<compile_context>
chip_gen: v5e
topology: v5e:2x2
jax: 0.10.0
libtpu: 0.0.40
codegen_flags: <defaults>
</compile_context>

<pallas_src>
import numpy as np
import jax
import jax.numpy as jnp
from jax.experimental import pallas as pl
from jax.experimental.pallas import tpu as pltpu

B = 2
L = 20                                  # branch lengths: 20 -> 10 -> 5 -> 3
IMG_C, IMG_H, IMG_W = 3, 16, 16
IMG_IN = IMG_C * IMG_H * IMG_W          # 768
IMG_FEATS = 1000                        # resnet stand-in output width
IMG_PAD = 1024                          # lane-padded projection width
NUM_CLASSES = 18
FC_IN = 3 * 128 * (L // 4 // 2 + 1) + IMG_FEATS   # 2152 == nn.Linear(2152, .)


# ---------------- host-built 0/1 selector matrices ---------------------------

def _pool_selectors(batch, l1, l2, l3):
    """Selector matrices implementing the three MaxPool1d stages."""
    r1, r2, r3 = batch * l1, batch * l2, batch * l3
    s2 = np.zeros((r2, r1 - 1), np.float32)     # MaxPool1d(2) on length l1
    s5 = np.zeros((r3, r2 - 1), np.float32)     # MaxPool1d(2) on length l2
    for b in range(batch):
        for i in range(l2):
            s2[b * l2 + i, b * l1 + 2 * i] = 1.0
        for i in range(l3):
            s5[b * l3 + i, b * l2 + 2 * i] = 1.0
    # MaxPool1d(2, padding=1) on length l3(=5) -> [x0, max(x1,x2), max(x3,x4)]
    t0 = np.zeros((batch, r3), np.float32)
    t1 = np.zeros((batch, r3 - 1), np.float32)
    t2 = np.zeros((batch, r3 - 1), np.float32)
    for b in range(batch):
        t0[b, b * l3 + 0] = 1.0
        t1[b, b * l3 + 1] = 1.0
        t2[b, b * l3 + 3] = 1.0
    return tuple(jnp.asarray(x) for x in (s2, s5, t0, t1, t2))


def _change3_selector(idx3, batch, l2, l3):
    """Row-gather (baked random indices) for change3, one matrix per branch."""
    m = np.zeros((3, batch * l3, batch * l2), np.float32)
    for j in range(3):
        for b in range(batch):
            for i, t in enumerate(idx3[j]):
                m[j, b * l3 + i, b * l2 + int(t)] = 1.0
    return jnp.asarray(m)


# ---------------- the fused kernel -------------------------------------------

def make_kernel(batch, l2, l3):
    f32 = jnp.float32

    def conv_same3(x, w_blk, bias, lb):
        # 'same' k=3 conv over row-blocks of length lb: one im2col matmul.
        r, c = x.shape
        pos = jax.lax.broadcasted_iota(jnp.int32, (r, 1), 0) % lb
        z = jnp.zeros((1, c), f32)
        prev = jnp.concatenate([z, x[:-1, :]], axis=0)
        prev = jnp.where(pos == 0, 0.0, prev)            # zero across sample edges
        nxt = jnp.concatenate([x[1:, :], z], axis=0)
        nxt = jnp.where(pos == lb - 1, 0.0, nxt)
        cols = jnp.concatenate([prev, x, nxt], axis=1)   # (r, 3c) lane concat
        return jnp.dot(cols, w_blk, preferred_element_type=f32) + bias

    def pool2(x, sel):
        # MaxPool1d(k=2, s=2): pairwise max + even-row selector matmul (MXU).
        m = jnp.maximum(x[:-1, :], x[1:, :])
        return jnp.dot(sel, m, preferred_element_type=f32)

    def kernel(x1col_ref, xg1_ref, xg2_ref, sel3_ref, s2_ref, s5_ref,
               t0_ref, t1_ref, t2_ref,
               w1_ref, b1_ref, w4_ref, b4_ref, w6_ref, b6_ref,
               bns_ref, bnh_ref, c1w_ref, c1b_ref, c2w_ref, c2b_ref,
               c3w_ref, c3b_ref, fcwf_ref, fcwi_ref, fcb_ref,
               img_ref, imgb_ref, imgw_hbm_ref,
               out_ref, imgw_vmem, dma_sem):
        # Start the big image-projection weight DMA (HBM -> VMEM scratch); it
        # overlaps with the entire feature-branch compute below.
        imgw_copy = pltpu.make_async_copy(imgw_hbm_ref, imgw_vmem, dma_sem)
        imgw_copy.start()

        x1col = x1col_ref[...]
        xg1, xg2 = xg1_ref[...], xg2_ref[...]
        sel3 = sel3_ref[...]
        s2, s5 = s2_ref[...], s5_ref[...]
        t0, t1, t2 = t0_ref[...], t1_ref[...], t2_ref[...]
        w1, b1 = w1_ref[...], b1_ref[...]
        w4, b4 = w4_ref[...], b4_ref[...]
        w6, b6 = w6_ref[...], b6_ref[...]
        bns, bnh = bns_ref[...], bnh_ref[...]
        c1w, c1b = c1w_ref[...], c1b_ref[...]
        c2w, c2b = c2w_ref[...], c2b_ref[...]
        c3w, c3b = c3w_ref[...], c3b_ref[...]
        fcwf, fcb = fcwf_ref[...], fcb_ref[...]

        o5_list, extra_list = [], []
        for j in range(3):
            # Conv1d(1->32, k=3, 'same') on the raw branch input: Ci=1, so the
            # 3 taps are VPU outer products on (B*L, 32) (no tiny matmuls).
            xc = x1col[j]                                         # (B*L, 3)
            o1 = b1[j]
            for k in range(3):
                o1 = o1 + xc[:, k:k + 1] * w1[j, k:k + 1, :]
            o1 = jax.nn.sigmoid(o1)                               # (B*L, 32)
            o2 = pool2(o1, s2)                                    # (B*l2, 32)
            o3 = o2 * bns[j] + bnh[j]                             # BatchNorm1d (eval)
            ch1 = xg1[j] * c1w + c1b                              # change1 (gathered)
            o4 = jax.nn.sigmoid(conv_same3(o3 + ch1, w4[j], b4[j], l2))   # (B*l2, 64)
            o5 = pool2(o4, s5)                                    # (B*l3, 64)
            ch2 = xg2[j] * c2w + c2b                              # change2 (gathered)
            g3 = jnp.dot(sel3[j], o3, preferred_element_type=f32)         # change3 gather
            ch3 = jnp.dot(g3, c3w, preferred_element_type=f32) + c3b      # (B*l3, 64)
            o5_list.append(o5)
            extra_list.append(ch2 + ch3)

        o5_sum = o5_list[0] + o5_list[1] + o5_list[2]             # cross-branch sum

        acc = jnp.zeros((batch, NUM_CLASSES), f32)
        for j in range(3):
            o6 = jax.nn.sigmoid(
                conv_same3(o5_sum + extra_list[j], w6[j], b6[j], l3))     # (B*l3, 128)
            # MaxPool1d(k=2, s=2, padding=1) on length 5 -> 3 positions.
            m = jnp.maximum(o6[:-1, :], o6[1:, :])
            p0 = jnp.dot(t0, o6, preferred_element_type=f32)      # (B, 128)
            p1 = jnp.dot(t1, m, preferred_element_type=f32)
            p2 = jnp.dot(t2, m, preferred_element_type=f32)
            feat = jnp.concatenate([p0, p1, p2], axis=1)          # (B, 384); dropout=id
            mn, mx = jnp.min(feat), jnp.max(feat)                 # global min-max (torch)
            featn = (feat - mn) * (1.0 / (mx - mn))
            acc = acc + jnp.dot(featn, fcwf[j], preferred_element_type=f32)

        # ---- image path: TODO(synk) resnet18 stand-in (linear projection) --
        imgw_copy.wait()
        proj = jnp.dot(img_ref[...], imgw_vmem[...],
                       preferred_element_type=f32) + imgb_ref[...]        # (B, 1024)
        valid = jax.lax.broadcasted_iota(jnp.int32, proj.shape, 1) < IMG_FEATS
        mn = jnp.min(jnp.where(valid, proj, jnp.inf))
        mx = jnp.max(jnp.where(valid, proj, -jnp.inf))
        projn = (proj - mn) * (1.0 / (mx - mn))
        acc = acc + jnp.dot(projn, fcwi_ref[...], preferred_element_type=f32)

        out_ref[...] = acc + fcb

    return kernel


# ---------------- parameters --------------------------------------------------

def init_params(key):
    ks = jax.random.split(key, 22)
    n = lambda k, shape, s=0.2: s * jax.random.normal(k, shape, jnp.float32)
    p = {}
    # conv weights in im2col layout: (branch, 3*Ci, Co); biases (branch, 1, Co)
    p["w1"] = n(ks[0], (3, 3, 32));    p["b1"] = n(ks[1], (3, 1, 32))
    p["w4"] = n(ks[2], (3, 96, 64));   p["b4"] = n(ks[3], (3, 1, 64))
    p["w6"] = n(ks[4], (3, 192, 128)); p["b6"] = n(ks[5], (3, 1, 128))
    gamma = 1.0 + n(ks[6], (3, 1, 32))
    beta = n(ks[7], (3, 1, 32))
    rmean = n(ks[8], (3, 1, 32))
    rvar = jax.random.uniform(ks[9], (3, 1, 32), jnp.float32, 0.5, 1.5)
    scale = gamma * jax.lax.rsqrt(rvar + 1e-5)
    p["bn_scale"] = scale
    p["bn_shift"] = beta - rmean * scale
    p["c1w"] = n(ks[10], (1, 32)); p["c1b"] = n(ks[11], (1, 32))
    p["c2w"] = n(ks[12], (1, 64)); p["c2b"] = n(ks[13], (1, 64))
    p["c3w"] = n(ks[14], (32, 64)); p["c3b"] = n(ks[15], (1, 64))
    imgw = n(ks[16], (IMG_IN, IMG_FEATS), 0.05)
    p["img_w"] = jnp.pad(imgw, ((0, 0), (0, IMG_PAD - IMG_FEATS)))     # lane-pad to 1024
    imgb = n(ks[17], (1, IMG_FEATS))
    p["img_b"] = jnp.pad(imgb, ((0, 0), (0, IMG_PAD - IMG_FEATS)))
    p["fcw_feat"] = n(ks[18], (3, 3 * 128, NUM_CLASSES), 0.05)
    fcwi = n(ks[19], (IMG_FEATS, NUM_CLASSES), 0.05)
    p["fcw_img"] = jnp.pad(fcwi, ((0, IMG_PAD - IMG_FEATS), (0, 0)))   # zero rows for pad cols
    p["fc_b"] = n(ks[20], (1, NUM_CLASSES))
    return p


# ---------------- forward ------------------------------------------------------

def forward(params, feature1, feature2, feature3, image, idx1, idx2, idx3):
    bn = feature1.shape[0]
    ln = feature1.shape[2]
    l2, l3 = ln // 2, ln // 4

    # Host-side input packing only (layout of the raw inputs, no model compute).
    feats = jnp.stack([feature1[:, 0, :], feature2[:, 0, :], feature3[:, 0, :]], 0)  # (3,B,L)
    xpad = jnp.pad(feats, ((0, 0), (0, 0), (1, 1)))
    x1col = jnp.stack([xpad[:, :, k:k + ln] for k in range(3)], axis=-1)             # (3,B,L,3)
    x1col = x1col.reshape(3, bn * ln, 3)

    def _gather(idx):
        g = jnp.stack([feats[j][:, jnp.array(idx[j])] for j in range(3)], 0)  # (3,B,n)
        return g.reshape(3, bn * len(idx[0]), 1)

    xg1 = _gather(idx1)                                      # (3, B*10, 1)
    xg2 = _gather(idx2)                                      # (3, B*5, 1)
    sel3 = _change3_selector(idx3, bn, l2, l3)               # (3, B*5, B*10)
    s2, s5, t0, t1, t2 = _pool_selectors(bn, ln, l2, l3)
    image_flat = image.reshape(bn, -1)                       # (B, 768)

    vmem = pl.BlockSpec(memory_space=pltpu.MemorySpace.VMEM)
    anyspec = pl.BlockSpec(memory_space=pl.ANY)

    out = pl.pallas_call(
        make_kernel(bn, l2, l3),
        out_shape=jax.ShapeDtypeStruct((bn, NUM_CLASSES), jnp.float32),
        in_specs=[vmem] * 28 + [anyspec],
        out_specs=vmem,
        scratch_shapes=[pltpu.VMEM((IMG_IN, IMG_PAD), jnp.float32),
                        pltpu.SemaphoreType.DMA],
    )(x1col, xg1, xg2, sel3, s2, s5, t0, t1, t2,
      params["w1"], params["b1"], params["w4"], params["b4"],
      params["w6"], params["b6"], params["bn_scale"], params["bn_shift"],
      params["c1w"], params["c1b"], params["c2w"], params["c2b"],
      params["c3w"], params["c3b"],
      params["fcw_feat"], params["fcw_img"], params["fc_b"],
      image_flat, params["img_b"],
      params["img_w"])
    return out


if __name__ == "__main__":
    key = jax.random.PRNGKey(0)
    kf1, kf2, kf3, kimg, kp, kidx = jax.random.split(key, 6)

    feature1 = jax.random.normal(kf1, (B, 1, L), jnp.float32)
    feature2 = jax.random.normal(kf2, (B, 1, L), jnp.float32)
    feature3 = jax.random.normal(kf3, (B, 1, L), jnp.float32)
    image = jax.random.normal(kimg, (B, IMG_C, IMG_H, IMG_W), jnp.float32)

    params = init_params(kp)

    # Deterministic replacements for torch.randint (static, baked in).
    iks = jax.random.split(kidx, 9)
    idx1 = tuple(tuple(int(v) for v in jax.device_get(
        jax.random.randint(iks[j], (10,), 0, L))) for j in range(3))
    idx2 = tuple(tuple(int(v) for v in jax.device_get(
        jax.random.randint(iks[3 + j], (5,), 0, L))) for j in range(3))
    idx3 = tuple(tuple(int(v) for v in jax.device_get(
        jax.random.randint(iks[6 + j], (5,), 0, L // 2))) for j in range(3))

    out = forward(params, feature1, feature2, feature3, image, idx1, idx2, idx3)
    out = jax.block_until_ready(out)
    assert out.shape == (B, NUM_CLASSES) and out.dtype == jnp.float32
    print("KERNEL_OK")
</pallas_src>

<mosaic_0001>
module attributes {stable_mosaic.version = 11 : i64} {
  func.func @kernel(%arg0: memref<3x40x3xf32, #tpu.memory_space<vmem>>, %arg1: memref<3x20x1xf32, #tpu.memory_space<vmem>>, %arg2: memref<3x10x1xf32, #tpu.memory_space<vmem>>, %arg3: memref<3x10x20xf32, #tpu.memory_space<vmem>>, %arg4: memref<20x39xf32, #tpu.memory_space<vmem>>, %arg5: memref<10x19xf32, #tpu.memory_space<vmem>>, %arg6: memref<2x10xf32, #tpu.memory_space<vmem>>, %arg7: memref<2x9xf32, #tpu.memory_space<vmem>>, %arg8: memref<2x9xf32, #tpu.memory_space<vmem>>, %arg9: memref<3x3x32xf32, #tpu.memory_space<vmem>>, %arg10: memref<3x1x32xf32, #tpu.memory_space<vmem>>, %arg11: memref<3x96x64xf32, #tpu.memory_space<vmem>>, %arg12: memref<3x1x64xf32, #tpu.memory_space<vmem>>, %arg13: memref<3x192x128xf32, #tpu.memory_space<vmem>>, %arg14: memref<3x1x128xf32, #tpu.memory_space<vmem>>, %arg15: memref<3x1x32xf32, #tpu.memory_space<vmem>>, %arg16: memref<3x1x32xf32, #tpu.memory_space<vmem>>, %arg17: memref<1x32xf32, #tpu.memory_space<vmem>>, %arg18: memref<1x32xf32, #tpu.memory_space<vmem>>, %arg19: memref<1x64xf32, #tpu.memory_space<vmem>>, %arg20: memref<1x64xf32, #tpu.memory_space<vmem>>, %arg21: memref<32x64xf32, #tpu.memory_space<vmem>>, %arg22: memref<1x64xf32, #tpu.memory_space<vmem>>, %arg23: memref<3x384x18xf32, #tpu.memory_space<vmem>>, %arg24: memref<1024x18xf32, #tpu.memory_space<vmem>>, %arg25: memref<1x18xf32, #tpu.memory_space<vmem>>, %arg26: memref<2x768xf32, #tpu.memory_space<vmem>>, %arg27: memref<1x1024xf32, #tpu.memory_space<vmem>>, %arg28: memref<768x1024xf32, #tpu.memory_space<any>>, %arg29: memref<2x18xf32, #tpu.memory_space<vmem>>, %arg30: memref<768x1024xf32, #tpu.memory_space<vmem>>, %arg31: memref<!tpu.dma_semaphore, #tpu.memory_space<semaphore_mem>>) attributes {dimension_semantics = [], scalar_prefetch = 0 : i64, scratch_operands = 2 : i64, tpu.core_type = #tpu.core_type<tc>} {
    tpu.enqueue_dma source(%arg28 : memref<768x1024xf32, #tpu.memory_space<any>>) target(%arg30 : memref<768x1024xf32, #tpu.memory_space<vmem>>) target_semaphore(%arg31 : memref<!tpu.dma_semaphore, #tpu.memory_space<semaphore_mem>>)
    %c0 = arith.constant 0 : index
    %c0_0 = arith.constant 0 : index
    %c0_1 = arith.constant 0 : index
    %0 = vector.load %arg0[%c0, %c0_0, %c0_1] : memref<3x40x3xf32, #tpu.memory_space<vmem>>, vector<3x40x3xf32>
    %c0_2 = arith.constant 0 : index
    %c0_3 = arith.constant 0 : index
    %c0_4 = arith.constant 0 : index
    %1 = vector.load %arg1[%c0_2, %c0_3, %c0_4] : memref<3x20x1xf32, #tpu.memory_space<vmem>>, vector<3x20x1xf32>
    %c0_5 = arith.constant 0 : index
    %c0_6 = arith.constant 0 : index
    %c0_7 = arith.constant 0 : index
    %2 = vector.load %arg2[%c0_5, %c0_6, %c0_7] : memref<3x10x1xf32, #tpu.memory_space<vmem>>, vector<3x10x1xf32>
    %c0_8 = arith.constant 0 : index
    %c0_9 = arith.constant 0 : index
    %c0_10 = arith.constant 0 : index
    %3 = vector.load %arg3[%c0_8, %c0_9, %c0_10] : memref<3x10x20xf32, #tpu.memory_space<vmem>>, vector<3x10x20xf32>
    %c0_11 = arith.constant 0 : index
    %c0_12 = arith.constant 0 : index
    %4 = vector.load %arg4[%c0_11, %c0_12] : memref<20x39xf32, #tpu.memory_space<vmem>>, vector<20x39xf32>
    %c0_13 = arith.constant 0 : index
    %c0_14 = arith.constant 0 : index
    %5 = vector.load %arg5[%c0_13, %c0_14] : memref<10x19xf32, #tpu.memory_space<vmem>>, vector<10x19xf32>
    %c0_15 = arith.constant 0 : index
    %c0_16 = arith.constant 0 : index
    %6 = vector.load %arg6[%c0_15, %c0_16] : memref<2x10xf32, #tpu.memory_space<vmem>>, vector<2x10xf32>
    %c0_17 = arith.constant 0 : index
    %c0_18 = arith.constant 0 : index
    %7 = vector.load %arg7[%c0_17, %c0_18] : memref<2x9xf32, #tpu.memory_space<vmem>>, vector<2x9xf32>
    %c0_19 = arith.constant 0 : index
    %c0_20 = arith.constant 0 : index
    %8 = vector.load %arg8[%c0_19, %c0_20] : memref<2x9xf32, #tpu.memory_space<vmem>>, vector<2x9xf32>
    %c0_21 = arith.constant 0 : index
    %c0_22 = arith.constant 0 : index
    %c0_23 = arith.constant 0 : index
    %9 = vector.load %arg9[%c0_21, %c0_22, %c0_23] : memref<3x3x32xf32, #tpu.memory_space<vmem>>, vector<3x3x32xf32>
    %c0_24 = arith.constant 0 : index
    %c0_25 = arith.constant 0 : index
    %c0_26 = arith.constant 0 : index
    %10 = vector.load %arg10[%c0_24, %c0_25, %c0_26] : memref<3x1x32xf32, #tpu.memory_space<vmem>>, vector<3x1x32xf32>
    %c0_27 = arith.constant 0 : index
    %c0_28 = arith.constant 0 : index
    %c0_29 = arith.constant 0 : index
    %11 = vector.load %arg11[%c0_27, %c0_28, %c0_29] : memref<3x96x64xf32, #tpu.memory_space<vmem>>, vector<3x96x64xf32>
    %c0_30 = arith.constant 0 : index
    %c0_31 = arith.constant 0 : index
    %c0_32 = arith.constant 0 : index
    %12 = vector.load %arg12[%c0_30, %c0_31, %c0_32] : memref<3x1x64xf32, #tpu.memory_space<vmem>>, vector<3x1x64xf32>
    %c0_33 = arith.constant 0 : index
    %c0_34 = arith.constant 0 : index
    %c0_35 = arith.constant 0 : index
    %13 = vector.load %arg13[%c0_33, %c0_34, %c0_35] : memref<3x192x128xf32, #tpu.memory_space<vmem>>, vector<3x192x128xf32>
    %c0_36 = arith.constant 0 : index
    %c0_37 = arith.constant 0 : index
    %c0_38 = arith.constant 0 : index
    %14 = vector.load %arg14[%c0_36, %c0_37, %c0_38] : memref<3x1x128xf32, #tpu.memory_space<vmem>>, vector<3x1x128xf32>
    %c0_39 = arith.constant 0 : index
    %c0_40 = arith.constant 0 : index
    %c0_41 = arith.constant 0 : index
    %15 = vector.load %arg15[%c0_39, %c0_40, %c0_41] : memref<3x1x32xf32, #tpu.memory_space<vmem>>, vector<3x1x32xf32>
    %c0_42 = arith.constant 0 : index
    %c0_43 = arith.constant 0 : index
    %c0_44 = arith.constant 0 : index
    %16 = vector.load %arg16[%c0_42, %c0_43, %c0_44] : memref<3x1x32xf32, #tpu.memory_space<vmem>>, vector<3x1x32xf32>
    %c0_45 = arith.constant 0 : index
    %c0_46 = arith.constant 0 : index
    %17 = vector.load %arg17[%c0_45, %c0_46] : memref<1x32xf32, #tpu.memory_space<vmem>>, vector<1x32xf32>
    %c0_47 = arith.constant 0 : index
    %c0_48 = arith.constant 0 : index
    %18 = vector.load %arg18[%c0_47, %c0_48] : memref<1x32xf32, #tpu.memory_space<vmem>>, vector<1x32xf32>
    %c0_49 = arith.constant 0 : index
    %c0_50 = arith.constant 0 : index
    %19 = vector.load %arg19[%c0_49, %c0_50] : memref<1x64xf32, #tpu.memory_space<vmem>>, vector<1x64xf32>
    %c0_51 = arith.constant 0 : index
    %c0_52 = arith.constant 0 : index
    %20 = vector.load %arg20[%c0_51, %c0_52] : memref<1x64xf32, #tpu.memory_space<vmem>>, vector<1x64xf32>
    %c0_53 = arith.constant 0 : index
    %c0_54 = arith.constant 0 : index
    %21 = vector.load %arg21[%c0_53, %c0_54] : memref<32x64xf32, #tpu.memory_space<vmem>>, vector<32x64xf32>
    %c0_55 = arith.constant 0 : index
    %c0_56 = arith.constant 0 : index
    %22 = vector.load %arg22[%c0_55, %c0_56] : memref<1x64xf32, #tpu.memory_space<vmem>>, vector<1x64xf32>
    %c0_57 = arith.constant 0 : index
    %c0_58 = arith.constant 0 : index
    %c0_59 = arith.constant 0 : index
    %23 = vector.load %arg23[%c0_57, %c0_58, %c0_59] : memref<3x384x18xf32, #tpu.memory_space<vmem>>, vector<3x384x18xf32>
    %c0_60 = arith.constant 0 : index
    %c0_61 = arith.constant 0 : index
    %24 = vector.load %arg25[%c0_60, %c0_61] : memref<1x18xf32, #tpu.memory_space<vmem>>, vector<1x18xf32>
    %25 = vector.extract_strided_slice %0 {offsets = [0, 0, 0], sizes = [1, 40, 3], strides = [1, 1, 1]} : vector<3x40x3xf32> to vector<1x40x3xf32>
    %26 = vector.shape_cast %25 : vector<1x40x3xf32> to vector<40x3xf32>
    %27 = vector.extract_strided_slice %10 {offsets = [0, 0, 0], sizes = [1, 1, 32], strides = [1, 1, 1]} : vector<3x1x32xf32> to vector<1x1x32xf32>
    %28 = vector.shape_cast %27 : vector<1x1x32xf32> to vector<1x32xf32>
    %29 = vector.extract_strided_slice %26 {offsets = [0, 0], sizes = [40, 1], strides = [1, 1]} : vector<40x3xf32> to vector<40x1xf32>
    %30 = vector.extract_strided_slice %9 {offsets = [0, 0, 0], sizes = [1, 1, 32], strides = [1, 1, 1]} : vector<3x3x32xf32> to vector<1x1x32xf32>
    %31 = vector.shape_cast %30 : vector<1x1x32xf32> to vector<1x32xf32>
    %32 = vector.broadcast %29 : vector<40x1xf32> to vector<40x32xf32>
    %33 = vector.broadcast %31 : vector<1x32xf32> to vector<40x32xf32>
    %34 = arith.mulf %32, %33 : vector<40x32xf32>
    %35 = vector.broadcast %28 : vector<1x32xf32> to vector<40x32xf32>
    %36 = arith.addf %35, %34 : vector<40x32xf32>
    %37 = vector.extract_strided_slice %26 {offsets = [0, 1], sizes = [40, 1], strides = [1, 1]} : vector<40x3xf32> to vector<40x1xf32>
    %38 = vector.extract_strided_slice %9 {offsets = [0, 1, 0], sizes = [1, 1, 32], strides = [1, 1, 1]} : vector<3x3x32xf32> to vector<1x1x32xf32>
    %39 = vector.shape_cast %38 : vector<1x1x32xf32> to vector<1x32xf32>
    %40 = vector.broadcast %37 : vector<40x1xf32> to vector<40x32xf32>
    %41 = vector.broadcast %39 : vector<1x32xf32> to vector<40x32xf32>
    %42 = arith.mulf %40, %41 : vector<40x32xf32>
    %43 = arith.addf %36, %42 : vector<40x32xf32>
    %44 = vector.extract_strided_slice %26 {offsets = [0, 2], sizes = [40, 1], strides = [1, 1]} : vector<40x3xf32> to vector<40x1xf32>
    %45 = vector.extract_strided_slice %9 {offsets = [0, 2, 0], sizes = [1, 1, 32], strides = [1, 1, 1]} : vector<3x3x32xf32> to vector<1x1x32xf32>
    %46 = vector.shape_cast %45 : vector<1x1x32xf32> to vector<1x32xf32>
    %47 = vector.broadcast %44 : vector<40x1xf32> to vector<40x32xf32>
    %48 = vector.broadcast %46 : vector<1x32xf32> to vector<40x32xf32>
    %49 = arith.mulf %47, %48 : vector<40x32xf32>
    %50 = arith.addf %43, %49 : vector<40x32xf32>
    %51 = arith.negf %50 : vector<40x32xf32>
    %52 = math.exp %51 : vector<40x32xf32>
    %cst = arith.constant 1.000000e+00 : f32
    %53 = vector.broadcast %cst : f32 to vector<40x32xf32>
    %54 = arith.addf %53, %52 : vector<40x32xf32>
    %55 = arith.divf %53, %54 : vector<40x32xf32>
    %56 = vector.extract_strided_slice %55 {offsets = [0, 0], sizes = [39, 32], strides = [1, 1]} : vector<40x32xf32> to vector<39x32xf32>
    %57 = vector.extract_strided_slice %55 {offsets = [1, 0], sizes = [39, 32], strides = [1, 1]} : vector<40x32xf32> to vector<39x32xf32>
    %58 = arith.maximumf %56, %57 : vector<39x32xf32>
    %cst_62 = arith.constant dense<0.000000e+00> : vector<20x32xf32>
    %59 = tpu.matmul %4, %58, %cst_62 {dimension_numbers = #tpu.dot_dimension_numbers<[1], [0], [0], [1], [0, 0, 1, 1], [], []>} : vector<20x39xf32>, vector<39x32xf32>, vector<20x32xf32> -> vector<20x32xf32>
    %60 = vector.extract_strided_slice %15 {offsets = [0, 0, 0], sizes = [1, 1, 32], strides = [1, 1, 1]} : vector<3x1x32xf32> to vector<1x1x32xf32>
    %61 = vector.shape_cast %60 : vector<1x1x32xf32> to vector<1x32xf32>
    %62 = vector.broadcast %61 : vector<1x32xf32> to vector<20x32xf32>
    %63 = arith.mulf %59, %62 : vector<20x32xf32>
    %64 = vector.extract_strided_slice %16 {offsets = [0, 0, 0], sizes = [1, 1, 32], strides = [1, 1, 1]} : vector<3x1x32xf32> to vector<1x1x32xf32>
    %65 = vector.shape_cast %64 : vector<1x1x32xf32> to vector<1x32xf32>
    %66 = vector.broadcast %65 : vector<1x32xf32> to vector<20x32xf32>
    %67 = arith.addf %63, %66 : vector<20x32xf32>
    %68 = vector.extract_strided_slice %1 {offsets = [0, 0, 0], sizes = [1, 20, 1], strides = [1, 1, 1]} : vector<3x20x1xf32> to vector<1x20x1xf32>
    %69 = vector.shape_cast %68 : vector<1x20x1xf32> to vector<20x1xf32>
    %70 = vector.broadcast %69 : vector<20x1xf32> to vector<20x32xf32>
    %71 = vector.broadcast %17 : vector<1x32xf32> to vector<20x32xf32>
    %72 = arith.mulf %70, %71 : vector<20x32xf32>
    %73 = vector.broadcast %18 : vector<1x32xf32> to vector<20x32xf32>
    %74 = arith.addf %72, %73 : vector<20x32xf32>
    %75 = arith.addf %67, %74 : vector<20x32xf32>
    %76 = vector.extract_strided_slice %11 {offsets = [0, 0, 0], sizes = [1, 96, 64], strides = [1, 1, 1]} : vector<3x96x64xf32> to vector<1x96x64xf32>
    %77 = vector.shape_cast %76 : vector<1x96x64xf32> to vector<96x64xf32>
    %78 = vector.extract_strided_slice %12 {offsets = [0, 0, 0], sizes = [1, 1, 64], strides = [1, 1, 1]} : vector<3x1x64xf32> to vector<1x1x64xf32>
    %79 = vector.shape_cast %78 : vector<1x1x64xf32> to vector<1x64xf32>
    %80 = tpu.iota {dimensions = array<i32: 0>} : vector<20x1xi32>
    %c10_i32 = arith.constant 10 : i32
    %c0_i32 = arith.constant 0 : i32
    %81 = arith.cmpi eq, %c10_i32, %c0_i32 : i32
    %c1_i32 = arith.constant 1 : i32
    %82 = arith.select %81, %c1_i32, %c10_i32 : i32
    %83 = vector.broadcast %82 : i32 to vector<20x1xi32>
    %84 = arith.remsi %80, %83 : vector<20x1xi32>
    %c0_i32_63 = arith.constant 0 : i32
    %85 = vector.broadcast %c0_i32_63 : i32 to vector<20x1xi32>
    %86 = arith.cmpi ne, %84, %85 : vector<20x1xi32>
    %c0_i32_64 = arith.constant 0 : i32
    %87 = vector.broadcast %c0_i32_64 : i32 to vector<20x1xi32>
    %88 = arith.cmpi slt, %84, %87 : vector<20x1xi32>
    %c0_i32_65 = arith.constant 0 : i32
    %89 = arith.cmpi slt, %82, %c0_i32_65 : i32
    %90 = vector.broadcast %89 : i1 to vector<20x1xi1>
    %91 = vector.broadcast %90 : vector<20x1xi1> to vector<20x1xi1>
    %92 = arith.xori %88, %91 : vector<20x1xi1>
    %93 = arith.andi %92, %86 : vector<20x1xi1>
    %94 = vector.broadcast %82 : i32 to vector<20x1xi32>
    %95 = arith.addi %84, %94 : vector<20x1xi32>
    %96 = arith.select %93, %95, %84 : vector<20x1xi1>, vector<20x1xi32>
    %cst_66 = arith.constant 0.000000e+00 : f32
    %97 = vector.broadcast %cst_66 : f32 to vector<1x32xf32>
    %98 = vector.extract_strided_slice %75 {offsets = [0, 0], sizes = [19, 32], strides = [1, 1]} : vector<20x32xf32> to vector<19x32xf32>
    %99 = tpu.concatenate %97, %98 in 0 : vector<1x32xf32>, vector<19x32xf32> -> vector<20x32xf32>
    %c0_i32_67 = arith.constant 0 : i32
    %100 = vector.broadcast %c0_i32_67 : i32 to vector<20x1xi32>
    %101 = arith.cmpi eq, %96, %100 : vector<20x1xi32>
    %cst_68 = arith.constant 0.000000e+00 : f32
    %102 = vector.shape_cast %101 : vector<20x1xi1> to vector<20x1xi1>
    %103 = vector.broadcast %102 : vector<20x1xi1> to vector<20x32xi1>
    %104 = vector.broadcast %cst_68 : f32 to vector<20x32xf32>
    %105 = arith.select %103, %104, %99 : vector<20x32xi1>, vector<20x32xf32>
    %106 = vector.extract_strided_slice %75 {offsets = [1, 0], sizes = [19, 32], strides = [1, 1]} : vector<20x32xf32> to vector<19x32xf32>
    %107 = tpu.concatenate %106, %97 in 0 : vector<19x32xf32>, vector<1x32xf32> -> vector<20x32xf32>
    %c9_i32 = arith.constant 9 : i32
    %108 = vector.broadcast %c9_i32 : i32 to vector<20x1xi32>
    %109 = arith.cmpi eq, %96, %108 : vector<20x1xi32>
    %cst_69 = arith.constant 0.000000e+00 : f32
    %110 = vector.shape_cast %109 : vector<20x1xi1> to vector<20x1xi1>
    %111 = vector.broadcast %110 : vector<20x1xi1> to vector<20x32xi1>
    %112 = vector.broadcast %cst_69 : f32 to vector<20x32xf32>
    %113 = arith.select %111, %112, %107 : vector<20x32xi1>, vector<20x32xf32>
    %114 = tpu.concatenate %105, %75, %113 in 1 : vector<20x32xf32>, vector<20x32xf32>, vector<20x32xf32> -> vector<20x96xf32>
    %cst_70 = arith.constant dense<0.000000e+00> : vector<20x64xf32>
    %115 = tpu.matmul %114, %77, %cst_70 {dimension_numbers = #tpu.dot_dimension_numbers<[1], [0], [0], [1], [0, 0, 1, 1], [], []>} : vector<20x96xf32>, vector<96x64xf32>, vector<20x64xf32> -> vector<20x64xf32>
    %116 = vector.broadcast %79 : vector<1x64xf32> to vector<20x64xf32>
    %117 = arith.addf %115, %116 : vector<20x64xf32>
    %118 = arith.negf %117 : vector<20x64xf32>
    %119 = math.exp %118 : vector<20x64xf32>
    %cst_71 = arith.constant 1.000000e+00 : f32
    %120 = vector.broadcast %cst_71 : f32 to vector<20x64xf32>
    %121 = arith.addf %120, %119 : vector<20x64xf32>
    %122 = arith.divf %120, %121 : vector<20x64xf32>
    %123 = vector.extract_strided_slice %122 {offsets = [0, 0], sizes = [19, 64], strides = [1, 1]} : vector<20x64xf32> to vector<19x64xf32>
    %124 = vector.extract_strided_slice %122 {offsets = [1, 0], sizes = [19, 64], strides = [1, 1]} : vector<20x64xf32> to vector<19x64xf32>
    %125 = arith.maximumf %123, %124 : vector<19x64xf32>
    %cst_72 = arith.constant dense<0.000000e+00> : vector<10x64xf32>
    %126 = tpu.matmul %5, %125, %cst_72 {dimension_numbers = #tpu.dot_dimension_numbers<[1], [0], [0], [1], [0, 0, 1, 1], [], []>} : vector<10x19xf32>, vector<19x64xf32>, vector<10x64xf32> -> vector<10x64xf32>
    %127 = vector.extract_strided_slice %2 {offsets = [0, 0, 0], sizes = [1, 10, 1], strides = [1, 1, 1]} : vector<3x10x1xf32> to vector<1x10x1xf32>
    %128 = vector.shape_cast %127 : vector<1x10x1xf32> to vector<10x1xf32>
    %129 = vector.broadcast %128 : vector<10x1xf32> to vector<10x64xf32>
    %130 = vector.broadcast %19 : vector<1x64xf32> to vector<10x64xf32>
    %131 = arith.mulf %129, %130 : vector<10x64xf32>
    %132 = vector.broadcast %20 : vector<1x64xf32> to vector<10x64xf32>
    %133 = arith.addf %131, %132 : vector<10x64xf32>
    %134 = vector.extract_strided_slice %3 {offsets = [0, 0, 0], sizes = [1, 10, 20], strides = [1, 1, 1]} : vector<3x10x20xf32> to vector<1x10x20xf32>
    %135 = vector.shape_cast %134 : vector<1x10x20xf32> to vector<10x20xf32>
    %cst_73 = arith.constant dense<0.000000e+00> : vector<10x32xf32>
    %136 = tpu.matmul %135, %67, %cst_73 {dimension_numbers = #tpu.dot_dimension_numbers<[1], [0], [0], [1], [0, 0, 1, 1], [], []>} : vector<10x20xf32>, vector<20x32xf32>, vector<10x32xf32> -> vector<10x32xf32>
    %cst_74 = arith.constant dense<0.000000e+00> : vector<10x64xf32>
    %137 = tpu.matmul %136, %21, %cst_74 {dimension_numbers = #tpu.dot_dimension_numbers<[1], [0], [0], [1], [0, 0, 1, 1], [], []>} : vector<10x32xf32>, vector<32x64xf32>, vector<10x64xf32> -> vector<10x64xf32>
    %138 = vector.broadcast %22 : vector<1x64xf32> to vector<10x64xf32>
    %139 = arith.addf %137, %138 : vector<10x64xf32>
    %140 = arith.addf %133, %139 : vector<10x64xf32>
    %141 = vector.extract_strided_slice %0 {offsets = [1, 0, 0], sizes = [1, 40, 3], strides = [1, 1, 1]} : vector<3x40x3xf32> to vector<1x40x3xf32>
    %142 = vector.shape_cast %141 : vector<1x40x3xf32> to vector<40x3xf32>
    %143 = vector.extract_strided_slice %10 {offsets = [1, 0, 0], sizes = [1, 1, 32], strides = [1, 1, 1]} : vector<3x1x32xf32> to vector<1x1x32xf32>
    %144 = vector.shape_cast %143 : vector<1x1x32xf32> to vector<1x32xf32>
    %145 = vector.extract_strided_slice %142 {offsets = [0, 0], sizes = [40, 1], strides = [1, 1]} : vector<40x3xf32> to vector<40x1xf32>
    %146 = vector.extract_strided_slice %9 {offsets = [1, 0, 0], sizes = [1, 1, 32], strides = [1, 1, 1]} : vector<3x3x32xf32> to vector<1x1x32xf32>
    %147 = vector.shape_cast %146 : vector<1x1x32xf32> to vector<1x32xf32>
    %148 = vector.broadcast %145 : vector<40x1xf32> to vector<40x32xf32>
    %149 = vector.broadcast %147 : vector<1x32xf32> to vector<40x32xf32>
    %150 = arith.mulf %148, %149 : vector<40x32xf32>
    %151 = vector.broadcast %144 : vector<1x32xf32> to vector<40x32xf32>
    %152 = arith.addf %151, %150 : vector<40x32xf32>
    %153 = vector.extract_strided_slice %142 {offsets = [0, 1], sizes = [40, 1], strides = [1, 1]} : vector<40x3xf32> to vector<40x1xf32>
    %154 = vector.extract_strided_slice %9 {offsets = [1, 1, 0], sizes = [1, 1, 32], strides = [1, 1, 1]} : vector<3x3x32xf32> to vector<1x1x32xf32>
    %155 = vector.shape_cast %154 : vector<1x1x32xf32> to vector<1x32xf32>
    %156 = vector.broadcast %153 : vector<40x1xf32> to vector<40x32xf32>
    %157 = vector.broadcast %155 : vector<1x32xf32> to vector<40x32xf32>
    %158 = arith.mulf %156, %157 : vector<40x32xf32>
    %159 = arith.addf %152, %158 : vector<40x32xf32>
    %160 = vector.extract_strided_slice %142 {offsets = [0, 2], sizes = [40, 1], strides = [1, 1]} : vector<40x3xf32> to vector<40x1xf32>
    %161 = vector.extract_strided_slice %9 {offsets = [1, 2, 0], sizes = [1, 1, 32], strides = [1, 1, 1]} : vector<3x3x32xf32> to vector<1x1x32xf32>
    %162 = vector.shape_cast %161 : vector<1x1x32xf32> to vector<1x32xf32>
    %163 = vector.broadcast %160 : vector<40x1xf32> to vector<40x32xf32>
    %164 = vector.broadcast %162 : vector<1x32xf32> to vector<40x32xf32>
    %165 = arith.mulf %163, %164 : vector<40x32xf32>
    %166 = arith.addf %159, %165 : vector<40x32xf32>
    %167 = arith.negf %166 : vector<40x32xf32>
    %168 = math.exp %167 : vector<40x32xf32>
    %cst_75 = arith.constant 1.000000e+00 : f32
    %169 = vector.broadcast %cst_75 : f32 to vector<40x32xf32>
    %170 = arith.addf %169, %168 : vector<40x32xf32>
    %171 = arith.divf %169, %170 : vector<40x32xf32>
    %172 = vector.extract_strided_slice %171 {offsets = [0, 0], sizes = [39, 32], strides = [1, 1]} : vector<40x32xf32> to vector<39x32xf32>
    %173 = vector.extract_strided_slice %171 {offsets = [1, 0], sizes = [39, 32], strides = [1, 1]} : vector<40x32xf32> to vector<39x32xf32>
    %174 = arith.maximumf %172, %173 : vector<39x32xf32>
    %cst_76 = arith.constant dense<0.000000e+00> : vector<20x32xf32>
    %175 = tpu.matmul %4, %174, %cst_76 {dimension_numbers = #tpu.dot_dimension_numbers<[1], [0], [0], [1], [0, 0, 1, 1], [], []>} : vector<20x39xf32>, vector<39x32xf32>, vector<20x32xf32> -> vector<20x32xf32>
    %176 = vector.extract_strided_slice %15 {offsets = [1, 0, 0], sizes = [1, 1, 32], strides = [1, 1, 1]} : vector<3x1x32xf32> to vector<1x1x32xf32>
    %177 = vector.shape_cast %176 : vector<1x1x32xf32> to vector<1x32xf32>
    %178 = vector.broadcast %177 : vector<1x32xf32> to vector<20x32xf32>
    %179 = arith.mulf %175, %178 : vector<20x32xf32>
    %180 = vector.extract_strided_slice %16 {offsets = [1, 0, 0], sizes = [1, 1, 32], strides = [1, 1, 1]} : vector<3x1x32xf32> to vector<1x1x32xf32>
    %181 = vector.shape_cast %180 : vector<1x1x32xf32> to vector<1x32xf32>
    %182 = vector.broadcast %181 : vector<1x32xf32> to vector<20x32xf32>
    %183 = arith.addf %179, %182 : vector<20x32xf32>
    %184 = vector.extract_strided_slice %1 {offsets = [1, 0, 0], sizes = [1, 20, 1], strides = [1, 1, 1]} : vector<3x20x1xf32> to vector<1x20x1xf32>
    %185 = vector.shape_cast %184 : vector<1x20x1xf32> to vector<20x1xf32>
    %186 = vector.broadcast %185 : vector<20x1xf32> to vector<20x32xf32>
    %187 = vector.broadcast %17 : vector<1x32xf32> to vector<20x32xf32>
    %188 = arith.mulf %186, %187 : vector<20x32xf32>
    %189 = vector.broadcast %18 : vector<1x32xf32> to vector<20x32xf32>
    %190 = arith.addf %188, %189 : vector<20x32xf32>
    %191 = arith.addf %183, %190 : vector<20x32xf32>
    %192 = vector.extract_strided_slice %11 {offsets = [1, 0, 0], sizes = [1, 96, 64], strides = [1, 1, 1]} : vector<3x96x64xf32> to vector<1x96x64xf32>
    %193 = vector.shape_cast %192 : vector<1x96x64xf32> to vector<96x64xf32>
    %194 = vector.extract_strided_slice %12 {offsets = [1, 0, 0], sizes = [1, 1, 64], strides = [1, 1, 1]} : vector<3x1x64xf32> to vector<1x1x64xf32>
    %195 = vector.shape_cast %194 : vector<1x1x64xf32> to vector<1x64xf32>
    %196 = tpu.iota {dimensions = array<i32: 0>} : vector<20x1xi32>
    %c10_i32_77 = arith.constant 10 : i32
    %c0_i32_78 = arith.constant 0 : i32
    %197 = arith.cmpi eq, %c10_i32_77, %c0_i32_78 : i32
    %c1_i32_79 = arith.constant 1 : i32
    %198 = arith.select %197, %c1_i32_79, %c10_i32_77 : i32
    %199 = vector.broadcast %198 : i32 to vector<20x1xi32>
    %200 = arith.remsi %196, %199 : vector<20x1xi32>
    %c0_i32_80 = arith.constant 0 : i32
    %201 = vector.broadcast %c0_i32_80 : i32 to vector<20x1xi32>
    %202 = arith.cmpi ne, %200, %201 : vector<20x1xi32>
    %c0_i32_81 = arith.constant 0 : i32
    %203 = vector.broadcast %c0_i32_81 : i32 to vector<20x1xi32>
    %204 = arith.cmpi slt, %200, %203 : vector<20x1xi32>
    %c0_i32_82 = arith.constant 0 : i32
    %205 = arith.cmpi slt, %198, %c0_i32_82 : i32
    %206 = vector.broadcast %205 : i1 to vector<20x1xi1>
    %207 = vector.broadcast %206 : vector<20x1xi1> to vector<20x1xi1>
    %208 = arith.xori %204, %207 : vector<20x1xi1>
    %209 = arith.andi %208, %202 : vector<20x1xi1>
    %210 = vector.broadcast %198 : i32 to vector<20x1xi32>
    %211 = arith.addi %200, %210 : vector<20x1xi32>
    %212 = arith.select %209, %211, %200 : vector<20x1xi1>, vector<20x1xi32>
    %cst_83 = arith.constant 0.000000e+00 : f32
    %213 = vector.broadcast %cst_83 : f32 to vector<1x32xf32>
    %214 = vector.extract_strided_slice %191 {offsets = [0, 0], sizes = [19, 32], strides = [1, 1]} : vector<20x32xf32> to vector<19x32xf32>
    %215 = tpu.concatenate %213, %214 in 0 : vector<1x32xf32>, vector<19x32xf32> -> vector<20x32xf32>
    %c0_i32_84 = arith.constant 0 : i32
    %216 = vector.broadcast %c0_i32_84 : i32 to vector<20x1xi32>
    %217 = arith.cmpi eq, %212, %216 : vector<20x1xi32>
    %cst_85 = arith.constant 0.000000e+00 : f32
    %218 = vector.shape_cast %217 : vector<20x1xi1> to vector<20x1xi1>
    %219 = vector.broadcast %218 : vector<20x1xi1> to vector<20x32xi1>
    %220 = vector.broadcast %cst_85 : f32 to vector<20x32xf32>
    %221 = arith.select %219, %220, %215 : vector<20x32xi1>, vector<20x32xf32>
    %222 = vector.extract_strided_slice %191 {offsets = [1, 0], sizes = [19, 32], strides = [1, 1]} : vector<20x32xf32> to vector<19x32xf32>
    %223 = tpu.concatenate %222, %213 in 0 : vector<19x32xf32>, vector<1x32xf32> -> vector<20x32xf32>
    %c9_i32_86 = arith.constant 9 : i32
    %224 = vector.broadcast %c9_i32_86 : i32 to vector<20x1xi32>
    %225 = arith.cmpi eq, %212, %224 : vector<20x1xi32>
    %cst_87 = arith.constant 0.000000e+00 : f32
    %226 = vector.shape_cast %225 : vector<20x1xi1> to vector<20x1xi1>
    %227 = vector.broadcast %226 : vector<20x1xi1> to vector<20x32xi1>
    %228 = vector.broadcast %cst_87 : f32 to vector<20x32xf32>
    %229 = arith.select %227, %228, %223 : vector<20x32xi1>, vector<20x32xf32>
    %230 = tpu.concatenate %221, %191, %229 in 1 : vector<20x32xf32>, vector<20x32xf32>, vector<20x32xf32> -> vector<20x96xf32>
    %cst_88 = arith.constant dense<0.000000e+00> : vector<20x64xf32>
    %231 = tpu.matmul %230, %193, %cst_88 {dimension_numbers = #tpu.dot_dimension_numbers<[1], [0], [0], [1], [0, 0, 1, 1], [], []>} : vector<20x96xf32>, vector<96x64xf32>, vector<20x64xf32> -> vector<20x64xf32>
    %232 = vector.broadcast %195 : vector<1x64xf32> to vector<20x64xf32>
    %233 = arith.addf %231, %232 : vector<20x64xf32>
    %234 = arith.negf %233 : vector<20x64xf32>
    %235 = math.exp %234 : vector<20x64xf32>
    %cst_89 = arith.constant 1.000000e+00 : f32
    %236 = vector.broadcast %cst_89 : f32 to vector<20x64xf32>
    %237 = arith.addf %236, %235 : vector<20x64xf32>
    %238 = arith.divf %236, %237 : vector<20x64xf32>
    %239 = vector.extract_strided_slice %238 {offsets = [0, 0], sizes = [19, 64], strides = [1, 1]} : vector<20x64xf32> to vector<19x64xf32>
    %240 = vector.extract_strided_slice %238 {offsets = [1, 0], sizes = [19, 64], strides = [1, 1]} : vector<20x64xf32> to vector<19x64xf32>
    %241 = arith.maximumf %239, %240 : vector<19x64xf32>
    %cst_90 = arith.constant dense<0.000000e+00> : vector<10x64xf32>
    %242 = tpu.matmul %5, %241, %cst_90 {dimension_numbers = #tpu.dot_dimension_numbers<[1], [0], [0], [1], [0, 0, 1, 1], [], []>} : vector<10x19xf32>, vector<19x64xf32>, vector<10x64xf32> -> vector<10x64xf32>
    %243 = vector.extract_strided_slice %2 {offsets = [1, 0, 0], sizes = [1, 10, 1], strides = [1, 1, 1]} : vector<3x10x1xf32> to vector<1x10x1xf32>
    %244 = vector.shape_cast %243 : vector<1x10x1xf32> to vector<10x1xf32>
    %245 = vector.broadcast %244 : vector<10x1xf32> to vector<10x64xf32>
    %246 = vector.broadcast %19 : vector<1x64xf32> to vector<10x64xf32>
    %247 = arith.mulf %245, %246 : vector<10x64xf32>
    %248 = vector.broadcast %20 : vector<1x64xf32> to vector<10x64xf32>
    %249 = arith.addf %247, %248 : vector<10x64xf32>
    %250 = vector.extract_strided_slice %3 {offsets = [1, 0, 0], sizes = [1, 10, 20], strides = [1, 1, 1]} : vector<3x10x20xf32> to vector<1x10x20xf32>
    %251 = vector.shape_cast %250 : vector<1x10x20xf32> to vector<10x20xf32>
    %cst_91 = arith.constant dense<0.000000e+00> : vector<10x32xf32>
    %252 = tpu.matmul %251, %183, %cst_91 {dimension_numbers = #tpu.dot_dimension_numbers<[1], [0], [0], [1], [0, 0, 1, 1], [], []>} : vector<10x20xf32>, vector<20x32xf32>, vector<10x32xf32> -> vector<10x32xf32>
    %cst_92 = arith.constant dense<0.000000e+00> : vector<10x64xf32>
    %253 = tpu.matmul %252, %21, %cst_92 {dimension_numbers = #tpu.dot_dimension_numbers<[1], [0], [0], [1], [0, 0, 1, 1], [], []>} : vector<10x32xf32>, vector<32x64xf32>, vector<10x64xf32> -> vector<10x64xf32>
    %254 = vector.broadcast %22 : vector<1x64xf32> to vector<10x64xf32>
    %255 = arith.addf %253, %254 : vector<10x64xf32>
    %256 = arith.addf %249, %255 : vector<10x64xf32>
    %257 = vector.extract_strided_slice %0 {offsets = [2, 0, 0], sizes = [1, 40, 3], strides = [1, 1, 1]} : vector<3x40x3xf32> to vector<1x40x3xf32>
    %258 = vector.shape_cast %257 : vector<1x40x3xf32> to vector<40x3xf32>
    %259 = vector.extract_strided_slice %10 {offsets = [2, 0, 0], sizes = [1, 1, 32], strides = [1, 1, 1]} : vector<3x1x32xf32> to vector<1x1x32xf32>
    %260 = vector.shape_cast %259 : vector<1x1x32xf32> to vector<1x32xf32>
    %261 = vector.extract_strided_slice %258 {offsets = [0, 0], sizes = [40, 1], strides = [1, 1]} : vector<40x3xf32> to vector<40x1xf32>
    %262 = vector.extract_strided_slice %9 {offsets = [2, 0, 0], sizes = [1, 1, 32], strides = [1, 1, 1]} : vector<3x3x32xf32> to vector<1x1x32xf32>
    %263 = vector.shape_cast %262 : vector<1x1x32xf32> to vector<1x32xf32>
    %264 = vector.broadcast %261 : vector<40x1xf32> to vector<40x32xf32>
    %265 = vector.broadcast %263 : vector<1x32xf32> to vector<40x32xf32>
    %266 = arith.mulf %264, %265 : vector<40x32xf32>
    %267 = vector.broadcast %260 : vector<1x32xf32> to vector<40x32xf32>
    %268 = arith.addf %267, %266 : vector<40x32xf32>
    %269 = vector.extract_strided_slice %258 {offsets = [0, 1], sizes = [40, 1], strides = [1, 1]} : vector<40x3xf32> to vector<40x1xf32>
    %270 = vector.extract_strided_slice %9 {offsets = [2, 1, 0], sizes = [1, 1, 32], strides = [1, 1, 1]} : vector<3x3x32xf32> to vector<1x1x32xf32>
    %271 = vector.shape_cast %270 : vector<1x1x32xf32> to vector<1x32xf32>
    %272 = vector.broadcast %269 : vector<40x1xf32> to vector<40x32xf32>
    %273 = vector.broadcast %271 : vector<1x32xf32> to vector<40x32xf32>
    %274 = arith.mulf %272, %273 : vector<40x32xf32>
    %275 = arith.addf %268, %274 : vector<40x32xf32>
    %276 = vector.extract_strided_slice %258 {offsets = [0, 2], sizes = [40, 1], strides = [1, 1]} : vector<40x3xf32> to vector<40x1xf32>
    %277 = vector.extract_strided_slice %9 {offsets = [2, 2, 0], sizes = [1, 1, 32], strides = [1, 1, 1]} : vector<3x3x32xf32> to vector<1x1x32xf32>
    %278 = vector.shape_cast %277 : vector<1x1x32xf32> to vector<1x32xf32>
    %279 = vector.broadcast %276 : vector<40x1xf32> to vector<40x32xf32>
    %280 = vector.broadcast %278 : vector<1x32xf32> to vector<40x32xf32>
    %281 = arith.mulf %279, %280 : vector<40x32xf32>
    %282 = arith.addf %275, %281 : vector<40x32xf32>
    %283 = arith.negf %282 : vector<40x32xf32>
    %284 = math.exp %283 : vector<40x32xf32>
    %cst_93 = arith.constant 1.000000e+00 : f32
    %285 = vector.broadcast %cst_93 : f32 to vector<40x32xf32>
    %286 = arith.addf %285, %284 : vector<40x32xf32>
    %287 = arith.divf %285, %286 : vector<40x32xf32>
    %288 = vector.extract_strided_slice %287 {offsets = [0, 0], sizes = [39, 32], strides = [1, 1]} : vector<40x32xf32> to vector<39x32xf32>
    %289 = vector.extract_strided_slice %287 {offsets = [1, 0], sizes = [39, 32], strides = [1, 1]} : vector<40x32xf32> to vector<39x32xf32>
    %290 = arith.maximumf %288, %289 : vector<39x32xf32>
    %cst_94 = arith.constant dense<0.000000e+00> : vector<20x32xf32>
    %291 = tpu.matmul %4, %290, %cst_94 {dimension_numbers = #tpu.dot_dimension_numbers<[1], [0], [0], [1], [0, 0, 1, 1], [], []>} : vector<20x39xf32>, vector<39x32xf32>, vector<20x32xf32> -> vector<20x32xf32>
    %292 = vector.extract_strided_slice %15 {offsets = [2, 0, 0], sizes = [1, 1, 32], strides = [1, 1, 1]} : vector<3x1x32xf32> to vector<1x1x32xf32>
    %293 = vector.shape_cast %292 : vector<1x1x32xf32> to vector<1x32xf32>
    %294 = vector.broadcast %293 : vector<1x32xf32> to vector<20x32xf32>
    %295 = arith.mulf %291, %294 : vector<20x32xf32>
    %296 = vector.extract_strided_slice %16 {offsets = [2, 0, 0], sizes = [1, 1, 32], strides = [1, 1, 1]} : vector<3x1x32xf32> to vector<1x1x32xf32>
    %297 = vector.shape_cast %296 : vector<1x1x32xf32> to vector<1x32xf32>
    %298 = vector.broadcast %297 : vector<1x32xf32> to vector<20x32xf32>
    %299 = arith.addf %295, %298 : vector<20x32xf32>
    %300 = vector.extract_strided_slice %1 {offsets = [2, 0, 0], sizes = [1, 20, 1], strides = [1, 1, 1]} : vector<3x20x1xf32> to vector<1x20x1xf32>
    %301 = vector.shape_cast %300 : vector<1x20x1xf32> to vector<20x1xf32>
    %302 = vector.broadcast %301 : vector<20x1xf32> to vector<20x32xf32>
    %303 = vector.broadcast %17 : vector<1x32xf32> to vector<20x32xf32>
    %304 = arith.mulf %302, %303 : vector<20x32xf32>
    %305 = vector.broadcast %18 : vector<1x32xf32> to vector<20x32xf32>
    %306 = arith.addf %304, %305 : vector<20x32xf32>
    %307 = arith.addf %299, %306 : vector<20x32xf32>
    %308 = vector.extract_strided_slice %11 {offsets = [2, 0, 0], sizes = [1, 96, 64], strides = [1, 1, 1]} : vector<3x96x64xf32> to vector<1x96x64xf32>
    %309 = vector.shape_cast %308 : vector<1x96x64xf32> to vector<96x64xf32>
    %310 = vector.extract_strided_slice %12 {offsets = [2, 0, 0], sizes = [1, 1, 64], strides = [1, 1, 1]} : vector<3x1x64xf32> to vector<1x1x64xf32>
    %311 = vector.shape_cast %310 : vector<1x1x64xf32> to vector<1x64xf32>
    %312 = tpu.iota {dimensions = array<i32: 0>} : vector<20x1xi32>
    %c10_i32_95 = arith.constant 10 : i32
    %c0_i32_96 = arith.constant 0 : i32
    %313 = arith.cmpi eq, %c10_i32_95, %c0_i32_96 : i32
    %c1_i32_97 = arith.constant 1 : i32
    %314 = arith.select %313, %c1_i32_97, %c10_i32_95 : i32
    %315 = vector.broadcast %314 : i32 to vector<20x1xi32>
    %316 = arith.remsi %312, %315 : vector<20x1xi32>
    %c0_i32_98 = arith.constant 0 : i32
    %317 = vector.broadcast %c0_i32_98 : i32 to vector<20x1xi32>
    %318 = arith.cmpi ne, %316, %317 : vector<20x1xi32>
    %c0_i32_99 = arith.constant 0 : i32
    %319 = vector.broadcast %c0_i32_99 : i32 to vector<20x1xi32>
    %320 = arith.cmpi slt, %316, %319 : vector<20x1xi32>
    %c0_i32_100 = arith.constant 0 : i32
    %321 = arith.cmpi slt, %314, %c0_i32_100 : i32
    %322 = vector.broadcast %321 : i1 to vector<20x1xi1>
    %323 = vector.broadcast %322 : vector<20x1xi1> to vector<20x1xi1>
    %324 = arith.xori %320, %323 : vector<20x1xi1>
    %325 = arith.andi %324, %318 : vector<20x1xi1>
    %326 = vector.broadcast %314 : i32 to vector<20x1xi32>
    %327 = arith.addi %316, %326 : vector<20x1xi32>
    %328 = arith.select %325, %327, %316 : vector<20x1xi1>, vector<20x1xi32>
    %cst_101 = arith.constant 0.000000e+00 : f32
    %329 = vector.broadcast %cst_101 : f32 to vector<1x32xf32>
    %330 = vector.extract_strided_slice %307 {offsets = [0, 0], sizes = [19, 32], strides = [1, 1]} : vector<20x32xf32> to vector<19x32xf32>
    %331 = tpu.concatenate %329, %330 in 0 : vector<1x32xf32>, vector<19x32xf32> -> vector<20x32xf32>
    %c0_i32_102 = arith.constant 0 : i32
    %332 = vector.broadcast %c0_i32_102 : i32 to vector<20x1xi32>
    %333 = arith.cmpi eq, %328, %332 : vector<20x1xi32>
    %cst_103 = arith.constant 0.000000e+00 : f32
    %334 = vector.shape_cast %333 : vector<20x1xi1> to vector<20x1xi1>
    %335 = vector.broadcast %334 : vector<20x1xi1> to vector<20x32xi1>
    %336 = vector.broadcast %cst_103 : f32 to vector<20x32xf32>
    %337 = arith.select %335, %336, %331 : vector<20x32xi1>, vector<20x32xf32>
    %338 = vector.extract_strided_slice %307 {offsets = [1, 0], sizes = [19, 32], strides = [1, 1]} : vector<20x32xf32> to vector<19x32xf32>
    %339 = tpu.concatenate %338, %329 in 0 : vector<19x32xf32>, vector<1x32xf32> -> vector<20x32xf32>
    %c9_i32_104 = arith.constant 9 : i32
    %340 = vector.broadcast %c9_i32_104 : i32 to vector<20x1xi32>
    %341 = arith.cmpi eq, %328, %340 : vector<20x1xi32>
    %cst_105 = arith.constant 0.000000e+00 : f32
    %342 = vector.shape_cast %341 : vector<20x1xi1> to vector<20x1xi1>
    %343 = vector.broadcast %342 : vector<20x1xi1> to vector<20x32xi1>
    %344 = vector.broadcast %cst_105 : f32 to vector<20x32xf32>
    %345 = arith.select %343, %344, %339 : vector<20x32xi1>, vector<20x32xf32>
    %346 = tpu.concatenate %337, %307, %345 in 1 : vector<20x32xf32>, vector<20x32xf32>, vector<20x32xf32> -> vector<20x96xf32>
    %cst_106 = arith.constant dense<0.000000e+00> : vector<20x64xf32>
    %347 = tpu.matmul %346, %309, %cst_106 {dimension_numbers = #tpu.dot_dimension_numbers<[1], [0], [0], [1], [0, 0, 1, 1], [], []>} : vector<20x96xf32>, vector<96x64xf32>, vector<20x64xf32> -> vector<20x64xf32>
    %348 = vector.broadcast %311 : vector<1x64xf32> to vector<20x64xf32>
    %349 = arith.addf %347, %348 : vector<20x64xf32>
    %350 = arith.negf %349 : vector<20x64xf32>
    %351 = math.exp %350 : vector<20x64xf32>
    %cst_107 = arith.constant 1.000000e+00 : f32
    %352 = vector.broadcast %cst_107 : f32 to vector<20x64xf32>
    %353 = arith.addf %352, %351 : vector<20x64xf32>
    %354 = arith.divf %352, %353 : vector<20x64xf32>
    %355 = vector.extract_strided_slice %354 {offsets = [0, 0], sizes = [19, 64], strides = [1, 1]} : vector<20x64xf32> to vector<19x64xf32>
    %356 = vector.extract_strided_slice %354 {offsets = [1, 0], sizes = [19, 64], strides = [1, 1]} : vector<20x64xf32> to vector<19x64xf32>
    %357 = arith.maximumf %355, %356 : vector<19x64xf32>
    %cst_108 = arith.constant dense<0.000000e+00> : vector<10x64xf32>
    %358 = tpu.matmul %5, %357, %cst_108 {dimension_numbers = #tpu.dot_dimension_numbers<[1], [0], [0], [1], [0, 0, 1, 1], [], []>} : vector<10x19xf32>, vector<19x64xf32>, vector<10x64xf32> -> vector<10x64xf32>
    %359 = vector.extract_strided_slice %2 {offsets = [2, 0, 0], sizes = [1, 10, 1], strides = [1, 1, 1]} : vector<3x10x1xf32> to vector<1x10x1xf32>
    %360 = vector.shape_cast %359 : vector<1x10x1xf32> to vector<10x1xf32>
    %361 = vector.broadcast %360 : vector<10x1xf32> to vector<10x64xf32>
    %362 = vector.broadcast %19 : vector<1x64xf32> to vector<10x64xf32>
    %363 = arith.mulf %361, %362 : vector<10x64xf32>
    %364 = vector.broadcast %20 : vector<1x64xf32> to vector<10x64xf32>
    %365 = arith.addf %363, %364 : vector<10x64xf32>
    %366 = vector.extract_strided_slice %3 {offsets = [2, 0, 0], sizes = [1, 10, 20], strides = [1, 1, 1]} : vector<3x10x20xf32> to vector<1x10x20xf32>
    %367 = vector.shape_cast %366 : vector<1x10x20xf32> to vector<10x20xf32>
    %cst_109 = arith.constant dense<0.000000e+00> : vector<10x32xf32>
    %368 = tpu.matmul %367, %299, %cst_109 {dimension_numbers = #tpu.dot_dimension_numbers<[1], [0], [0], [1], [0, 0, 1, 1], [], []>} : vector<10x20xf32>, vector<20x32xf32>, vector<10x32xf32> -> vector<10x32xf32>
    %cst_110 = arith.constant dense<0.000000e+00> : vector<10x64xf32>
    %369 = tpu.matmul %368, %21, %cst_110 {dimension_numbers = #tpu.dot_dimension_numbers<[1], [0], [0], [1], [0, 0, 1, 1], [], []>} : vector<10x32xf32>, vector<32x64xf32>, vector<10x64xf32> -> vector<10x64xf32>
    %370 = vector.broadcast %22 : vector<1x64xf32> to vector<10x64xf32>
    %371 = arith.addf %369, %370 : vector<10x64xf32>
    %372 = arith.addf %365, %371 : vector<10x64xf32>
    %373 = arith.addf %126, %242 : vector<10x64xf32>
    %374 = arith.addf %373, %358 : vector<10x64xf32>
    %cst_111 = arith.constant 0.000000e+00 : f32
    %375 = vector.broadcast %cst_111 : f32 to vector<2x18xf32>
    %376 = arith.addf %374, %140 : vector<10x64xf32>
    %377 = vector.extract_strided_slice %13 {offsets = [0, 0, 0], sizes = [1, 192, 128], strides = [1, 1, 1]} : vector<3x192x128xf32> to vector<1x192x128xf32>
    %378 = vector.shape_cast %377 : vector<1x192x128xf32> to vector<192x128xf32>
    %379 = vector.extract_strided_slice %14 {offsets = [0, 0, 0], sizes = [1, 1, 128], strides = [1, 1, 1]} : vector<3x1x128xf32> to vector<1x1x128xf32>
    %380 = vector.shape_cast %379 : vector<1x1x128xf32> to vector<1x128xf32>
    %381 = tpu.iota {dimensions = array<i32: 0>} : vector<10x1xi32>
    %c5_i32 = arith.constant 5 : i32
    %c0_i32_112 = arith.constant 0 : i32
    %382 = arith.cmpi eq, %c5_i32, %c0_i32_112 : i32
    %c1_i32_113 = arith.constant 1 : i32
    %383 = arith.select %382, %c1_i32_113, %c5_i32 : i32
    %384 = vector.broadcast %383 : i32 to vector<10x1xi32>
    %385 = arith.remsi %381, %384 : vector<10x1xi32>
    %c0_i32_114 = arith.constant 0 : i32
    %386 = vector.broadcast %c0_i32_114 : i32 to vector<10x1xi32>
    %387 = arith.cmpi ne, %385, %386 : vector<10x1xi32>
    %c0_i32_115 = arith.constant 0 : i32
    %388 = vector.broadcast %c0_i32_115 : i32 to vector<10x1xi32>
    %389 = arith.cmpi slt, %385, %388 : vector<10x1xi32>
    %c0_i32_116 = arith.constant 0 : i32
    %390 = arith.cmpi slt, %383, %c0_i32_116 : i32
    %391 = vector.broadcast %390 : i1 to vector<10x1xi1>
    %392 = vector.broadcast %391 : vector<10x1xi1> to vector<10x1xi1>
    %393 = arith.xori %389, %392 : vector<10x1xi1>
    %394 = arith.andi %393, %387 : vector<10x1xi1>
    %395 = vector.broadcast %383 : i32 to vector<10x1xi32>
    %396 = arith.addi %385, %395 : vector<10x1xi32>
    %397 = arith.select %394, %396, %385 : vector<10x1xi1>, vector<10x1xi32>
    %cst_117 = arith.constant 0.000000e+00 : f32
    %398 = vector.broadcast %cst_117 : f32 to vector<1x64xf32>
    %399 = vector.extract_strided_slice %376 {offsets = [0, 0], sizes = [9, 64], strides = [1, 1]} : vector<10x64xf32> to vector<9x64xf32>
    %400 = tpu.concatenate %398, %399 in 0 : vector<1x64xf32>, vector<9x64xf32> -> vector<10x64xf32>
    %c0_i32_118 = arith.constant 0 : i32
    %401 = vector.broadcast %c0_i32_118 : i32 to vector<10x1xi32>
    %402 = arith.cmpi eq, %397, %401 : vector<10x1xi32>
    %cst_119 = arith.constant 0.000000e+00 : f32
    %403 = vector.shape_cast %402 : vector<10x1xi1> to vector<10x1xi1>
    %404 = vector.broadcast %403 : vector<10x1xi1> to vector<10x64xi1>
    %405 = vector.broadcast %cst_119 : f32 to vector<10x64xf32>
    %406 = arith.select %404, %405, %400 : vector<10x64xi1>, vector<10x64xf32>
    %407 = vector.extract_strided_slice %376 {offsets = [1, 0], sizes = [9, 64], strides = [1, 1]} : vector<10x64xf32> to vector<9x64xf32>
    %408 = tpu.concatenate %407, %398 in 0 : vector<9x64xf32>, vector<1x64xf32> -> vector<10x64xf32>
    %c4_i32 = arith.constant 4 : i32
    %409 = vector.broadcast %c4_i32 : i32 to vector<10x1xi32>
    %410 = arith.cmpi eq, %397, %409 : vector<10x1xi32>
    %cst_120 = arith.constant 0.000000e+00 : f32
    %411 = vector.shape_cast %410 : vector<10x1xi1> to vector<10x1xi1>
    %412 = vector.broadcast %411 : vector<10x1xi1> to vector<10x64xi1>
    %413 = vector.broadcast %cst_120 : f32 to vector<10x64xf32>
    %414 = arith.select %412, %413, %408 : vector<10x64xi1>, vector<10x64xf32>
    %415 = tpu.concatenate %406, %376, %414 in 1 : vector<10x64xf32>, vector<10x64xf32>, vector<10x64xf32> -> vector<10x192xf32>
    %cst_121 = arith.constant dense<0.000000e+00> : vector<10x128xf32>
    %416 = tpu.matmul %415, %378, %cst_121 {dimension_numbers = #tpu.dot_dimension_numbers<[1], [0], [0], [1], [0, 0, 1, 1], [], []>} : vector<10x192xf32>, vector<192x128xf32>, vector<10x128xf32> -> vector<10x128xf32>
    %417 = vector.broadcast %380 : vector<1x128xf32> to vector<10x128xf32>
    %418 = arith.addf %416, %417 : vector<10x128xf32>
    %419 = arith.negf %418 : vector<10x128xf32>
    %420 = math.exp %419 : vector<10x128xf32>
    %cst_122 = arith.constant 1.000000e+00 : f32
    %421 = vector.broadcast %cst_122 : f32 to vector<10x128xf32>
    %422 = arith.addf %421, %420 : vector<10x128xf32>
    %423 = arith.divf %421, %422 : vector<10x128xf32>
    %424 = vector.extract_strided_slice %423 {offsets = [0, 0], sizes = [9, 128], strides = [1, 1]} : vector<10x128xf32> to vector<9x128xf32>
    %425 = vector.extract_strided_slice %423 {offsets = [1, 0], sizes = [9, 128], strides = [1, 1]} : vector<10x128xf32> to vector<9x128xf32>
    %426 = arith.maximumf %424, %425 : vector<9x128xf32>
    %cst_123 = arith.constant dense<0.000000e+00> : vector<2x128xf32>
    %427 = tpu.matmul %6, %423, %cst_123 {dimension_numbers = #tpu.dot_dimension_numbers<[1], [0], [0], [1], [0, 0, 1, 1], [], []>} : vector<2x10xf32>, vector<10x128xf32>, vector<2x128xf32> -> vector<2x128xf32>
    %cst_124 = arith.constant dense<0.000000e+00> : vector<2x128xf32>
    %428 = tpu.matmul %7, %426, %cst_124 {dimension_numbers = #tpu.dot_dimension_numbers<[1], [0], [0], [1], [0, 0, 1, 1], [], []>} : vector<2x9xf32>, vector<9x128xf32>, vector<2x128xf32> -> vector<2x128xf32>
    %cst_125 = arith.constant dense<0.000000e+00> : vector<2x128xf32>
    %429 = tpu.matmul %8, %426, %cst_125 {dimension_numbers = #tpu.dot_dimension_numbers<[1], [0], [0], [1], [0, 0, 1, 1], [], []>} : vector<2x9xf32>, vector<9x128xf32>, vector<2x128xf32> -> vector<2x128xf32>
    %430 = tpu.concatenate %427, %428, %429 in 1 : vector<2x128xf32>, vector<2x128xf32>, vector<2x128xf32> -> vector<2x384xf32>
    %431 = vector.shape_cast %430 : vector<2x384xf32> to vector<1x2x384xf32>
    %cst_126 = arith.constant dense<0x7F800000> : vector<1xf32>
    %432 = vector.multi_reduction <minimumf>, %431, %cst_126 [1, 2] : vector<1x2x384xf32> to vector<1xf32>
    %433 = vector.shape_cast %432 : vector<1xf32> to vector<1x1x1xf32>
    %434 = vector.extract %433[0, 0, 0] : f32 from vector<1x1x1xf32>
    %435 = vector.shape_cast %430 : vector<2x384xf32> to vector<1x2x384xf32>
    %cst_127 = arith.constant dense<0xFF800000> : vector<1xf32>
    %436 = vector.multi_reduction <maximumf>, %435, %cst_127 [1, 2] : vector<1x2x384xf32> to vector<1xf32>
    %437 = vector.shape_cast %436 : vector<1xf32> to vector<1x1x1xf32>
    %438 = vector.extract %437[0, 0, 0] : f32 from vector<1x1x1xf32>
    %439 = vector.broadcast %434 : f32 to vector<2x384xf32>
    %440 = arith.subf %430, %439 : vector<2x384xf32>
    %441 = arith.subf %438, %434 : f32
    %cst_128 = arith.constant 1.000000e+00 : f32
    %442 = arith.divf %cst_128, %441 : f32
    %443 = vector.broadcast %442 : f32 to vector<2x384xf32>
    %444 = arith.mulf %440, %443 : vector<2x384xf32>
    %445 = vector.extract_strided_slice %23 {offsets = [0, 0, 0], sizes = [1, 384, 18], strides = [1, 1, 1]} : vector<3x384x18xf32> to vector<1x384x18xf32>
    %446 = vector.shape_cast %445 : vector<1x384x18xf32> to vector<384x18xf32>
    %cst_129 = arith.constant dense<0.000000e+00> : vector<2x18xf32>
    %447 = tpu.matmul %444, %446, %cst_129 {dimension_numbers = #tpu.dot_dimension_numbers<[1], [0], [0], [1], [0, 0, 1, 1], [], []>} : vector<2x384xf32>, vector<384x18xf32>, vector<2x18xf32> -> vector<2x18xf32>
    %448 = arith.addf %375, %447 : vector<2x18xf32>
    %449 = arith.addf %374, %256 : vector<10x64xf32>
    %450 = vector.extract_strided_slice %13 {offsets = [1, 0, 0], sizes = [1, 192, 128], strides = [1, 1, 1]} : vector<3x192x128xf32> to vector<1x192x128xf32>
    %451 = vector.shape_cast %450 : vector<1x192x128xf32> to vector<192x128xf32>
    %452 = vector.extract_strided_slice %14 {offsets = [1, 0, 0], sizes = [1, 1, 128], strides = [1, 1, 1]} : vector<3x1x128xf32> to vector<1x1x128xf32>
    %453 = vector.shape_cast %452 : vector<1x1x128xf32> to vector<1x128xf32>
    %454 = tpu.iota {dimensions = array<i32: 0>} : vector<10x1xi32>
    %c5_i32_130 = arith.constant 5 : i32
    %c0_i32_131 = arith.constant 0 : i32
    %455 = arith.cmpi eq, %c5_i32_130, %c0_i32_131 : i32
    %c1_i32_132 = arith.constant 1 : i32
    %456 = arith.select %455, %c1_i32_132, %c5_i32_130 : i32
    %457 = vector.broadcast %456 : i32 to vector<10x1xi32>
    %458 = arith.remsi %454, %457 : vector<10x1xi32>
    %c0_i32_133 = arith.constant 0 : i32
    %459 = vector.broadcast %c0_i32_133 : i32 to vector<10x1xi32>
    %460 = arith.cmpi ne, %458, %459 : vector<10x1xi32>
    %c0_i32_134 = arith.constant 0 : i32
    %461 = vector.broadcast %c0_i32_134 : i32 to vector<10x1xi32>
    %462 = arith.cmpi slt, %458, %461 : vector<10x1xi32>
    %c0_i32_135 = arith.constant 0 : i32
    %463 = arith.cmpi slt, %456, %c0_i32_135 : i32
    %464 = vector.broadcast %463 : i1 to vector<10x1xi1>
    %465 = vector.broadcast %464 : vector<10x1xi1> to vector<10x1xi1>
    %466 = arith.xori %462, %465 : vector<10x1xi1>
    %467 = arith.andi %466, %460 : vector<10x1xi1>
    %468 = vector.broadcast %456 : i32 to vector<10x1xi32>
    %469 = arith.addi %458, %468 : vector<10x1xi32>
    %470 = arith.select %467, %469, %458 : vector<10x1xi1>, vector<10x1xi32>
    %cst_136 = arith.constant 0.000000e+00 : f32
    %471 = vector.broadcast %cst_136 : f32 to vector<1x64xf32>
    %472 = vector.extract_strided_slice %449 {offsets = [0, 0], sizes = [9, 64], strides = [1, 1]} : vector<10x64xf32> to vector<9x64xf32>
    %473 = tpu.concatenate %471, %472 in 0 : vector<1x64xf32>, vector<9x64xf32> -> vector<10x64xf32>
    %c0_i32_137 = arith.constant 0 : i32
    %474 = vector.broadcast %c0_i32_137 : i32 to vector<10x1xi32>
    %475 = arith.cmpi eq, %470, %474 : vector<10x1xi32>
    %cst_138 = arith.constant 0.000000e+00 : f32
    %476 = vector.shape_cast %475 : vector<10x1xi1> to vector<10x1xi1>
    %477 = vector.broadcast %476 : vector<10x1xi1> to vector<10x64xi1>
    %478 = vector.broadcast %cst_138 : f32 to vector<10x64xf32>
    %479 = arith.select %477, %478, %473 : vector<10x64xi1>, vector<10x64xf32>
    %480 = vector.extract_strided_slice %449 {offsets = [1, 0], sizes = [9, 64], strides = [1, 1]} : vector<10x64xf32> to vector<9x64xf32>
    %481 = tpu.concatenate %480, %471 in 0 : vector<9x64xf32>, vector<1x64xf32> -> vector<10x64xf32>
    %c4_i32_139 = arith.constant 4 : i32
    %482 = vector.broadcast %c4_i32_139 : i32 to vector<10x1xi32>
    %483 = arith.cmpi eq, %470, %482 : vector<10x1xi32>
    %cst_140 = arith.constant 0.000000e+00 : f32
    %484 = vector.shape_cast %483 : vector<10x1xi1> to vector<10x1xi1>
    %485 = vector.broadcast %484 : vector<10x1xi1> to vector<10x64xi1>
    %486 = vector.broadcast %cst_140 : f32 to vector<10x64xf32>
    %487 = arith.select %485, %486, %481 : vector<10x64xi1>, vector<10x64xf32>
    %488 = tpu.concatenate %479, %449, %487 in 1 : vector<10x64xf32>, vector<10x64xf32>, vector<10x64xf32> -> vector<10x192xf32>
    %cst_141 = arith.constant dense<0.000000e+00> : vector<10x128xf32>
    %489 = tpu.matmul %488, %451, %cst_141 {dimension_numbers = #tpu.dot_dimension_numbers<[1], [0], [0], [1], [0, 0, 1, 1], [], []>} : vector<10x192xf32>, vector<192x128xf32>, vector<10x128xf32> -> vector<10x128xf32>
    %490 = vector.broadcast %453 : vector<1x128xf32> to vector<10x128xf32>
    %491 = arith.addf %489, %490 : vector<10x128xf32>
    %492 = arith.negf %491 : vector<10x128xf32>
    %493 = math.exp %492 : vector<10x128xf32>
    %cst_142 = arith.constant 1.000000e+00 : f32
    %494 = vector.broadcast %cst_142 : f32 to vector<10x128xf32>
    %495 = arith.addf %494, %493 : vector<10x128xf32>
    %496 = arith.divf %494, %495 : vector<10x128xf32>
    %497 = vector.extract_strided_slice %496 {offsets = [0, 0], sizes = [9, 128], strides = [1, 1]} : vector<10x128xf32> to vector<9x128xf32>
    %498 = vector.extract_strided_slice %496 {offsets = [1, 0], sizes = [9, 128], strides = [1, 1]} : vector<10x128xf32> to vector<9x128xf32>
    %499 = arith.maximumf %497, %498 : vector<9x128xf32>
    %cst_143 = arith.constant dense<0.000000e+00> : vector<2x128xf32>
    %500 = tpu.matmul %6, %496, %cst_143 {dimension_numbers = #tpu.dot_dimension_numbers<[1], [0], [0], [1], [0, 0, 1, 1], [], []>} : vector<2x10xf32>, vector<10x128xf32>, vector<2x128xf32> -> vector<2x128xf32>
    %cst_144 = arith.constant dense<0.000000e+00> : vector<2x128xf32>
    %501 = tpu.matmul %7, %499, %cst_144 {dimension_numbers = #tpu.dot_dimension_numbers<[1], [0], [0], [1], [0, 0, 1, 1], [], []>} : vector<2x9xf32>, vector<9x128xf32>, vector<2x128xf32> -> vector<2x128xf32>
    %cst_145 = arith.constant dense<0.000000e+00> : vector<2x128xf32>
    %502 = tpu.matmul %8, %499, %cst_145 {dimension_numbers = #tpu.dot_dimension_numbers<[1], [0], [0], [1], [0, 0, 1, 1], [], []>} : vector<2x9xf32>, vector<9x128xf32>, vector<2x128xf32> -> vector<2x128xf32>
    %503 = tpu.concatenate %500, %501, %502 in 1 : vector<2x128xf32>, vector<2x128xf32>, vector<2x128xf32> -> vector<2x384xf32>
    %504 = vector.shape_cast %503 : vector<2x384xf32> to vector<1x2x384xf32>
    %cst_146 = arith.constant dense<0x7F800000> : vector<1xf32>
    %505 = vector.multi_reduction <minimumf>, %504, %cst_146 [1, 2] : vector<1x2x384xf32> to vector<1xf32>
    %506 = vector.shape_cast %505 : vector<1xf32> to vector<1x1x1xf32>
    %507 = vector.extract %506[0, 0, 0] : f32 from vector<1x1x1xf32>
    %508 = vector.shape_cast %503 : vector<2x384xf32> to vector<1x2x384xf32>
    %cst_147 = arith.constant dense<0xFF800000> : vector<1xf32>
    %509 = vector.multi_reduction <maximumf>, %508, %cst_147 [1, 2] : vector<1x2x384xf32> to vector<1xf32>
    %510 = vector.shape_cast %509 : vector<1xf32> to vector<1x1x1xf32>
    %511 = vector.extract %510[0, 0, 0] : f32 from vector<1x1x1xf32>
    %512 = vector.broadcast %507 : f32 to vector<2x384xf32>
    %513 = arith.subf %503, %512 : vector<2x384xf32>
    %514 = arith.subf %511, %507 : f32
    %cst_148 = arith.constant 1.000000e+00 : f32
    %515 = arith.divf %cst_148, %514 : f32
    %516 = vector.broadcast %515 : f32 to vector<2x384xf32>
    %517 = arith.mulf %513, %516 : vector<2x384xf32>
    %518 = vector.extract_strided_slice %23 {offsets = [1, 0, 0], sizes = [1, 384, 18], strides = [1, 1, 1]} : vector<3x384x18xf32> to vector<1x384x18xf32>
    %519 = vector.shape_cast %518 : vector<1x384x18xf32> to vector<384x18xf32>
    %cst_149 = arith.constant dense<0.000000e+00> : vector<2x18xf32>
    %520 = tpu.matmul %517, %519, %cst_149 {dimension_numbers = #tpu.dot_dimension_numbers<[1], [0], [0], [1], [0, 0, 1, 1], [], []>} : vector<2x384xf32>, vector<384x18xf32>, vector<2x18xf32> -> vector<2x18xf32>
    %521 = arith.addf %448, %520 : vector<2x18xf32>
    %522 = arith.addf %374, %372 : vector<10x64xf32>
    %523 = vector.extract_strided_slice %13 {offsets = [2, 0, 0], sizes = [1, 192, 128], strides = [1, 1, 1]} : vector<3x192x128xf32> to vector<1x192x128xf32>
    %524 = vector.shape_cast %523 : vector<1x192x128xf32> to vector<192x128xf32>
    %525 = vector.extract_strided_slice %14 {offsets = [2, 0, 0], sizes = [1, 1, 128], strides = [1, 1, 1]} : vector<3x1x128xf32> to vector<1x1x128xf32>
    %526 = vector.shape_cast %525 : vector<1x1x128xf32> to vector<1x128xf32>
    %527 = tpu.iota {dimensions = array<i32: 0>} : vector<10x1xi32>
    %c5_i32_150 = arith.constant 5 : i32
    %c0_i32_151 = arith.constant 0 : i32
    %528 = arith.cmpi eq, %c5_i32_150, %c0_i32_151 : i32
    %c1_i32_152 = arith.constant 1 : i32
    %529 = arith.select %528, %c1_i32_152, %c5_i32_150 : i32
    %530 = vector.broadcast %529 : i32 to vector<10x1xi32>
    %531 = arith.remsi %527, %530 : vector<10x1xi32>
    %c0_i32_153 = arith.constant 0 : i32
    %532 = vector.broadcast %c0_i32_153 : i32 to vector<10x1xi32>
    %533 = arith.cmpi ne, %531, %532 : vector<10x1xi32>
    %c0_i32_154 = arith.constant 0 : i32
    %534 = vector.broadcast %c0_i32_154 : i32 to vector<10x1xi32>
    %535 = arith.cmpi slt, %531, %534 : vector<10x1xi32>
    %c0_i32_155 = arith.constant 0 : i32
    %536 = arith.cmpi slt, %529, %c0_i32_155 : i32
    %537 = vector.broadcast %536 : i1 to vector<10x1xi1>
    %538 = vector.broadcast %537 : vector<10x1xi1> to vector<10x1xi1>
    %539 = arith.xori %535, %538 : vector<10x1xi1>
    %540 = arith.andi %539, %533 : vector<10x1xi1>
    %541 = vector.broadcast %529 : i32 to vector<10x1xi32>
    %542 = arith.addi %531, %541 : vector<10x1xi32>
    %543 = arith.select %540, %542, %531 : vector<10x1xi1>, vector<10x1xi32>
    %cst_156 = arith.constant 0.000000e+00 : f32
    %544 = vector.broadcast %cst_156 : f32 to vector<1x64xf32>
    %545 = vector.extract_strided_slice %522 {offsets = [0, 0], sizes = [9, 64], strides = [1, 1]} : vector<10x64xf32> to vector<9x64xf32>
    %546 = tpu.concatenate %544, %545 in 0 : vector<1x64xf32>, vector<9x64xf32> -> vector<10x64xf32>
    %c0_i32_157 = arith.constant 0 : i32
    %547 = vector.broadcast %c0_i32_157 : i32 to vector<10x1xi32>
    %548 = arith.cmpi eq, %543, %547 : vector<10x1xi32>
    %cst_158 = arith.constant 0.000000e+00 : f32
    %549 = vector.shape_cast %548 : vector<10x1xi1> to vector<10x1xi1>
    %550 = vector.broadcast %549 : vector<10x1xi1> to vector<10x64xi1>
    %551 = vector.broadcast %cst_158 : f32 to vector<10x64xf32>
    %552 = arith.select %550, %551, %546 : vector<10x64xi1>, vector<10x64xf32>
    %553 = vector.extract_strided_slice %522 {offsets = [1, 0], sizes = [9, 64], strides = [1, 1]} : vector<10x64xf32> to vector<9x64xf32>
    %554 = tpu.concatenate %553, %544 in 0 : vector<9x64xf32>, vector<1x64xf32> -> vector<10x64xf32>
    %c4_i32_159 = arith.constant 4 : i32
    %555 = vector.broadcast %c4_i32_159 : i32 to vector<10x1xi32>
    %556 = arith.cmpi eq, %543, %555 : vector<10x1xi32>
    %cst_160 = arith.constant 0.000000e+00 : f32
    %557 = vector.shape_cast %556 : vector<10x1xi1> to vector<10x1xi1>
    %558 = vector.broadcast %557 : vector<10x1xi1> to vector<10x64xi1>
    %559 = vector.broadcast %cst_160 : f32 to vector<10x64xf32>
    %560 = arith.select %558, %559, %554 : vector<10x64xi1>, vector<10x64xf32>
    %561 = tpu.concatenate %552, %522, %560 in 1 : vector<10x64xf32>, vector<10x64xf32>, vector<10x64xf32> -> vector<10x192xf32>
    %cst_161 = arith.constant dense<0.000000e+00> : vector<10x128xf32>
    %562 = tpu.matmul %561, %524, %cst_161 {dimension_numbers = #tpu.dot_dimension_numbers<[1], [0], [0], [1], [0, 0, 1, 1], [], []>} : vector<10x192xf32>, vector<192x128xf32>, vector<10x128xf32> -> vector<10x128xf32>
    %563 = vector.broadcast %526 : vector<1x128xf32> to vector<10x128xf32>
    %564 = arith.addf %562, %563 : vector<10x128xf32>
    %565 = arith.negf %564 : vector<10x128xf32>
    %566 = math.exp %565 : vector<10x128xf32>
    %cst_162 = arith.constant 1.000000e+00 : f32
    %567 = vector.broadcast %cst_162 : f32 to vector<10x128xf32>
    %568 = arith.addf %567, %566 : vector<10x128xf32>
    %569 = arith.divf %567, %568 : vector<10x128xf32>
    %570 = vector.extract_strided_slice %569 {offsets = [0, 0], sizes = [9, 128], strides = [1, 1]} : vector<10x128xf32> to vector<9x128xf32>
    %571 = vector.extract_strided_slice %569 {offsets = [1, 0], sizes = [9, 128], strides = [1, 1]} : vector<10x128xf32> to vector<9x128xf32>
    %572 = arith.maximumf %570, %571 : vector<9x128xf32>
    %cst_163 = arith.constant dense<0.000000e+00> : vector<2x128xf32>
    %573 = tpu.matmul %6, %569, %cst_163 {dimension_numbers = #tpu.dot_dimension_numbers<[1], [0], [0], [1], [0, 0, 1, 1], [], []>} : vector<2x10xf32>, vector<10x128xf32>, vector<2x128xf32> -> vector<2x128xf32>
    %cst_164 = arith.constant dense<0.000000e+00> : vector<2x128xf32>
    %574 = tpu.matmul %7, %572, %cst_164 {dimension_numbers = #tpu.dot_dimension_numbers<[1], [0], [0], [1], [0, 0, 1, 1], [], []>} : vector<2x9xf32>, vector<9x128xf32>, vector<2x128xf32> -> vector<2x128xf32>
    %cst_165 = arith.constant dense<0.000000e+00> : vector<2x128xf32>
    %575 = tpu.matmul %8, %572, %cst_165 {dimension_numbers = #tpu.dot_dimension_numbers<[1], [0], [0], [1], [0, 0, 1, 1], [], []>} : vector<2x9xf32>, vector<9x128xf32>, vector<2x128xf32> -> vector<2x128xf32>
    %576 = tpu.concatenate %573, %574, %575 in 1 : vector<2x128xf32>, vector<2x128xf32>, vector<2x128xf32> -> vector<2x384xf32>
    %577 = vector.shape_cast %576 : vector<2x384xf32> to vector<1x2x384xf32>
    %cst_166 = arith.constant dense<0x7F800000> : vector<1xf32>
    %578 = vector.multi_reduction <minimumf>, %577, %cst_166 [1, 2] : vector<1x2x384xf32> to vector<1xf32>
    %579 = vector.shape_cast %578 : vector<1xf32> to vector<1x1x1xf32>
    %580 = vector.extract %579[0, 0, 0] : f32 from vector<1x1x1xf32>
    %581 = vector.shape_cast %576 : vector<2x384xf32> to vector<1x2x384xf32>
    %cst_167 = arith.constant dense<0xFF800000> : vector<1xf32>
    %582 = vector.multi_reduction <maximumf>, %581, %cst_167 [1, 2] : vector<1x2x384xf32> to vector<1xf32>
    %583 = vector.shape_cast %582 : vector<1xf32> to vector<1x1x1xf32>
    %584 = vector.extract %583[0, 0, 0] : f32 from vector<1x1x1xf32>
    %585 = vector.broadcast %580 : f32 to vector<2x384xf32>
    %586 = arith.subf %576, %585 : vector<2x384xf32>
    %587 = arith.subf %584, %580 : f32
    %cst_168 = arith.constant 1.000000e+00 : f32
    %588 = arith.divf %cst_168, %587 : f32
    %589 = vector.broadcast %588 : f32 to vector<2x384xf32>
    %590 = arith.mulf %586, %589 : vector<2x384xf32>
    %591 = vector.extract_strided_slice %23 {offsets = [2, 0, 0], sizes = [1, 384, 18], strides = [1, 1, 1]} : vector<3x384x18xf32> to vector<1x384x18xf32>
    %592 = vector.shape_cast %591 : vector<1x384x18xf32> to vector<384x18xf32>
    %cst_169 = arith.constant dense<0.000000e+00> : vector<2x18xf32>
    %593 = tpu.matmul %590, %592, %cst_169 {dimension_numbers = #tpu.dot_dimension_numbers<[1], [0], [0], [1], [0, 0, 1, 1], [], []>} : vector<2x384xf32>, vector<384x18xf32>, vector<2x18xf32> -> vector<2x18xf32>
    %594 = arith.addf %521, %593 : vector<2x18xf32>
    tpu.wait_dma2 semaphore(%arg31 : memref<!tpu.dma_semaphore, #tpu.memory_space<semaphore_mem>>) src(%arg28 : memref<768x1024xf32, #tpu.memory_space<any>>) dst(%arg30 : memref<768x1024xf32, #tpu.memory_space<vmem>>)
    %c0_170 = arith.constant 0 : index
    %c0_171 = arith.constant 0 : index
    %595 = vector.load %arg26[%c0_170, %c0_171] : memref<2x768xf32, #tpu.memory_space<vmem>>, vector<2x768xf32>
    %c0_172 = arith.constant 0 : index
    %c0_173 = arith.constant 0 : index
    %596 = vector.load %arg30[%c0_172, %c0_173] : memref<768x1024xf32, #tpu.memory_space<vmem>>, vector<768x1024xf32>
    %cst_174 = arith.constant dense<0.000000e+00> : vector<2x1024xf32>
    %597 = tpu.matmul %595, %596, %cst_174 {dimension_numbers = #tpu.dot_dimension_numbers<[1], [0], [0], [1], [0, 0, 1, 1], [], []>} : vector<2x768xf32>, vector<768x1024xf32>, vector<2x1024xf32> -> vector<2x1024xf32>
    %c0_175 = arith.constant 0 : index
    %c0_176 = arith.constant 0 : index
    %598 = vector.load %arg27[%c0_175, %c0_176] : memref<1x1024xf32, #tpu.memory_space<vmem>>, vector<1x1024xf32>
    %599 = vector.broadcast %598 : vector<1x1024xf32> to vector<2x1024xf32>
    %600 = arith.addf %597, %599 : vector<2x1024xf32>
    %601 = tpu.iota {dimensions = array<i32: 1>} : vector<2x1024xi32>
    %c1000_i32 = arith.constant 1000 : i32
    %602 = vector.broadcast %c1000_i32 : i32 to vector<2x1024xi32>
    %603 = arith.cmpi slt, %601, %602 : vector<2x1024xi32>
    %cst_177 = arith.constant 0x7F800000 : f32
    %604 = vector.broadcast %cst_177 : f32 to vector<2x1024xf32>
    %605 = arith.select %603, %600, %604 : vector<2x1024xi1>, vector<2x1024xf32>
    %606 = vector.shape_cast %605 : vector<2x1024xf32> to vector<1x2x1024xf32>
    %cst_178 = arith.constant dense<0x7F800000> : vector<1xf32>
    %607 = vector.multi_reduction <minimumf>, %606, %cst_178 [1, 2] : vector<1x2x1024xf32> to vector<1xf32>
    %608 = vector.shape_cast %607 : vector<1xf32> to vector<1x1x1xf32>
    %609 = vector.extract %608[0, 0, 0] : f32 from vector<1x1x1xf32>
    %cst_179 = arith.constant 0xFF800000 : f32
    %610 = vector.broadcast %cst_179 : f32 to vector<2x1024xf32>
    %611 = arith.select %603, %600, %610 : vector<2x1024xi1>, vector<2x1024xf32>
    %612 = vector.shape_cast %611 : vector<2x1024xf32> to vector<1x2x1024xf32>
    %cst_180 = arith.constant dense<0xFF800000> : vector<1xf32>
    %613 = vector.multi_reduction <maximumf>, %612, %cst_180 [1, 2] : vector<1x2x1024xf32> to vector<1xf32>
    %614 = vector.shape_cast %613 : vector<1xf32> to vector<1x1x1xf32>
    %615 = vector.extract %614[0, 0, 0] : f32 from vector<1x1x1xf32>
    %616 = vector.broadcast %609 : f32 to vector<2x1024xf32>
    %617 = arith.subf %600, %616 : vector<2x1024xf32>
    %618 = arith.subf %615, %609 : f32
    %cst_181 = arith.constant 1.000000e+00 : f32
    %619 = arith.divf %cst_181, %618 : f32
    %620 = vector.broadcast %619 : f32 to vector<2x1024xf32>
    %621 = arith.mulf %617, %620 : vector<2x1024xf32>
    %c0_182 = arith.constant 0 : index
    %c0_183 = arith.constant 0 : index
    %622 = vector.load %arg24[%c0_182, %c0_183] : memref<1024x18xf32, #tpu.memory_space<vmem>>, vector<1024x18xf32>
    %cst_184 = arith.constant dense<0.000000e+00> : vector<2x18xf32>
    %623 = tpu.matmul %621, %622, %cst_184 {dimension_numbers = #tpu.dot_dimension_numbers<[1], [0], [0], [1], [0, 0, 1, 1], [], []>} : vector<2x1024xf32>, vector<1024x18xf32>, vector<2x18xf32> -> vector<2x18xf32>
    %624 = arith.addf %594, %623 : vector<2x18xf32>
    %625 = vector.broadcast %24 : vector<1x18xf32> to vector<2x18xf32>
    %626 = arith.addf %624, %625 : vector<2x18xf32>
    %c0_185 = arith.constant 0 : index
    %c0_186 = arith.constant 0 : index
    %627 = vector.load %arg29[%c0_185, %c0_186] : memref<2x18xf32, #tpu.memory_space<vmem>>, vector<2x18xf32>
    tpu.vector_store %arg29[%c0_185, %c0_186], %626 {strides = array<i32>} : memref<2x18xf32, #tpu.memory_space<vmem>>, vector<2x18xf32>,
    return
  }
}

</mosaic_0001>

<bundles_post_ra>
// kernel: tpu_custom_call.1
= control target key start
LH: loop header
LB: loop body
LE: loop exit
PB: predicated region body
PF: predicated region fallthrough
CT: control target
= control target key end

     0   :  { %s6800_s6 = smov 1   ;;  %s6801_s10 = smov 2   ;;  %s8667_s0 = inlined_call_operand.smem [shape: u32[30], index: -1, kind: input, shape index: {}] }
   0x1   :  { %s6870_s5 = sld [smem:[%s8667_s0]]   ;;  %s6802_s14 = smov 3  }
   0x2   :  { %s6875_s9 = sld [smem:[%s8667_s0 + %s6800_s6]]   ;;  %s6803_s18 = smov 4  }
   0x3   :  { %s6880_s13 = sld [smem:[%s8667_s0 + %s6801_s10]]   ;;  %s6804_s22 = smov 5  }
   0x4   :  { %s6885_s17 = sld [smem:[%s8667_s0 + %s6802_s14]]   ;;  %s6805_s26 = smov 6  }
   0x5   :  { %s6890_s21 = sld [smem:[%s8667_s0 + %s6803_s18]]   ;;  %s6806_s30 = smov 7  }
   0x6   :  { %s6895_s25 = sld [smem:[%s8667_s0 + %s6804_s22]]   ;;  %s6807_s4 = smov 8  }
   0x7   :  { %8693 = sst [smem:[#allocation55_spill]] %s6870_s5  ;;  %s6808_s10 = smov 9  }
   0x8   :  { %8694 = sst [smem:[#allocation56_spill]] %s6875_s9  ;;  %s6809_s15 = smov 10  }
   0x9   :  { %8695 = sst [smem:[#allocation57_spill]] %s6880_s13  ;;  %s6810_s20 = smov 11  }
   0xa   :  { %8696 = sst [smem:[#allocation58_spill]] %s6885_s17  ;;  %s6812_s1 = smov 13  }
   0xb   :  { %s6900_s29 = sld [smem:[%s8667_s0 + %s6805_s26]]   ;;  %s6811_s26 = smov 12  }
   0xc   :  { %s6905_s3 = sld [smem:[%s8667_s0 + %s6806_s30]]   ;;  %s6813_s7 = smov 14  }
   0xd   :  { %s6910_s8 = sld [smem:[%s8667_s0 + %s6807_s4]]   ;;  %s6815_s22 = smov 16  }
   0xe   :  { %s6915_s14 = sld [smem:[%s8667_s0 + %s6808_s10]]   ;;  %s6816_s28 = smov 17  }
   0xf   :  { %s6920_s19 = sld [smem:[%s8667_s0 + %s6809_s15]]   ;;  %s6814_s15 = smov 15  }
  0x10   :  { %s6925_s24 = sld [smem:[%s8667_s0 + %s6810_s20]]  }
  0x11   :  { %s6930_s30 = sld [smem:[%s8667_s0 + %s6811_s26]]  }
  0x12   :  { %s6935_s6 = sld [smem:[%s8667_s0 + %s6812_s1]]  }
  0x13   :  { %s6940_s12 = sld [smem:[%s8667_s0 + %s6813_s7]]   ;;  %s6817_s7 = smov 18  }
  0x14   :  { %s6945_s20 = sld [smem:[%s8667_s0 + %s6814_s15]]   ;;  %s6818_s15 = smov 19  }
  0x15   :  { %s6950_s27 = sld [smem:[%s8667_s0 + %s6815_s22]]   ;;  %s6819_s22 = smov 20  }
  0x16   :  { %8697 = sst [smem:[#allocation59_spill]] %s6925_s24 }
  0x17   :  { %s6955_s4 = sld [smem:[%s8667_s0 + %s6816_s28]]   ;;  %s6820_s28 = smov 21  }
  0x18   :  { %s6960_s13 = sld [smem:[%s8667_s0 + %s6817_s7]]   ;;  %s6821_s7 = smov 22  }
  0x19   :  { %s6965_s24 = sld [smem:[%s8667_s0 + %s6818_s15]]   ;;  %s6822_s15 = smov 23  }
  0x1a   :  { %8698 = sst [smem:[#allocation60_spill]] %s6945_s20 }
  0x1b   :  { %s6970_s17 = sld [smem:[%s8667_s0 + %s6819_s22]]   ;;  %s6823_s22 = smov 24  }
  0x1c   :  { %s6975_s9 = sld [smem:[%s8667_s0 + %s6820_s28]]   ;;  %s6824_s28 = smov 25  }
  0x1d   :  { %8699 = sst [smem:[#allocation61_spill]] %s6955_s4 }
  0x1e   :  { %s6980_s5 = sld [smem:[%s8667_s0 + %s6821_s7]]   ;;  %s6825_s7 = smov 26  }
  0x1f   :  { %8700 = sst [smem:[#allocation62_spill]] %s6965_s24 }
  0x20   :  { %s6985_s24 = sld [smem:[%s8667_s0 + %s6822_s15]]   ;;  %s6826_s15 = smov 27  }
  0x21   :  { %s6990_s4 = sld [smem:[%s8667_s0 + %s6823_s22]]   ;;  %s6827_s22 = smov 28  }
  0x22   :  { %8701 = sst [smem:[#allocation63_spill]] %s6975_s9 }
  0x23   :  { %s6995_s9 = sld [smem:[%s8667_s0 + %s6824_s28]]   ;;  %s6828_s28 = smov 29  }
  0x24   :  { %s7000_s20 = sld [smem:[%s8667_s0 + %s6825_s7]]  }
  0x26   :  { %8702 = sst [smem:[#allocation64_spill]] %s6985_s24 }
  0x27   :  { %8703 = sst [smem:[#allocation65_spill]] %s6990_s4 }
  0x28   :  { %s7005_s24 = sld [smem:[%s8667_s0 + %s6826_s15]]  }
  0x29   :  { %8704 = sst [smem:[#allocation66_spill]] %s6995_s9 }
  0x2a   :  { %s7010_s4 = sld [smem:[%s8667_s0 + %s6827_s22]]  }
  0x2b   :  { %s7015_s9 = sld [smem:[%s8667_s0 + %s6828_s28]]  }
  0x2c   :  { %64 = vsyncpa [#allocation5], 0 }
  0x2d   :  { %65 = vsyncpa [#allocation8], 0 }
  0x2e   :  { %66 = vsyncpa [#allocation11], 0 }
  0x2f   :  { %67 = vsyncpa [#allocation14], 0 }
  0x30   :  { %68 = vsyncpa [#allocation17], 0 }
  0x31   :  { %69 = vsyncpa [#allocation20], 0 }
  0x32   :  { %70 = vsyncpa [#allocation23], 0 }
  0x33   :  { %71 = vsyncpa [#allocation26], 0 }
  0x34   :  { %72 = vsyncpa [#allocation29], 0 }
  0x35   :  { %73 = vsyncpa [#allocation32], 0 }
  0x36   :  { %74 = vsyncpa [#allocation35], 0 }
  0x37   :  { %75 = vsyncpa [#allocation6], 0  ;;  %s101_s7 = sshll.u32 %s6895_s25, 4  ;;  %s6829_s0 = smov [#allocation7]   ;;  %s102_s7 = int_to_ptr.hbm [resolvable:$true] %s101_s7 }
  0x38   :  { %s103_s10 = sshll.u32 %s6829_s0, 4  ;;  %s126_s11 = sshll.u32 %s6905_s3, 4  ;;  %s104_s10 = int_to_ptr.vmem [resolvable:$true] %s103_s10  ;;  %s127_s11 = int_to_ptr.hbm [resolvable:$true] %s126_s11 }
  0x39   :  { %s6222_s15 = sshra.s32 %s102_s7, 4  ;;  %s6226_s18 = scalar_lea.hbm %s6895_s25, 16  ;;  %s6223_s15 = int_to_ptr.hbm [resolvable:$true] %s6222_s15 }
  0x3a   :  { %s6224_s16 = scalar_lea.hbm %s6223_s15, 16  ;;  %p6227_p1 = scmp.lt.s32.totalorder %s6223_s15, %s6895_s25 }
  0x3b   :  { %p6225_p0 = scmp.ne.s32.totalorder %s6223_s15, %s6224_s16  ;;  %p6228_p2 = scmp.lt.s32.totalorder %s6226_s18, %s6224_s16 }
  0x3d   :  { %p6229_p3 = por %p6228_p2, %p6227_p1 }
  0x3f   :  { %p6230_p4 = pnand %p6229_p3, %p6225_p0 }
  0x41   :  { %6233 = shalt.err (!%p6230_p4)
}
  0x42   :  { %s6830_s22 = smov 128   ;;  %s6831_s23 = smov 8  }
  0x43   :  { %109 = dma.hbm_to_vmem [thread:$0]  %s102_s7, 256, %s104_s10, [#allocation8], %s6830_s22, %s6830_s22, %s6831_s23  }
  0x44   :  { %s6832_s26 = smov [#allocation10]   ;;  %s147_s1 = sshll.u32 %s6915_s14, 4  ;;  %s7025_s1 = int_to_ptr.hbm [resolvable:$true] %s147_s1 }
  0x45   :  { %s128_s28 = sshll.u32 %s6832_s26, 4  ;;  %s6246_s25 = sshra.s32 %s127_s11, 4  ;;  %s129_s28 = int_to_ptr.vmem [resolvable:$true] %s128_s28  ;;  %s6247_s25 = int_to_ptr.hbm [resolvable:$true] %s6246_s25 }
  0x46   :  { %s6248_s2 = scalar_lea.hbm %s6247_s25, 2  ;;  %s6250_s0 = scalar_lea.hbm %s6905_s3, 2 }
  0x47   :  { %p6249_p5 = scmp.ne.s32.totalorder %s6247_s25, %s6248_s2  ;;  %p6251_p6 = scmp.lt.s32.totalorder %s6247_s25, %s6905_s3 }
  0x48   :  { %p6252_p7 = scmp.lt.s32.totalorder %s6250_s0, %s6248_s2 }
  0x4a   :  { %p6253_p8 = por %p6252_p7, %p6251_p6 }
  0x4c   :  { %p6254_p9 = pnand %p6253_p8, %p6249_p5 }
  0x4e   :  { %6257 = shalt.err (!%p6254_p9)
}
  0x4f   :  { %131 = dma.hbm_to_vmem [thread:$0]  %s127_s11, 32, %s129_s28, [#allocation11]  }
  0x50   :  { %s6833_s7 = smov [#allocation13]   ;;  %s6270_s15 = sshra.s32 %s7025_s1, 4  ;;  %s6271_s15 = int_to_ptr.hbm [resolvable:$true] %s6270_s15 }
  0x51   :  { %s149_s10 = sshll.u32 %s6833_s7, 4  ;;  %s6272_s16 = scalar_lea.hbm %s6271_s15, 12  ;;  %s150_s10 = int_to_ptr.vmem [resolvable:$true] %s149_s10 }
  0x52   :  { %p6273_p10 = scmp.ne.s32.totalorder %s6271_s15, %s6272_s16  ;;  %s6274_s18 = scalar_lea.hbm %s6915_s14, 12 }
  0x53   :  { %p6275_p11 = scmp.lt.s32.totalorder %s6271_s15, %s6915_s14  ;;  %p6276_p12 = scmp.lt.s32.totalorder %s6274_s18, %s6272_s16 }
  0x55   :  { %p6277_p13 = por %p6276_p12, %p6275_p11 }
  0x57   :  { %p6278_p0 = pnand %p6277_p13, %p6273_p10 }
  0x59   :  { %6281 = shalt.err (!%p6278_p0)
}
  0x5a   :  { %s6834_s3 = smov 64   ;;  %s6835_s11 = smov 4  }
  0x5b   :  { %155 = dma.hbm_to_vmem [thread:$0]  %s7025_s1, 192, %s150_s10, [#allocation14], %s6834_s3, %s6834_s3, %s6835_s11  }
  0x5c   :  { %s175_s26 = sshll.u32 %s6930_s30, 4  ;;  %s6836_s28 = smov [#allocation16]   ;;  %s176_s26 = int_to_ptr.hbm [resolvable:$true] %s175_s26 }
  0x5d   :  { %s177_s25 = sshll.u32 %s6836_s28, 4  ;;  %s201_s2 = sshll.u32 %s6940_s12, 4  ;;  %s178_s25 = int_to_ptr.vmem [resolvable:$true] %s177_s25  ;;  %s7037_s2 = int_to_ptr.hbm [resolvable:$true] %s201_s2 }
  0x5e   :  { %s6294_s14 = sshra.s32 %s176_s26, 4  ;;  %s6298_s7 = scalar_lea.hbm %s6930_s30, 3  ;;  %s6295_s14 = int_to_ptr.hbm [resolvable:$true] %s6294_s14 }
  0x5f   :  { %s6296_s0 = scalar_lea.hbm %s6295_s14, 3  ;;  %p6299_p2 = scmp.lt.s32.totalorder %s6295_s14, %s6930_s30 }
  0x60   :  { %p6297_p1 = scmp.ne.s32.totalorder %s6295_s14, %s6296_s0  ;;  %p6300_p3 = scmp.lt.s32.totalorder %s6298_s7, %s6296_s0 }
  0x62   :  { %p6301_p4 = por %p6300_p3, %p6299_p2 }
  0x64   :  { %p6302_p5 = pnand %p6301_p4, %p6297_p1 }
  0x66   :  { %6305 = shalt.err (!%p6302_p5)
}
  0x67   :  { %s6837_s15 = smov 16   ;;  %s6838_s1 = smov 1  }
  0x68   :  { %183 = dma.hbm_to_vmem [thread:$0]  %s176_s26, 48, %s178_s25, [#allocation17], %s6837_s15, %s6837_s15, %s6838_s1  }
  0x69   :  { %s227_s10 = sshll.u32 %s6950_s27, 4  ;;  %s6839_s16 = smov [#allocation19]   ;;  %s7045_s10 = int_to_ptr.hbm [resolvable:$true] %s227_s10 }
  0x6a   :  { %s203_s18 = sshll.u32 %s6839_s16, 4  ;;  %s6318_s30 = sshra.s32 %s7037_s2, 4  ;;  %s204_s18 = int_to_ptr.vmem [resolvable:$true] %s203_s18  ;;  %s6319_s30 = int_to_ptr.hbm [resolvable:$true] %s6318_s30 }
  0x6b   :  { %s6320_s11 = scalar_lea.hbm %s6319_s30, 3  ;;  %s6322_s28 = scalar_lea.hbm %s6940_s12, 3 }
  0x6c   :  { %p6321_p6 = scmp.ne.s32.totalorder %s6319_s30, %s6320_s11  ;;  %p6323_p7 = scmp.lt.s32.totalorder %s6319_s30, %s6940_s12 }
  0x6d   :  { %p6324_p8 = scmp.lt.s32.totalorder %s6322_s28, %s6320_s11 }
  0x6f   :  { %p6325_p9 = por %p6324_p8, %p6323_p7 }
  0x71   :  { %p6326_p10 = pnand %p6325_p9, %p6321_p6 }
  0x73   :  { %6329 = shalt.err (!%p6326_p10)
}
  0x74   :  { %209 = dma.hbm_to_vmem [thread:$0]  %s7037_s2, 48, %s204_s18, [#allocation20], %s6837_s15, %s6837_s15, %s6838_s1  }
  0x75   :  { %s6840_s26 = smov [#allocation22]   ;;  %s252_s14 = sshll.u32 %s6960_s13, 4  ;;  %s253_s14 = int_to_ptr.hbm [resolvable:$true] %s252_s14 }
  0x76   :  { %s229_s25 = sshll.u32 %s6840_s26, 4  ;;  %s6342_s0 = sshra.s32 %s7045_s10, 4  ;;  %s230_s25 = int_to_ptr.vmem [resolvable:$true] %s229_s25  ;;  %s6343_s0 = int_to_ptr.hbm [resolvable:$true] %s6342_s0 }
  0x77   :  { %s6344_s12 = scalar_lea.hbm %s6343_s0, 3  ;;  %s6346_s7 = scalar_lea.hbm %s6950_s27, 3 }
  0x78   :  { %p6345_p11 = scmp.ne.s32.totalorder %s6343_s0, %s6344_s12  ;;  %p6347_p12 = scmp.lt.s32.totalorder %s6343_s0, %s6950_s27 }
  0x79   :  { %p6348_p13 = scmp.lt.s32.totalorder %s6346_s7, %s6344_s12 }
  0x7b   :  { %p6349_p0 = por %p6348_p13, %p6347_p12 }
  0x7d   :  { %p6350_p1 = pnand %p6349_p0, %p6345_p11 }
  0x7f   :  { %6353 = shalt.err (!%p6350_p1)
}
  0x80   :  { %235 = dma.hbm_to_vmem [thread:$0]  %s7045_s10, 48, %s230_s25, [#allocation23], %s6837_s15, %s6837_s15, %s6838_s1  }
  0x81   :  { %s274_s2 = sshll.u32 %s6970_s17, 4  ;;  %s6841_s16 = smov [#allocation25]   ;;  %s275_s2 = int_to_ptr.hbm [resolvable:$true] %s274_s2 }
  0x82   :  { %s254_s18 = sshll.u32 %s6841_s16, 4  ;;  %s6366_s30 = sshra.s32 %s253_s14, 4  ;;  %s255_s18 = int_to_ptr.vmem [resolvable:$true] %s254_s18  ;;  %s6367_s30 = int_to_ptr.hbm [resolvable:$true] %s6366_s30 }
  0x83   :  { %s6368_s27 = scalar_lea.hbm %s6367_s30, 1  ;;  %s6370_s11 = scalar_lea.hbm %s6960_s13, 1 }
  0x84   :  { %p6369_p2 = scmp.ne.s32.totalorder %s6367_s30, %s6368_s27  ;;  %p6371_p3 = scmp.lt.s32.totalorder %s6367_s30, %s6960_s13 }
  0x85   :  { %p6372_p4 = scmp.lt.s32.totalorder %s6370_s11, %s6368_s27 }
  0x87   :  { %p6373_p5 = por %p6372_p4, %p6371_p3 }
  0x89   :  { %p6374_p6 = pnand %p6373_p5, %p6369_p2 }
  0x8b   :  { %6377 = shalt.err (!%p6374_p6)
}
  0x8c   :  { %257 = dma.hbm_to_vmem [thread:$0]  %s253_s14, 16, %s255_s18, [#allocation26]  }
  0x8d   :  { %s6842_s10 = smov [#allocation28]   ;;  %s298_s26 = sshll.u32 %s6980_s5, 4  ;;  %s299_s26 = int_to_ptr.hbm [resolvable:$true] %s298_s26 }
  0x8e   :  { %s276_s28 = sshll.u32 %s6842_s10, 4  ;;  %s6390_s25 = sshra.s32 %s275_s2, 4  ;;  %s277_s28 = int_to_ptr.vmem [resolvable:$true] %s276_s28  ;;  %s6391_s25 = int_to_ptr.hbm [resolvable:$true] %s6390_s25 }
  0x8f   :  { %s6392_s0 = scalar_lea.hbm %s6391_s25, 1  ;;  %s6394_s12 = scalar_lea.hbm %s6970_s17, 1 }
  0x90   :  { %p6393_p7 = scmp.ne.s32.totalorder %s6391_s25, %s6392_s0  ;;  %p6395_p8 = scmp.lt.s32.totalorder %s6391_s25, %s6970_s17 }
  0x91   :  { %p6396_p9 = scmp.lt.s32.totalorder %s6394_s12, %s6392_s0 }
  0x93   :  { %p6397_p10 = por %p6396_p9, %p6395_p8 }
  0x95   :  { %p6398_p11 = pnand %p6397_p10, %p6393_p7 }
  0x97   :  { %6401 = shalt.err (!%p6398_p11)
}
  0x98   :  { %279 = dma.hbm_to_vmem [thread:$0]  %s275_s2, 16, %s277_s28, [#allocation29]  }
  0x99   :  { %s324_s13 = sshll.u32 %s7000_s20, 4  ;;  %s6843_s14 = smov [#allocation31]   ;;  %s325_s13 = int_to_ptr.hbm [resolvable:$true] %s324_s13 }
  0x9a   :  { %s300_s7 = sshll.u32 %s6843_s14, 4  ;;  %s6414_s16 = sshra.s32 %s299_s26, 4  ;;  %s301_s7 = int_to_ptr.vmem [resolvable:$true] %s300_s7  ;;  %s6415_s16 = int_to_ptr.hbm [resolvable:$true] %s6414_s16 }
  0x9b   :  { %s6416_s18 = scalar_lea.hbm %s6415_s16, 1  ;;  %s6418_s30 = scalar_lea.hbm %s6980_s5, 1 }
  0x9c   :  { %p6417_p12 = scmp.ne.s32.totalorder %s6415_s16, %s6416_s18  ;;  %p6419_p13 = scmp.lt.s32.totalorder %s6415_s16, %s6980_s5 }
  0x9d   :  { %p6420_p0 = scmp.lt.s32.totalorder %s6418_s30, %s6416_s18 }
  0x9f   :  { %p6421_p1 = por %p6420_p0, %p6419_p13 }
  0xa1   :  { %p6422_p2 = pnand %p6421_p1, %p6417_p12 }
  0xa3   :  { %6425 = shalt.err (!%p6422_p2)
}
  0xa4   :  { %303 = dma.hbm_to_vmem [thread:$0]  %s299_s26, 16, %s301_s7, [#allocation32]  }
  0xa5   :  { %s6844_s17 = smov [#allocation34]   ;;  %s88_s27 = sshll.u32 %s6890_s21, 4  ;;  %s7072_s27 = int_to_ptr.hbm [resolvable:$true] %s88_s27 }
  0xa6   :  { %s326_s2 = sshll.u32 %s6844_s17, 4  ;;  %s6438_s11 = sshra.s32 %s325_s13, 4  ;;  %s327_s2 = int_to_ptr.vmem [resolvable:$true] %s326_s2  ;;  %s6439_s11 = int_to_ptr.hbm [resolvable:$true] %s6438_s11 }
  0xa7   :  { %s6440_s10 = scalar_lea.hbm %s6439_s11, 12  ;;  %s6442_s28 = scalar_lea.hbm %s7000_s20, 12 }
  0xa8   :  { %p6441_p3 = scmp.ne.s32.totalorder %s6439_s11, %s6440_s10  ;;  %p6443_p4 = scmp.lt.s32.totalorder %s6439_s11, %s7000_s20 }
  0xa9   :  { %p6444_p5 = scmp.lt.s32.totalorder %s6442_s28, %s6440_s10 }
  0xab   :  { %p6445_p6 = por %p6444_p5, %p6443_p4 }
  0xad   :  { %p6446_p7 = pnand %p6445_p6, %p6441_p3 }
  0xaf   :  { %6449 = shalt.err (!%p6446_p7)
}
  0xb0   :  { %329 = dma.hbm_to_vmem [thread:$0]  %s325_s13, 192, %s327_s2, [#allocation35]  }
  0xb1   :  { %s115_s5 = sshll.u32 %s6900_s29, 4  ;;  %s6845_s26 = smov [#allocation4]   ;;  %s116_s5 = int_to_ptr.hbm [resolvable:$true] %s115_s5 }
  0xb2   :  { %s90_s25 = sshll.u32 %s6845_s26, 4  ;;  %s6462_s0 = sshra.s32 %s7072_s27, 4  ;;  %s91_s25 = int_to_ptr.vmem [resolvable:$true] %s90_s25  ;;  %s6463_s0 = int_to_ptr.hbm [resolvable:$true] %s6462_s0 }
  0xb3   :  { %s6464_s12 = scalar_lea.hbm %s6463_s0, 24  ;;  %s6466_s14 = scalar_lea.hbm %s6890_s21, 24 }
  0xb4   :  { %p6465_p8 = scmp.ne.s32.totalorder %s6463_s0, %s6464_s12  ;;  %p6467_p9 = scmp.lt.s32.totalorder %s6463_s0, %s6890_s21 }
  0xb5   :  { %p6468_p10 = scmp.lt.s32.totalorder %s6466_s14, %s6464_s12 }
  0xb7   :  { %p6469_p11 = por %p6468_p10, %p6467_p9 }
  0xb9   :  { %p6470_p12 = pnand %p6469_p11, %p6465_p8 }
  0xbb   :  { %6473 = shalt.err (!%p6470_p12)
}
  0xbc   :  { %96 = dma.hbm_to_vmem [thread:$0]  %s7072_s27, 384, %s91_s25, [#allocation5], %s6830_s22, %s6830_s22, %s6831_s23  }
  0xbd   :  { %s6846_s20 = smov [#allocation9]   ;;  %s137_s7 = sshll.u32 %s6910_s8, 4  ;;  %s138_s7 = int_to_ptr.hbm [resolvable:$true] %s137_s7 }
  0xbe   :  { %s117_s13 = sshll.u32 %s6846_s20, 4  ;;  %s6486_s16 = sshra.s32 %s116_s5, 4  ;;  %s118_s13 = int_to_ptr.vmem [resolvable:$true] %s117_s13  ;;  %s6487_s16 = int_to_ptr.hbm [resolvable:$true] %s6486_s16 }
  0xbf   :  { %s6488_s21 = scalar_lea.hbm %s6487_s16, 2  ;;  %s6490_s18 = scalar_lea.hbm %s6900_s29, 2 }
  0xc0   :  { %p6489_p13 = scmp.ne.s32.totalorder %s6487_s16, %s6488_s21  ;;  %p6491_p0 = scmp.lt.s32.totalorder %s6487_s16, %s6900_s29 }
  0xc1   :  { %p6492_p1 = scmp.lt.s32.totalorder %s6490_s18, %s6488_s21 }
  0xc3   :  { %p6493_p2 = por %p6492_p1, %p6491_p0 }
  0xc5   :  { %p6494_p3 = pnand %p6493_p2, %p6489_p13 }
  0xc7   :  { %6497 = shalt.err (!%p6494_p3)
}
  0xc8   :  { %120 = dma.hbm_to_vmem [thread:$0]  %s116_s5, 32, %s118_s13, [#allocation8]  }
  0xc9   :  { %s160_s30 = sshll.u32 %s6920_s19, 4  ;;  %s6847_s17 = smov [#allocation12]   ;;  %s7088_s30 = int_to_ptr.hbm [resolvable:$true] %s160_s30 }
  0xca   :  { %s139_s2 = sshll.u32 %s6847_s17, 4  ;;  %s6510_s27 = sshra.s32 %s138_s7, 4  ;;  %s140_s2 = int_to_ptr.vmem [resolvable:$true] %s139_s2  ;;  %s6511_s27 = int_to_ptr.hbm [resolvable:$true] %s6510_s27 }
  0xcb   :  { %s6512_s11 = scalar_lea.hbm %s6511_s27, 2  ;;  %s6514_s10 = scalar_lea.hbm %s6910_s8, 2 }
  0xcc   :  { %p6513_p4 = scmp.ne.s32.totalorder %s6511_s27, %s6512_s11  ;;  %p6515_p5 = scmp.lt.s32.totalorder %s6511_s27, %s6910_s8 }
  0xcd   :  { %p6516_p6 = scmp.lt.s32.totalorder %s6514_s10, %s6512_s11 }
  0xcf   :  { %p6517_p7 = por %p6516_p6, %p6515_p5 }
  0xd1   :  { %p6518_p8 = pnand %p6517_p7, %p6513_p4 }
  0xd3   :  { %6521 = shalt.err (!%p6518_p8)
}
  0xd4   :  { %142 = dma.hbm_to_vmem [thread:$0]  %s138_s7, 32, %s140_s2, [#allocation11]  }
  0xd5   :  { %s6848_s29 = smov [#allocation15]   ;;  %s188_s5 = sshll.u32 %s6935_s6, 4  ;;  %s7093_s5 = int_to_ptr.hbm [resolvable:$true] %s188_s5 }
  0xd6   :  { %s162_s28 = sshll.u32 %s6848_s29, 4  ;;  %s6534_s26 = sshra.s32 %s7088_s30, 4  ;;  %s163_s28 = int_to_ptr.vmem [resolvable:$true] %s162_s28  ;;  %s6535_s26 = int_to_ptr.hbm [resolvable:$true] %s6534_s26 }
  0xd7   :  { %s6536_s25 = scalar_lea.hbm %s6535_s26, 3  ;;  %s6538_s8 = scalar_lea.hbm %s6920_s19, 3 }
  0xd8   :  { %p6537_p9 = scmp.ne.s32.totalorder %s6535_s26, %s6536_s25  ;;  %p6539_p10 = scmp.lt.s32.totalorder %s6535_s26, %s6920_s19 }
  0xd9   :  { %p6540_p11 = scmp.lt.s32.totalorder %s6538_s8, %s6536_s25 }
  0xdb   :  { %p6541_p12 = por %p6540_p11, %p6539_p10 }
  0xdd   :  { %p6542_p13 = pnand %p6541_p12, %p6537_p9 }
  0xdf   :  { %6545 = shalt.err (!%p6542_p13)
}
  0xe0   :  { %s8705_s0 = sld [smem:[#allocation60_spill]]  ;;  %s6849_s14 = smov [#allocation18]  }
  0xe1   :  { %168 = dma.hbm_to_vmem [thread:$0]  %s7088_s30, 48, %s163_s28, [#allocation14], %s6837_s15, %s6837_s15, %s6838_s1  }
  0xe2   :  { %s190_s20 = sshll.u32 %s6849_s14, 4  ;;  %s6558_s19 = sshra.s32 %s7093_s5, 4  ;;  %s191_s20 = int_to_ptr.vmem [resolvable:$true] %s190_s20  ;;  %s6559_s19 = int_to_ptr.hbm [resolvable:$true] %s6558_s19 }
  0xe3   :  { %s6560_s13 = scalar_lea.hbm %s6559_s19, 576  ;;  %s6562_s7 = scalar_lea.hbm %s6935_s6, 576 }
  0xe4   :  { %p6561_p0 = scmp.ne.s32.totalorder %s6559_s19, %s6560_s13  ;;  %p6563_p1 = scmp.lt.s32.totalorder %s6559_s19, %s6935_s6 }
  0xe5   :  { %p6564_p2 = scmp.lt.s32.totalorder %s6562_s7, %s6560_s13 }
  0xe6   :  { %s214_s12 = sshll.u32 %s8705_s0, 4  ;;  %s7103_s12 = int_to_ptr.hbm [resolvable:$true] %s214_s12 }
  0xe7   :  { %p6565_p3 = por %p6564_p2, %p6563_p1 }
  0xe9   :  { %p6566_p4 = pnand %p6565_p3, %p6561_p0 }
  0xeb   :  { %6569 = shalt.err (!%p6566_p4)
}
  0xec   :  { %s8706_s16 = sld [smem:[#allocation61_spill]]  ;;  %s6850_s21 = smov [#allocation21]  }
  0xed   :  { %196 = dma.hbm_to_vmem [thread:$0]  %s7093_s5, 9216, %s191_s20, [#allocation17], %s6830_s22, %s6830_s22, %s6831_s23  }
  0xee   :  { %s216_s18 = sshll.u32 %s6850_s21, 4  ;;  %s6582_s17 = sshra.s32 %s7103_s12, 4  ;;  %s217_s18 = int_to_ptr.vmem [resolvable:$true] %s216_s18  ;;  %s6583_s17 = int_to_ptr.hbm [resolvable:$true] %s6582_s17 }
  0xef   :  { %s6584_s6 = scalar_lea.hbm %s6583_s17, 3  ;;  %s6586_s2 = scalar_lea.hbm %s8705_s0, 3 }
  0xf0   :  { %p6585_p5 = scmp.ne.s32.totalorder %s6583_s17, %s6584_s6  ;;  %p6587_p6 = scmp.lt.s32.totalorder %s6583_s17, %s8705_s0 }
  0xf1   :  { %p6588_p7 = scmp.lt.s32.totalorder %s6586_s2, %s6584_s6 }
  0xf2   :  { %s241_s30 = sshll.u32 %s8706_s16, 4  ;;  %s242_s30 = int_to_ptr.hbm [resolvable:$true] %s241_s30 }
  0xf3   :  { %p6589_p8 = por %p6588_p7, %p6587_p6 }
  0xf5   :  { %p6590_p9 = pnand %p6589_p8, %p6585_p5 }
  0xf7   :  { %6593 = shalt.err (!%p6590_p9)
}
  0xf8   :  { %s8707_s27 = sld [smem:[#allocation62_spill]]  ;;  %s6851_s10 = smov [#allocation24]  }
  0xf9   :  { %222 = dma.hbm_to_vmem [thread:$0]  %s7103_s12, 48, %s217_s18, [#allocation20], %s6837_s15, %s6837_s15, %s6838_s1  }
  0xfa   :  { %s243_s29 = sshll.u32 %s6851_s10, 4  ;;  %s6606_s28 = sshra.s32 %s242_s30, 4  ;;  %s244_s29 = int_to_ptr.vmem [resolvable:$true] %s243_s29  ;;  %s6607_s28 = int_to_ptr.hbm [resolvable:$true] %s6606_s28 }
  0xfb   :  { %s6608_s5 = scalar_lea.hbm %s6607_s28, 1  ;;  %s6610_s26 = scalar_lea.hbm %s8706_s16, 1 }
  0xfc   :  { %p6609_p10 = scmp.ne.s32.totalorder %s6607_s28, %s6608_s5  ;;  %p6611_p11 = scmp.lt.s32.totalorder %s6607_s28, %s8706_s16 }
  0xfd   :  { %p6612_p12 = scmp.lt.s32.totalorder %s6610_s26, %s6608_s5 }
  0xfe   :  { %s263_s11 = sshll.u32 %s8707_s27, 4  ;;  %s264_s11 = int_to_ptr.hbm [resolvable:$true] %s263_s11 }
  0xff   :  { %p6613_p13 = por %p6612_p12, %p6611_p11 }
 0x101   :  { %p6614_p0 = pnand %p6613_p13, %p6609_p10 }
 0x103   :  { %6617 = shalt.err (!%p6614_p0)
}
 0x104   :  { %246 = dma.hbm_to_vmem [thread:$0]  %s242_s30, 16, %s244_s29, [#allocation23]  }
 0x105   :  { %s8708_s25 = sld [smem:[#allocation63_spill]]  ;;  %s6852_s15 = smov [#allocation27]  }
 0x106   :  { %s265_s1 = sshll.u32 %s6852_s15, 4  ;;  %s6630_s0 = sshra.s32 %s264_s11, 4  ;;  %s266_s1 = int_to_ptr.vmem [resolvable:$true] %s265_s1  ;;  %s6631_s0 = int_to_ptr.hbm [resolvable:$true] %s6630_s0 }
 0x107   :  { %s6632_s12 = scalar_lea.hbm %s6631_s0, 1  ;;  %s6634_s14 = scalar_lea.hbm %s8707_s27, 1 }
 0x108   :  { %p6633_p1 = scmp.ne.s32.totalorder %s6631_s0, %s6632_s12  ;;  %p6635_p2 = scmp.lt.s32.totalorder %s6631_s0, %s8707_s27 }
 0x109   :  { %p6636_p3 = scmp.lt.s32.totalorder %s6634_s14, %s6632_s12 }
 0x10b   :  { %s284_s8 = sshll.u32 %s8708_s25, 4  ;;  %p6637_p4 = por %p6636_p3, %p6635_p2  ;;  %s7124_s8 = int_to_ptr.hbm [resolvable:$true] %s284_s8 }
 0x10d   :  { %p6638_p5 = pnand %p6637_p4, %p6633_p1 }
 0x10f   :  { %6641 = shalt.err (!%p6638_p5)
}
 0x110   :  { %268 = dma.hbm_to_vmem [thread:$0]  %s264_s11, 16, %s266_s1, [#allocation26]  }
 0x111   :  { %s8709_s20 = sld [smem:[#allocation66_spill]]  ;;  %s6853_s13 = smov [#allocation30]  }
 0x112   :  { %s286_s7 = sshll.u32 %s6853_s13, 4  ;;  %s6654_s16 = sshra.s32 %s7124_s8, 4  ;;  %s287_s7 = int_to_ptr.vmem [resolvable:$true] %s286_s7  ;;  %s6655_s16 = int_to_ptr.hbm [resolvable:$true] %s6654_s16 }
 0x113   :  { %s6656_s21 = scalar_lea.hbm %s6655_s16, 32  ;;  %s6658_s18 = scalar_lea.hbm %s8708_s25, 32 }
 0x114   :  { %p6657_p6 = scmp.ne.s32.totalorder %s6655_s16, %s6656_s21  ;;  %p6659_p7 = scmp.lt.s32.totalorder %s6655_s16, %s8708_s25 }
 0x115   :  { %p6660_p8 = scmp.lt.s32.totalorder %s6658_s18, %s6656_s21 }
 0x117   :  { %s313_s19 = sshll.u32 %s8709_s20, 4  ;;  %p6661_p9 = por %p6660_p8, %p6659_p7  ;;  %s314_s19 = int_to_ptr.hbm [resolvable:$true] %s313_s19 }
 0x119   :  { %p6662_p10 = pnand %p6661_p9, %p6657_p6 }
 0x11b   :  { %6665 = shalt.err (!%p6662_p10)
}
 0x11c   :  { %292 = dma.hbm_to_vmem [thread:$0]  %s7124_s8, 512, %s287_s7, [#allocation29], %s6830_s22, %s6830_s22, %s6831_s23  }
 0x11d   :  { %s6854_s30 = smov [#allocation33]   ;;  %s335_s6 = sshll.u32 %s7005_s24, 4  ;;  %s336_s6 = int_to_ptr.hbm [resolvable:$true] %s335_s6 }
 0x11e   :  { %s315_s17 = sshll.u32 %s6854_s30, 4  ;;  %s6678_s2 = sshra.s32 %s314_s19, 4  ;;  %s316_s17 = int_to_ptr.vmem [resolvable:$true] %s315_s17  ;;  %s6679_s2 = int_to_ptr.hbm [resolvable:$true] %s6678_s2 }
 0x11f   :  { %s6680_s27 = scalar_lea.hbm %s6679_s2, 1  ;;  %s6682_s11 = scalar_lea.hbm %s8709_s20, 1 }
 0x120   :  { %p6681_p11 = scmp.ne.s32.totalorder %s6679_s2, %s6680_s27  ;;  %p6683_p12 = scmp.lt.s32.totalorder %s6679_s2, %s8709_s20 }
 0x121   :  { %p6684_p13 = scmp.lt.s32.totalorder %s6682_s11, %s6680_s27 }
 0x123   :  { %p6685_p0 = por %p6684_p13, %p6683_p12 }
 0x125   :  { %p6686_p1 = pnand %p6685_p0, %p6681_p11 }
 0x127   :  { %6689 = shalt.err (!%p6686_p1)
}
 0x128   :  { %318 = dma.hbm_to_vmem [thread:$0]  %s314_s19, 16, %s316_s17, [#allocation32]  }
 0x129   :  { %s6855_s10 = smov [#allocation36]   ;;  %s6702_s23 = sshra.s32 %s336_s6, 4  ;;  %s6703_s23 = int_to_ptr.hbm [resolvable:$true] %s6702_s23 }
 0x12a   :  { %s337_s22 = sshll.u32 %s6855_s10, 4  ;;  %s6704_s29 = scalar_lea.hbm %s6703_s23, 8  ;;  %s338_s22 = int_to_ptr.vmem [resolvable:$true] %s337_s22 }
 0x12b   :  { %p6705_p2 = scmp.ne.s32.totalorder %s6703_s23, %s6704_s29  ;;  %s6706_s28 = scalar_lea.hbm %s7005_s24, 8 }
 0x12c   :  { %p6707_p3 = scmp.lt.s32.totalorder %s6703_s23, %s7005_s24  ;;  %p6708_p4 = scmp.lt.s32.totalorder %s6706_s28, %s6704_s29 }
 0x12e   :  { %p6709_p5 = por %p6708_p4, %p6707_p3 }
 0x130   :  { %p6710_p6 = pnand %p6709_p5, %p6705_p2 }
 0x132   :  { %6713 = shalt.err (!%p6710_p6)
}
 0x133   :  { %340 = dma.hbm_to_vmem [thread:$0]  %s336_s6, 128, %s338_s22, [#allocation35]  }
 0x134   :  { %6774 = dma.done.wait [#allocation5], 384  }
 0x135   :  { %6775 = vsyncadd [#allocation5], 4294966912 }
 0x136   :  { %6776 = dma.done.wait [#allocation8], 288  }
 0x137   :  { %6777 = vsyncadd [#allocation8], 4294967008 }
 0x138   :  { %6778 = dma.done.wait [#allocation11], 64  }
 0x139   :  { %6779 = vsyncadd [#allocation11], 4294967232 }
 0x13a   :  { %6780 = dma.done.wait [#allocation14], 240  }
 0x13b   :  { %6781 = vsyncadd [#allocation14], 4294967056 }
 0x13c   :  { %6782 = dma.done.wait [#allocation17], 9264  }
 0x13d   :  { %6783 = vsyncadd [#allocation17], 4294958032 }
 0x13e   :  { %6784 = dma.done.wait [#allocation20], 96  }
 0x13f   :  { %6785 = vsyncadd [#allocation20], 4294967200 }
 0x140   :  { %6786 = dma.done.wait [#allocation23], 64  }
 0x141   :  { %6787 = vsyncadd [#allocation23], 4294967232 }
 0x142   :  { %6788 = dma.done.wait [#allocation26], 32  }
 0x143   :  { %6789 = vsyncadd [#allocation26], 4294967264 }
 0x144   :  { %6790 = dma.done.wait [#allocation29], 528  }
 0x145   :  { %6791 = vsyncadd [#allocation29], 4294966768 }
 0x146   :  { %6792 = dma.done.wait [#allocation32], 32  }
 0x147   :  { %6793 = vsyncadd [#allocation32], 4294967264 }
 0x148   :  { %6794 = dma.done.wait [#allocation35], 320  }
 0x149   :  { %6795 = vsyncadd [#allocation35], 4294966976  ;;  %s8710_s24 = sld [smem:[#allocation55_spill]]  ;;  %v6856_v0 = vmov 1   ;;  %v6857_v1 = vmov 0   ;;  %v6858_v6 = vmov 2  }
 0x14a   :  { %6029 = vset.pattern.permute.xlu2 %v6856_v0  ;;  %6027 = vset.pattern.permute.xlu1 %v6856_v0  ;;  %v7144_v2 = vld [vmem:[#allocation33] sm:$0x1]  ;;  %v482_v16 = vld [vmem:[#allocation13] sm:$0x7]  ;;  %v6055_v21 = vld [vmem:[#allocation15] ss:$0 sm:$0xff] }
 0x14b   :  { %6026 = vset.pattern.permute.xlu0 %v6857_v1  ;;  %v787_v18 = vperm.slane %v482_v16, 0  ;;  %v7173_v19 = vperm.slane %v482_v16, 1  ;;  %v7175_v20 = vperm.slane %v482_v16, 2  ;;  %vm963_vm4 = vcmask 1046528   ;;  %s8711_s5 = sld [smem:[#allocation56_spill]]  ;;  %s6859_s25 = smov 32  }
 0x14c   :  { %s8714_s26 = sld [smem:[#allocation58_spill]]  ;;  %s432_s17 = sshll.u32 %s7010_s4, 4  ;;  %s433_s17 = int_to_ptr.hbm [resolvable:$true] %s432_s17 }
 0x14d   :  { %s8715_s15 = sld [smem:[#allocation59_spill]]  ;;  %s6860_s6 = smov [#allocation2]  }
 0x14e   :  { %s8745_s1 = sld [smem:[#allocation57_spill]]  ;;  %s434_s2 = sshll.u32 %s6860_s6, 4  ;;  %s435_s2 = int_to_ptr.vmem [resolvable:$true] %s434_s2 }
 0x14f   :  { %v442_v3 = vld [vmem:[%s8710_s24 + $0x20] sm:$0xff]  ;;  %v441_v4 = vld [vmem:[%s8710_s24 + $0x18] sm:$0xff]  ;;  %v440_v5 = vld [vmem:[%s8710_s24 + $0x10] sm:$0xff]  ;;  %s8809_s8 = sld [smem:[#allocation64_spill]]  ;;  %s6726_s27 = sshra.s32 %s433_s17, 4  ;;  %s6727_s27 = int_to_ptr.hbm [resolvable:$true] %s6726_s27 }
 0x150   :  { %818 = vperm.xlu1 %6027, %v442_v3   ;;  %784 = vperm.xlu0 %6026, %v442_v3   ;;  %v439_v7 = vld [vmem:[%s8710_s24 + $0x8] sm:$0xff]  ;;  %v438_v8 = vld [vmem:[%s8710_s24] sm:$0xff]  ;;  %v445_v11 = vld [vmem:[%s8710_s24 + $0x38] sm:$0xff]  ;;  %s6728_s11 = scalar_lea.hbm %s6727_s27, 6144  ;;  %s6730_s10 = scalar_lea.hbm %s7010_s4, 6144 }
 0x151   :  { %814 = vperm.xlu2 %6029, %v441_v4   ;;  %v447_v9 = vld [vmem:[%s8710_s24 + $0x48] sm:$0xff]  ;;  %v446_v10 = vld [vmem:[%s8710_s24 + $0x40] sm:$0xff]  ;;  %v444_v12 = vld [vmem:[%s8710_s24 + $0x30] sm:$0xff]  ;;  %p6729_p7 = scmp.ne.s32.totalorder %s6727_s27, %s6728_s11  ;;  %p6731_p8 = scmp.lt.s32.totalorder %s6727_s27, %s7010_s4 }
 0x152   :  { %v443_v13 = vld [vmem:[%s8710_s24 + $0x28] sm:$0xff]  ;;  %p6732_p9 = scmp.lt.s32.totalorder %s6730_s10, %s6728_s11 }
 0x154   :  { %p6733_p10 = por %p6732_p9, %p6731_p8 }
 0x156   :  { %p6734_p11 = pnand %p6733_p10, %p6729_p7 }
 0x158   :  { %6028 = vset.pattern.permute.xlu1 %v6857_v1  ;;  %779 = vperm.xlu0 %6026, %v441_v4  }
 0x159   :  { %6030 = vset.pattern.permute.xlu2 %v6858_v6  ;;  %774 = vperm.xlu1 %6028, %v440_v5  }
 0x15a   :  { %849 = vperm.xlu2 %6030, %v442_v3  }
 0x160   :  { %769 = vperm.xlu0 %6026, %v439_v7  }
 0x161   :  { %6031 = vset.pattern.permute.xlu1 %v6856_v0 }
 0x162   :  { %845 = vperm.xlu2 %6030, %v441_v4   ;;  %810 = vperm.xlu1 %6031, %v440_v5  }
 0x168   :  { %764 = vperm.xlu0 %6026, %v438_v8  }
 0x16a   :  { %841 = vperm.xlu2 %6030, %v440_v5   ;;  %806 = vperm.xlu1 %6031, %v439_v7  }
 0x170   :  { %6032 = vset.pattern.permute.xlu0 %v6856_v0 }
 0x171   :  { %802 = vperm.xlu0 %6032, %v438_v8  }
 0x172   :  { %833 = vperm.xlu2 %6030, %v438_v8   ;;  %6033 = vset.pattern.permute.xlu1 %v6858_v6 }
 0x173   :  { %837 = vperm.xlu1 %6033, %v439_v7  }
 0x179   :  { %6037 = vset.pattern.permute.xlu0 %v6858_v6 }
 0x17a   :  { %6035 = vset.pattern.permute.xlu2 %v6857_v1  ;;  %1531 = vperm.xlu0 %6037, %v447_v9  }
 0x17b   :  { %1461 = vperm.xlu2 %6035, %v446_v10   ;;  %6034 = vset.pattern.permute.xlu1 %v6857_v1 }
 0x17c   :  { %1466 = vperm.xlu1 %6034, %v447_v9  }
 0x182   :  { %6038 = vset.pattern.permute.xlu0 %v6856_v0 }
 0x183   :  { %6036 = vset.pattern.permute.xlu2 %v6856_v0  ;;  %1500 = vperm.xlu0 %6038, %v447_v9  }
 0x184   :  { %1496 = vperm.xlu2 %6036, %v446_v10   ;;  %1456 = vperm.xlu1 %6034, %v445_v11  }
 0x18b   :  { %1488 = vperm.xlu0 %6038, %v444_v12  }
 0x18c   :  { %1492 = vperm.xlu2 %6036, %v445_v11   ;;  %1451 = vperm.xlu1 %6034, %v444_v12  }
 0x193   :  { %6043 = vset.pattern.permute.xlu0 %v6857_v1 }
 0x194   :  { %6040 = vset.pattern.permute.xlu2 %v6857_v1  ;;  %6039 = vset.pattern.permute.xlu1 %v6858_v6 }
 0x195   :  { %1446 = vperm.xlu2 %6040, %v443_v13   ;;  %1527 = vperm.xlu1 %6039, %v446_v10  }
 0x19d   :  { %6041 = vset.pattern.permute.xlu2 %v6856_v0  ;;  %1523 = vperm.xlu1 %6039, %v445_v11  }
 0x19e   :  { %1484 = vperm.xlu2 %6041, %v443_v13  }
 0x1a5   :  { %1519 = vperm.xlu1 %6039, %v444_v12  }
 0x1a6   :  { %6042 = vset.pattern.permute.xlu2 %v6858_v6 }
 0x1a7   :  { %1515 = vperm.xlu2 %6042, %v443_v13  }
 0x1ab   :  { %v815_v14 = vpop.permute.xlu2 %814 }
 0x1ac   :  { %v825_v35 = vmul.f32 %v7173_v19, %v815_v14 }
 0x1ad   :  { %6044 = vset.pattern.permute.xlu1 %v6857_v1 }
 0x1af   :  { %6045 = vset.pattern.permute.xlu2 %v6857_v1 }
 0x1b4   :  { %v850_v15 = vpop.permute.xlu2 %849 }
 0x1b5   :  { %v857_v26 = vmul.f32 %v7175_v20, %v850_v15 }
 0x1bc   :  { %v846_v17 = vpop.permute.xlu2 %845 }
 0x1bd   :  { %v856_v38 = vmul.f32 %v7175_v20, %v846_v17 }
 0x1c2   :  { %v819_v22 = vpop.permute.xlu1 %818  ;;  %v785_v23 = vpop.permute.xlu0 %784 }
 0x1c3   :  { %v792_v24 = vmul.f32 %v787_v18, %v785_v23  ;;  %v826_v27 = vmul.f32 %v7173_v19, %v819_v22 }
 0x1c4   :  { %v842_v25 = vpop.permute.xlu2 %841 }
 0x1c5   :  { %v800_v28 = vadd.f32 %v6055_v21, %v792_v24  ;;  %v855_v50 = vmul.f32 %v7175_v20, %v842_v25 }
 0x1c7   :  { %v831_v29 = vadd.f32 %v826_v27, %v800_v28 }
 0x1c9   :  { %v862_v30 = vadd.f32 %v857_v26, %v831_v29 }
 0x1ca   :  { %v780_v31 = vpop.permute.xlu0 %779 }
 0x1cb   :  { %v5844_v32 = vmul.f32 -1.442695, %v862_v30  ;;  %v791_v33 = vmul.f32 %v787_v18, %v780_v31  ;;  %v775_v34 = vpop.permute.xlu1 %774 }
 0x1cc   :  { %v834_v37 = vpop.permute.xlu2 %833  ;;  %v790_v41 = vmul.f32 %v787_v18, %v775_v34 }
 0x1cd   :  { %6075 = vpow2.f32 %v5844_v32  ;;  %v799_v36 = vadd.f32 %v6055_v21, %v791_v33  ;;  %v853_v10 = vmul.f32 %v7175_v20, %v834_v37  ;;  %v483_v37 = vld [vmem:[#allocation13 + $0x4] sm:$0x7] }
 0x1ce   :  { %v798_v47 = vadd.f32 %v6055_v21, %v790_v41 }
 0x1cf   :  { %v830_v39 = vadd.f32 %v825_v35, %v799_v36 }
 0x1d1   :  { %v861_v40 = vadd.f32 %v856_v38, %v830_v39 }
 0x1d2   :  { %v770_v42 = vpop.permute.xlu0 %769 }
 0x1d3   :  { %v6076_v43 = vpop.eup %6075  ;;  %v5843_v44 = vmul.f32 -1.442695, %v861_v40  ;;  %v789_v58 = vmul.f32 %v787_v18, %v770_v42 }
 0x1d4   :  { %v882_v45 = vadd.f32 1.0, %v6076_v43  ;;  %v811_v46 = vpop.permute.xlu1 %810  ;;  %v7198_v43 = vperm.slane %v483_v37, 0 }
 0x1d5   :  { %6077 = vpow2.f32 %v5843_v44  ;;  %v824_v48 = vmul.f32 %v7173_v19, %v811_v46  ;;  %v7182_v49 = vpop.permute.xlu2 %1461  ;;  %v797_v63 = vadd.f32 %v6055_v21, %v789_v58 }
 0x1d6   :  { %6079 = vrcp.f32 %v882_v45  ;;  %v954_v4 = vand.u32 2147483648, %v882_v45  ;;  %v952_v8 = vand.u32 2147483647, %v882_v45  ;;  %vm948_vm1 = vweird.f32 %v882_v45 }
 0x1d7   :  { %v829_v51 = vadd.f32 %v824_v48, %v798_v47 }
 0x1d8   :  { %v955_v17 = vor.u32 1.1754944e-38, %v954_v4  ;;  %vm953_vm3 = vcmp.eq.f32.partialorder %v952_v8, 8.507059e+37 }
 0x1d9   :  { %v860_v52 = vadd.f32 %v855_v50, %v829_v51  ;;  %v7200_v50 = vperm.slane %v483_v37, 2 }
 0x1da   :  { %v765_v53 = vpop.permute.xlu0 %764 }
 0x1db   :  { %v6078_v54 = vpop.eup %6077  ;;  %v5842_v55 = vmul.f32 -1.442695, %v860_v52  ;;  %v788_v3 = vmul.f32 %v787_v18, %v765_v53 }
 0x1dc   :  { %v6080_v56 = vpop.eup %6079  ;;  %v881_v57 = vadd.f32 1.0, %v6078_v54  ;;  %v807_v59 = vpop.permute.xlu1 %806 }
 0x1dd   :  { %6081 = vpow2.f32 %v5842_v55  ;;  %v944_v60 = vmul.f32 %v6080_v56, %v882_v45  ;;  %v823_v5 = vmul.f32 %v7173_v19, %v807_v59  ;;  %vm949_vm0 = vweird.f32 %v6080_v56 }
 0x1de   :  { %6083 = vrcp.f32 %v881_v57  ;;  %v7185_v61 = vpop.permute.xlu2 %1496  ;;  %v796_v15 = vadd.f32 %v6055_v21, %v788_v3  ;;  %vm950_vm2 = vmor %vm948_vm1, %vm949_vm0  ;;  %v937_v34 = vand.u32 2147483647, %v881_v57  ;;  %vm933_vm6 = vweird.f32 %v881_v57 }
 0x1df   :  { %v945_v62 = vsub.f32 1.0, %v944_v60  ;;  %v828_v18 = vadd.f32 %v823_v5, %v797_v63  ;;  %v7211_v63 = vperm.slane %v483_v37, 1 }
 0x1e0   :  { %vm938_vm8 = vcmp.eq.f32.partialorder %v937_v34, 8.507059e+37 }
 0x1e1   :  { %v946_v7 = vmul.f32 %v6080_v56, %v945_v62 }
 0x1e3   :  { %v6082_v9 = vpop.eup %6081  ;;  %v803_v11 = vpop.permute.xlu0 %802  ;;  %v947_v12 = vadd.f32 %v6080_v56, %v946_v7 }
 0x1e4   :  { %v6084_v13 = vpop.eup %6083  ;;  %v7189_v14 = vadd.f32 1.0, %v6082_v9  ;;  %v822_v16 = vmul.f32 %v7173_v19, %v803_v11  ;;  %v939_v19 = vand.u32 2147483648, %v881_v57 }
 0x1e5   :  { %v838_v22 = vpop.permute.xlu1 %837  ;;  %v951_v23 = vsel %vm950_vm2, %v6080_v56, %v947_v12  ;;  %v929_v24 = vmul.f32 %v6084_v13, %v881_v57  ;;  %vm934_vm5 = vweird.f32 %v6084_v13  ;;  %v7205_v56 = vld [vmem:[#allocation15 + $0x1] ss:$0 sm:$0xff] }
 0x1e6   :  { %6085 = vrcp.f32 %v7189_v14  ;;  %v827_v25 = vadd.f32 %v822_v16, %v796_v15  ;;  %v854_v26 = vmul.f32 %v7175_v20, %v838_v22  ;;  %v7194_v27 = vpop.permute.xlu2 %1492  ;;  %v956_v28 = vsel %vm953_vm3, %v955_v17, %v951_v23  ;;  %vm935_vm7 = vmor %vm933_vm6, %vm934_vm5 }
 0x1e7   :  { %v971_v29 = vrot.slane %v956_v28, 1  ;;  %v930_v30 = vsub.f32 1.0, %v929_v24  ;;  %v940_v40 = vor.u32 1.1754944e-38, %v939_v19  ;;  %v924_v51 = vand.u32 2147483648, %v7189_v14 }
 0x1e8   :  { %v858_v21 = vadd.f32 %v853_v10, %v827_v25  ;;  %v859_v31 = vadd.f32 %v854_v26, %v828_v18  ;;  %v922_v54 = vand.u32 2147483647, %v7189_v14  ;;  %vm918_vm10 = vweird.f32 %v7189_v14 }
 0x1e9   :  { %v982_v32 = vmax.f32 %v956_v28, %v971_v29  ;;  %v931_v33 = vmul.f32 %v6084_v13, %v930_v30  ;;  %v925_v4 = vor.u32 1.1754944e-38, %v924_v51  ;;  %vm8692_vm6 = vcmask 318464  }
 0x1ea   :  { %v5840_v35 = vmul.f32 -1.442695, %v858_v21  ;;  %v5841_v36 = vmul.f32 -1.442695, %v859_v31  ;;  %vm923_vm12 = vcmp.eq.f32.partialorder %v922_v54, 8.507059e+37  ;;  %v1473_v21 = vmul.f32 %v7198_v43, %v7182_v49 }
 0x1eb   :  { %5845 = vmatpush.msk.msra.mxu1 %vm963_vm4, %v982_v32  ;;  %v932_v38 = vadd.f32 %v6084_v13, %v931_v33 }
 0x1ec   :  { %v6086_v20 = vpop.eup %6085  ;;  %6087 = vpow2.f32 %v5840_v35  ;;  %v1532_v39 = vpop.permute.xlu0 %1531 }
 0x1ed   :  { %6089 = vpow2.f32 %v5841_v36  ;;  %v936_v41 = vsel %vm935_vm7, %v6084_v13, %v932_v38  ;;  %v914_v42 = vmul.f32 %v6086_v20, %v7189_v14  ;;  %vm919_vm9 = vweird.f32 %v6086_v20 }
 0x1ee   :  { %v1467_v44 = vpop.permute.xlu1 %1466  ;;  %v941_v45 = vsel %vm938_vm8, %v940_v40, %v936_v41  ;;  %vm920_vm11 = vmor %vm918_vm10, %vm919_vm9  ;;  %v1539_v5 = vmul.f32 %v7200_v50, %v1532_v39  ;;  %v1481_v40 = vadd.f32 %v7205_v56, %v1473_v21 }
 0x1ef   :  { %v1447_v46 = vpop.permute.xlu2 %1446  ;;  %v969_v47 = vrot.slane %v941_v45, 1  ;;  %v915_v48 = vsub.f32 1.0, %v914_v42  ;;  %v1474_v57 = vmul.f32 %v7198_v43, %v1467_v44  ;;  %v1507_v42 = vmul.f32 %v7211_v63, %v7185_v61 }
 0x1f0   :  { %v1470_v14 = vmul.f32 %v7198_v43, %v1447_v46 }
 0x1f1   :  { %v972_v52 = vsel %vm963_vm4, %v969_v47, %v971_v29  ;;  %v916_v53 = vmul.f32 %v6086_v20, %v915_v48  ;;  %v1482_v9 = vadd.f32 %v7205_v56, %v1474_v57 }
 0x1f2   :  { %v6088_v55 = vpop.eup %6087  ;;  %v981_v58 = vmax.f32 %v941_v45, %v972_v52  ;;  %v1478_v25 = vadd.f32 %v7205_v56, %v1470_v14  ;;  %v7236_v14 = vld [vmem:[#allocation4] sm:$0xff] }
 0x1f3   :  { %v6090_v59 = vpop.eup %6089  ;;  %v7208_v60 = vadd.f32 1.0, %v6088_v55  ;;  %v917_v62 = vadd.f32 %v6086_v20, %v916_v53 }
 0x1f4   :  { %v879_v3 = vadd.f32 1.0, %v6090_v59  ;;  %1008 = vmatpush.msra.mxu1 %v981_v58 }
 0x1f5   :  { %6091 = vrcp.f32 %v7208_v60  ;;  %v1501_v7 = vpop.permute.xlu0 %1500  ;;  %v921_v8 = vsel %vm920_vm11, %v6086_v20, %v917_v62  ;;  %v892_v33 = vand.u32 2147483647, %v7208_v60  ;;  %v894_v34 = vand.u32 2147483648, %v7208_v60 }
 0x1f6   :  { %6093 = vrcp.f32 %v879_v3  ;;  %v1508_v10 = vmul.f32 %v7211_v63, %v1501_v7  ;;  %v1457_v11 = vpop.permute.xlu1 %1456  ;;  %v926_v12 = vsel %vm923_vm12, %v925_v4, %v921_v8  ;;  %v909_v36 = vand.u32 2147483648, %v879_v3 }
 0x1f7   :  { %v967_v13 = vrot.slane %v926_v12, 1  ;;  %v907_v39 = vand.u32 2147483647, %v879_v3  ;;  %vm888_vm15 = vweird.f32 %v7208_v60  ;;  %vm903_vm0 = vweird.f32 %v879_v3 }
 0x1f8   :  { %v1513_v15 = vadd.f32 %v1508_v10, %v1482_v9  ;;  %v1485_v16 = vpop.permute.xlu2 %1484  ;;  %v895_v45 = vor.u32 1.1754944e-38, %v894_v34  ;;  %v910_v48 = vor.u32 1.1754944e-38, %v909_v36  ;;  %vm893_vm3 = vcmp.eq.f32.partialorder %v892_v33, 8.507059e+37 }
 0x1f9   :  { %v970_v17 = vsel %vm963_vm4, %v967_v13, %v969_v47  ;;  %v1504_v28 = vmul.f32 %v7211_v63, %v1485_v16  ;;  %vm908_vm5 = vcmp.eq.f32.partialorder %v907_v39, 8.507059e+37  ;;  %v1472_v62 = vmul.f32 %v7198_v43, %v1457_v11 }
 0x1fa   :  { %v1544_v18 = vadd.f32 %v1539_v5, %v1513_v15  ;;  %v980_v22 = vmax.f32 %v926_v12, %v970_v17  ;;  %v1506_v11 = vmul.f32 %v7211_v63, %v7194_v27 }
 0x1fb   :  { %v6092_v23 = vpop.eup %6091  ;;  %v1509_v35 = vadd.f32 %v1504_v28, %v1478_v25  ;;  %v1480_v9 = vadd.f32 %v7205_v56, %v1472_v62 }
 0x1fc   :  { %v6094_v24 = vpop.eup %6093  ;;  %v5864_v26 = vmul.f32 -1.442695, %v1544_v18  ;;  %1009 = vmatpush.msra.mxu1 %v980_v22  ;;  %v884_v29 = vmul.f32 %v6092_v23, %v7208_v60  ;;  %vm889_vm13 = vweird.f32 %v6092_v23  ;;  %v1512_v60 = vadd.f32 %v1507_v42, %v1481_v40  ;;  %v7255_v42 = vld [vmem:[#allocation4 + $0x10] sm:$0xf] }
 0x1fd   :  { %v899_v30 = vmul.f32 %v6094_v24, %v879_v3  ;;  %vm904_vm14 = vweird.f32 %v6094_v24  ;;  %vm890_vm1 = vmor %vm888_vm15, %vm889_vm13  ;;  %v1489_v18 = vpop.permute.xlu0 %1488  ;;  %v1511_v22 = vadd.f32 %v1506_v11, %v1480_v9 }
 0x1fe   :  { %6095 = vpow2.f32 %v5864_v26  ;;  %v1452_v31 = vpop.permute.xlu1 %1451  ;;  %v885_v19 = vsub.f32 1.0, %v884_v29  ;;  %vm905_vm2 = vmor %vm903_vm0, %vm904_vm14  ;;  %v1505_v21 = vmul.f32 %v7211_v63, %v1489_v18 }
 0x1ff   :  { %v900_v32 = vsub.f32 1.0, %v899_v30  ;;  %v1471_v16 = vmul.f32 %v7198_v43, %v1452_v31 }
 0x200   :  { %v886_v37 = vmul.f32 %v6092_v23, %v885_v19 }
 0x201   :  { %v1516_v38 = vpop.permute.xlu2 %1515  ;;  %v901_v20 = vmul.f32 %v6094_v24, %v900_v32  ;;  %v1479_v30 = vadd.f32 %v7205_v56, %v1471_v16  ;;  %v7248_v32 = vld [vmem:[#allocation4 + $0x8] sm:$0xff] }
 0x202   :  { %v1535_v49 = vmul.f32 %v7200_v50, %v1516_v38  ;;  %v887_v41 = vadd.f32 %v6092_v23, %v886_v37 }
 0x203   :  { %v902_v44 = vadd.f32 %v6094_v24, %v901_v20  ;;  %v1510_v63 = vadd.f32 %v1505_v21, %v1479_v30  ;;  %v457_v30 = vld [vmem:[%s8711_s5 + $0x20] sm:$0xff]  ;;  %v458_v21 = vld [vmem:[%s8711_s5 + $0x28] sm:$0xf] }
 0x204   :  { %v6096_v46 = vpop.eup %6095  ;;  %v1540_v47 = vadd.f32 %v1535_v49, %v1509_v35  ;;  %v891_v51 = vsel %vm890_vm1, %v6092_v23, %v887_v41  ;;  %1712 = vperm.xlu1 %6044, %v457_v30   ;;  %1717 = vperm.xlu2 %6045, %v458_v21  }
 0x205   :  { %v1564_v52 = vadd.f32 1.0, %v6096_v46  ;;  %v906_v53 = vsel %vm905_vm2, %v6094_v24, %v902_v44  ;;  %v896_v54 = vsel %vm893_vm3, %v895_v45, %v891_v51 }
 0x206   :  { %v911_v55 = vsel %vm908_vm5, %v910_v48, %v906_v53  ;;  %v964_v57 = vrot.slane %v896_v54, 1  ;;  %v5860_v58 = vmul.f32 -1.442695, %v1540_v47 }
 0x207   :  { %6097 = vrcp.f32 %v1564_v52  ;;  %v1528_v59 = vpop.permute.xlu1 %1527  ;;  %v965_v61 = vrot.slane %v911_v55, 1  ;;  %v1636_v26 = vand.u32 2147483648, %v1564_v52  ;;  %v1634_v27 = vand.u32 2147483647, %v1564_v52 }
 0x208   :  { %v1538_v3 = vmul.f32 %v7200_v50, %v1528_v59  ;;  %6099 = vpow2.f32 %v5860_v58  ;;  %vm1630_vm8 = vweird.f32 %v1564_v52 }
 0x209   :  { %v968_v4 = vsel %vm963_vm4, %v965_v61, %v967_v13  ;;  %v966_v5 = vsel %vm963_vm4, %v964_v57, %v965_v61  ;;  %v1637_v35 = vor.u32 1.1754944e-38, %v1636_v26  ;;  %vm1635_vm10 = vcmp.eq.f32.partialorder %v1634_v27, 8.507059e+37  ;;  %v456_v27 = vld [vmem:[%s8711_s5 + $0x18] sm:$0xff] }
 0x20a   :  { %v1543_v7 = vadd.f32 %v1538_v3, %v1512_v60  ;;  %v979_v8 = vmax.f32 %v911_v55, %v968_v4  ;;  %v978_v12 = vmax.f32 %v896_v54, %v966_v5  ;;  %1707 = vperm.xlu0 %6043, %v456_v27  }
 0x20c   :  { %v5863_v10 = vmul.f32 -1.442695, %v1543_v7  ;;  %1010 = vmatpush.msra.mxu1 %v979_v8 }
 0x20d   :  { %v6098_v15 = vpop.eup %6097 }
 0x20e   :  { %6101 = vpow2.f32 %v5863_v10  ;;  %1011 = vmatpush.msra.mxu1 %v978_v12  ;;  %v1626_v13 = vmul.f32 %v6098_v15, %v1564_v52  ;;  %v6100_v25 = vpop.eup %6099  ;;  %vm1631_vm7 = vweird.f32 %v6098_v15 }
 0x20f   :  { %v1524_v17 = vpop.permute.xlu1 %1523  ;;  %5846 = vmatmul.msk.f32.vlgmr.msra.gmra.mxu1 %vm8692_vm6, %v7236_v14  ;;  %v7246_v31 = vadd.f32 1.0, %v6100_v25  ;;  %vm1632_vm9 = vmor %vm1630_vm8, %vm1631_vm7 }
 0x210   :  { %v1537_v23 = vmul.f32 %v7200_v50, %v1524_v17  ;;  %v1627_v24 = vsub.f32 1.0, %v1626_v13 }
 0x211   :  { %vm1570_vm1 = vweird.f32 %v7246_v31  ;;  %v1576_v18 = vand.u32 2147483648, %v7246_v31  ;;  %v1574_v26 = vand.u32 2147483647, %v7246_v31 }
 0x212   :  { %v1542_v28 = vadd.f32 %v1537_v23, %v1511_v22  ;;  %v1628_v29 = vmul.f32 %v6098_v15, %v1627_v24  ;;  %6046 = vset.pattern.permute.xlu0 %v6856_v0 }
 0x214   :  { %v6102_v43 = vpop.eup %6101  ;;  %v5862_v19 = vmul.f32 -1.442695, %v1542_v28  ;;  %v1629_v33 = vadd.f32 %v6098_v15, %v1628_v29 }
 0x215   :  { %v1563_v34 = vadd.f32 1.0, %v6102_v43 }
 0x216   :  { %6103 = vpow2.f32 %v5862_v19  ;;  %v1633_v36 = vsel %vm1632_vm9, %v6098_v15, %v1629_v33  ;;  %v1577_v33 = vor.u32 1.1754944e-38, %v1576_v18  ;;  %v469_v18 = vld [vmem:[%s8714_s26 + $0x8] sm:$0x3] }
 0x217   :  { %6105 = vrcp.f32 %v1563_v34  ;;  %v1520_v37 = vpop.permute.xlu1 %1519  ;;  %5847 = vmatmul.msk.f32.gmra.mxu1 %vm8692_vm6, %v7248_v32  ;;  %v1638_v56 = vsel %vm1635_vm10, %v1637_v35, %v1633_v36  ;;  %v1621_v48 = vand.u32 2147483648, %v1563_v34  ;;  %v1619_v53 = vand.u32 2147483647, %v1563_v34 }
 0x218   :  { %6107 = vrcp.f32 %v7246_v31  ;;  %v1536_v38 = vmul.f32 %v7200_v50, %v1520_v37  ;;  %v1652_v20 = vrot.slane %v1638_v56, 1  ;;  %vm1615_vm12 = vweird.f32 %v1563_v34 }
 0x219   :  { %v1622_v59 = vor.u32 1.1754944e-38, %v1621_v48  ;;  %vm1620_vm14 = vcmp.eq.f32.partialorder %v1619_v53, 8.507059e+37  ;;  %vm1575_vm10 = vcmp.eq.f32.partialorder %v1574_v26, 8.507059e+37  ;;  %v6058_v53 = vld [vmem:[#allocation22] ss:$0 sm:$0xff] }
 0x21a   :  { %v1541_v39 = vadd.f32 %v1536_v38, %v1510_v63  ;;  %v1663_v40 = vmax.f32 %v1638_v56, %v1652_v20 }
 0x21c   :  { %v6104_v49 = vpop.eup %6103  ;;  %v5861_v41 = vmul.f32 -1.442695, %v1541_v39  ;;  %5865 = vmatpush.msk.msra.mxu2 %vm963_vm4, %v1663_v40 }
 0x21d   :  { %v6106_v44 = vpop.eup %6105  ;;  %v1562_v45 = vadd.f32 1.0, %v6104_v49 }
 0x21e   :  { %v7257_v46 = vpop.eup %6107  ;;  %6109 = vpow2.f32 %v5861_v41  ;;  %v1611_v47 = vmul.f32 %v6106_v44, %v1563_v34  ;;  %vm1616_vm11 = vweird.f32 %v6106_v44 }
 0x21f   :  { %6111 = vrcp.f32 %v1562_v45  ;;  %5848 = vmatmul.msk.f32.gmra.mxu1 %vm8692_vm6, %v7255_v42  ;;  %v1566_v51 = vmul.f32 %v7257_v46, %v7246_v31  ;;  %vm1617_vm13 = vmor %vm1615_vm12, %vm1616_vm11  ;;  %v1606_v7 = vand.u32 2147483648, %v1562_v45  ;;  %v1604_v12 = vand.u32 2147483647, %v1562_v45 }
 0x220   :  { %v1612_v50 = vsub.f32 1.0, %v1611_v47  ;;  %vm1600_vm0 = vweird.f32 %v1562_v45  ;;  %vm1571_vm2 = vweird.f32 %v7257_v46 }
 0x221   :  { %v1567_v61 = vsub.f32 1.0, %v1566_v51  ;;  %v1607_v16 = vor.u32 1.1754944e-38, %v1606_v7  ;;  %vm1605_vm5 = vcmp.eq.f32.partialorder %v1604_v12, 8.507059e+37  ;;  %vm7269_vm7 = vmor %vm1570_vm1, %vm1571_vm2  ;;  %v6057_v51 = vld [vmem:[#allocation21] ss:$0 sm:$0xff] }
 0x222   :  { %v1613_v52 = vmul.f32 %v6106_v44, %v1612_v50  ;;  %v1064_v50 = vlaneseq }
 0x223   :  { %v1568_v8 = vmul.f32 %v7257_v46, %v1567_v61 }
 0x224   :  { %v6110_v54 = vpop.eup %6109  ;;  %v1614_v55 = vadd.f32 %v6106_v44, %v1613_v52  ;;  %v7291_v48 = vshrl.u32 %v1064_v50, 7 }
 0x225   :  { %v6112_v57 = vpop.eup %6111  ;;  %v1561_v58 = vadd.f32 1.0, %v6110_v54  ;;  %v1569_v17 = vadd.f32 %v7257_v46, %v1568_v8 }
 0x226   :  { %v1618_v60 = vsel %vm1617_vm13, %v6106_v44, %v1614_v55  ;;  %v1596_v62 = vmul.f32 %v6112_v57, %v1562_v45  ;;  %vm1601_vm15 = vweird.f32 %v6112_v57  ;;  %v1071_v55 = vand.u32 65535, %v7291_v48 }
 0x227   :  { %6113 = vrcp.f32 %v1561_v58  ;;  %v1623_v3 = vsel %vm1620_vm14, %v1622_v59, %v1618_v60  ;;  %vm1602_vm3 = vmor %vm1600_vm0, %vm1601_vm15  ;;  %v1591_v43 = vand.u32 2147483648, %v1561_v58  ;;  %v1573_v19 = vsel %vm7269_vm7, %v7257_v46, %v1569_v17 }
 0x228   :  { %v1650_v4 = vrot.slane %v1623_v3, 1  ;;  %v1597_v5 = vsub.f32 1.0, %v1596_v62  ;;  %v1589_v36 = vand.u32 2147483647, %v1561_v58  ;;  %vm1585_vm9 = vweird.f32 %v1561_v58  ;;  %v468_v62 = vld [vmem:[%s8714_s26] sm:$0xff] }
 0x229   :  { %v1592_v56 = vor.u32 1.1754944e-38, %v1591_v43  ;;  %v1578_v63 = vsel %vm1575_vm10, %v1577_v33, %v1573_v19  ;;  %vm8680_vm13 = vcmask 1043456   ;;  %v1075_v59 = vmul.u32 52428, %v1071_v55 }
 0x22a   :  { %v1653_v9 = vsel %vm963_vm4, %v1650_v4, %v1652_v20  ;;  %v1598_v10 = vmul.f32 %v6112_v57, %v1597_v5  ;;  %vm1590_vm12 = vcmp.eq.f32.partialorder %v1589_v36, 8.507059e+37  ;;  %v1645_v40 = vrot.slane %v1578_v63, 1 }
 0x22b   :  { %v1662_v15 = vmax.f32 %v1623_v3, %v1653_v9  ;;  %v7304_v60 = vadd.s32 8, %v7291_v48  ;;  %vm8691_vm14 = vcmask 162816   ;;  %v1078_v5 = vshll.u32 %v1075_v59, 16 }
 0x22c   :  { %v1599_v11 = vadd.f32 %v6112_v57, %v1598_v10  ;;  %v7309_v7 = vadd.s32 16, %v7291_v48 }
 0x22d   :  { %v6114_v13 = vpop.eup %6113  ;;  %1679 = vmatpush.msra.mxu2 %v1662_v15  ;;  %v1100_v8 = vand.u32 65535, %v7304_v60 }
 0x22e   :  { %v1603_v22 = vsel %vm1602_vm3, %v6112_v57, %v1599_v11  ;;  %v1581_v23 = vmul.f32 %v6114_v13, %v1561_v58  ;;  %vm1586_vm8 = vweird.f32 %v6114_v13  ;;  %v1129_v9 = vand.u32 65535, %v7309_v7 }
 0x22f   :  { %v1608_v24 = vsel %vm1605_vm5, %v1607_v16, %v1603_v22  ;;  %vm1587_vm11 = vmor %vm1585_vm9, %vm1586_vm8  ;;  %v1130_v15 = vshrl.u32 %v7309_v7, 16  ;;  %v1104_v16 = vmul.u32 52428, %v1100_v8  ;;  %v1103_v26 = vmul.u32 52429, %v1100_v8 }
 0x230   :  { %v1648_v28 = vrot.slane %v1608_v24, 1  ;;  %v1582_v29 = vsub.f32 1.0, %v1581_v23  ;;  %v1133_v11 = vmul.u32 52428, %v1129_v9  ;;  %v1132_v23 = vmul.u32 52429, %v1129_v9 }
 0x231   :  { %v1135_v19 = vmul.u32 52428, %v1130_v15 }
 0x232   :  { %v1651_v34 = vsel %vm963_vm4, %v1648_v28, %v1650_v4  ;;  %v1583_v35 = vmul.f32 %v6114_v13, %v1582_v29  ;;  %v1074_v4 = vmul.u32 52429, %v1071_v55  ;;  %v1136_v25 = vshll.u32 %v1133_v11, 16 }
 0x233   :  { %v1661_v31 = vmax.f32 %v1608_v24, %v1651_v34  ;;  %v1134_v24 = vmul.u32 52429, %v1130_v15  ;;  %v1107_v29 = vshll.u32 %v1104_v16, 16 }
 0x234   :  { %v1584_v37 = vadd.f32 %v6114_v13, %v1583_v35  ;;  %vm1082_vm15 = vc.u32 %v1074_v4, %v1078_v5  ;;  %v1084_v12 = vadd.s32 %v1078_v5, %v1074_v4  ;;  %vm1140_vm1 = vc.u32 %v1132_v23, %v1136_v25  ;;  %v6060_v4 = vld [vmem:[#allocation22 + $0x1] ss:$0 sm:$0xff] }
 0x235   :  { %1680 = vmatpush.msra.mxu2 %v1661_v31  ;;  %v1083_v22 = vsel %vm1082_vm15, 1, %v6857_v1  ;;  %v1138_v21 = vshll.u32 %v1134_v24, 16  ;;  %v1142_v43 = vadd.s32 %v1136_v25, %v1132_v23  ;;  %vm1111_vm2 = vc.u32 %v1103_v26, %v1107_v29 }
 0x236   :  { %v1588_v38 = vsel %vm1587_vm11, %v6114_v13, %v1584_v37  ;;  %v1101_v13 = vshrl.u32 %v7304_v60, 16  ;;  %v1113_v34 = vadd.s32 %v1107_v29, %v1103_v26  ;;  %v1079_v35 = vshrl.u32 %v1075_v59, 16  ;;  %v7330_v59 = vld [vmem:[#allocation25] ss:$0 sm:$0xff] }
 0x237   :  { %v1593_v20 = vsel %vm1590_vm12, %v1592_v56, %v1588_v38  ;;  %v1141_v31 = vsel %vm1140_vm1, 1, %v6857_v1  ;;  %vm1144_vm3 = vc.u32 %v1142_v43, %v1138_v21  ;;  %v1112_v56 = vsel %vm1111_vm2, 1, %v6857_v1 }
 0x238   :  { %v1646_v39 = vrot.slane %v1593_v20, 1  ;;  %v1106_v37 = vmul.u32 52428, %v1101_v13  ;;  %vm8690_vm1 = vcmask 1040384  }
 0x23a   :  { %v1649_v49 = vsel %vm963_vm4, %v1646_v39, %v1648_v28  ;;  %v1647_v41 = vsel %vm963_vm4, %v1645_v40, %v1646_v39  ;;  %v1105_v28 = vmul.u32 52429, %v1101_v13  ;;  %v1145_v39 = vsel %vm1144_vm3, 1, %v6857_v1 }
 0x23b   :  { %v1660_v44 = vmax.f32 %v1593_v20, %v1649_v49  ;;  %v1659_v45 = vmax.f32 %v1578_v63, %v1647_v41  ;;  %v1143_v63 = vadd.s32 %v1141_v31, %v1135_v19  ;;  %v1114_v40 = vadd.s32 %v1112_v56, %v1106_v37 }
 0x23c   :  { %v1109_v33 = vshll.u32 %v1105_v28, 16  ;;  %v1137_v41 = vshrl.u32 %v1133_v11, 16 }
 0x23d   :  { %1681 = vmatpush.msra.mxu2 %v1660_v44  ;;  %v1147_v44 = vadd.s32 %v1145_v39, %v1143_v63 }
 0x23e   :  { %vm1115_vm5 = vc.u32 %v1113_v34, %v1109_v33 }
 0x23f   :  { %1682 = vmatpush.msra.mxu2 %v1659_v45  ;;  %v1116_v49 = vsel %vm1115_vm5, 1, %v6857_v1  ;;  %vm1203_vm5 = vcmask 1042432  }
 0x240   :  { %5866 = vmatmul.msk.f32.vlgmr.msra.gmra.mxu2 %vm8692_vm6, %v7236_v14 }
 0x248   :  { %5867 = vmatmul.msk.f32.gmra.mxu2 %vm8692_vm6, %v7248_v32 }
 0x250   :  { %5868 = vmatmul.msk.f32.gmra.mxu2 %vm8692_vm6, %v7255_v42  ;;  %v1072_v42 = vshrl.u32 %v7291_v48, 16 }
 0x252   :  { %v1076_v3 = vmul.u32 52429, %v1072_v42  ;;  %v1077_v17 = vmul.u32 52428, %v1072_v42  ;;  %v6059_v42 = vld [vmem:[#allocation21 + $0x1] ss:$0 sm:$0xff] }
 0x254   :  { %v1080_v10 = vshll.u32 %v1076_v3, 16  ;;  %v1085_v27 = vadd.s32 %v1083_v22, %v1077_v17  ;;  %v1081_v38 = vshrl.u32 %v1076_v3, 16 }
 0x256   :  { %vm1086_vm0 = vc.u32 %v1084_v12, %v1080_v10 }
 0x257   :  { %v1087_v30 = vsel %vm1086_vm0, 1, %v6857_v1 }
 0x258   :  { %v1089_v36 = vadd.s32 %v1087_v30, %v1085_v27 }
 0x25a   :  { %v1090_v20 = vadd.s32 %v1089_v36, %v1079_v35 }
 0x25c   :  { %v7325_v45 = vadd.s32 %v1090_v20, %v1081_v38 }
 0x25e   :  { %v1092_v55 = vshrl.u32 %v7325_v45, 3  ;;  %v1718_v27 = vpop.permute.xlu2 %1717 }
 0x260   :  { %v1093_v5 = vmul.u32 10, %v1092_v55 }
 0x276   :  { %v1713_v15 = vpop.permute.xlu1 %1712 }
 0x28c   :  { %v1013_v46 = vpop.f32.mrf.mxu1 }
 0x28d   :  { %v1025_v14 = vmul.f32 %v6057_v51, %v1013_v46  ;;  %v1108_v46 = vshrl.u32 %v1104_v16, 16  ;;  %v1094_v16 = vsub.s32 %v7291_v48, %v1093_v5  ;;  %v449_v5 = vld [vmem:[%s8710_s24 + $0x58] sm:$0xff] }
 0x28f   :  { %v7301_v61 = vadd.f32 %v6058_v53, %v1025_v14  ;;  %v1110_v14 = vshrl.u32 %v1105_v28, 16  ;;  %vm1155_vm7 = vcmp.ne.s32.totalorder %v1094_v16, 0  ;;  %vm1158_vm8 = vcmp.lt.s32.totalorder %v1094_v16, 0 }
 0x290   :  { %v1164_v29 = vadd.s32 10, %v1094_v16  ;;  %vm1161_vm9 = vmand %vm1158_vm8, %vm1155_vm7 }
 0x292   :  { %v7347_v34 = vsel %vm1161_vm9, %v1164_v29, %v1094_v16  ;;  %v510_v16 = vld [vmem:[%s8715_s15 + $0xb0] sm:$0xff]  ;;  %v503_v29 = vld [vmem:[%s8715_s15 + $0x78] sm:$0xff]  ;;  %vm8685_vm9 = vcmask 261120  }
 0x293   :  { %vm8689_vm10 = vcmp.eq.s32.totalorder %v7347_v34, 9 }
 0x294   :  { %v1016_v47 = vpop.f32.mrf.mxu1 }
 0x295   :  { %v1026_v52 = vmul.f32 %v6057_v51, %v1016_v47  ;;  %v1118_v47 = vadd.s32 %v1116_v49, %v1114_v40 }
 0x297   :  { %v7296_v58 = vadd.f32 %v6058_v53, %v1026_v52  ;;  %v1708_v52 = vpop.permute.xlu0 %1707 }
 0x29c   :  { %v1019_v54 = vpop.f32.mrf.mxu1 }
 0x29d   :  { %v1027_v57 = vmul.f32 %v6057_v51, %v1019_v54  ;;  %v7327_v51 = vld [vmem:[#allocation24] ss:$0 sm:$0xff]  ;;  %v1148_v54 = vadd.s32 %v1147_v44, %v1137_v41 }
 0x29e   :  { %v1721_v22 = vmul.f32 %v7327_v51, %v1713_v15  ;;  %v1722_v33 = vmul.f32 %v7327_v51, %v1718_v27  ;;  %v7397_v15 = vld [vmem:[#allocation30 + $0x8] sm:$0xff]  ;;  %v461_v27 = vld [vmem:[%s8711_s5 + $0x40] sm:$0xf] }
 0x29f   :  { %v7294_v32 = vadd.f32 %v6058_v53, %v1027_v57  ;;  %v1139_v53 = vshrl.u32 %v1134_v24, 16  ;;  %v1119_v57 = vadd.s32 %v1118_v47, %v1108_v46 }
 0x2a0   :  { %v1724_v26 = vadd.f32 %v7330_v59, %v1721_v22  ;;  %v1725_v63 = vadd.f32 %v7330_v59, %v1722_v33  ;;  %v508_v22 = vld [vmem:[%s8715_s15 + $0xa0] sm:$0xff]  ;;  %v455_v33 = vld [vmem:[%s8711_s5 + $0x10] sm:$0xf] }
 0x2a1   :  { %5855 = vmatpush.msk.msra.mxu0 %vm8680_vm13, %v7294_v32  ;;  %v1149_v3 = vadd.s32 %v1148_v54, %v1139_v53  ;;  %v7333_v9 = vadd.s32 %v1119_v57, %v1110_v14 }
 0x2a3   :  { %1401 = vmatpush.msra.mxu0 %v7296_v58  ;;  %v1150_v11 = vshrl.u32 %v1149_v3, 3  ;;  %v1121_v17 = vshrl.u32 %v7333_v9, 3  ;;  %v451_v3 = vld [vmem:[%s8710_s24 + $0x68] sm:$0xff] }
 0x2a5   :  { %1402 = vmatpush.msra.mxu0 %v7301_v61  ;;  %v1151_v23 = vmul.u32 10, %v1150_v11  ;;  %v1122_v25 = vmul.u32 10, %v1121_v17  ;;  %v453_v11 = vld [vmem:[%s8711_s5] sm:$0xff]  ;;  %v509_v17 = vld [vmem:[%s8715_s15 + $0xa8] sm:$0xff] }
 0x2a6   :  { %5856 = vmatmul.msk.f32.vlgmr.msra.gmra.mxu0 %vm8691_vm14, %v468_v62  ;;  %v1720_v62 = vmul.f32 %v7327_v51, %v1708_v52 }
 0x2a7   :  { %v1152_v30 = vsub.s32 %v7309_v7, %v1151_v23  ;;  %v1123_v43 = vsub.s32 %v7304_v60, %v1122_v25  ;;  %v507_v23 = vld [vmem:[%s8715_s15 + $0x98] sm:$0xff]  ;;  %v506_v25 = vld [vmem:[%s8715_s15 + $0x90] sm:$0xff] }
 0x2a8   :  { %v1723_v12 = vadd.f32 %v7330_v59, %v1720_v62  ;;  %v452_v62 = vld [vmem:[%s8710_s24 + $0x70] sm:$0xff] }
 0x2a9   :  { %vm1157_vm11 = vcmp.ne.s32.totalorder %v1152_v30, 0  ;;  %vm1160_vm12 = vcmp.lt.s32.totalorder %v1152_v30, 0  ;;  %v1166_v56 = vadd.s32 10, %v1152_v30  ;;  %vm1156_vm15 = vcmp.ne.s32.totalorder %v1123_v43, 0 }
 0x2aa   :  { %vm1159_vm0 = vcmp.lt.s32.totalorder %v1123_v43, 0  ;;  %vm1163_vm2 = vmand %vm1160_vm12, %vm1157_vm11  ;;  %v1165_v49 = vadd.s32 10, %v1123_v43  ;;  %vm8686_vm11 = vcmp.eq.s32.totalorder %v7347_v34, 0  ;;  %vm8684_vm12 = vcmask 523264  }
 0x2ab   :  { %vm1162_vm3 = vmand %vm1159_vm0, %vm1156_vm15  ;;  %v7364_v44 = vsel %vm1163_vm2, %v1166_v56, %v1152_v30  ;;  %v502_v30 = vld [vmem:[%s8715_s15 + $0x70] sm:$0xff]  ;;  %vm8683_vm15 = vcmask 785408  }
 0x2ac   :  { %v7367_v47 = vsel %vm1162_vm3, %v1165_v49, %v1123_v43  ;;  %vm8688_vm7 = vcmp.eq.s32.totalorder %v7364_v44, 9  ;;  %v454_v43 = vld [vmem:[%s8711_s5 + $0x8] sm:$0xff]  ;;  %vm8681_vm2 = vcmp.eq.s32.totalorder %v7364_v44, 0 }
 0x2ad   :  { %vm8687_vm8 = vcmp.eq.s32.totalorder %v7367_v47, 9  ;;  %vm8682_vm0 = vcmp.eq.s32.totalorder %v7367_v47, 0 }
 0x2ae   :  { %5857 = vmatmul.msk.f32.gmra.mxu0 %vm8691_vm14, %v469_v18 }
 0x2c3   :  { %v1684_v8 = vpop.f32.mrf.mxu2 }
 0x2c4   :  { %v1696_v10 = vmul.f32 %v6059_v42, %v1684_v8  ;;  %v448_v8 = vld [vmem:[%s8710_s24 + $0x50] sm:$0xff] }
 0x2c6   :  { %v1702_v13 = vadd.f32 %v6060_v4, %v1696_v10  ;;  %v7392_v10 = vld [vmem:[#allocation30 + $0x18] sm:$0xff] }
 0x2c7   :  { %1431 = vmatpush.msra.mxu3 %v7392_v10 }
 0x2c8   :  { %v7338_v18 = vadd.f32 %v1723_v12, %v1702_v13  ;;  %v7395_v12 = vld [vmem:[#allocation30 + $0x10] sm:$0xff] }
 0x2c9   :  { %1432 = vmatpush.msra.mxu3 %v7395_v12 }
 0x2ca   :  { %1756 = vrot.lane.b32.xlu1 %v7338_v18, %s6859_s25  ;;  %v1744_v36 = vrot.slane %v7338_v18, 1  ;;  %v1732_v7 = vrot.slane %v7338_v18, 7 }
 0x2cb   :  { %v1687_v24 = vpop.f32.mrf.mxu2  ;;  %1433 = vmatpush.msra.mxu3 %v7397_v15 }
 0x2cc   :  { %v1697_v28 = vmul.f32 %v6059_v42, %v1687_v24  ;;  %v459_v24 = vld [vmem:[%s8711_s5 + $0x30] sm:$0xff] }
 0x2ce   :  { %v1703_v21 = vadd.f32 %v6060_v4, %v1697_v28  ;;  %v460_v28 = vld [vmem:[%s8711_s5 + $0x38] sm:$0xff] }
 0x2d0   :  { %v1727_v19 = vadd.f32 %v1724_v26, %v1703_v21  ;;  %v504_v26 = vld [vmem:[%s8715_s15 + $0x80] sm:$0xff] }
 0x2d2   :  { %1758 = vrot.lane.b32.xlu0 %v1727_v19, %s6859_s25  ;;  %v1733_v35 = vrot.slane %v1727_v19, 7  ;;  %v1745_v31 = vrot.slane %v1727_v19, 1  ;;  %v500_v19 = vld [vmem:[%s8715_s15 + $0x60] sm:$0xff] }
 0x2d3   :  { %v1690_v37 = vpop.f32.mrf.mxu2 }
 0x2d4   :  { %v1698_v38 = vmul.f32 %v6059_v42, %v1690_v37  ;;  %v1746_v20 = vsel %vm963_vm4, %v1744_v36, %v1745_v31  ;;  %v7359_v39 = vsel %vm8690_vm1, %v1732_v7, %v1733_v35  ;;  %v1740_v36 = vsel %vm8690_vm1, 0.0, %v1732_v7 }
 0x2d5   :  { %v1753_v40 = vsel %vm8689_vm10, 0.0, %v1746_v20  ;;  %v1741_v37 = vsel %vm8686_vm11, 0.0, %v1740_v36  ;;  %v1742_v18 = vsel %vm8682_vm0, 0.0, %v7359_v39 }
 0x2d6   :  { %v1704_v41 = vadd.f32 %v6060_v4, %v1698_v38  ;;  %1768 = vrot.lane.b32.xlu2 %v1753_v40, %s6834_s3  ;;  %v450_v4 = vld [vmem:[%s8710_s24 + $0x60] sm:$0xff] }
 0x2d8   :  { %v1728_v46 = vadd.f32 %v1725_v63, %v1704_v41  ;;  %5878 = vmatpush.msk.msrb.mxu2 %vm8680_vm13, %v1704_v41 }
 0x2da   :  { %v1735_v52 = vrot.slane %v1728_v46, 7  ;;  %1962 = vmatpush.msrb.mxu2 %v1703_v21  ;;  %v1747_v53 = vrot.slane %v1728_v46, 1  ;;  %v501_v21 = vld [vmem:[%s8715_s15 + $0x68] sm:$0xff] }
 0x2dc   :  { %1963 = vmatpush.msrb.mxu2 %v1702_v13  ;;  %v1752_v54 = vsel %vm1203_vm5, %v1747_v53, 0.0  ;;  %v1748_v55 = vsel %vm963_vm4, %v1745_v31, %v1747_v53  ;;  %v7374_v14 = vsel %vm8690_vm1, %v1733_v35, %v1735_v52  ;;  %v511_v13 = vld [vmem:[%s8715_s15 + $0xb8] sm:$0xff] }
 0x2dd   :  { %v1755_v57 = vsel %vm8688_vm7, 0.0, %v1752_v54  ;;  %v1754_v42 = vsel %vm8687_vm8, 0.0, %v1748_v55  ;;  %v1743_v52 = vsel %vm8681_vm2, 0.0, %v7374_v14 }
 0x2de   :  { %1772 = vrot.lane.b32.xlu0 %v1755_v57, %s6834_s3  ;;  %1770 = vrot.lane.b32.xlu1 %v1754_v42, %s6834_s3 }
 0x2df   :  { %1760 = vrot.lane.b32.xlu2 %v1728_v46, %s6859_s25 }
 0x2e6   :  { %2058 = vperm.xlu0 %6046, %v452_v62   ;;  %2024 = vperm.xlu1 %6044, %v452_v62  }
 0x2e7   :  { %2019 = vperm.xlu2 %6045, %v451_v3  }
 0x2ee   :  { %2050 = vperm.xlu0 %6046, %v450_v4   ;;  %2014 = vperm.xlu1 %6044, %v450_v4  }
 0x2ef   :  { %6047 = vset.pattern.permute.xlu2 %v6856_v0 }
 0x2f0   :  { %2054 = vperm.xlu2 %6047, %v451_v3  }
 0x2f6   :  { %2046 = vperm.xlu0 %6046, %v449_v5   ;;  %6048 = vset.pattern.permute.xlu1 %v6858_v6 }
 0x2f7   :  { %2089 = vperm.xlu1 %6048, %v452_v62  }
 0x2f8   :  { %6049 = vset.pattern.permute.xlu2 %v6857_v1 }
 0x2f9   :  { %2009 = vperm.xlu2 %6049, %v449_v5  }
 0x2fe   :  { %6051 = vset.pattern.permute.xlu0 %v6858_v6  ;;  %v7401_v6 = vld [vmem:[#allocation30] sm:$0xff] }
 0x2ff   :  { %2077 = vperm.xlu0 %6051, %v449_v5   ;;  %2085 = vperm.xlu1 %6048, %v451_v3   ;;  %v484_v5 = vld [vmem:[#allocation13 + $0x8] sm:$0x7] }
 0x300   :  { %1434 = vmatpush.msra.mxu3 %v7401_v6 }
 0x301   :  { %2004 = vperm.xlu2 %6049, %v448_v8  }
 0x302   :  { %1799 = vmatpush.msrb.mxu3 %v511_v13  ;;  %v2027_v13 = vperm.slane %v484_v5, 0 }
 0x304   :  { %1800 = vmatpush.msrb.mxu3 %v510_v16 }
 0x306   :  { %1801 = vmatpush.msrb.mxu3 %v509_v17  ;;  %v2061_v17 = vperm.slane %v484_v5, 1 }
 0x307   :  { %6054 = vset.pattern.permute.xlu0 %v6857_v1  ;;  %2081 = vperm.xlu1 %6048, %v450_v4  }
 0x308   :  { %1036 = vperm.xlu0 %6054, %v453_v11   ;;  %1802 = vmatpush.msrb.mxu3 %v508_v22  ;;  %v6063_v22 = vld [vmem:[#allocation15 + $0x2] ss:$0 sm:$0xff] }
 0x309   :  { %6050 = vset.pattern.permute.xlu2 %v6856_v0  ;;  %v505_v0 = vld [vmem:[%s8715_s15 + $0x88] sm:$0xff] }
 0x30a   :  { %2042 = vperm.xlu2 %6050, %v448_v8   ;;  %1803 = vmatpush.msrb.mxu3 %v507_v23  ;;  %v2092_v23 = vperm.slane %v484_v5, 2 }
 0x30c   :  { %1804 = vmatpush.msrb.mxu3 %v506_v25 }
 0x30e   :  { %1805 = vmatpush.msrb.mxu3 %v505_v0 }
 0x30f   :  { %2073 = vperm.xlu1 %6048, %v448_v8  }
 0x310   :  { %1806 = vmatpush.msrb.mxu3 %v504_v26 }
 0x312   :  { %6052 = vset.pattern.permute.xlu2 %v6857_v1  ;;  %1807 = vmatpush.msrb.mxu3 %v503_v29 }
 0x313   :  { %2265 = vperm.xlu2 %6052, %v459_v24  }
 0x314   :  { %1808 = vmatpush.msrb.mxu3 %v502_v30 }
 0x316   :  { %1809 = vmatpush.msrb.mxu3 %v501_v21 }
 0x317   :  { %6053 = vset.pattern.permute.xlu1 %v6857_v1 }
 0x318   :  { %2270 = vperm.xlu1 %6053, %v460_v28   ;;  %1810 = vmatpush.msrb.mxu3 %v500_v19 }
 0x31b   :  { %2275 = vperm.xlu2 %6052, %v461_v27  }
 0x320   :  { %1041 = vperm.xlu1 %6053, %v454_v43  }
 0x323   :  { %1046 = vperm.xlu2 %6052, %v455_v33   ;;  %v1404_v35 = vpop.f32.mrf.mxu0 }
 0x324   :  { %5858 = vmatmul.msk.f32.vlgmr.msra.gmra.mxu3 %vm8685_vm9, %v1404_v35 }
 0x32b   :  { %v1407_v1 = vpop.f32.mrf.mxu0 }
 0x32c   :  { %5859 = vmatmul.msk.f32.gmra.mxu3 %vm8685_vm9, %v1407_v1 }
 0x330   :  { %v1769_v56 = vpop.permute.xlu2 %1768 }
 0x339   :  { %v1761_v41 = vpop.permute.xlu2 %1760 }
 0x33a   :  { %v1779_v53 = vsel %vm8685_vm9, %v1743_v52, %v1761_v41  ;;  %v6065_v41 = vld [vmem:[#allocation16 + $0x1] ss:$0 sm:$0xff] }
 0x33c   :  { %v1757_v31 = vpop.permute.xlu1 %1756 }
 0x33d   :  { %v1777_v63 = vsel %vm8685_vm9, %v1741_v37, %v1757_v31 }
 0x33e   :  { %v1780_v38 = vsel %vm8684_vm12, %v1777_v63, %v1769_v56 }
 0x33f   :  { %5869 = vmatmul.msk.f32.vlgmr.msrb.gmra.mxu3 %vm8683_vm15, %v1780_v38 }
 0x341   :  { %v2020_v55 = vpop.permute.xlu2 %2019 }
 0x342   :  { %v2031_v24 = vmul.f32 %v2027_v13, %v2020_v55 }
 0x344   :  { %v1759_v20 = vpop.permute.xlu0 %1758  ;;  %v2039_v43 = vadd.f32 %v6063_v22, %v2031_v24 }
 0x345   :  { %v1778_v7 = vsel %vm8685_vm9, %v1742_v18, %v1759_v20 }
 0x34a   :  { %v2055_v62 = vpop.permute.xlu2 %2054 }
 0x34b   :  { %v2065_v28 = vmul.f32 %v2061_v17, %v2055_v62 }
 0x34d   :  { %v2070_v1 = vadd.f32 %v2065_v28, %v2039_v43 }
 0x350   :  { %v1771_v40 = vpop.permute.xlu1 %1770  ;;  %v1773_v46 = vpop.permute.xlu0 %1772 }
 0x351   :  { %v1781_v49 = vsel %vm8684_vm12, %v1778_v7, %v1771_v40  ;;  %v1782_v54 = vsel %vm8684_vm12, %v1779_v53, %v1773_v46 }
 0x352   :  { %5870 = vmatmul.msk.f32.gmra.mxu3 %vm8683_vm15, %v1781_v49 }
 0x353   :  { %v2010_v11 = vpop.permute.xlu2 %2009 }
 0x354   :  { %v2029_v27 = vmul.f32 %v2027_v13, %v2010_v11 }
 0x356   :  { %v2037_v36 = vadd.f32 %v6063_v22, %v2029_v27 }
 0x358   :  { %v2025_v39 = vpop.permute.xlu1 %2024  ;;  %v2059_v42 = vpop.permute.xlu0 %2058 }
 0x359   :  { %v2032_v16 = vmul.f32 %v2027_v13, %v2025_v39  ;;  %v2066_v0 = vmul.f32 %v2061_v17, %v2059_v42 }
 0x35a   :  { %5871 = vmatmul.msk.f32.gmra.mxu3 %vm8683_vm15, %v1782_v54 }
 0x35b   :  { %v2040_v25 = vadd.f32 %v6063_v22, %v2032_v16  ;;  %v2005_v30 = vpop.permute.xlu2 %2004 }
 0x35c   :  { %v2028_v18 = vmul.f32 %v2027_v13, %v2005_v30 }
 0x35d   :  { %v2071_v35 = vadd.f32 %v2066_v0, %v2040_v25 }
 0x360   :  { %v2015_v57 = vpop.permute.xlu1 %2014  ;;  %v2051_v4 = vpop.permute.xlu0 %2050 }
 0x361   :  { %v2030_v19 = vmul.f32 %v2027_v13, %v2015_v57  ;;  %v2064_v63 = vmul.f32 %v2061_v17, %v2051_v4  ;;  %v2036_v57 = vadd.f32 %v6063_v22, %v2028_v18 }
 0x363   :  { %v2038_v56 = vadd.f32 %v6063_v22, %v2030_v19 }
 0x364   :  { %v2043_v55 = vpop.permute.xlu2 %2042 }
 0x365   :  { %v2069_v46 = vadd.f32 %v2064_v63, %v2038_v56  ;;  %v2062_v42 = vmul.f32 %v2061_v17, %v2043_v55 }
 0x367   :  { %v2067_v11 = vadd.f32 %v2062_v42, %v2036_v57 }
 0x368   :  { %v2047_v26 = vpop.permute.xlu0 %2046 }
 0x369   :  { %v2090_v3 = vpop.permute.xlu1 %2089  ;;  %v2063_v38 = vmul.f32 %v2061_v17, %v2047_v26 }
 0x36a   :  { %v2097_v21 = vmul.f32 %v2092_v23, %v2090_v3 }
 0x36b   :  { %v2068_v52 = vadd.f32 %v2063_v38, %v2037_v36 }
 0x36c   :  { %v2102_v31 = vadd.f32 %v2097_v21, %v2071_v35 }
 0x36e   :  { %v5887_v40 = vmul.f32 -1.442695, %v2102_v31 }
 0x370   :  { %6115 = vpow2.f32 %v5887_v40 }
 0x371   :  { %v2086_v14 = vpop.permute.xlu1 %2085  ;;  %v2078_v49 = vpop.permute.xlu0 %2077 }
 0x372   :  { %v2096_v33 = vmul.f32 %v2092_v23, %v2086_v14  ;;  %v2094_v54 = vmul.f32 %v2092_v23, %v2078_v49 }
 0x374   :  { %v2101_v20 = vadd.f32 %v2096_v33, %v2070_v1  ;;  %v2099_v4 = vadd.f32 %v2094_v54, %v2068_v52 }
 0x376   :  { %v5886_v53 = vmul.f32 -1.442695, %v2101_v20  ;;  %v5884_v24 = vmul.f32 -1.442695, %v2099_v4  ;;  %v6116_v25 = vpop.eup %6115 }
 0x377   :  { %v7455_v28 = vadd.f32 1.0, %v6116_v25 }
 0x378   :  { %6117 = vpow2.f32 %v5886_v53 }
 0x379   :  { %v2082_v37 = vpop.permute.xlu1 %2081  ;;  %vm2188_vm3 = vweird.f32 %v7455_v28 }
 0x37a   :  { %v2095_v7 = vmul.f32 %v2092_v23, %v2082_v37 }
 0x37c   :  { %v2100_v62 = vadd.f32 %v2095_v7, %v2069_v46 }
 0x37e   :  { %v5885_v13 = vmul.f32 -1.442695, %v2100_v62  ;;  %v6118_v0 = vpop.eup %6117  ;;  %v2194_v62 = vand.u32 2147483648, %v7455_v28 }
 0x37f   :  { %v7457_v17 = vadd.f32 1.0, %v6118_v0 }
 0x380   :  { %6119 = vpow2.f32 %v5885_v13 }
 0x381   :  { %v2074_v5 = vpop.permute.xlu1 %2073  ;;  %v2177_v13 = vand.u32 2147483647, %v7457_v17  ;;  %vm2173_vm2 = vweird.f32 %v7457_v17 }
 0x382   :  { %v2093_v16 = vmul.f32 %v2092_v23, %v2074_v5 }
 0x383   :  { %vm7521_vm15 = vcmp.eq.f32.partialorder %v2177_v13, 8.507059e+37 }
 0x384   :  { %v2098_v26 = vadd.f32 %v2093_v16, %v2067_v11 }
 0x386   :  { %v5883_v22 = vmul.f32 -1.442695, %v2098_v26  ;;  %v6120_v30 = vpop.eup %6119 }
 0x387   :  { %v7461_v33 = vadd.f32 1.0, %v6120_v30  ;;  %v7516_v30 = vor.u32 1.1754944e-38, %v2194_v62 }
 0x389   :  { %vm2158_vm9 = vweird.f32 %v7461_v33 }
 0x3a7   :  { %v7451_v8 = vpop.f32.mrf.mxu3 }
 0x3af   :  { %v7453_v29 = vpop.f32.mrf.mxu3 }
 0x3c2   :  { %v1812_v39 = vpop.f32.mrf.mxu3 }
 0x3c3   :  { %v1813_v3 = vadd.f32 %v6065_v41, %v1812_v39 }
 0x3c5   :  { %v5872_v14 = vmul.f32 -1.442695, %v1813_v3 }
 0x3c7   :  { %6121 = vpow2.f32 %v5872_v14  ;;  %v2192_v14 = vand.u32 2147483647, %v7455_v28 }
 0x3c8   :  { %6123 = vpow2.f32 %v5884_v24  ;;  %v2179_v24 = vand.u32 2147483648, %v7457_v17 }
 0x3c9   :  { %6125 = vrcp.f32 %v7455_v28  ;;  %vm7567_vm10 = vcmp.eq.f32.partialorder %v2192_v14, 8.507059e+37 }
 0x3ca   :  { %6127 = vrcp.f32 %v7457_v17 }
 0x3cb   :  { %6129 = vpow2.f32 %v5883_v22 }
 0x3cd   :  { %v6122_v43 = vpop.eup %6121 }
 0x3ce   :  { %v6124_v23 = vpop.eup %6123  ;;  %v7463_v35 = vadd.f32 1.0, %v6122_v43 }
 0x3cf   :  { %v7465_v1 = vadd.f32 1.0, %v6124_v23  ;;  %v7467_v36 = vpop.eup %6125 }
 0x3d0   :  { %v7469_v31 = vpop.eup %6127  ;;  %v2184_v38 = vmul.f32 %v7467_v36, %v7455_v28  ;;  %vm2189_vm13 = vweird.f32 %v7467_v36  ;;  %vm1838_vm1 = vweird.f32 %v7463_v35 }
 0x3d1   :  { %v6130_v56 = vpop.eup %6129  ;;  %v2169_v49 = vmul.f32 %v7469_v31, %v7457_v17  ;;  %vm2174_vm0 = vweird.f32 %v7469_v31  ;;  %vm7529_vm12 = vmor %vm2188_vm3, %vm2189_vm13  ;;  %vm2143_vm13 = vweird.f32 %v7465_v1  ;;  %v2149_v28 = vand.u32 2147483648, %v7465_v1 }
 0x3d2   :  { %v7476_v7 = vadd.f32 1.0, %v6130_v56  ;;  %v2185_v52 = vsub.f32 1.0, %v2184_v38  ;;  %vm7546_vm3 = vmor %vm2173_vm2, %vm2174_vm0 }
 0x3d3   :  { %v2170_v54 = vsub.f32 1.0, %v2169_v49 }
 0x3d4   :  { %v2186_v55 = vmul.f32 %v7467_v36, %v2185_v52 }
 0x3d5   :  { %v1815_v27 = vpop.f32.mrf.mxu3  ;;  %v2171_v11 = vmul.f32 %v7469_v31, %v2170_v54  ;;  %v2162_v54 = vand.u32 2147483647, %v7461_v33 }
 0x3d6   :  { %v1816_v21 = vadd.f32 %v6065_v41, %v1815_v27  ;;  %v7513_v22 = vadd.f32 %v7467_v36, %v2186_v55 }
 0x3d7   :  { %v2172_v43 = vadd.f32 %v7469_v31, %v2171_v11 }
 0x3d8   :  { %v5873_v19 = vmul.f32 -1.442695, %v1816_v21  ;;  %v2191_v49 = vsel %vm7529_vm12, %v7467_v36, %v7513_v22  ;;  %vm8736_vm12 = vcmask 318464  }
 0x3d9   :  { %v2176_v17 = vsel %vm7546_vm3, %v7469_v31, %v2172_v43 }
 0x3da   :  { %6131 = vpow2.f32 %v5873_v19  ;;  %v2147_v19 = vand.u32 2147483647, %v7465_v1 }
 0x3db   :  { %6133 = vrcp.f32 %v7461_v33 }
 0x3dc   :  { %6135 = vrcp.f32 %v7463_v35 }
 0x3dd   :  { %v1818_v37 = vpop.f32.mrf.mxu3  ;;  %6137 = vrcp.f32 %v7465_v1 }
 0x3de   :  { %v1819_v63 = vadd.f32 %v6065_v41, %v1818_v37 }
 0x3e0   :  { %v6132_v20 = vpop.eup %6131  ;;  %v5874_v18 = vmul.f32 -1.442695, %v1819_v63  ;;  %v2180_v63 = vor.u32 1.1754944e-38, %v2179_v24 }
 0x3e1   :  { %v7478_v40 = vadd.f32 1.0, %v6132_v20  ;;  %v7482_v46 = vpop.eup %6133 }
 0x3e2   :  { %6139 = vpow2.f32 %v5874_v18  ;;  %v7485_v41 = vpop.eup %6135  ;;  %v2154_v39 = vmul.f32 %v7482_v46, %v7461_v33  ;;  %vm2159_vm0 = vweird.f32 %v7482_v46 }
 0x3e3   :  { %6141 = vrcp.f32 %v7478_v40  ;;  %v7487_v53 = vpop.eup %6137  ;;  %v1834_v57 = vmul.f32 %v7485_v41, %v7463_v35  ;;  %vm1853_vm2 = vweird.f32 %v7478_v40  ;;  %vm1839_vm7 = vweird.f32 %v7485_v41 }
 0x3e4   :  { %6143 = vrcp.f32 %v7476_v7  ;;  %v2139_v3 = vmul.f32 %v7487_v53, %v7465_v1  ;;  %v2155_v25 = vsub.f32 1.0, %v2154_v39  ;;  %v2164_v39 = vand.u32 2147483648, %v7461_v33 }
 0x3e5   :  { %v1835_v26 = vsub.f32 1.0, %v1834_v57  ;;  %vm2144_vm11 = vweird.f32 %v7487_v53  ;;  %v2196_v1 = vsel %vm7567_vm10, %v7516_v30, %v2191_v49  ;;  %vm1892_vm10 = vcmask 154624  }
 0x3e6   :  { %v2140_v21 = vsub.f32 1.0, %v2139_v3  ;;  %v2156_v38 = vmul.f32 %v7482_v46, %v2155_v25  ;;  %v1859_v3 = vand.u32 2147483648, %v7478_v40 }
 0x3e7   :  { %v1836_v18 = vmul.f32 %v7485_v41, %v1835_v26 }
 0x3e8   :  { %v6140_v42 = vpop.eup %6139  ;;  %v2141_v55 = vmul.f32 %v7487_v53, %v2140_v21  ;;  %v2157_v11 = vadd.f32 %v7482_v46, %v2156_v38  ;;  %v7578_v21 = vsel %vm7521_vm15, %v2180_v63, %v2176_v17  ;;  %vm7595_vm15 = vcmp.eq.f32.partialorder %v2147_v19, 8.507059e+37 }
 0x3e9   :  { %v7498_v4 = vpop.eup %6141  ;;  %v7501_v5 = vadd.f32 1.0, %v6140_v42  ;;  %v1837_v24 = vadd.f32 %v7485_v41, %v1836_v18 }
 0x3ea   :  { %v1849_v16 = vmul.f32 %v7498_v4, %v7478_v40  ;;  %v7509_v0 = vpop.eup %6143  ;;  %vm1854_vm8 = vweird.f32 %v7498_v4 }
 0x3eb   :  { %6145 = vrcp.f32 %v7501_v5  ;;  %v2124_v20 = vmul.f32 %v7509_v0, %v7476_v7  ;;  %vm7571_vm3 = vmor %vm1853_vm2, %vm1854_vm8  ;;  %v1874_v43 = vand.u32 2147483648, %v7501_v5  ;;  %vm2129_vm6 = vweird.f32 %v7509_v0 }
 0x3ec   :  { %v1850_v27 = vsub.f32 1.0, %v1849_v16  ;;  %v1857_v16 = vand.u32 2147483647, %v7478_v40  ;;  %v2142_v40 = vadd.f32 %v7487_v53, %v2141_v55  ;;  %vm7591_vm8 = vmor %vm2158_vm9, %vm2159_vm0  ;;  %vm1868_vm9 = vweird.f32 %v7501_v5 }
 0x3ed   :  { %v2125_v13 = vsub.f32 1.0, %v2124_v20  ;;  %v1860_v20 = vor.u32 1.1754944e-38, %v1859_v3  ;;  %v2161_v19 = vsel %vm7591_vm8, %v7482_v46, %v2157_v11  ;;  %v1875_v17 = vor.u32 1.1754944e-38, %v1874_v43  ;;  %vm7620_vm8 = vmor %vm2143_vm13, %vm2144_vm11  ;;  %v2266_v46 = vpop.permute.xlu2 %2265 }
 0x3ee   :  { %v1851_v37 = vmul.f32 %v7498_v4, %v1850_v27  ;;  %v1844_v27 = vand.u32 2147483648, %v7463_v35  ;;  %vm1858_vm14 = vcmp.eq.f32.partialorder %v1857_v16, 8.507059e+37  ;;  %vm2128_vm0 = vweird.f32 %v7476_v7  ;;  %vm8737_vm13 = vmmov %vm8736_vm12 }
 0x3ef   :  { %v2126_v18 = vmul.f32 %v7509_v0, %v2125_v13  ;;  %v2132_v16 = vand.u32 2147483647, %v7476_v7  ;;  %v2208_v43 = vrot.slane %v7578_v21, 1  ;;  %vm2163_vm11 = vcmp.eq.f32.partialorder %v2162_v54, 8.507059e+37 }
 0x3f0   :  { %v1852_v42 = vadd.f32 %v7498_v4, %v1851_v37  ;;  %v1842_v37 = vand.u32 2147483647, %v7463_v35  ;;  %v2146_v36 = vsel %vm7620_vm8, %v7487_v53, %v2142_v40  ;;  %v2210_v54 = vrot.slane %v2196_v1, 1 }
 0x3f1   :  { %v6146_v57 = vpop.eup %6145  ;;  %v2127_v13 = vadd.f32 %v7509_v0, %v2126_v18 }
 0x3f2   :  { %v1864_v62 = vmul.f32 %v6146_v57, %v7501_v5  ;;  %v1856_v14 = vsel %vm7571_vm3, %v7498_v4, %v1852_v42  ;;  %vm1869_vm2 = vweird.f32 %v6146_v57  ;;  %v1872_v4 = vand.u32 2147483647, %v7501_v5  ;;  %vm7602_vm3 = vmor %vm1838_vm1, %vm1839_vm7 }
 0x3f3   :  { %v1841_v33 = vsel %vm7602_vm3, %v7485_v41, %v1837_v24  ;;  %v1861_v55 = vsel %vm1858_vm14, %v1860_v20, %v1856_v14  ;;  %v1845_v42 = vor.u32 1.1754944e-38, %v1844_v27  ;;  %vm1870_vm1 = vmor %vm1868_vm9, %vm1869_vm2  ;;  %vm1843_vm7 = vcmp.eq.f32.partialorder %v1842_v37, 8.507059e+37  ;;  %v7653_v14 = vld [vmem:[#allocation7] sm:$0xff] }
 0x3f4   :  { %v1865_v31 = vsub.f32 1.0, %v1864_v62  ;;  %vm1873_vm3 = vcmp.eq.f32.partialorder %v1872_v4, 8.507059e+37  ;;  %v2134_v5 = vand.u32 2147483648, %v7476_v7  ;;  %v1882_v11 = vrot.slane %v1861_v55, 1  ;;  %vm7637_vm14 = vmor %vm2128_vm0, %vm2129_vm6 }
 0x3f5   :  { %v1846_v41 = vsel %vm1843_vm7, %v1845_v42, %v1841_v33  ;;  %vm2133_vm6 = vcmp.eq.f32.partialorder %v2132_v16, 8.507059e+37  ;;  %v2211_v23 = vsel %vm963_vm4, %v2208_v43, %v2210_v54  ;;  %v2221_v4 = vmax.f32 %v2196_v1, %v2210_v54  ;;  %v6202_v42 = vld [vmem:[#allocation4 + $0x8] sm:$0xff] }
 0x3f6   :  { %v1866_v38 = vmul.f32 %v6146_v57, %v1865_v31  ;;  %v2150_v31 = vor.u32 1.1754944e-38, %v2149_v28  ;;  %v1881_v27 = vrot.slane %v1846_v41, 1  ;;  %v2135_v49 = vor.u32 1.1754944e-38, %v2134_v5 }
 0x3f7   :  { %v2220_v63 = vmax.f32 %v7578_v21, %v2211_v23  ;;  %v6201_v21 = vld [vmem:[#allocation4] sm:$0xff]  ;;  %v2278_v5 = vmul.f32 %v7327_v51, %v2266_v46  ;;  %vm8739_vm2 = vcmask 162816   ;;  %vm8740_vm9 = vcmask 1040384  }
 0x3f8   :  { %v1867_v52 = vadd.f32 %v6146_v57, %v1866_v38  ;;  %v1883_v7 = vsel %vm963_vm4, %v1881_v27, %v1882_v11  ;;  %v2151_v25 = vsel %vm7595_vm15, %v2150_v31, %v2146_v36  ;;  %vm8738_vm15 = vmmov %vm8736_vm12  ;;  %vm8743_vm0 = vcmp.eq.s32.totalorder %v7364_v44, 9 }
 0x3f9   :  { %v1889_v40 = vmax.f32 %v1846_v41, %v1883_v7  ;;  %v2204_v38 = vrot.slane %v2151_v25, 1  ;;  %v2281_v16 = vadd.f32 %v7330_v59, %v2278_v5  ;;  %vm8742_vm7 = vmmov %vm8740_vm9 }
 0x3fa   :  { %v1871_v62 = vsel %vm1870_vm1, %v6146_v57, %v1867_v52  ;;  %v2165_v57 = vor.u32 1.1754944e-38, %v2164_v39  ;;  %v2131_v39 = vsel %vm7637_vm14, %v7509_v0, %v2127_v13  ;;  %v7663_v52 = vld [vmem:[#allocation7 + $0x8] sm:$0x3]  ;;  %vm8741_vm1 = vcmp.eq.s32.totalorder %v7347_v34, 9  ;;  %vm8747_vm14 = vmmov %vm8743_vm0 }
 0x3fb   :  { %v1876_v3 = vsel %vm1873_vm3, %v1875_v17, %v1871_v62  ;;  %v2136_v37 = vsel %vm2133_vm6, %v2135_v49, %v2131_v39  ;;  %v6203_v17 = vld [vmem:[#allocation4 + $0x10] sm:$0xf]  ;;  %v470_v49 = vld [vmem:[%s8714_s26 + $0x10] sm:$0xff]  ;;  %v1037_v39 = vpop.permute.xlu0 %1036  ;;  %vm8744_vm3 = vcmp.eq.s32.totalorder %v7367_v47, 9  ;;  %vm8746_vm8 = vmmov %vm8741_vm1 }
 0x3fc   :  { %v1884_v24 = vrot.slane %v1876_v3, 1  ;;  %v2166_v30 = vsel %vm2163_vm11, %v2165_v57, %v2161_v19  ;;  %v2203_v20 = vrot.slane %v2136_v37, 1  ;;  %5879 = vmatmul.msk.f32.vlgmr.msrb.gmra.mxu2 %vm8739_vm2, %v470_v49  ;;  %vm8748_vm11 = vmmov %vm8744_vm3  ;;  %vm8753_vm2 = vcmask 785408  }
 0x3fd   :  { %v2206_v53 = vrot.slane %v2166_v30, 1  ;;  %vm8749_vm6 = vmmov %vm8742_vm7 }
 0x3fe   :  { %v1891_v22 = vmax.f32 %v1876_v3, %v1884_v24  ;;  %v1885_v56 = vsel %vm963_vm4, %v1882_v11, %v1884_v24  ;;  %v2205_v19 = vsel %vm963_vm4, %v2203_v20, %v2204_v38  ;;  %v6066_v3 = vld [vmem:[#allocation21 + $0x2] ss:$0 sm:$0xff]  ;;  %v6067_v11 = vld [vmem:[#allocation22 + $0x2] ss:$0 sm:$0xff]  ;;  %v2271_v24 = vpop.permute.xlu1 %2270 }
 0x3ff   :  { %v1890_v28 = vmax.f32 %v1861_v55, %v1885_v56  ;;  %v2209_v0 = vsel %vm963_vm4, %v2206_v53, %v2208_v43  ;;  %v2207_v35 = vsel %vm963_vm4, %v2204_v38, %v2206_v53  ;;  %v2217_v55 = vmax.f32 %v2136_v37, %v2205_v19 }
 0x400   :  { %5875 = vmatpush.msk.msrb.mxu0 %vm1203_vm5, %v1891_v22  ;;  %v2219_v33 = vmax.f32 %v2166_v30, %v2209_v0  ;;  %v2218_v18 = vmax.f32 %v2151_v25, %v2207_v35  ;;  %v2279_v31 = vmul.f32 %v7327_v51, %v2271_v24  ;;  %v2276_v22 = vpop.permute.xlu2 %2275  ;;  %v1052_v38 = vmul.f32 %v7327_v51, %v1037_v39 }
 0x401   :  { %v2280_v7 = vmul.f32 %v7327_v51, %v2276_v22  ;;  %v520_v22 = vld [vmem:[%s8715_s15 + $0x100] sm:$0xff] }
 0x402   :  { %1916 = vmatpush.msrb.mxu0 %v1890_v28  ;;  %v2282_v43 = vadd.f32 %v7330_v59, %v2279_v31  ;;  %v522_v31 = vld [vmem:[%s8715_s15 + $0x110] sm:$0xff] }
 0x403   :  { %v2283_v35 = vadd.f32 %v7330_v59, %v2280_v7 }
 0x404   :  { %1917 = vmatpush.msrb.mxu0 %v1889_v40 }
 0x405   :  { %5876 = vmatmul.msk.f32.vlgmr.msrb.gmra.mxu0 %vm1892_vm10, %v7653_v14 }
 0x406   :  { %5888 = vmatpush.msk.msra.mxu0 %vm963_vm4, %v2221_v4  ;;  %v1042_v56 = vpop.permute.xlu1 %1041 }
 0x407   :  { %v1053_v54 = vmul.f32 %v7327_v51, %v1042_v56  ;;  %v519_v56 = vld [vmem:[%s8715_s15 + $0xf8] sm:$0xff] }
 0x408   :  { %2237 = vmatpush.msra.mxu0 %v2220_v63 }
 0x40a   :  { %2238 = vmatpush.msra.mxu0 %v2219_v33  ;;  %v1059_v33 = vadd.f32 %v7330_v59, %v1053_v54 }
 0x40c   :  { %2239 = vmatpush.msra.mxu0 %v2218_v18  ;;  %v1047_v18 = vpop.permute.xlu2 %1046  ;;  %v7717_v5 = vadd.f32 %v1059_v33, %v7296_v58  ;;  %v499_v33 = vld [vmem:[%s8715_s15 + $0x58] sm:$0xff] }
 0x40d   :  { %5877 = vmatmul.msk.f32.gmra.mxu0 %vm1892_vm10, %v7663_v52  ;;  %1263 = vmatpush.msrb.mxu1 %v499_v33 }
 0x40e   :  { %2240 = vmatpush.msra.mxu0 %v2217_v55  ;;  %v1058_v55 = vadd.f32 %v7330_v59, %v1052_v38  ;;  %v517_v38 = vld [vmem:[%s8715_s15 + $0xe8] sm:$0xff] }
 0x410   :  { %2540 = vmatpush.msrb.mxu0 %v7392_v10 }
 0x412   :  { %2541 = vmatpush.msrb.mxu0 %v7395_v12 }
 0x414   :  { %2542 = vmatpush.msrb.mxu0 %v7397_v15 }
 0x415   :  { %5889 = vmatmul.msk.f32.vlgmr.msra.gmra.mxu0 %vm8736_vm12, %v6201_v21  ;;  %vm8750_vm12 = vcmp.eq.s32.totalorder %v7347_v34, 0 }
 0x416   :  { %2543 = vmatpush.msrb.mxu0 %v7401_v6 }
 0x41d   :  { %5890 = vmatmul.msk.f32.gmra.mxu0 %vm8737_vm13, %v6202_v42  ;;  %v1054_v42 = vmul.f32 %v7327_v51, %v1047_v18  ;;  %v512_v18 = vld [vmem:[%s8715_s15 + $0xc0] sm:$0xff]  ;;  %vm8751_vm13 = vcmask 261120  }
 0x41f   :  { %v1060_v58 = vadd.f32 %v7330_v59, %v1054_v42  ;;  %v496_v42 = vld [vmem:[%s8715_s15 + $0x40] sm:$0xff] }
 0x425   :  { %5891 = vmatmul.msk.f32.gmra.mxu0 %vm8738_vm15, %v6203_v17  ;;  %vm8752_vm15 = vcmask 523264  }
 0x482   :  { %v7674_v62 = vpop.f32.mrf.mxu0 }
 0x48a   :  { %v7676_v41 = vpop.f32.mrf.mxu0 }
 0x492   :  { %v2242_v13 = vpop.f32.mrf.mxu0 }
 0x493   :  { %v2254_v1 = vmul.f32 %v6066_v3, %v2242_v13  ;;  %v7722_v13 = vadd.f32 %v1058_v55, %v7301_v61  ;;  %v1196_v61 = vrot.slane %v7717_v5, 1  ;;  %v498_v55 = vld [vmem:[%s8715_s15 + $0x50] sm:$0xff] }
 0x494   :  { %1264 = vmatpush.msrb.mxu1 %v498_v55 }
 0x495   :  { %v7680_v57 = vadd.f32 %v6067_v11, %v2254_v1  ;;  %v523_v1 = vld [vmem:[%s8715_s15 + $0x118] sm:$0xff] }
 0x496   :  { %2357 = vmatpush.msra.mxu3 %v523_v1 }
 0x497   :  { %v7684_v26 = vadd.f32 %v2281_v16, %v7680_v57 }
 0x498   :  { %2358 = vmatpush.msra.mxu3 %v522_v31 }
 0x499   :  { %2314 = vrot.lane.b32.xlu1 %v7684_v26, %s6859_s25  ;;  %v2302_v53 = vrot.slane %v7684_v26, 1  ;;  %v2290_v37 = vrot.slane %v7684_v26, 7 }
 0x49a   :  { %v2245_v27 = vpop.f32.mrf.mxu0 }
 0x49b   :  { %v2255_v36 = vmul.f32 %v6066_v3, %v2245_v27  ;;  %v1195_v27 = vrot.slane %v7722_v13, 1  ;;  %v2298_v1 = vsel %vm8749_vm6, 0.0, %v2290_v37 }
 0x49d   :  { %v7689_v30 = vadd.f32 %v6067_v11, %v2255_v36  ;;  %v7741_v36 = vadd.f32 %v1060_v58, %v7294_v32  ;;  %v1197_v59 = vsel %vm963_vm4, %v1195_v27, %v1196_v61  ;;  %v489_v58 = vld [vmem:[%s8715_s15 + $0x8] sm:$0xff]  ;;  %v2299_v27 = vsel %vm8750_vm12, 0.0, %v2298_v1 }
 0x49e   :  { %v1214_v49 = vsel %vm8746_vm8, 0.0, %v1197_v59  ;;  %vm8759_vm8 = vcmp.eq.s32.totalorder %v7364_v44, 0 }
 0x49f   :  { %v2285_v28 = vadd.f32 %v2282_v43, %v7689_v30  ;;  %v521_v43 = vld [vmem:[%s8715_s15 + $0x108] sm:$0xff]  ;;  %v1198_v32 = vrot.slane %v7741_v36, 1 }
 0x4a0   :  { %2359 = vmatpush.msra.mxu3 %v521_v43 }
 0x4a1   :  { %2316 = vrot.lane.b32.xlu0 %v2285_v28, %s6859_s25  ;;  %v2291_v25 = vrot.slane %v2285_v28, 7  ;;  %v2303_v40 = vrot.slane %v2285_v28, 1  ;;  %v1204_v28 = vsel %vm1203_vm5, %v1198_v32, 0.0  ;;  %v1199_v7 = vsel %vm963_vm4, %v1196_v61, %v1198_v32  ;;  %v488_v61 = vld [vmem:[%s8715_s15] sm:$0xff] }
 0x4a2   :  { %v2248_v23 = vpop.f32.mrf.mxu0  ;;  %2360 = vmatpush.msra.mxu3 %v520_v22  ;;  %v1216_v39 = vsel %vm8747_vm14, 0.0, %v1204_v28  ;;  %v1215_v54 = vsel %vm8748_vm11, 0.0, %v1199_v7  ;;  %v1174_v32 = vrot.slane %v7722_v13, 7  ;;  %v1175_v7 = vrot.slane %v7717_v5, 7  ;;  %vm8761_vm11 = vmmov %vm8750_vm12 }
 0x4a3   :  { %v2256_v4 = vmul.f32 %v6066_v3, %v2248_v23  ;;  %v2304_v0 = vsel %vm963_vm4, %v2302_v53, %v2303_v40  ;;  %v7704_v20 = vsel %vm8740_vm9, %v2290_v37, %v2291_v25  ;;  %v462_v53 = vld [vmem:[%s8745_s1] sm:$0xff]  ;;  %v518_v23 = vld [vmem:[%s8715_s15 + $0xf0] sm:$0xff]  ;;  %vm8754_vm9 = vcmp.eq.s32.totalorder %v7367_v47, 0 }
 0x4a4   :  { %v2311_v63 = vsel %vm8741_vm1, 0.0, %v2304_v0  ;;  %2361 = vmatpush.msra.mxu3 %v519_v56  ;;  %v515_v0 = vld [vmem:[%s8715_s15 + $0xd8] sm:$0xff]  ;;  %vm8755_vm1 = vmmov %vm8751_vm13 }
 0x4a5   :  { %v7710_v19 = vadd.f32 %v6067_v11, %v2256_v4  ;;  %2326 = vrot.lane.b32.xlu2 %v2311_v63, %s6834_s3  ;;  %v516_v4 = vld [vmem:[%s8715_s15 + $0xe0] sm:$0xff]  ;;  %v514_v63 = vld [vmem:[%s8715_s15 + $0xd0] sm:$0xff]  ;;  %vm8760_vm14 = vmmov %vm8755_vm1 }
 0x4a6   :  { %2362 = vmatpush.msra.mxu3 %v518_v23 }
 0x4a7   :  { %v2286_v21 = vadd.f32 %v2283_v35, %v7710_v19  ;;  %v513_v35 = vld [vmem:[%s8715_s15 + $0xc8] sm:$0xff] }
 0x4a8   :  { %2363 = vmatpush.msra.mxu3 %v517_v38 }
 0x4a9   :  { %v2293_v17 = vrot.slane %v2286_v21, 7  ;;  %v2305_v46 = vrot.slane %v2286_v21, 1 }
 0x4aa   :  { %2364 = vmatpush.msra.mxu3 %v516_v4 }
 0x4ab   :  { %v2310_v3 = vsel %vm1203_vm5, %v2305_v46, 0.0  ;;  %v2306_v11 = vsel %vm963_vm4, %v2303_v40, %v2305_v46  ;;  %v7725_v16 = vsel %vm8742_vm7, %v2291_v25, %v2293_v17  ;;  %v463_v25 = vld [vmem:[%s8745_s1 + $0x8] sm:$0x3]  ;;  %v464_v40 = vld [vmem:[%s8745_s1 + $0x10] sm:$0xff]  ;;  %v495_v17 = vld [vmem:[%s8715_s15 + $0x38] sm:$0xff] }
 0x4ac   :  { %v2313_v51 = vsel %vm8743_vm0, 0.0, %v2310_v3  ;;  %v2312_v24 = vsel %vm8744_vm3, 0.0, %v2306_v11  ;;  %2365 = vmatpush.msra.mxu3 %v515_v0  ;;  %v494_v46 = vld [vmem:[%s8715_s15 + $0x30] sm:$0xff]  ;;  %v493_v3 = vld [vmem:[%s8715_s15 + $0x28] sm:$0xff]  ;;  %v492_v11 = vld [vmem:[%s8715_s15 + $0x20] sm:$0xff]  ;;  %v1177_v0 = vrot.slane %v7741_v36, 7 }
 0x4ad   :  { %2318 = vrot.lane.b32.xlu2 %v2286_v21, %s6859_s25  ;;  %2330 = vrot.lane.b32.xlu0 %v2313_v51, %s6834_s3  ;;  %v497_v21 = vld [vmem:[%s8715_s15 + $0x48] sm:$0xff]  ;;  %v491_v51 = vld [vmem:[%s8715_s15 + $0x18] sm:$0xff]  ;;  %vm8756_vm7 = vmmov %vm8752_vm15 }
 0x4ae   :  { %2328 = vrot.lane.b32.xlu1 %v2312_v24, %s6834_s3  ;;  %2366 = vmatpush.msra.mxu3 %v514_v63  ;;  %v490_v24 = vld [vmem:[%s8715_s15 + $0x10] sm:$0xff]  ;;  %vm8757_vm0 = vmmov %vm8753_vm2 }
 0x4af   :  { %1265 = vmatpush.msrb.mxu1 %v497_v21  ;;  %vm8758_vm3 = vmmov %vm8749_vm6 }
 0x4b0   :  { %2367 = vmatpush.msra.mxu3 %v513_v35  ;;  %v1182_v28 = vsel %vm8758_vm3, 0.0, %v1174_v32  ;;  %vm8762_vm6 = vmmov %vm8755_vm1 }
 0x4b1   :  { %1266 = vmatpush.msrb.mxu1 %v496_v42  ;;  %vm8763_vm12 = vmmov %vm8756_vm7 }
 0x4b2   :  { %2368 = vmatpush.msra.mxu3 %v512_v18  ;;  %v6070_v18 = vld [vmem:[#allocation16 + $0x2] ss:$0 sm:$0xff] }
 0x4b3   :  { %1267 = vmatpush.msrb.mxu1 %v495_v17 }
 0x4b5   :  { %1219 = vrot.lane.b32.xlu0 %v7717_v5, %s6859_s25  ;;  %1229 = vrot.lane.b32.xlu2 %v1214_v49, %s6834_s3 }
 0x4b6   :  { %1217 = vrot.lane.b32.xlu1 %v7722_v13, %s6859_s25  ;;  %1268 = vmatpush.msrb.mxu1 %v494_v46  ;;  %v6071_v46 = vld [vmem:[#allocation16] ss:$0 sm:$0xff] }
 0x4b8   :  { %1269 = vmatpush.msrb.mxu1 %v493_v3 }
 0x4ba   :  { %1270 = vmatpush.msrb.mxu1 %v492_v11 }
 0x4bc   :  { %1271 = vmatpush.msrb.mxu1 %v491_v51 }
 0x4bd   :  { %1233 = vrot.lane.b32.xlu0 %v1216_v39, %s6834_s3  ;;  %1221 = vrot.lane.b32.xlu2 %v7741_v36, %s6859_s25 }
 0x4be   :  { %1231 = vrot.lane.b32.xlu1 %v1215_v54, %s6834_s3  ;;  %1272 = vmatpush.msrb.mxu1 %v490_v24  ;;  %v1192_v54 = vsel %vm8761_vm11, 0.0, %v1182_v28  ;;  %vm8774_vm11 = vcmp.eq.s32.totalorder %v7364_v44, 0 }
 0x4c0   :  { %1273 = vmatpush.msrb.mxu1 %v489_v58 }
 0x4c2   :  { %1274 = vmatpush.msrb.mxu1 %v488_v61 }
 0x4c4   :  { %1989 = vmatpush.msra.mxu1 %v7392_v10  ;;  %v2300_v10 = vsel %vm8754_vm9, 0.0, %v7704_v20  ;;  %vm8767_vm9 = vmmov %vm8758_vm3 }
 0x4c5   :  { %1363 = vperm.xlu2 %6052, %v463_v25   ;;  %vm8771_vm3 = vmmov %vm8763_vm12 }
 0x4c6   :  { %1358 = vperm.xlu1 %6053, %v462_v53   ;;  %1990 = vmatpush.msra.mxu1 %v7395_v12 }
 0x4c8   :  { %1991 = vmatpush.msra.mxu1 %v7397_v15 }
 0x4ca   :  { %1992 = vmatpush.msra.mxu1 %v7401_v6  ;;  %v2301_v6 = vsel %vm8759_vm8, 0.0, %v7725_v16  ;;  %v1176_v16 = vsel %vm8767_vm9, %v1174_v32, %v1175_v7 }
 0x4cd   :  { %1927 = vperm.xlu2 %6052, %v464_v40  }
 0x4ff   :  { %v2327_v43 = vpop.permute.xlu2 %2326 }
 0x507   :  { %v2319_v37 = vpop.permute.xlu2 %2318 }
 0x508   :  { %v2337_v20 = vsel %vm8760_vm14, %v2301_v6, %v2319_v37  ;;  %vm8773_vm14 = vmmov %vm8767_vm9  ;;  %v471_v37 = vld [vmem:[%s8714_s26 + $0x18] sm:$0x3] }
 0x509   :  { %v1178_v63 = vsel %vm8773_vm14, %v1175_v7, %v1177_v0 }
 0x50b   :  { %v2315_v31 = vpop.permute.xlu1 %2314 }
 0x50c   :  { %v2335_v59 = vsel %vm8751_vm13, %v2299_v27, %v2315_v31  ;;  %vm8764_vm13 = vmmov %vm8757_vm0 }
 0x50d   :  { %v2338_v22 = vsel %vm8752_vm15, %v2335_v59, %v2327_v43  ;;  %vm8765_vm15 = vmmov %vm8756_vm7 }
 0x50e   :  { %5892 = vmatmul.msk.f32.vlgmr.msra.gmra.mxu3 %vm8753_vm2, %v2338_v22  ;;  %vm8766_vm2 = vmmov %vm8757_vm0 }
 0x50f   :  { %v1230_v25 = vpop.permute.xlu2 %1229  ;;  %vm8772_vm8 = vmmov %vm8766_vm2 }
 0x513   :  { %v2317_v26 = vpop.permute.xlu0 %2316 }
 0x514   :  { %v2336_v12 = vsel %vm8755_vm1, %v2300_v10, %v2317_v26  ;;  %vm8768_vm1 = vcmask 1043456  }
 0x51f   :  { %v2331_v15 = vpop.permute.xlu0 %2330 }
 0x520   :  { %v2329_v56 = vpop.permute.xlu1 %2328  ;;  %v2340_v53 = vsel %vm8763_vm12, %v2337_v20, %v2331_v15  ;;  %vm8776_vm12 = vmmov %vm8771_vm3 }
 0x521   :  { %v2339_v49 = vsel %vm8756_vm7, %v2336_v12, %v2329_v56  ;;  %vm8769_vm7 = vcmp.eq.s32.totalorder %v7367_v47, 0 }
 0x522   :  { %5893 = vmatmul.msk.f32.gmra.mxu3 %vm8757_vm0, %v2339_v49  ;;  %v1193_v34 = vsel %vm8769_vm7, 0.0, %v1176_v16  ;;  %vm8770_vm0 = vmmov %vm8762_vm6 }
 0x527   :  { %v1220_v5 = vpop.permute.xlu0 %1219 }
 0x528   :  { %v1218_v39 = vpop.permute.xlu1 %1217  ;;  %v1240_v23 = vsel %vm8770_vm0, %v1193_v34, %v1220_v5 }
 0x529   :  { %v1239_v13 = vsel %vm8762_vm6, %v1192_v54, %v1218_v39  ;;  %vm8775_vm6 = vmmov %vm8770_vm0 }
 0x52a   :  { %5894 = vmatmul.msk.f32.gmra.mxu3 %vm8764_vm13, %v2340_v53  ;;  %v1243_v40 = vsel %vm8765_vm15, %v1239_v13, %v1230_v25  ;;  %vm8777_vm13 = vmmov %vm8766_vm2 }
 0x52b   :  { %5849 = vmatmul.msk.f32.vlgmr.msrb.gmra.mxu1 %vm8766_vm2, %v1243_v40  ;;  %vm8778_vm15 = vmmov %vm8770_vm0  ;;  %vm8779_vm2 = vcmask 162816  }
 0x52c   :  { %5901 = vmatpush.msk.msrb.mxu1 %vm8768_vm1, %v7710_v19  ;;  %v1222_v19 = vpop.permute.xlu2 %1221  ;;  %5880 = vmatmul.msk.f32.gmra.mxu2 %vm8779_vm2, %v471_v37 }
 0x52e   :  { %2513 = vmatpush.msrb.mxu1 %v7689_v30  ;;  %v1194_v30 = vsel %vm8774_vm11, 0.0, %v1178_v63 }
 0x52f   :  { %v1234_v35 = vpop.permute.xlu0 %1233  ;;  %v1241_v47 = vsel %vm8775_vm6, %v1194_v30, %v1222_v19 }
 0x530   :  { %2514 = vmatpush.msrb.mxu1 %v7680_v57  ;;  %v1232_v38 = vpop.permute.xlu1 %1231  ;;  %v1245_v33 = vsel %vm8776_vm12, %v1241_v47, %v1234_v35  ;;  %v1965_v57 = vpop.f32.mrf.mxu2 }
 0x531   :  { %v1244_v4 = vsel %vm8771_vm3, %v1240_v23, %v1232_v38 }
 0x533   :  { %5850 = vmatmul.msk.f32.gmra.mxu1 %vm8772_vm8, %v1244_v4 }
 0x53b   :  { %5851 = vmatmul.msk.f32.gmra.mxu1 %vm8777_vm13, %v1245_v33 }
 0x543   :  { %5881 = vmatmul.msk.f32.vlgmr.msra.gmra.mxu1 %vm8778_vm15, %v1965_v57 }
 0x591   :  { %v2370_v36 = vpop.f32.mrf.mxu3 }
 0x592   :  { %v2371_v55 = vadd.f32 %v6070_v18, %v2370_v36 }
 0x594   :  { %v5895_v21 = vmul.f32 -1.442695, %v2371_v55 }
 0x596   :  { %6147 = vpow2.f32 %v5895_v21 }
 0x59c   :  { %v6148_v42 = vpop.eup %6147 }
 0x59d   :  { %v7836_v44 = vadd.f32 1.0, %v6148_v42 }
 0x59f   :  { %vm2396_vm7 = vweird.f32 %v7836_v44  ;;  %v2402_v47 = vand.u32 2147483648, %v7836_v44  ;;  %v2400_v21 = vand.u32 2147483647, %v7836_v44 }
 0x5a1   :  { %vm2401_vm12 = vcmp.eq.f32.partialorder %v2400_v21, 8.507059e+37 }
 0x5a5   :  { %v2373_v17 = vpop.f32.mrf.mxu3 }
 0x5a6   :  { %v2374_v3 = vadd.f32 %v6070_v18, %v2373_v17 }
 0x5a8   :  { %v5896_v11 = vmul.f32 -1.442695, %v2374_v3  ;;  %v1276_v51 = vpop.f32.mrf.mxu1 }
 0x5a9   :  { %v1277_v24 = vadd.f32 %v6071_v46, %v1276_v51 }
 0x5aa   :  { %6149 = vpow2.f32 %v5896_v11 }
 0x5ab   :  { %6151 = vrcp.f32 %v7836_v44  ;;  %v5852_v58 = vmul.f32 -1.442695, %v1277_v24  ;;  %v2403_v24 = vor.u32 1.1754944e-38, %v2402_v47 }
 0x5ad   :  { %6153 = vpow2.f32 %v5852_v58  ;;  %v2376_v61 = vpop.f32.mrf.mxu3 }
 0x5ae   :  { %v2377_v1 = vadd.f32 %v6070_v18, %v2376_v61 }
 0x5b0   :  { %v6150_v31 = vpop.eup %6149  ;;  %v5897_v27 = vmul.f32 -1.442695, %v2377_v1  ;;  %v1279_v43 = vpop.f32.mrf.mxu1 }
 0x5b1   :  { %v7839_v59 = vpop.eup %6151  ;;  %v2389_v22 = vadd.f32 1.0, %v6150_v31  ;;  %v1280_v26 = vadd.f32 %v6071_v46, %v1279_v43 }
 0x5b2   :  { %6155 = vpow2.f32 %v5897_v27  ;;  %v2392_v56 = vmul.f32 %v7839_v59, %v7836_v44  ;;  %vm2397_vm9 = vweird.f32 %v7839_v59 }
 0x5b3   :  { %v6154_v10 = vpop.eup %6153  ;;  %6157 = vrcp.f32 %v2389_v22  ;;  %v5853_v12 = vmul.f32 -1.442695, %v1280_v26  ;;  %v2417_v4 = vand.u32 2147483648, %v2389_v22  ;;  %vm2411_vm0 = vweird.f32 %v2389_v22  ;;  %vm7859_vm3 = vmor %vm2396_vm7, %vm2397_vm9 }
 0x5b4   :  { %v7845_v49 = vadd.f32 1.0, %v6154_v10  ;;  %v2393_v28 = vsub.f32 1.0, %v2392_v56  ;;  %v2415_v35 = vand.u32 2147483647, %v2389_v22 }
 0x5b5   :  { %6159 = vpow2.f32 %v5853_v12  ;;  %v2418_v3 = vor.u32 1.1754944e-38, %v2417_v4 }
 0x5b6   :  { %6161 = vrcp.f32 %v7845_v49  ;;  %v2394_v40 = vmul.f32 %v7839_v59, %v2393_v28  ;;  %vm2416_vm11 = vcmp.eq.f32.partialorder %v2415_v35, 8.507059e+37 }
 0x5b8   :  { %v6156_v32 = vpop.eup %6155  ;;  %v1282_v15 = vpop.f32.mrf.mxu1  ;;  %v2395_v34 = vadd.f32 %v7839_v59, %v2394_v40 }
 0x5b9   :  { %v6158_v6 = vpop.eup %6157  ;;  %v2390_v7 = vadd.f32 1.0, %v6156_v32  ;;  %v1283_v20 = vadd.f32 %v6071_v46, %v1282_v15 }
 0x5ba   :  { %v2407_v39 = vmul.f32 %v6158_v6, %v2389_v22  ;;  %vm2412_vm1 = vweird.f32 %v6158_v6  ;;  %v2399_v55 = vsel %vm7859_vm3, %v7839_v59, %v2395_v34  ;;  %v1306_v34 = vand.u32 2147483647, %v7845_v49 }
 0x5bb   :  { %v6160_v54 = vpop.eup %6159  ;;  %6163 = vrcp.f32 %v2390_v7  ;;  %v5854_v25 = vmul.f32 -1.442695, %v1283_v20  ;;  %vm7868_vm8 = vmor %vm2411_vm0, %vm2412_vm1  ;;  %v2432_v42 = vand.u32 2147483648, %v2390_v7  ;;  %v2430_v51 = vand.u32 2147483647, %v2390_v7 }
 0x5bc   :  { %v7848_v13 = vadd.f32 1.0, %v6160_v54  ;;  %v2408_v53 = vsub.f32 1.0, %v2407_v39  ;;  %v7852_v5 = vpop.eup %6161  ;;  %vm2426_vm6 = vweird.f32 %v2390_v7  ;;  %v2404_v27 = vsel %vm2401_vm12, %v2403_v24, %v2399_v55  ;;  %v472_v24 = vld [vmem:[%s8714_s26 + $0x20] sm:$0xff] }
 0x5bd   :  { %6165 = vpow2.f32 %v5854_v25  ;;  %v1298_v19 = vmul.f32 %v7852_v5, %v7845_v49  ;;  %v2433_v31 = vor.u32 1.1754944e-38, %v2432_v42  ;;  %vm2431_vm15 = vcmp.eq.f32.partialorder %v2430_v51, 8.507059e+37  ;;  %v1968_v51 = vpop.f32.mrf.mxu2 }
 0x5be   :  { %6167 = vrcp.f32 %v7848_v13  ;;  %v2409_v16 = vmul.f32 %v6158_v6, %v2408_v53  ;;  %v2439_v56 = vrot.slane %v2404_v27, 1  ;;  %vm1303_vm2 = vweird.f32 %v7852_v5 }
 0x5bf   :  { %v1299_v61 = vsub.f32 1.0, %v1298_v19  ;;  %vm1317_vm9 = vweird.f32 %v7848_v13  ;;  %v1323_v20 = vand.u32 2147483648, %v7848_v13  ;;  %vm1302_vm0 = vweird.f32 %v7845_v49 }
 0x5c0   :  { %v2410_v38 = vadd.f32 %v6158_v6, %v2409_v16  ;;  %v2636_v16 = vshrl.u32 %v7333_v9, 2  ;;  %v535_v9 = vld [vmem:[#allocation18 + $0x40] sm:$0xff] }
 0x5c1   :  { %v6164_v23 = vpop.eup %6163  ;;  %v1300_v37 = vmul.f32 %v7852_v5, %v1299_v61  ;;  %v549_v61 = vld [vmem:[#allocation18 + $0xb0] sm:$0xff] }
 0x5c2   :  { %v2422_v0 = vmul.f32 %v6164_v23, %v2390_v7  ;;  %v2414_v46 = vsel %vm7868_vm8, %v6158_v6, %v2410_v38  ;;  %vm2427_vm14 = vweird.f32 %v6164_v23  ;;  %v1321_v7 = vand.u32 2147483647, %v7848_v13  ;;  %vm7908_vm8 = vmor %vm1302_vm0, %vm1303_vm2 }
 0x5c3   :  { %v6166_v63 = vpop.eup %6165  ;;  %v2419_v44 = vsel %vm2416_vm11, %v2418_v3, %v2414_v46  ;;  %vm2428_vm13 = vmor %vm2426_vm6, %vm2427_vm14  ;;  %v1301_v53 = vadd.f32 %v7852_v5, %v1300_v37  ;;  %v7932_v37 = vld [vmem:[#allocation27] ss:$0 sm:$0xff] }
 0x5c4   :  { %v7864_v33 = vpop.eup %6167  ;;  %v2423_v57 = vsub.f32 1.0, %v2422_v0  ;;  %v7866_v18 = vadd.f32 1.0, %v6166_v63  ;;  %v2440_v26 = vrot.slane %v2419_v44, 1  ;;  %v1324_v63 = vor.u32 1.1754944e-38, %v1323_v20 }
 0x5c5   :  { %v1313_v17 = vmul.f32 %v7864_v33, %v7848_v13  ;;  %vm1318_vm1 = vweird.f32 %v7864_v33  ;;  %v1308_v13 = vand.u32 2147483648, %v7845_v49  ;;  %vm1322_vm11 = vcmp.eq.f32.partialorder %v1321_v7, 8.507059e+37 }
 0x5c6   :  { %v2424_v11 = vmul.f32 %v6164_v23, %v2423_v57  ;;  %6169 = vrcp.f32 %v7866_v18  ;;  %v2441_v25 = vsel %vm963_vm4, %v2439_v56, %v2440_v26  ;;  %v1338_v40 = vand.u32 2147483648, %v7866_v18  ;;  %vm7895_vm7 = vmor %vm1317_vm9, %vm1318_vm1  ;;  %v542_v56 = vld [vmem:[#allocation18 + $0x78] sm:$0xff] }
 0x5c7   :  { %v1314_v58 = vsub.f32 1.0, %v1313_v17  ;;  %v1336_v38 = vand.u32 2147483647, %v7866_v18  ;;  %v2447_v0 = vmax.f32 %v2404_v27, %v2441_v25  ;;  %vm1332_vm14 = vweird.f32 %v7866_v18  ;;  %v545_v27 = vld [vmem:[#allocation18 + $0x90] sm:$0xff]  ;;  %2698 = vmatpush.msrb.mxu3 %v542_v56 }
 0x5c8   :  { %v2425_v1 = vadd.f32 %v6164_v23, %v2424_v11  ;;  %v1305_v35 = vsel %vm7908_vm8, %v7852_v5, %v1301_v53  ;;  %v1339_v30 = vor.u32 1.1754944e-38, %v1338_v40  ;;  %v538_v40 = vld [vmem:[#allocation18 + $0x58] sm:$0xff]  ;;  %v565_v56 = vld [vmem:[#allocation18 + $0x130] sm:$0xff] }
 0x5c9   :  { %v1315_v43 = vmul.f32 %v7864_v33, %v1314_v58  ;;  %vm1337_vm12 = vcmp.eq.f32.partialorder %v1336_v38, 8.507059e+37  ;;  %v550_v58 = vld [vmem:[#allocation18 + $0xb8] sm:$0xff] }
 0x5ca   :  { %v2429_v59 = vsel %vm2428_vm13, %v6164_v23, %v2425_v1  ;;  %vm1307_vm13 = vcmp.eq.f32.partialorder %v1306_v34, 8.507059e+37  ;;  %2729 = vmatpush.msra.mxu1 %v550_v58  ;;  %v548_v1 = vld [vmem:[#allocation18 + $0xa8] sm:$0xff] }
 0x5cb   :  { %v2434_v22 = vsel %vm2431_vm15, %v2433_v31, %v2429_v59  ;;  %v1316_v15 = vadd.f32 %v7864_v33, %v1315_v43  ;;  %vm8788_vm15 = vcmask 261120   ;;  %v473_v31 = vld [vmem:[%s8714_s26 + $0x28] sm:$0x3]  ;;  %v544_v43 = vld [vmem:[#allocation18 + $0x88] sm:$0xff]  ;;  %v543_v59 = vld [vmem:[#allocation18 + $0x80] sm:$0xff] }
 0x5cc   :  { %v6170_v10 = vpop.eup %6169  ;;  %v2442_v12 = vrot.slane %v2434_v22, 1  ;;  %5882 = vmatmul.msk.f32.gmra.mxu1 %vm8788_vm15, %v1968_v51 }
 0x5cd   :  { %v1328_v32 = vmul.f32 %v6170_v10, %v7866_v18  ;;  %vm1333_vm3 = vweird.f32 %v6170_v10  ;;  %v1320_v4 = vsel %vm7895_vm7, %v7864_v33, %v1316_v15  ;;  %v1309_v33 = vor.u32 1.1754944e-38, %v1308_v13  ;;  %2730 = vmatpush.msra.mxu1 %v549_v61  ;;  %v7936_v15 = vld [vmem:[#allocation31] ss:$0 sm:$0xff] }
 0x5ce   :  { %v2449_v28 = vmax.f32 %v2434_v22, %v2442_v12  ;;  %v2443_v6 = vsel %vm963_vm4, %v2440_v26, %v2442_v12  ;;  %vm1334_vm6 = vmor %vm1332_vm14, %vm1333_vm3  ;;  %v1325_v47 = vsel %vm1322_vm11, %v1324_v63, %v1320_v4  ;;  %v1359_v22 = vpop.permute.xlu1 %1358  ;;  %v537_v4 = vld [vmem:[#allocation18 + $0x50] sm:$0xff]  ;;  %v536_v63 = vld [vmem:[#allocation18 + $0x48] sm:$0xff]  ;;  %vm8791_vm14 = vcmask 1040384  }
 0x5cf   :  { %v1329_v39 = vsub.f32 1.0, %v1328_v32  ;;  %v2448_v54 = vmax.f32 %v2419_v44, %v2443_v6  ;;  %v1310_v55 = vsel %vm1307_vm13, %v1309_v33, %v1305_v35  ;;  %v1346_v21 = vrot.slane %v1325_v47, 1  ;;  %v547_v44 = vld [vmem:[#allocation18 + $0xa0] sm:$0xff]  ;;  %2731 = vmatpush.msra.mxu1 %v548_v1  ;;  %v541_v32 = vld [vmem:[#allocation18 + $0x70] sm:$0xff]  ;;  %v540_v6 = vld [vmem:[#allocation18 + $0x68] sm:$0xff] }
 0x5d0   :  { %5898 = vmatpush.msk.msra.mxu2 %vm1203_vm5, %v2449_v28  ;;  %v1345_v5 = vrot.slane %v1310_v55, 1  ;;  %v1369_v12 = vmul.f32 %v7932_v37, %v1359_v22  ;;  %v7938_v28 = vld [vmem:[#allocation28] ss:$0 sm:$0xff]  ;;  %2699 = vmatpush.msrb.mxu3 %v541_v32  ;;  %v530_v1 = vld [vmem:[#allocation18 + $0x18] sm:$0xff]  ;;  %vm8792_vm11 = vcmask 523264   ;;  %v564_v32 = vld [vmem:[#allocation18 + $0x128] sm:$0xff] }
 0x5d1   :  { %v1330_v23 = vmul.f32 %v6170_v10, %v1329_v39  ;;  %2732 = vmatpush.msra.mxu1 %v547_v44  ;;  %v539_v39 = vld [vmem:[#allocation18 + $0x60] sm:$0xff]  ;;  %vm8794_vm13 = vmmov %vm8792_vm11  ;;  %v529_v22 = vld [vmem:[#allocation18 + $0x10] sm:$0xff] }
 0x5d2   :  { %2467 = vmatpush.msra.mxu2 %v2448_v54  ;;  %v1347_v3 = vsel %vm963_vm4, %v1345_v5, %v1346_v21  ;;  %v1374_v20 = vadd.f32 %v7938_v28, %v1369_v12  ;;  %v1364_v54 = vpop.permute.xlu2 %1363  ;;  %2700 = vmatpush.msrb.mxu3 %v540_v6  ;;  %v566_v12 = vld [vmem:[#allocation18 + $0x138] sm:$0xff]  ;;  %v563_v6 = vld [vmem:[#allocation18 + $0x120] sm:$0xff] }
 0x5d3   :  { %v1331_v49 = vadd.f32 %v6170_v10, %v1330_v23  ;;  %v1353_v11 = vmax.f32 %v1310_v55, %v1347_v3  ;;  %v1370_v34 = vmul.f32 %v7932_v37, %v1364_v54  ;;  %v531_v3 = vld [vmem:[#allocation18 + $0x20] sm:$0xff] }
 0x5d4   :  { %2468 = vmatpush.msra.mxu2 %v2447_v0  ;;  %2701 = vmatpush.msrb.mxu3 %v539_v39  ;;  %v560_v39 = vld [vmem:[#allocation18 + $0x108] sm:$0xff] }
 0x5d5   :  { %5899 = vmatmul.msk.f32.vlgmr.msra.gmra.mxu2 %vm1892_vm10, %v7653_v14  ;;  %v1335_v57 = vsel %vm1334_vm6, %v6170_v10, %v1331_v49  ;;  %v2607_v10 = vshrl.u32 %v7325_v45, 2  ;;  %v1437_v45 = vadd.f32 %v7936_v15, %v7451_v8  ;;  %v2637_v8 = vmul.u32 5, %v2636_v16  ;;  %vm8793_vm6 = vmmov %vm8791_vm14 }
 0x5d6   :  { %v1340_v36 = vsel %vm1337_vm12, %v1339_v30, %v1335_v57  ;;  %2702 = vmatpush.msrb.mxu3 %v538_v40  ;;  %v534_v30 = vld [vmem:[#allocation18 + $0x38] sm:$0xff]  ;;  %v556_v40 = vld [vmem:[#allocation18 + $0xe8] sm:$0xff] }
 0x5d7   :  { %v1348_v18 = vrot.slane %v1340_v36, 1  ;;  %v2608_v7 = vmul.u32 5, %v2607_v10  ;;  %v1442_v13 = vadd.f32 %v1437_v45, %v1374_v20  ;;  %v2638_v33 = vsub.s32 %v7304_v60, %v2637_v8  ;;  %v527_v10 = vld [vmem:[#allocation18] sm:$0xff]  ;;  %v561_v20 = vld [vmem:[#allocation18 + $0x110] sm:$0xff]  ;;  %v558_v45 = vld [vmem:[#allocation18 + $0xf8] sm:$0xff] }
 0x5d8   :  { %2703 = vmatpush.msrb.mxu3 %v537_v4  ;;  %v551_v8 = vld [vmem:[#allocation18 + $0xc0] sm:$0xff] }
 0x5d9   :  { %v1355_v42 = vmax.f32 %v1340_v36, %v1348_v18  ;;  %v1349_v17 = vsel %vm963_vm4, %v1346_v21, %v1348_v18  ;;  %v2609_v38 = vsub.s32 %v7291_v48, %v2608_v7  ;;  %v1440_v48 = vadd.f32 %v7936_v15, %v7453_v29  ;;  %v1994_v36 = vpop.f32.mrf.mxu1  ;;  %v533_v18 = vld [vmem:[#allocation18 + $0x30] sm:$0xff]  ;;  %v465_v21 = vld [vmem:[%s8745_s1 + $0x18] sm:$0x3]  ;;  %v562_v7 = vld [vmem:[#allocation18 + $0x118] sm:$0xff] }
 0x5da   :  { %v1354_v46 = vmax.f32 %v1325_v47, %v1349_v17  ;;  %2704 = vmatpush.msrb.mxu3 %v536_v63  ;;  %v1928_v47 = vpop.permute.xlu2 %1927  ;;  %v1995_v5 = vadd.f32 %v7936_v15, %v1994_v36  ;;  %vm2642_vm0 = vcmp.ne.s32.totalorder %v2638_v33, 0  ;;  %vm2644_vm3 = vcmp.lt.s32.totalorder %v2638_v33, 0  ;;  %v552_v63 = vld [vmem:[#allocation18 + $0xc8] sm:$0xff] }
 0x5db   :  { %5906 = vmatpush.msk.msrb.mxu2 %vm1203_vm5, %v1355_v42  ;;  %vm8789_vm5 = vcmask 162816   ;;  %vm2643_vm9 = vcmp.lt.s32.totalorder %v2609_v38, 0  ;;  %v2647_v35 = vadd.s32 5, %v2609_v38  ;;  %v1935_v42 = vmul.f32 %v7932_v37, %v1928_v47  ;;  %vm2646_vm8 = vmand %vm2644_vm3, %vm2642_vm0 }
 0x5dc   :  { %5902 = vmatmul.msk.f32.vlgmr.msrb.gmra.mxu1 %vm8789_vm5, %v472_v24  ;;  %vm8790_vm2 = vmmov %vm8789_vm5  ;;  %2705 = vmatpush.msrb.mxu3 %v535_v9  ;;  %v2648_v24 = vadd.s32 5, %v2638_v33 }
 0x5dd   :  { %5900 = vmatmul.msk.f32.gmra.mxu2 %vm1892_vm10, %v7663_v52  ;;  %v1937_v58 = vadd.f32 %v7938_v28, %v1935_v42  ;;  %vm8795_vm5 = vmmov %vm8788_vm15 }
 0x5de   :  { %2570 = vmatpush.msrb.mxu2 %v1354_v46  ;;  %2706 = vmatpush.msrb.mxu3 %v534_v30  ;;  %vm8799_vm3 = vmmov %vm8793_vm6 }
 0x5e0   :  { %2571 = vmatpush.msrb.mxu2 %v1353_v11  ;;  %2707 = vmatpush.msrb.mxu3 %v533_v18 }
 0x5e4   :  { %5903 = vmatmul.msk.f32.gmra.mxu1 %vm8790_vm2, %v473_v31 }
 0x5e5   :  { %5907 = vmatmul.msk.f32.vlgmr.msrb.gmra.mxu2 %vm1892_vm10, %v7653_v14  ;;  %v546_v14 = vld [vmem:[#allocation18 + $0x98] sm:$0xff] }
 0x5e6   :  { %2733 = vmatpush.msra.mxu1 %v546_v14  ;;  %v2000_v14 = vadd.f32 %v1995_v5, %v1937_v58 }
 0x5e8   :  { %2734 = vmatpush.msra.mxu1 %v545_v27  ;;  %v7981_v27 = vsel %vm2646_vm8, %v2648_v24, %v2638_v33 }
 0x5e9   :  { %vm2674_vm12 = vcmp.eq.s32.totalorder %v7981_v27, 4 }
 0x5ea   :  { %2735 = vmatpush.msra.mxu1 %v544_v43 }
 0x5ec   :  { %2736 = vmatpush.msra.mxu1 %v543_v59 }
 0x5ed   :  { %5908 = vmatmul.msk.f32.gmra.mxu2 %vm1892_vm10, %v7663_v52  ;;  %vm2641_vm10 = vcmp.ne.s32.totalorder %v2609_v38, 0 }
 0x5ee   :  { %vm2645_vm1 = vmand %vm2643_vm9, %vm2641_vm10 }
 0x5ef   :  { %v7964_v17 = vsel %vm2645_vm1, %v2647_v35, %v2609_v38  ;;  %v553_v38 = vld [vmem:[#allocation18 + $0xd0] sm:$0xff]  ;;  %vm8796_vm10 = vmmov %vm8793_vm6  ;;  %vm2660_vm1 = vcmp.eq.s32.totalorder %v7981_v27, 0 }
 0x5f0   :  { %vm2673_vm7 = vcmp.eq.s32.totalorder %v7964_v17, 4  ;;  %vm2659_vm2 = vcmp.eq.s32.totalorder %v7964_v17, 0  ;;  %vm8797_vm9 = vmmov %vm8792_vm11 }
 0x5f1   :  { %vm8798_vm0 = vmmov %vm8797_vm9 }
 0x5f2   :  { %vm8800_vm8 = vmmov %vm8798_vm0 }
 0x649   :  { %v1997_v54 = vpop.f32.mrf.mxu1 }
 0x658   :  { %v2470_v52 = vpop.f32.mrf.mxu2 }
 0x659   :  { %v2516_v16 = vpop.f32.mrf.mxu1 }
 0x65a   :  { %5904 = vmatmul.msk.f32.vlgmr.msrb.gmra.mxu0 %vm8788_vm15, %v2516_v16 }
 0x660   :  { %v2473_v26 = vpop.f32.mrf.mxu2 }
 0x661   :  { %v2519_v4 = vpop.f32.mrf.mxu1 }
 0x662   :  { %5905 = vmatmul.msk.f32.gmra.mxu0 %vm8795_vm5, %v2519_v4 }
 0x668   :  { %v2573_v25 = vpop.f32.mrf.mxu2 }
 0x669   :  { %v2574_v53 = vadd.f32 %v2573_v25, %v7674_v62  ;;  %v1375_v62 = vadd.f32 %v7938_v28, %v1370_v34  ;;  %v559_v25 = vld [vmem:[#allocation18 + $0x100] sm:$0xff] }
 0x66a   :  { %v555_v34 = vld [vmem:[#allocation18 + $0xe0] sm:$0xff] }
 0x66b   :  { %v7946_v23 = vadd.f32 %v2574_v53, %v2470_v52  ;;  %v1443_v57 = vadd.f32 %v1440_v48, %v1375_v62  ;;  %v557_v53 = vld [vmem:[#allocation18 + $0xf0] sm:$0xff] }
 0x66d   :  { %v7950_v0 = vadd.f32 %v7946_v23, %v1442_v13  ;;  %v7984_v52 = vadd.f32 %v7946_v23, %v2000_v14  ;;  %v554_v13 = vld [vmem:[#allocation18 + $0xd8] sm:$0xff] }
 0x66f   :  { %2681 = vrot.lane.b32.xlu0 %v7950_v0, %s6834_s3  ;;  %v2667_v60 = vrot.slane %v7950_v0, 1  ;;  %v2653_v11 = vrot.slane %v7950_v0, 7  ;;  %v2925_v33 = vrot.slane %v7984_v52, 7  ;;  %v2933_v5 = vrot.slane %v7984_v52, 1 }
 0x670   :  { %v2576_v19 = vpop.f32.mrf.mxu2 }
 0x671   :  { %v2577_v49 = vadd.f32 %v2576_v19, %v7676_v41  ;;  %v532_v41 = vld [vmem:[#allocation18 + $0x28] sm:$0xff]  ;;  %v2658_v62 = vsel %vm8796_vm10, 0.0, %v2653_v11 }
 0x672   :  { %2708 = vmatpush.msrb.mxu3 %v532_v41  ;;  %v2665_v19 = vsel %vm2659_vm2, 0.0, %v2658_v62 }
 0x673   :  { %v7959_v55 = vadd.f32 %v2577_v49, %v2473_v26  ;;  %v528_v26 = vld [vmem:[#allocation18 + $0x8] sm:$0xff] }
 0x674   :  { %2709 = vmatpush.msrb.mxu3 %v531_v3 }
 0x675   :  { %v2582_v29 = vadd.f32 %v7959_v55, %v1443_v57  ;;  %v1998_v57 = vadd.f32 %v7936_v15, %v1997_v54 }
 0x676   :  { %2710 = vmatpush.msrb.mxu3 %v530_v1  ;;  %v6072_v1 = vld [vmem:[#allocation19] ss:$0 sm:$0xff] }
 0x677   :  { %2683 = vrot.lane.b32.xlu1 %v2582_v29, %s6834_s3  ;;  %v2668_v46 = vrot.slane %v2582_v29, 1  ;;  %1932 = vperm.xlu0 %6054, %v465_v21   ;;  %v2654_v51 = vrot.slane %v2582_v29, 7  ;;  %v2930_v21 = vsel %vm8799_vm3, 0.0, %v2925_v33 }
 0x678   :  { %2711 = vmatpush.msrb.mxu3 %v529_v22  ;;  %v2931_v41 = vsel %vm2659_vm2, 0.0, %v2930_v21  ;;  %v8036_v21 = vld [vmem:[#allocation10] sm:$0x3] }
 0x679   :  { %v2669_v61 = vsel %vm963_vm4, %v2667_v60, %v2668_v46  ;;  %v7976_v44 = vsel %vm8791_vm14, %v2653_v11, %v2654_v51  ;;  %v2672_v43 = vsel %vm8793_vm6, %v2668_v46, 0.0  ;;  %vm8801_vm14 = vmmov %vm8799_vm3  ;;  %vm2795_vm3 = vcmask 1041408  }
 0x67a   :  { %v2679_v31 = vsel %vm2673_vm7, 0.0, %v2669_v61  ;;  %v2680_v59 = vsel %vm2674_vm12, 0.0, %v2672_v43  ;;  %2712 = vmatpush.msrb.mxu3 %v528_v26  ;;  %v2666_v30 = vsel %vm2660_vm1, 0.0, %v7976_v44 }
 0x67b   :  { %5909 = vmatmul.msk.f32.vlgmr.msra.gmra.mxu1 %vm8792_vm11, %v2679_v31  ;;  %vm8802_vm11 = vmmov %vm8798_vm0 }
 0x67c   :  { %2713 = vmatpush.msrb.mxu3 %v527_v10 }
 0x67e   :  { %2958 = vmatpush.msra.mxu3 %v566_v12 }
 0x67f   :  { %2941 = vrot.lane.b32.xlu1 %v7984_v52, %s6834_s3 }
 0x680   :  { %2959 = vmatpush.msra.mxu3 %v565_v56 }
 0x682   :  { %2960 = vmatpush.msra.mxu3 %v564_v32 }
 0x683   :  { %5910 = vmatmul.msk.f32.gmra.mxu1 %vm8794_vm13, %v2680_v59 }
 0x684   :  { %2961 = vmatpush.msra.mxu3 %v563_v6 }
 0x686   :  { %2962 = vmatpush.msra.mxu3 %v562_v7 }
 0x688   :  { %2963 = vmatpush.msra.mxu3 %v561_v20 }
 0x68a   :  { %2964 = vmatpush.msra.mxu3 %v560_v39 }
 0x68c   :  { %2965 = vmatpush.msra.mxu3 %v559_v25 }
 0x68e   :  { %2966 = vmatpush.msra.mxu3 %v558_v45 }
 0x690   :  { %2967 = vmatpush.msra.mxu3 %v557_v53 }
 0x692   :  { %2968 = vmatpush.msra.mxu3 %v556_v40 }
 0x694   :  { %2969 = vmatpush.msra.mxu3 %v555_v34 }
 0x696   :  { %2970 = vmatpush.msra.mxu3 %v554_v13 }
 0x698   :  { %2971 = vmatpush.msra.mxu3 %v553_v38 }
 0x69a   :  { %2972 = vmatpush.msra.mxu3 %v552_v63 }
 0x69c   :  { %2973 = vmatpush.msra.mxu3 %v551_v8 }
 0x6e1   :  { %v2682_v9 = vpop.permute.xlu0 %2681 }
 0x6e2   :  { %v2687_v48 = vsel %vm8797_vm9, %v2665_v19, %v2682_v9 }
 0x6e3   :  { %2714 = vmatmul.f32.vlgmr.msrb.gmra.mxu3 %v2687_v48 }
 0x6e9   :  { %v2684_v49 = vpop.permute.xlu1 %2683  ;;  %v1933_v35 = vpop.permute.xlu0 %1932 }
 0x6ea   :  { %v1936_v47 = vmul.f32 %v7932_v37, %v1933_v35  ;;  %v2688_v0 = vsel %vm8798_vm0, %v2666_v30, %v2684_v49 }
 0x6eb   :  { %2717 = vmatmul.f32.gmra.mxu3 %v2688_v0  ;;  %v574_v0 = vld [vmem:[#allocation18 + $0x178] sm:$0xff] }
 0x6ec   :  { %v1938_v36 = vadd.f32 %v7938_v28, %v1936_v47 }
 0x6ee   :  { %v2001_v18 = vadd.f32 %v1998_v57, %v1938_v36  ;;  %v573_v57 = vld [vmem:[#allocation18 + $0x170] sm:$0xff] }
 0x6f0   :  { %v8013_v42 = vadd.f32 %v7959_v55, %v2001_v18 }
 0x6f1   :  { %v2942_v29 = vpop.permute.xlu1 %2941 }
 0x6f2   :  { %v2947_v60 = vsel %vm8800_vm8, %v2931_v41, %v2942_v29  ;;  %2943 = vrot.lane.b32.xlu2 %v8013_v42, %s6834_s3  ;;  %v2934_v46 = vrot.slane %v8013_v42, 1  ;;  %v2926_v11 = vrot.slane %v8013_v42, 7  ;;  %v572_v29 = vld [vmem:[#allocation18 + $0x168] sm:$0xff]  ;;  %v8038_v41 = vld [vmem:[#allocation9] sm:$0x3] }
 0x6f3   :  { %2974 = vmatmul.f32.vlgmr.msra.gmra.mxu3 %v2947_v60  ;;  %v571_v60 = vld [vmem:[#allocation18 + $0x160] sm:$0xff] }
 0x6f4   :  { %v8025_v3 = vsel %vm963_vm4, %v2933_v5, %v2934_v46  ;;  %v2927_v51 = vsel %vm8801_vm14, %v2925_v33, %v2926_v11  ;;  %v8040_v5 = vld [vmem:[#allocation12] sm:$0x3]  ;;  %v570_v11 = vld [vmem:[#allocation18 + $0x158] sm:$0xff] }
 0x6f5   :  { %v2932_v58 = vsel %vm2660_vm1, 0.0, %v2927_v51  ;;  %v569_v51 = vld [vmem:[#allocation18 + $0x150] sm:$0xff] }
 0x6f8   :  { %v2738_v44 = vpop.f32.mrf.mxu1 }
 0x700   :  { %v2741_v26 = vpop.f32.mrf.mxu1 }
 0x74c   :  { %v2944_v24 = vpop.permute.xlu2 %2943 }
 0x74d   :  { %v2948_v61 = vsel %vm8802_vm11, %v2932_v58, %v2944_v24  ;;  %vm8803_vm11 = vmmov %vm8801_vm14  ;;  %v568_v24 = vld [vmem:[#allocation18 + $0x148] sm:$0xff]  ;;  %v567_v58 = vld [vmem:[#allocation18 + $0x140] sm:$0xff] }
 0x74e   :  { %2977 = vmatmul.f32.gmra.mxu3 %v2948_v61  ;;  %v2939_v61 = vsel %vm2673_vm7, 0.0, %v8025_v3  ;;  %v6073_v3 = vld [vmem:[#allocation19 + $0x1] ss:$0 sm:$0xff] }
 0x766   :  { %v2715_v31 = vpop.f32.mrf.mxu3 }
 0x767   :  { %v2716_v14 = vadd.f32 %v6072_v1, %v2715_v31  ;;  %v8058_v31 = vpop.f32.mrf.mxu0 }
 0x769   :  { %v2739_v52 = vadd.f32 %v2738_v44, %v2716_v14 }
 0x76b   :  { %v5911_v43 = vmul.f32 -1.442695, %v2739_v52 }
 0x76d   :  { %6171 = vpow2.f32 %v5911_v43 }
 0x76e   :  { %v2718_v59 = vpop.f32.mrf.mxu3 }
 0x76f   :  { %v2719_v22 = vadd.f32 %v6072_v1, %v2718_v59  ;;  %v8060_v14 = vpop.f32.mrf.mxu0 }
 0x771   :  { %v2742_v10 = vadd.f32 %v2741_v26, %v2719_v22 }
 0x773   :  { %v6172_v12 = vpop.eup %6171  ;;  %v5912_v56 = vmul.f32 -1.442695, %v2742_v10 }
 0x774   :  { %v2750_v32 = vadd.f32 1.0, %v6172_v12 }
 0x775   :  { %6173 = vpow2.f32 %v5912_v56 }
 0x776   :  { %6175 = vrcp.f32 %v2750_v32  ;;  %v2763_v16 = vand.u32 2147483648, %v2750_v32  ;;  %vm2757_vm13 = vweird.f32 %v2750_v32  ;;  %v2761_v13 = vand.u32 2147483647, %v2750_v32  ;;  %v2975_v22 = vpop.f32.mrf.mxu3 }
 0x778   :  { %v2764_v62 = vor.u32 1.1754944e-38, %v2763_v16  ;;  %vm2762_vm9 = vcmp.eq.f32.partialorder %v2761_v13, 8.507059e+37 }
 0x77b   :  { %v6174_v6 = vpop.eup %6173 }
 0x77c   :  { %v6176_v7 = vpop.eup %6175  ;;  %v2751_v20 = vadd.f32 1.0, %v6174_v6 }
 0x77d   :  { %v2753_v39 = vmul.f32 %v6176_v7, %v2750_v32  ;;  %vm2758_vm6 = vweird.f32 %v6176_v7 }
 0x77e   :  { %6177 = vrcp.f32 %v2751_v20  ;;  %v2778_v38 = vand.u32 2147483648, %v2751_v20  ;;  %vm2759_vm15 = vmor %vm2757_vm13, %vm2758_vm6  ;;  %v2776_v63 = vand.u32 2147483647, %v2751_v20  ;;  %vm2772_vm10 = vweird.f32 %v2751_v20 }
 0x77f   :  { %v2754_v54 = vsub.f32 1.0, %v2753_v39  ;;  %vm2818_vm6 = vcmask 72704   ;;  %vm2791_vm13 = vcmask 80896  }
 0x780   :  { %v2779_v19 = vor.u32 1.1754944e-38, %v2778_v38  ;;  %vm2777_vm8 = vcmp.eq.f32.partialorder %v2776_v63, 8.507059e+37  ;;  %v466_v63 = vld [vmem:[%s8745_s1 + $0x20] sm:$0xff] }
 0x781   :  { %v2755_v25 = vmul.f32 %v6176_v7, %v2754_v54 }
 0x783   :  { %v2756_v40 = vadd.f32 %v6176_v7, %v2755_v25 }
 0x784   :  { %v6178_v45 = vpop.eup %6177 }
 0x785   :  { %v2768_v53 = vmul.f32 %v6178_v45, %v2751_v20  ;;  %vm2773_vm5 = vweird.f32 %v6178_v45  ;;  %v2760_v8 = vsel %vm2759_vm15, %v6176_v7, %v2756_v40  ;;  %vm8804_vm15 = vcmask 523264  }
 0x786   :  { %vm2774_vm0 = vmor %vm2772_vm10, %vm2773_vm5  ;;  %v2765_v48 = vsel %vm2762_vm9, %v2764_v62, %v2760_v8  ;;  %v2976_v7 = vadd.f32 %v6073_v3, %v2975_v22 }
 0x787   :  { %v2769_v34 = vsub.f32 1.0, %v2768_v53  ;;  %v2784_v47 = vrot.slane %v2765_v48, 1  ;;  %vm8805_vm5 = vmmov %vm8803_vm11 }
 0x788   :  { %v2938_v1 = vsel %vm8805_vm5, %v2934_v46, 0.0  ;;  %vm8806_vm10 = vmmov %vm8804_vm15 }
 0x789   :  { %v2770_v4 = vmul.f32 %v6178_v45, %v2769_v34  ;;  %v2940_v44 = vsel %vm2674_vm12, 0.0, %v2938_v1 }
 0x78b   :  { %v2771_v9 = vadd.f32 %v6178_v45, %v2770_v4 }
 0x78d   :  { %v2775_v49 = vsel %vm2774_vm0, %v6178_v45, %v2771_v9 }
 0x78e   :  { %v2780_v35 = vsel %vm2777_vm8, %v2779_v19, %v2775_v49 }
 0x78f   :  { %v2785_v30 = vrot.slane %v2780_v35, 1  ;;  %5913 = vmatpush.msk.msra.mxu0 %vm2795_vm3, %v2780_v35 }
 0x791   :  { %v2790_v33 = vmax.f32 %v2780_v35, %v2785_v30  ;;  %2813 = vmatpush.msra.mxu0 %v2765_v48  ;;  %v2786_v36 = vsel %vm963_vm4, %v2784_v47, %v2785_v30 }
 0x792   :  { %v2789_v18 = vmax.f32 %v2765_v48, %v2786_v36  ;;  %5914 = vmatmul.msk.f32.vlgmr.msra.gmra.mxu0 %vm2791_vm13, %v8038_v41  ;;  %v467_v48 = vld [vmem:[%s8745_s1 + $0x28] sm:$0x3] }
 0x793   :  { %2989 = vmatpush.msrb.mxu0 %v574_v0  ;;  %5915 = vmatpush.msk.msra.mxu2 %vm8801_vm14, %v2790_v33 }
 0x794   :  { %5917 = vmatpush.msk.msrb.mxu1 %vm8803_vm11, %v2790_v33 }
 0x795   :  { %2990 = vmatpush.msrb.mxu0 %v573_v57  ;;  %2840 = vmatpush.msra.mxu2 %v2789_v18 }
 0x796   :  { %2863 = vmatpush.msrb.mxu1 %v2789_v18  ;;  %5916 = vmatmul.msk.f32.vlgmr.msra.gmra.mxu2 %vm2818_vm6, %v8036_v21 }
 0x797   :  { %2991 = vmatpush.msrb.mxu0 %v572_v29  ;;  %5918 = vmatmul.msk.f32.vlgmr.msrb.gmra.mxu1 %vm2818_vm6, %v8040_v5 }
 0x799   :  { %2992 = vmatpush.msrb.mxu0 %v571_v60 }
 0x79b   :  { %2993 = vmatpush.msrb.mxu0 %v570_v11 }
 0x79d   :  { %2994 = vmatpush.msrb.mxu0 %v569_v51 }
 0x79f   :  { %2995 = vmatpush.msrb.mxu0 %v568_v24 }
 0x7a1   :  { %2996 = vmatpush.msrb.mxu0 %v567_v58 }
 0x7a2   :  { %5919 = vmatmul.msk.f32.vlgmr.msrb.gmra.mxu0 %vm8804_vm15, %v2939_v61 }
 0x7aa   :  { %5920 = vmatmul.msk.f32.gmra.mxu0 %vm8806_vm10, %v2940_v44 }
 0x7d1   :  { %v2978_v53 = vpop.f32.mrf.mxu3 }
 0x7d2   :  { %v2979_v40 = vadd.f32 %v6073_v3, %v2978_v53 }
 0x80f   :  { %v8062_v52 = vpop.f32.mrf.mxu0 }
 0x810   :  { %v2868_v59 = vsel %vm2795_vm3, %v8062_v52, inf  ;;  %v2882_v42 = vsel %vm2795_vm3, %v8062_v52, -inf }
 0x814   :  { %v8064_v43 = vpop.f32.mrf.mxu1 }
 0x815   :  { %v2884_v12 = vsel %vm2795_vm3, %v8064_v43, -inf  ;;  %v2870_v56 = vsel %vm2795_vm3, %v8064_v43, inf }
 0x819   :  { %v8070_v46 = vpop.f32.mrf.mxu2 }
 0x81a   :  { %v2869_v26 = vsel %vm2795_vm3, %v8070_v46, inf  ;;  %v2883_v10 = vsel %vm2795_vm3, %v8070_v46, -inf }
 0x81b   :  { %v2885_v32 = vmax.f32 %v2882_v42, %v2883_v10  ;;  %v2871_v6 = vmin.f32 %v2868_v59, %v2869_v26 }
 0x81d   :  { %v2886_v20 = vmax.f32 %v2885_v32, %v2884_v12  ;;  %v2872_v39 = vmin.f32 %v2871_v6, %v2870_v56 }
 0x81f   :  { %v2998_v54 = vpop.f32.mrf.mxu0  ;;  %2887 = vmax.xlane.f32.xlu1 %v2886_v20  ;;  %2873 = vmin.xlane.f32.xlu0 %v2872_v39 }
 0x820   :  { %v2999_v25 = vadd.f32 %v2998_v54, %v2976_v7 }
 0x822   :  { %v5921_v45 = vmul.f32 -1.442695, %v2999_v25 }
 0x824   :  { %6179 = vpow2.f32 %v5921_v45 }
 0x827   :  { %v3001_v16 = vpop.f32.mrf.mxu0 }
 0x828   :  { %v3002_v34 = vadd.f32 %v3001_v16, %v2979_v40  ;;  %v2549_v16 = vadd.f32 %v7936_v15, %v8060_v14 }
 0x82a   :  { %v6180_v13 = vpop.eup %6179  ;;  %v5922_v38 = vmul.f32 -1.442695, %v3002_v34 }
 0x82b   :  { %v3010_v4 = vadd.f32 1.0, %v6180_v13 }
 0x82c   :  { %6181 = vpow2.f32 %v5922_v38 }
 0x82d   :  { %6183 = vrcp.f32 %v3010_v4  ;;  %v3023_v33 = vand.u32 2147483648, %v3010_v4  ;;  %vm3017_vm0 = vweird.f32 %v3010_v4  ;;  %v3021_v36 = vand.u32 2147483647, %v3010_v4 }
 0x82f   :  { %v3024_v51 = vor.u32 1.1754944e-38, %v3023_v33  ;;  %vm3022_vm15 = vcmp.eq.f32.partialorder %v3021_v36, 8.507059e+37 }
 0x832   :  { %v6182_v8 = vpop.eup %6181 }
 0x833   :  { %v6184_v62 = vpop.eup %6183  ;;  %v3011_v9 = vadd.f32 1.0, %v6182_v8  ;;  %2478 = vperm.xlu0 %6054, %v466_v63   ;;  %v631_v63 = vld [vmem:[%s8809_s8 + $0x70] sm:$0xff] }
 0x834   :  { %v3013_v19 = vmul.f32 %v6184_v62, %v3010_v4  ;;  %vm3018_vm9 = vweird.f32 %v6184_v62  ;;  %v632_v4 = vld [vmem:[%s8809_s8 + $0x78] sm:$0xff] }
 0x835   :  { %6185 = vrcp.f32 %v3011_v9  ;;  %v3038_v18 = vand.u32 2147483648, %v3011_v9  ;;  %vm3019_vm8 = vmor %vm3017_vm0, %vm3018_vm9  ;;  %v3036_v60 = vand.u32 2147483647, %v3011_v9  ;;  %vm3032_vm11 = vweird.f32 %v3011_v9  ;;  %3229 = vmatpush.msrb.mxu3 %v632_v4 }
 0x836   :  { %v3014_v49 = vsub.f32 1.0, %v3013_v19  ;;  %vm8807_vm9 = vcmask 1040384  }
 0x837   :  { %v3039_v58 = vor.u32 1.1754944e-38, %v3038_v18  ;;  %vm3037_vm10 = vcmp.eq.f32.partialorder %v3036_v60, 8.507059e+37  ;;  %vm8808_vm0 = vmmov %vm8807_vm9  ;;  %3230 = vmatpush.msrb.mxu3 %v631_v63  ;;  %v627_v60 = vld [vmem:[%s8809_s8 + $0x50] sm:$0xff] }
 0x838   :  { %v3015_v35 = vmul.f32 %v6184_v62, %v3014_v49  ;;  %2483 = vperm.xlu1 %6053, %v467_v48  }
 0x83a   :  { %v3016_v0 = vadd.f32 %v6184_v62, %v3015_v35 }
 0x83b   :  { %v6186_v30 = vpop.eup %6185 }
 0x83c   :  { %v3028_v47 = vmul.f32 %v6186_v30, %v3011_v9  ;;  %vm3033_vm14 = vweird.f32 %v6186_v30  ;;  %v3020_v11 = vsel %vm3019_vm8, %v6184_v62, %v3016_v0 }
 0x83d   :  { %vm3034_vm5 = vmor %vm3032_vm11, %vm3033_vm14  ;;  %v3025_v61 = vsel %vm3022_vm15, %v3024_v51, %v3020_v11 }
 0x83e   :  { %v3029_v57 = vsub.f32 1.0, %v3028_v47  ;;  %v3044_v59 = vrot.slane %v3025_v61, 1  ;;  %v629_v47 = vld [vmem:[%s8809_s8 + $0x60] sm:$0xff] }
 0x840   :  { %v3030_v29 = vmul.f32 %v6186_v30, %v3029_v57  ;;  %v628_v57 = vld [vmem:[%s8809_s8 + $0x58] sm:$0xff] }
 0x842   :  { %v3031_v24 = vadd.f32 %v6186_v30, %v3030_v29 }
 0x844   :  { %v3035_v1 = vsel %vm3034_vm5, %v6186_v30, %v3031_v24  ;;  %v630_v30 = vld [vmem:[%s8809_s8 + $0x68] sm:$0xff]  ;;  %vm8810_vm5 = vcmask 523264  }
 0x845   :  { %v3040_v44 = vsel %vm3037_vm10, %v3039_v58, %v3035_v1  ;;  %3231 = vmatpush.msrb.mxu3 %v630_v30  ;;  %v626_v24 = vld [vmem:[%s8809_s8 + $0x48] sm:$0xff]  ;;  %v625_v1 = vld [vmem:[%s8809_s8 + $0x40] sm:$0xff]  ;;  %vm8811_vm10 = vmmov %vm8808_vm0 }
 0x846   :  { %v3045_v3 = vrot.slane %v3040_v44, 1  ;;  %5923 = vmatpush.msk.msrb.mxu2 %vm2795_vm3, %v3040_v44 }
 0x847   :  { %3232 = vmatpush.msrb.mxu3 %v629_v47 }
 0x848   :  { %v3050_v42 = vmax.f32 %v3040_v44, %v3045_v3  ;;  %3068 = vmatpush.msrb.mxu2 %v3025_v61  ;;  %v3046_v22 = vsel %vm963_vm4, %v3044_v59, %v3045_v3  ;;  %v624_v59 = vld [vmem:[%s8809_s8 + $0x38] sm:$0xff] }
 0x849   :  { %5924 = vmatmul.msk.f32.vlgmr.msrb.gmra.mxu2 %vm2791_vm13, %v8038_v41  ;;  %v3049_v26 = vmax.f32 %v3025_v61, %v3046_v22  ;;  %3233 = vmatpush.msrb.mxu3 %v628_v57 }
 0x84a   :  { %5925 = vmatpush.msk.msra.mxu1 %vm8807_vm9, %v3050_v42  ;;  %5927 = vmatpush.msk.msra.mxu2 %vm8808_vm0, %v3050_v42  ;;  %vm8812_vm9 = vmmov %vm8810_vm5 }
 0x84b   :  { %3234 = vmatpush.msrb.mxu3 %v627_v60 }
 0x84c   :  { %3091 = vmatpush.msra.mxu1 %v3049_v26  ;;  %3111 = vmatpush.msra.mxu2 %v3049_v26  ;;  %v623_v26 = vld [vmem:[%s8809_s8 + $0x30] sm:$0xff] }
 0x84d   :  { %5926 = vmatmul.msk.f32.vlgmr.msra.gmra.mxu1 %vm2818_vm6, %v8036_v21  ;;  %3235 = vmatpush.msrb.mxu3 %v626_v24 }
 0x84f   :  { %3236 = vmatpush.msrb.mxu3 %v625_v1 }
 0x851   :  { %5928 = vmatmul.msk.f32.vlgmr.msra.gmra.mxu2 %vm2818_vm6, %v8040_v5  ;;  %3237 = vmatpush.msrb.mxu3 %v624_v59  ;;  %v712_v59 = vld [vmem:[%s8809_s8 + $0x2f8] sm:$0xff] }
 0x852   :  { %3209 = vmatpush.msrb.mxu2 %v712_v59  ;;  %v697_v59 = vld [vmem:[%s8809_s8 + $0x280] sm:$0xff] }
 0x853   :  { %3238 = vmatpush.msrb.mxu3 %v623_v26  ;;  %v711_v26 = vld [vmem:[%s8809_s8 + $0x2f0] sm:$0xff] }
 0x854   :  { %3210 = vmatpush.msrb.mxu2 %v711_v26  ;;  %v664_v26 = vld [vmem:[%s8809_s8 + $0x178] sm:$0xff] }
 0x892   :  { %v2888_v10 = vpop.xlane.xlu1 %2887  ;;  %v2874_v12 = vpop.xlane.xlu0 %2873 }
 0x893   :  { %v2889_v56 = vrot.slane %v2888_v10, 4  ;;  %v2875_v32 = vrot.slane %v2874_v12, 4 }
 0x895   :  { %v2890_v6 = vmax.f32 %v2888_v10, %v2889_v56  ;;  %v2876_v7 = vmin.f32 %v2874_v12, %v2875_v32  ;;  %v622_v56 = vld [vmem:[%s8809_s8 + $0x28] sm:$0xff] }
 0x896   :  { %3239 = vmatpush.msrb.mxu3 %v622_v56  ;;  %v710_v56 = vld [vmem:[%s8809_s8 + $0x2e8] sm:$0xff] }
 0x897   :  { %v2891_v41 = vrot.slane %v2890_v6, 2  ;;  %v2877_v20 = vrot.slane %v2876_v7, 2  ;;  %3211 = vmatpush.msrb.mxu2 %v710_v56  ;;  %v647_v56 = vld [vmem:[%s8809_s8 + $0xf0] sm:$0xff] }
 0x899   :  { %v2878_v39 = vmin.f32 %v2876_v7, %v2877_v20  ;;  %v2892_v54 = vmax.f32 %v2890_v6, %v2891_v41  ;;  %v621_v6 = vld [vmem:[%s8809_s8 + $0x20] sm:$0xff]  ;;  %v620_v41 = vld [vmem:[%s8809_s8 + $0x18] sm:$0xff]  ;;  %v619_v20 = vld [vmem:[%s8809_s8 + $0x10] sm:$0xff] }
 0x89a   :  { %3240 = vmatpush.msrb.mxu3 %v621_v6  ;;  %v693_v6 = vld [vmem:[%s8809_s8 + $0x260] sm:$0xff] }
 0x89b   :  { %v2879_v25 = vrot.slane %v2878_v39, 1  ;;  %v2893_v45 = vrot.slane %v2892_v54, 1 }
 0x89c   :  { %3241 = vmatpush.msrb.mxu3 %v620_v41  ;;  %v676_v41 = vld [vmem:[%s8809_s8 + $0x1d8] sm:$0xff] }
 0x89d   :  { %v2880_v53 = vmin.f32 %v2878_v39, %v2879_v25  ;;  %v2894_v40 = vmax.f32 %v2892_v54, %v2893_v45  ;;  %v618_v54 = vld [vmem:[%s8809_s8 + $0x8] sm:$0xff]  ;;  %v2546_v25 = vadd.f32 %v7936_v15, %v8058_v31  ;;  %v617_v45 = vld [vmem:[%s8809_s8] sm:$0xff]  ;;  %v592_v31 = vld [vmem:[#allocation18 + $0x208] sm:$0xff] }
 0x89e   :  { %3242 = vmatpush.msrb.mxu3 %v619_v20  ;;  %v593_v15 = vld [vmem:[#allocation18 + $0x210] sm:$0xff] }
 0x89f   :  { %5940 = vpush %v2880_v53  ;;  %v598_v53 = vld [vmem:[#allocation18 + $0x238] sm:$0xff]  ;;  %v692_v20 = vld [vmem:[%s8809_s8 + $0x258] sm:$0xff] }
 0x8a0   :  { %5942 = vpush %v2894_v40  ;;  %3243 = vmatpush.msrb.mxu3 %v618_v54  ;;  %v675_v54 = vld [vmem:[%s8809_s8 + $0x1d0] sm:$0xff] }
 0x8a2   :  { %3244 = vmatpush.msrb.mxu3 %v617_v45  ;;  %v707_v45 = vld [vmem:[%s8809_s8 + $0x2d0] sm:$0xff] }
 0x8a4   :  { %3357 = vmatpush.msra.mxu3 %v598_v53  ;;  %v674_v53 = vld [vmem:[%s8809_s8 + $0x1c8] sm:$0xff] }
 0x8a5   :  { %v2479_v32 = vpop.permute.xlu0 %2478 }
 0x8a6   :  { %v2486_v7 = vmul.f32 %v7932_v37, %v2479_v32  ;;  %v677_v32 = vld [vmem:[%s8809_s8 + $0x1e0] sm:$0xff] }
 0x8a8   :  { %v2488_v39 = vadd.f32 %v7938_v28, %v2486_v7  ;;  %v709_v7 = vld [vmem:[%s8809_s8 + $0x2e0] sm:$0xff] }
 0x8a9   :  { %3212 = vmatpush.msrb.mxu2 %v709_v7  ;;  %v589_v7 = vld [vmem:[#allocation18 + $0x1f0] sm:$0xff] }
 0x8aa   :  { %v2484_v21 = vpop.permute.xlu1 %2483  ;;  %v2551_v40 = vadd.f32 %v2546_v25, %v2488_v39  ;;  %v708_v39 = vld [vmem:[%s8809_s8 + $0x2d8] sm:$0xff]  ;;  %v691_v25 = vld [vmem:[%s8809_s8 + $0x250] sm:$0xff] }
 0x8ab   :  { %v2487_v5 = vmul.f32 %v7932_v37, %v2484_v21  ;;  %v597_v21 = vld [vmem:[#allocation18 + $0x230] sm:$0xff]  ;;  %3213 = vmatpush.msrb.mxu2 %v708_v39  ;;  %v588_v39 = vld [vmem:[#allocation18 + $0x1e8] sm:$0xff] }
 0x8ac   :  { %v8143_v37 = vadd.f32 %v7946_v23, %v2551_v40  ;;  %3358 = vmatpush.msra.mxu3 %v597_v21  ;;  %v690_v40 = vld [vmem:[%s8809_s8 + $0x248] sm:$0xff] }
 0x8ad   :  { %v2489_v34 = vadd.f32 %v7938_v28, %v2487_v5  ;;  %v596_v28 = vld [vmem:[#allocation18 + $0x228] sm:$0xff]  ;;  %v595_v5 = vld [vmem:[#allocation18 + $0x220] sm:$0xff]  ;;  %3214 = vmatpush.msrb.mxu2 %v707_v45 }
 0x8ae   :  { %3359 = vmatpush.msra.mxu3 %v596_v28  ;;  %v706_v21 = vld [vmem:[%s8809_s8 + $0x2c8] sm:$0xff]  ;;  %v673_v28 = vld [vmem:[%s8809_s8 + $0x1c0] sm:$0xff] }
 0x8af   :  { %v2552_v13 = vadd.f32 %v2549_v16, %v2489_v34  ;;  %v594_v16 = vld [vmem:[#allocation18 + $0x218] sm:$0xff]  ;;  %v591_v34 = vld [vmem:[#allocation18 + $0x200] sm:$0xff]  ;;  %3215 = vmatpush.msrb.mxu2 %v706_v21 }
 0x8b0   :  { %3360 = vmatpush.msra.mxu3 %v595_v5  ;;  %v689_v5 = vld [vmem:[%s8809_s8 + $0x240] sm:$0xff]  ;;  %v587_v45 = vld [vmem:[#allocation18 + $0x1e0] sm:$0xff] }
 0x8b1   :  { %v8097_v38 = vadd.f32 %v7959_v55, %v2552_v13  ;;  %v586_v21 = vld [vmem:[#allocation18 + $0x1d8] sm:$0xff] }
 0x8b2   :  { %3361 = vmatpush.msra.mxu3 %v594_v16  ;;  %v705_v16 = vld [vmem:[%s8809_s8 + $0x2c0] sm:$0xff] }
 0x8b3   :  { %3311 = vrot.lane.b32.xlu0 %v8097_v38, %s6834_s3  ;;  %3216 = vmatpush.msrb.mxu2 %v705_v16  ;;  %v585_v16 = vld [vmem:[#allocation18 + $0x1d0] sm:$0xff] }
 0x8b4   :  { %3362 = vmatpush.msra.mxu3 %v593_v15  ;;  %v672_v15 = vld [vmem:[%s8809_s8 + $0x1b8] sm:$0xff] }
 0x8b6   :  { %3363 = vmatpush.msra.mxu3 %v592_v31  ;;  %v688_v31 = vld [vmem:[%s8809_s8 + $0x238] sm:$0xff] }
 0x8b8   :  { %3364 = vmatpush.msra.mxu3 %v591_v34 }
 0x8ca   :  { %v8105_v62 = vpop.f32.mrf.mxu1 }
 0x8cb   :  { %v3117_v55 = vsel %vm2795_vm3, %v8105_v62, inf  ;;  %v3131_v33 = vsel %vm2795_vm3, %v8105_v62, -inf }
 0x8cc   :  { %v8103_v8 = vpop.f32.mrf.mxu2 }
 0x8cd   :  { %v3116_v14 = vsel %vm2795_vm3, %v8103_v8, inf  ;;  %v3130_v0 = vsel %vm2795_vm3, %v8103_v8, -inf }
 0x8ce   :  { %v3119_v19 = vmin.f32 %v3116_v14, %v3117_v55  ;;  %v3133_v29 = vmax.f32 %v3130_v0, %v3131_v33 }
 0x8d0   :  { %s8111_s0 = spop %5940 }
 0x8d1   :  { %s5943_s12 = spop %5942  ;;  %v2896_v13 = vstv %s8111_s0 }
 0x8d2   :  { %s2900_s14 = ssub.f32 %s5943_s12, %s8111_s0  ;;  %v2897_v23 = vsub.f32 %v8062_v52, %v2896_v13  ;;  %v2898_v4 = vsub.f32 %v8070_v46, %v2896_v13  ;;  %v2899_v63 = vsub.f32 %v8064_v43, %v2896_v13  ;;  %v704_v13 = vld [vmem:[%s8809_s8 + $0x2b8] sm:$0xff] }
 0x8d3   :  { %3217 = vmatpush.msrb.mxu2 %v704_v13  ;;  %v641_v13 = vld [vmem:[%s8809_s8 + $0xc0] sm:$0xff] }
 0x8d4   :  { %v8114_v9 = vpop.f32.mrf.mxu2  ;;  %v2901_v48 = vstv %s2900_s14 }
 0x8d5   :  { %v3118_v49 = vsel %vm2795_vm3, %v8114_v9, inf  ;;  %6187 = vrcp.f32 %v2901_v48  ;;  %v3132_v36 = vsel %vm2795_vm3, %v8114_v9, -inf  ;;  %v2913_v61 = vand.u32 2147483648, %v2901_v48 }
 0x8d6   :  { %v3120_v35 = vmin.f32 %v3119_v19, %v3118_v49  ;;  %v3134_v51 = vmax.f32 %v3133_v29, %v3132_v36  ;;  %v2911_v3 = vand.u32 2147483647, %v2901_v48  ;;  %vm2907_vm14 = vweird.f32 %v2901_v48 }
 0x8d7   :  { %v2914_v22 = vor.u32 1.1754944e-38, %v2913_v61  ;;  %v3302_v49 = vrot.slane %v8097_v38, 1 }
 0x8d8   :  { %3121 = vmin.xlane.f32.xlu2 %v3120_v35  ;;  %vm2912_vm15 = vcmp.eq.f32.partialorder %v2911_v3, 8.507059e+37  ;;  %v3301_v35 = vrot.slane %v8143_v37, 1  ;;  %v696_v3 = vld [vmem:[%s8809_s8 + $0x278] sm:$0xff] }
 0x8d9   :  { %v3306_v43 = vsel %vm8811_vm10, %v3302_v49, 0.0  ;;  %3189 = vmatpush.msra.mxu0 %v696_v3 }
 0x8da   :  { %v3303_v30 = vsel %vm963_vm4, %v3301_v35, %v3302_v49  ;;  %v3308_v46 = vsel %vm2674_vm12, 0.0, %v3306_v43  ;;  %v702_v49 = vld [vmem:[%s8809_s8 + $0x2a8] sm:$0xff]  ;;  %v669_v35 = vld [vmem:[%s8809_s8 + $0x1a0] sm:$0xff] }
 0x8db   :  { %v6188_v18 = vpop.eup %6187  ;;  %v3307_v52 = vsel %vm2673_vm7, 0.0, %v3303_v30  ;;  %v685_v30 = vld [vmem:[%s8809_s8 + $0x220] sm:$0xff] }
 0x8dc   :  { %v2903_v11 = vmul.f32 %v6188_v18, %v2901_v48  ;;  %vm2908_vm8 = vweird.f32 %v6188_v18 }
 0x8dd   :  { %vm2909_vm11 = vmor %vm2907_vm14, %vm2908_vm8 }
 0x8de   :  { %v2904_v58 = vsub.f32 1.0, %v2903_v11  ;;  %vm8813_vm14 = vmmov %vm8811_vm10 }
 0x8e0   :  { %3135 = vmax.xlane.f32.xlu2 %v3134_v51  ;;  %v2905_v44 = vmul.f32 %v6188_v18, %v2904_v58 }
 0x8e2   :  { %v2906_v42 = vadd.f32 %v6188_v18, %v2905_v44  ;;  %v680_v44 = vld [vmem:[%s8809_s8 + $0x1f8] sm:$0xff] }
 0x8e3   :  { %3169 = vmatpush.msrb.mxu1 %v680_v44  ;;  %v681_v44 = vld [vmem:[%s8809_s8 + $0x200] sm:$0xff] }
 0x8e4   :  { %v2910_v10 = vsel %vm2909_vm11, %v6188_v18, %v2906_v42  ;;  %v679_v42 = vld [vmem:[%s8809_s8 + $0x1f0] sm:$0xff]  ;;  %vm8814_vm11 = vmmov %vm8810_vm5 }
 0x8e5   :  { %v2915_v12 = vsel %vm2912_vm15, %v2914_v22, %v2910_v10  ;;  %v695_v22 = vld [vmem:[%s8809_s8 + $0x270] sm:$0xff]  ;;  %3170 = vmatpush.msrb.mxu1 %v679_v42  ;;  %v678_v10 = vld [vmem:[%s8809_s8 + $0x1e8] sm:$0xff]  ;;  %v648_v42 = vld [vmem:[%s8809_s8 + $0xf8] sm:$0xff] }
 0x8e6   :  { %5944 = vpush %v2915_v12  ;;  %3190 = vmatpush.msra.mxu0 %v695_v22  ;;  %v694_v12 = vld [vmem:[%s8809_s8 + $0x268] sm:$0xff]  ;;  %vm8815_vm15 = vmmov %vm8811_vm10 }
 0x8e7   :  { %3171 = vmatpush.msrb.mxu1 %v678_v10  ;;  %v590_v10 = vld [vmem:[#allocation18 + $0x1f8] sm:$0xff] }
 0x8e8   :  { %3191 = vmatpush.msra.mxu0 %v694_v12 }
 0x8e9   :  { %3172 = vmatpush.msrb.mxu1 %v677_v32 }
 0x8ea   :  { %3192 = vmatpush.msra.mxu0 %v693_v6  ;;  %v663_v6 = vld [vmem:[%s8809_s8 + $0x170] sm:$0xff] }
 0x8eb   :  { %3173 = vmatpush.msrb.mxu1 %v676_v41  ;;  %v646_v41 = vld [vmem:[%s8809_s8 + $0xe8] sm:$0xff] }
 0x8ec   :  { %3193 = vmatpush.msra.mxu0 %v692_v20  ;;  %v662_v20 = vld [vmem:[%s8809_s8 + $0x168] sm:$0xff] }
 0x8ed   :  { %3174 = vmatpush.msrb.mxu1 %v675_v54  ;;  %v645_v54 = vld [vmem:[%s8809_s8 + $0xe0] sm:$0xff] }
 0x8ee   :  { %3194 = vmatpush.msra.mxu0 %v691_v25  ;;  %v661_v25 = vld [vmem:[%s8809_s8 + $0x160] sm:$0xff] }
 0x8ef   :  { %3175 = vmatpush.msrb.mxu1 %v674_v53  ;;  %v644_v53 = vld [vmem:[%s8809_s8 + $0xd8] sm:$0xff] }
 0x8f0   :  { %3195 = vmatpush.msra.mxu0 %v690_v40  ;;  %v660_v40 = vld [vmem:[%s8809_s8 + $0x158] sm:$0xff] }
 0x8f1   :  { %3176 = vmatpush.msrb.mxu1 %v673_v28  ;;  %v643_v28 = vld [vmem:[%s8809_s8 + $0xd0] sm:$0xff] }
 0x8f2   :  { %3196 = vmatpush.msra.mxu0 %v689_v5  ;;  %v659_v5 = vld [vmem:[%s8809_s8 + $0x150] sm:$0xff] }
 0x8f3   :  { %3177 = vmatpush.msrb.mxu1 %v672_v15  ;;  %v642_v15 = vld [vmem:[%s8809_s8 + $0xc8] sm:$0xff] }
 0x8f4   :  { %3197 = vmatpush.msra.mxu0 %v688_v31  ;;  %v658_v31 = vld [vmem:[%s8809_s8 + $0x148] sm:$0xff] }
 0x8f8   :  { %3309 = vrot.lane.b32.xlu2 %v8143_v37, %s6834_s3 }
 0x917   :  { %s5945_s3 = spop %5944 }
 0x918   :  { %v2917_v14 = vstv %s5945_s3 }
 0x919   :  { %v2918_v55 = vmul.f32 %v2917_v14, %v2897_v23  ;;  %v8151_v19 = vmul.f32 %v2917_v14, %v2898_v4  ;;  %v8153_v48 = vmul.f32 %v2917_v14, %v2899_v63  ;;  %v671_v23 = vld [vmem:[%s8809_s8 + $0x1b0] sm:$0xff]  ;;  %v670_v14 = vld [vmem:[%s8809_s8 + $0x1a8] sm:$0xff] }
 0x91a   :  { %v687_v4 = vld [vmem:[%s8809_s8 + $0x230] sm:$0xff]  ;;  %3178 = vmatpush.msrb.mxu1 %v671_v23  ;;  %v657_v23 = vld [vmem:[%s8809_s8 + $0x140] sm:$0xff] }
 0x91b   :  { %3245 = vmatmul.f32.vlgmr.msrb.gmra.mxu3 %v2918_v55  ;;  %v703_v63 = vld [vmem:[%s8809_s8 + $0x2b0] sm:$0xff]  ;;  %v686_v55 = vld [vmem:[%s8809_s8 + $0x228] sm:$0xff]  ;;  %3198 = vmatpush.msra.mxu0 %v687_v4 }
 0x91c   :  { %3218 = vmatpush.msrb.mxu2 %v703_v63  ;;  %3179 = vmatpush.msrb.mxu1 %v670_v14  ;;  %v583_v4 = vld [vmem:[#allocation18 + $0x1c0] sm:$0xff]  ;;  %v640_v63 = vld [vmem:[%s8809_s8 + $0xb8] sm:$0xff] }
 0x91d   :  { %3199 = vmatpush.msra.mxu0 %v686_v55  ;;  %v656_v14 = vld [vmem:[%s8809_s8 + $0x138] sm:$0xff]  ;;  %v582_v55 = vld [vmem:[#allocation18 + $0x1b8] sm:$0xff] }
 0x91e   :  { %3219 = vmatpush.msrb.mxu2 %v702_v49  ;;  %3180 = vmatpush.msrb.mxu1 %v669_v35  ;;  %v639_v49 = vld [vmem:[%s8809_s8 + $0xb0] sm:$0xff] }
 0x91f   :  { %3200 = vmatpush.msra.mxu0 %v685_v30  ;;  %v655_v35 = vld [vmem:[%s8809_s8 + $0x130] sm:$0xff]  ;;  %v581_v30 = vld [vmem:[#allocation18 + $0x1b0] sm:$0xff] }
 0x923   :  { %5929 = vmatmul.msk.f32.vlgmr.msra.gmra.mxu3 %vm8810_vm5, %v3307_v52  ;;  %v701_v52 = vld [vmem:[%s8809_s8 + $0x2a0] sm:$0xff] }
 0x924   :  { %3220 = vmatpush.msrb.mxu2 %v701_v52  ;;  %v638_v52 = vld [vmem:[%s8809_s8 + $0xa8] sm:$0xff] }
 0x92b   :  { %5930 = vmatmul.msk.f32.gmra.mxu3 %vm8812_vm9, %v3308_v46  ;;  %v668_v46 = vld [vmem:[%s8809_s8 + $0x198] sm:$0xff] }
 0x92c   :  { %3181 = vmatpush.msrb.mxu1 %v668_v46  ;;  %v580_v46 = vld [vmem:[#allocation18 + $0x1a8] sm:$0xff] }
 0x94b   :  { %v3122_v47 = vpop.xlane.xlu2 %3121 }
 0x94c   :  { %v3123_v0 = vrot.slane %v3122_v47, 4 }
 0x94e   :  { %v3124_v33 = vmin.f32 %v3122_v47, %v3123_v0  ;;  %v684_v47 = vld [vmem:[%s8809_s8 + $0x218] sm:$0xff] }
 0x94f   :  { %3201 = vmatpush.msra.mxu0 %v684_v47  ;;  %v637_v47 = vld [vmem:[%s8809_s8 + $0xa0] sm:$0xff] }
 0x950   :  { %v3125_v57 = vrot.slane %v3124_v33, 2 }
 0x952   :  { %v3126_v36 = vmin.f32 %v3124_v33, %v3125_v57  ;;  %v700_v33 = vld [vmem:[%s8809_s8 + $0x298] sm:$0xff]  ;;  %v667_v57 = vld [vmem:[%s8809_s8 + $0x190] sm:$0xff] }
 0x953   :  { %v3136_v18 = vpop.xlane.xlu2 %3135  ;;  %3221 = vmatpush.msrb.mxu2 %v700_v33  ;;  %3182 = vmatpush.msrb.mxu1 %v667_v57  ;;  %v579_v33 = vld [vmem:[#allocation18 + $0x1a0] sm:$0xff]  ;;  %v636_v57 = vld [vmem:[%s8809_s8 + $0x98] sm:$0xff] }
 0x954   :  { %v3137_v29 = vrot.slane %v3136_v18, 4  ;;  %v3127_v60 = vrot.slane %v3126_v36, 1 }
 0x956   :  { %v3138_v11 = vmax.f32 %v3136_v18, %v3137_v29  ;;  %v3128_v51 = vmin.f32 %v3126_v36, %v3127_v60  ;;  %v683_v36 = vld [vmem:[%s8809_s8 + $0x210] sm:$0xff] }
 0x957   :  { %v699_v29 = vld [vmem:[%s8809_s8 + $0x290] sm:$0xff]  ;;  %3202 = vmatpush.msra.mxu0 %v683_v36  ;;  %v652_v36 = vld [vmem:[%s8809_s8 + $0x118] sm:$0xff] }
 0x958   :  { %v3139_v24 = vrot.slane %v3138_v11, 2  ;;  %5946 = vpush %v3128_v51  ;;  %v682_v51 = vld [vmem:[%s8809_s8 + $0x208] sm:$0xff]  ;;  %3222 = vmatpush.msrb.mxu2 %v699_v29  ;;  %v635_v29 = vld [vmem:[%s8809_s8 + $0x90] sm:$0xff] }
 0x959   :  { %3203 = vmatpush.msra.mxu0 %v682_v51  ;;  %v634_v51 = vld [vmem:[%s8809_s8 + $0x88] sm:$0xff] }
 0x95a   :  { %v3140_v58 = vmax.f32 %v3138_v11, %v3139_v24  ;;  %v666_v11 = vld [vmem:[%s8809_s8 + $0x188] sm:$0xff] }
 0x95b   :  { %3183 = vmatpush.msrb.mxu1 %v666_v11  ;;  %3204 = vmatpush.msra.mxu0 %v681_v44  ;;  %v577_v11 = vld [vmem:[#allocation18 + $0x190] sm:$0xff]  ;;  %v575_v44 = vld [vmem:[#allocation18 + $0x180] sm:$0xff] }
 0x95c   :  { %v3141_v61 = vrot.slane %v3140_v58, 1 }
 0x95d   :  { %3269 = vmatpush.msrb.mxu0 %v664_v26 }
 0x95e   :  { %v3142_v1 = vmax.f32 %v3140_v58, %v3141_v61  ;;  %v698_v61 = vld [vmem:[%s8809_s8 + $0x288] sm:$0xff] }
 0x95f   :  { %3223 = vmatpush.msrb.mxu2 %v698_v61  ;;  %3270 = vmatpush.msrb.mxu0 %v663_v6  ;;  %v633_v61 = vld [vmem:[%s8809_s8 + $0x80] sm:$0xff] }
 0x960   :  { %5948 = vpush %v3142_v1  ;;  %v665_v1 = vld [vmem:[%s8809_s8 + $0x180] sm:$0xff] }
 0x961   :  { %3184 = vmatpush.msrb.mxu1 %v665_v1  ;;  %3224 = vmatpush.msrb.mxu2 %v697_v59  ;;  %v649_v1 = vld [vmem:[%s8809_s8 + $0x100] sm:$0xff] }
 0x962   :  { %3271 = vmatpush.msrb.mxu0 %v662_v20 }
 0x963   :  { %3249 = vmatpush.msra.mxu1 %v648_v42  ;;  %3326 = vmatpush.msra.mxu2 %v590_v10 }
 0x964   :  { %3272 = vmatpush.msrb.mxu0 %v661_v25 }
 0x965   :  { %3250 = vmatpush.msra.mxu1 %v647_v56  ;;  %3327 = vmatpush.msra.mxu2 %v589_v7  ;;  %v3310_v7 = vpop.permute.xlu2 %3309 }
 0x966   :  { %3273 = vmatpush.msrb.mxu0 %v660_v40 }
 0x967   :  { %3251 = vmatpush.msra.mxu1 %v646_v41  ;;  %3328 = vmatpush.msra.mxu2 %v588_v39  ;;  %v3312_v41 = vpop.permute.xlu0 %3311 }
 0x968   :  { %3274 = vmatpush.msrb.mxu0 %v659_v5 }
 0x969   :  { %3252 = vmatpush.msra.mxu1 %v645_v54  ;;  %3329 = vmatpush.msra.mxu2 %v587_v45 }
 0x96a   :  { %3275 = vmatpush.msrb.mxu0 %v658_v31 }
 0x96b   :  { %3253 = vmatpush.msra.mxu1 %v644_v53  ;;  %3330 = vmatpush.msra.mxu2 %v586_v21 }
 0x96c   :  { %3276 = vmatpush.msrb.mxu0 %v657_v23 }
 0x96d   :  { %3254 = vmatpush.msra.mxu1 %v643_v28  ;;  %3331 = vmatpush.msra.mxu2 %v585_v16 }
 0x96e   :  { %3277 = vmatpush.msrb.mxu0 %v656_v14 }
 0x96f   :  { %3255 = vmatpush.msra.mxu1 %v642_v15 }
 0x970   :  { %3278 = vmatpush.msrb.mxu0 %v655_v35 }
 0x971   :  { %3256 = vmatpush.msra.mxu1 %v641_v13 }
 0x973   :  { %3257 = vmatpush.msra.mxu1 %v640_v63 }
 0x975   :  { %3258 = vmatpush.msra.mxu1 %v639_v49 }
 0x977   :  { %3259 = vmatpush.msra.mxu1 %v638_v52 }
 0x979   :  { %3260 = vmatpush.msra.mxu1 %v637_v47 }
 0x97b   :  { %3261 = vmatpush.msra.mxu1 %v636_v57 }
 0x97d   :  { %3262 = vmatpush.msra.mxu1 %v635_v29 }
 0x97f   :  { %3263 = vmatpush.msra.mxu1 %v634_v51 }
 0x981   :  { %3264 = vmatpush.msra.mxu1 %v633_v61 }
 0x989   :  { %s8183_s20 = spop %5946 }
 0x991   :  { %s5949_s19 = spop %5948 }
 0x992   :  { %s3148_s13 = ssub.f32 %s5949_s19, %s8183_s20 }
 0x994   :  { %v8194_v34 = vstv %s3148_s13 }
 0x995   :  { %6189 = vrcp.f32 %v8194_v34  ;;  %v3161_v60 = vand.u32 2147483648, %v8194_v34  ;;  %v3159_v58 = vand.u32 2147483647, %v8194_v34  ;;  %vm3155_vm12 = vweird.f32 %v8194_v34 }
 0x997   :  { %v3162_v22 = vor.u32 1.1754944e-38, %v3161_v60  ;;  %vm3160_vm8 = vcmp.eq.f32.partialorder %v3159_v58, 8.507059e+37  ;;  %v651_v60 = vld [vmem:[%s8809_s8 + $0x110] sm:$0xff] }
 0x998   :  { %v576_v58 = vld [vmem:[#allocation18 + $0x188] sm:$0xff] }
 0x99b   :  { %v6190_v43 = vpop.eup %6189 }
 0x99c   :  { %v3151_v0 = vmul.f32 %v6190_v43, %v8194_v34  ;;  %vm3156_vm7 = vweird.f32 %v6190_v43  ;;  %v584_v34 = vld [vmem:[#allocation18 + $0x1c8] sm:$0xff] }
 0x99d   :  { %vm3157_vm0 = vmor %vm3155_vm12, %vm3156_vm7  ;;  %3332 = vmatpush.msra.mxu2 %v584_v34 }
 0x99e   :  { %v3152_v18 = vsub.f32 1.0, %v3151_v0  ;;  %v653_v0 = vld [vmem:[%s8809_s8 + $0x120] sm:$0xff]  ;;  %v8271_v45 = vpop.f32.mrf.mxu3 }
 0x99f   :  { %3333 = vmatpush.msra.mxu2 %v583_v4 }
 0x9a0   :  { %v3153_v24 = vmul.f32 %v6190_v43, %v3152_v18  ;;  %v578_v18 = vld [vmem:[#allocation18 + $0x198] sm:$0xff] }
 0x9a1   :  { %3334 = vmatpush.msra.mxu2 %v582_v55 }
 0x9a2   :  { %v3154_v3 = vadd.f32 %v6190_v43, %v3153_v24  ;;  %v650_v24 = vld [vmem:[%s8809_s8 + $0x108] sm:$0xff] }
 0x9a3   :  { %3335 = vmatpush.msra.mxu2 %v581_v30 }
 0x9a4   :  { %v3158_v12 = vsel %vm3157_vm0, %v6190_v43, %v3154_v3  ;;  %v654_v43 = vld [vmem:[%s8809_s8 + $0x128] sm:$0xff]  ;;  %v3144_v3 = vstv %s8183_s20 }
 0x9a5   :  { %v3163_v32 = vsel %vm3160_vm8, %v3162_v22, %v3158_v12  ;;  %3279 = vmatpush.msrb.mxu0 %v654_v43  ;;  %3336 = vmatpush.msra.mxu2 %v580_v46  ;;  %v3145_v59 = vsub.f32 %v8103_v8, %v3144_v3  ;;  %v3146_v42 = vsub.f32 %v8105_v62, %v3144_v3 }
 0x9a6   :  { %5950 = vpush %v3163_v32  ;;  %v3147_v22 = vsub.f32 %v8114_v9, %v3144_v3  ;;  %v3293_v32 = vrot.slane %v8143_v37, 7  ;;  %v3294_v9 = vrot.slane %v8097_v38, 7  ;;  %v3366_v38 = vpop.f32.mrf.mxu3 }
 0x9a7   :  { %3280 = vmatpush.msrb.mxu0 %v653_v0  ;;  %3337 = vmatpush.msra.mxu2 %v579_v33 }
 0x9a8   :  { %v3298_v6 = vsel %vm8813_vm14, 0.0, %v3293_v32  ;;  %v3295_v37 = vsel %vm8815_vm15, %v3293_v32, %v3294_v9 }
 0x9a9   :  { %3281 = vmatpush.msrb.mxu0 %v652_v36  ;;  %3338 = vmatpush.msra.mxu2 %v578_v18  ;;  %v3299_v8 = vsel %vm2659_vm2, 0.0, %v3298_v6  ;;  %v3300_v20 = vsel %vm2660_vm1, 0.0, %v3295_v37 }
 0x9aa   :  { %v3315_v62 = vsel %vm8814_vm11, %v3299_v8, %v3310_v7  ;;  %v3316_v39 = vsel %vm8810_vm5, %v3300_v20, %v3312_v41  ;;  %vm8816_vm11 = vmmov %vm8813_vm14 }
 0x9ab   :  { %3282 = vmatpush.msrb.mxu0 %v651_v60  ;;  %3339 = vmatpush.msra.mxu2 %v577_v11 }
 0x9ad   :  { %3283 = vmatpush.msrb.mxu0 %v650_v24  ;;  %3340 = vmatpush.msra.mxu2 %v576_v58 }
 0x9ae   :  { %v3369_v15 = vpop.f32.mrf.mxu3 }
 0x9af   :  { %3284 = vmatpush.msrb.mxu0 %v649_v1  ;;  %3341 = vmatpush.msra.mxu2 %v575_v44 }
 0x9d7   :  { %s5951_s7 = spop %5950 }
 0x9d8   :  { %v3165_v26 = vstv %s5951_s7 }
 0x9d9   :  { %v3166_v10 = vmul.f32 %v3165_v26, %v3145_v59  ;;  %v3167_v12 = vmul.f32 %v3165_v26, %v3146_v42  ;;  %v3168_v56 = vmul.f32 %v3165_v26, %v3147_v22  ;;  %v6204_v59 = vld [vmem:[#allocation9] sm:$0x3]  ;;  %v6205_v22 = vld [vmem:[#allocation10] sm:$0x3]  ;;  %v6206_v26 = vld [vmem:[#allocation12] sm:$0x3] }
 0x9db   :  { %3185 = vmatmul.f32.vlgmr.msrb.gmra.mxu1 %v3166_v10  ;;  %3205 = vmatmul.f32.vlgmr.msra.gmra.mxu0 %v3167_v12 }
 0x9dc   :  { %3225 = vmatmul.f32.vlgmr.msrb.gmra.mxu2 %v3168_v56 }
 0x9e3   :  { %3265 = vmatmul.f32.vlgmr.msra.gmra.mxu1 %v8151_v19  ;;  %3285 = vmatmul.f32.vlgmr.msrb.gmra.mxu0 %v8153_v48  ;;  %v6074_v48 = vld [vmem:[#allocation19 + $0x2] ss:$0 sm:$0xff] }
 0x9e4   :  { %3342 = vmatmul.f32.vlgmr.msra.gmra.mxu2 %v3315_v62 }
 0x9ec   :  { %3345 = vmatmul.f32.gmra.mxu2 %v3316_v39 }
 0xa58   :  { %v3186_v17 = vpop.f32.mrf.mxu1  ;;  %v3206_v54 = vpop.f32.mrf.mxu0 }
 0xa59   :  { %v3207_v25 = vadd.f32 %v3206_v54, %v3186_v17 }
 0xa5f   :  { %v3226_v19 = vpop.f32.mrf.mxu2 }
 0xa60   :  { %v8273_v53 = vadd.f32 %v3226_v19, %v3207_v25  ;;  %v8282_v10 = vpop.f32.mrf.mxu1  ;;  %v8284_v12 = vpop.f32.mrf.mxu0 }
 0xa67   :  { %v3343_v40 = vpop.f32.mrf.mxu2 }
 0xa68   :  { %v3344_v21 = vadd.f32 %v6074_v48, %v3343_v40 }
 0xa6a   :  { %v3367_v28 = vadd.f32 %v3366_v38, %v3344_v21 }
 0xa6c   :  { %v5931_v5 = vmul.f32 -1.442695, %v3367_v28 }
 0xa6e   :  { %6191 = vpow2.f32 %v5931_v5 }
 0xa6f   :  { %v3346_v27 = vpop.f32.mrf.mxu2 }
 0xa70   :  { %v3347_v16 = vadd.f32 %v6074_v48, %v3346_v27 }
 0xa72   :  { %v3370_v31 = vadd.f32 %v3369_v15, %v3347_v16 }
 0xa74   :  { %v6192_v34 = vpop.eup %6191  ;;  %v5932_v13 = vmul.f32 -1.442695, %v3370_v31 }
 0xa75   :  { %v3378_v23 = vadd.f32 1.0, %v6192_v34 }
 0xa76   :  { %6193 = vpow2.f32 %v5932_v13 }
 0xa77   :  { %6195 = vrcp.f32 %v3378_v23  ;;  %v3391_v46 = vand.u32 2147483648, %v3378_v23  ;;  %vm3385_vm1 = vweird.f32 %v3378_v23  ;;  %v3389_v0 = vand.u32 2147483647, %v3378_v23 }
 0xa79   :  { %v3392_v29 = vor.u32 1.1754944e-38, %v3391_v46  ;;  %vm3390_vm12 = vcmp.eq.f32.partialorder %v3389_v0, 8.507059e+37  ;;  %v741_v46 = vld [vmem:[%s8809_s8 + $0x3e0] sm:$0xff]  ;;  %v724_v0 = vld [vmem:[%s8809_s8 + $0x358] sm:$0xff] }
 0xa7c   :  { %v6194_v4 = vpop.eup %6193 }
 0xa7d   :  { %v6196_v63 = vpop.eup %6195  ;;  %v3379_v14 = vadd.f32 1.0, %v6194_v4  ;;  %v744_v4 = vld [vmem:[%s8809_s8 + $0x3f8] sm:$0xff] }
 0xa7e   :  { %v3381_v55 = vmul.f32 %v6196_v63, %v3378_v23  ;;  %vm3386_vm2 = vweird.f32 %v6196_v63  ;;  %v728_v23 = vld [vmem:[%s8809_s8 + $0x378] sm:$0xff]  ;;  %3557 = vmatpush.msrb.mxu2 %v744_v4  ;;  %v713_v4 = vld [vmem:[%s8809_s8 + $0x300] sm:$0xff] }
 0xa7f   :  { %6197 = vrcp.f32 %v3379_v14  ;;  %v3406_v33 = vand.u32 2147483648, %v3379_v14  ;;  %vm3387_vm10 = vmor %vm3385_vm1, %vm3386_vm2  ;;  %v3404_v36 = vand.u32 2147483647, %v3379_v14  ;;  %vm3400_vm7 = vweird.f32 %v3379_v14  ;;  %3537 = vmatpush.msrb.mxu3 %v728_v23  ;;  %v746_v23 = vld [vmem:[%s8809_s8 + $0x408] sm:$0xff] }
 0xa80   :  { %v3382_v49 = vsub.f32 1.0, %v3381_v55  ;;  %v743_v55 = vld [vmem:[%s8809_s8 + $0x3f0] sm:$0xff] }
 0xa81   :  { %v3407_v11 = vor.u32 1.1754944e-38, %v3406_v33  ;;  %vm3405_vm8 = vcmp.eq.f32.partialorder %v3404_v36, 8.507059e+37  ;;  %3558 = vmatpush.msrb.mxu2 %v743_v55  ;;  %v740_v33 = vld [vmem:[%s8809_s8 + $0x3d8] sm:$0xff]  ;;  %v723_v36 = vld [vmem:[%s8809_s8 + $0x350] sm:$0xff] }
 0xa82   :  { %v3383_v35 = vmul.f32 %v6196_v63, %v3382_v49  ;;  %v759_v49 = vld [vmem:[%s8809_s8 + $0x470] sm:$0xff] }
 0xa84   :  { %v3384_v43 = vadd.f32 %v6196_v63, %v3383_v35  ;;  %v726_v35 = vld [vmem:[%s8809_s8 + $0x368] sm:$0xff] }
 0xa85   :  { %v6198_v30 = vpop.eup %6197 }
 0xa86   :  { %v3396_v52 = vmul.f32 %v6198_v30, %v3379_v14  ;;  %vm3401_vm9 = vweird.f32 %v6198_v30  ;;  %v3388_v18 = vsel %vm3387_vm10, %v6196_v63, %v3384_v43  ;;  %v760_v63 = vld [vmem:[%s8809_s8 + $0x478] sm:$0xff]  ;;  %v727_v14 = vld [vmem:[%s8809_s8 + $0x370] sm:$0xff]  ;;  %v725_v43 = vld [vmem:[%s8809_s8 + $0x360] sm:$0xff] }
 0xa87   :  { %vm3402_vm0 = vmor %vm3400_vm7, %vm3401_vm9  ;;  %v3393_v51 = vsel %vm3390_vm12, %v3392_v29, %v3388_v18  ;;  %3538 = vmatpush.msrb.mxu3 %v727_v14  ;;  %v739_v18 = vld [vmem:[%s8809_s8 + $0x3d0] sm:$0xff]  ;;  %v745_v14 = vld [vmem:[%s8809_s8 + $0x400] sm:$0xff] }
 0xa88   :  { %v3397_v47 = vsub.f32 1.0, %v3396_v52  ;;  %v3412_v1 = vrot.slane %v3393_v51, 1  ;;  %v758_v52 = vld [vmem:[%s8809_s8 + $0x468] sm:$0xff]  ;;  %v755_v29 = vld [vmem:[%s8809_s8 + $0x450] sm:$0xff] }
 0xa89   :  { %3539 = vmatpush.msrb.mxu3 %v726_v35 }
 0xa8a   :  { %v3398_v57 = vmul.f32 %v6198_v30, %v3397_v47  ;;  %v757_v47 = vld [vmem:[%s8809_s8 + $0x460] sm:$0xff] }
 0xa8b   :  { %3540 = vmatpush.msrb.mxu3 %v725_v43 }
 0xa8c   :  { %v3399_v60 = vadd.f32 %v6198_v30, %v3398_v57  ;;  %v756_v57 = vld [vmem:[%s8809_s8 + $0x458] sm:$0xff] }
 0xa8d   :  { %3541 = vmatpush.msrb.mxu3 %v724_v0 }
 0xa8e   :  { %v3403_v24 = vsel %vm3402_vm0, %v6198_v30, %v3399_v60  ;;  %v742_v30 = vld [vmem:[%s8809_s8 + $0x3e8] sm:$0xff] }
 0xa8f   :  { %v3408_v58 = vsel %vm3405_vm8, %v3407_v11, %v3403_v24  ;;  %3559 = vmatpush.msrb.mxu2 %v742_v30  ;;  %v722_v60 = vld [vmem:[%s8809_s8 + $0x348] sm:$0xff]  ;;  %3542 = vmatpush.msrb.mxu3 %v723_v36  ;;  %v721_v24 = vld [vmem:[%s8809_s8 + $0x340] sm:$0xff] }
 0xa90   :  { %v3413_v61 = vrot.slane %v3408_v58, 1  ;;  %5933 = vmatpush.msk.msrb.mxu1 %vm2795_vm3, %v3408_v58  ;;  %v738_v11 = vld [vmem:[%s8809_s8 + $0x3c8] sm:$0xff] }
 0xa91   :  { %3560 = vmatpush.msrb.mxu2 %v741_v46  ;;  %3543 = vmatpush.msrb.mxu3 %v722_v60 }
 0xa92   :  { %v3418_v44 = vmax.f32 %v3408_v58, %v3413_v61  ;;  %3436 = vmatpush.msrb.mxu1 %v3393_v51  ;;  %v3414_v3 = vsel %vm963_vm4, %v3412_v1, %v3413_v61  ;;  %v737_v58 = vld [vmem:[%s8809_s8 + $0x3c0] sm:$0xff] }
 0xa93   :  { %5934 = vmatmul.msk.f32.vlgmr.msrb.gmra.mxu1 %vm2791_vm13, %v6204_v59  ;;  %v3417_v42 = vmax.f32 %v3393_v51, %v3414_v3  ;;  %3561 = vmatpush.msrb.mxu2 %v740_v33  ;;  %v754_v51 = vld [vmem:[%s8809_s8 + $0x448] sm:$0xff]  ;;  %v753_v61 = vld [vmem:[%s8809_s8 + $0x440] sm:$0xff]  ;;  %v736_v3 = vld [vmem:[%s8809_s8 + $0x3b8] sm:$0xff] }
 0xa94   :  { %5935 = vmatpush.msk.msra.mxu0 %vm8813_vm14, %v3418_v44  ;;  %5937 = vmatpush.msk.msra.mxu1 %vm8816_vm11, %v3418_v44  ;;  %v720_v44 = vld [vmem:[%s8809_s8 + $0x338] sm:$0xff] }
 0xa95   :  { %3562 = vmatpush.msrb.mxu2 %v739_v18  ;;  %3544 = vmatpush.msrb.mxu3 %v721_v24  ;;  %v752_v59 = vld [vmem:[%s8809_s8 + $0x438] sm:$0xff] }
 0xa96   :  { %3459 = vmatpush.msra.mxu0 %v3417_v42  ;;  %3479 = vmatpush.msra.mxu1 %v3417_v42  ;;  %v719_v42 = vld [vmem:[%s8809_s8 + $0x330] sm:$0xff] }
 0xa97   :  { %5936 = vmatmul.msk.f32.vlgmr.msra.gmra.mxu0 %vm2818_vm6, %v6205_v22  ;;  %3563 = vmatpush.msrb.mxu2 %v738_v11  ;;  %v735_v22 = vld [vmem:[%s8809_s8 + $0x3b0] sm:$0xff] }
 0xa98   :  { %3577 = vmatpush.msrb.mxu0 %v760_v63  ;;  %3545 = vmatpush.msrb.mxu3 %v720_v44  ;;  %v729_v63 = vld [vmem:[%s8809_s8 + $0x380] sm:$0xff] }
 0xa99   :  { %3564 = vmatpush.msrb.mxu2 %v737_v58 }
 0xa9a   :  { %3578 = vmatpush.msrb.mxu0 %v759_v49  ;;  %3546 = vmatpush.msrb.mxu3 %v719_v42 }
 0xa9b   :  { %5938 = vmatmul.msk.f32.vlgmr.msra.gmra.mxu1 %vm2818_vm6, %v6206_v26  ;;  %3565 = vmatpush.msrb.mxu2 %v736_v3  ;;  %v751_v26 = vld [vmem:[%s8809_s8 + $0x430] sm:$0xff] }
 0xa9c   :  { %3579 = vmatpush.msrb.mxu0 %v758_v52 }
 0xa9d   :  { %3566 = vmatpush.msrb.mxu2 %v735_v22 }
 0xa9e   :  { %3580 = vmatpush.msrb.mxu0 %v757_v47 }
 0xaa0   :  { %3581 = vmatpush.msrb.mxu0 %v756_v57 }
 0xaa2   :  { %3582 = vmatpush.msrb.mxu0 %v755_v29 }
 0xaa4   :  { %3583 = vmatpush.msrb.mxu0 %v754_v51 }
 0xaa6   :  { %3584 = vmatpush.msrb.mxu0 %v753_v61 }
 0xaa8   :  { %3585 = vmatpush.msrb.mxu0 %v752_v59 }
 0xaaa   :  { %3586 = vmatpush.msrb.mxu0 %v751_v26 }
 0xb10   :  { %v8286_v56 = vpop.f32.mrf.mxu1 }
 0xb11   :  { %v3484_v8 = vsel %vm2795_vm3, %v8286_v56, inf  ;;  %v3498_v62 = vsel %vm2795_vm3, %v8286_v56, -inf }
 0xb14   :  { %v8288_v32 = vpop.f32.mrf.mxu0 }
 0xb15   :  { %v3485_v6 = vsel %vm2795_vm3, %v8288_v32, inf  ;;  %v3499_v7 = vsel %vm2795_vm3, %v8288_v32, -inf }
 0xb16   :  { %v3501_v37 = vmax.f32 %v3498_v62, %v3499_v7  ;;  %v3487_v41 = vmin.f32 %v3484_v8, %v3485_v6  ;;  %v718_v6 = vld [vmem:[%s8809_s8 + $0x328] sm:$0xff]  ;;  %v717_v62 = vld [vmem:[%s8809_s8 + $0x320] sm:$0xff] }
 0xb17   :  { %v734_v7 = vld [vmem:[%s8809_s8 + $0x3a8] sm:$0xff]  ;;  %3547 = vmatpush.msrb.mxu3 %v718_v6 }
 0xb18   :  { %v8298_v9 = vpop.f32.mrf.mxu1  ;;  %v750_v8 = vld [vmem:[%s8809_s8 + $0x428] sm:$0xff]  ;;  %3567 = vmatpush.msrb.mxu2 %v734_v7 }
 0xb19   :  { %v3486_v20 = vsel %vm2795_vm3, %v8298_v9, inf  ;;  %v3500_v39 = vsel %vm2795_vm3, %v8298_v9, -inf  ;;  %3587 = vmatpush.msrb.mxu0 %v750_v8  ;;  %3548 = vmatpush.msrb.mxu3 %v717_v62 }
 0xb1a   :  { %v3502_v17 = vmax.f32 %v3501_v37, %v3500_v39  ;;  %v3488_v54 = vmin.f32 %v3487_v41, %v3486_v20  ;;  %v733_v37 = vld [vmem:[%s8809_s8 + $0x3a0] sm:$0xff] }
 0xb1b   :  { %v749_v20 = vld [vmem:[%s8809_s8 + $0x420] sm:$0xff]  ;;  %3568 = vmatpush.msrb.mxu2 %v733_v37 }
 0xb1c   :  { %3503 = vmax.xlane.f32.xlu0 %v3502_v17  ;;  %3489 = vmin.xlane.f32.xlu1 %v3488_v54  ;;  %v716_v17 = vld [vmem:[%s8809_s8 + $0x318] sm:$0xff] }
 0xb1d   :  { %v732_v54 = vld [vmem:[%s8809_s8 + $0x398] sm:$0xff]  ;;  %3588 = vmatpush.msrb.mxu0 %v749_v20  ;;  %3549 = vmatpush.msrb.mxu3 %v716_v17 }
 0xb1e   :  { %3569 = vmatpush.msrb.mxu2 %v732_v54 }
 0xb8f   :  { %v3504_v25 = vpop.xlane.xlu0 %3503  ;;  %v3490_v19 = vpop.xlane.xlu1 %3489 }
 0xb90   :  { %v3505_v48 = vrot.slane %v3504_v25, 4  ;;  %v3491_v38 = vrot.slane %v3490_v19, 4 }
 0xb92   :  { %v3506_v40 = vmax.f32 %v3504_v25, %v3505_v48  ;;  %v3492_v21 = vmin.f32 %v3490_v19, %v3491_v38  ;;  %v748_v25 = vld [vmem:[%s8809_s8 + $0x418] sm:$0xff]  ;;  %v715_v48 = vld [vmem:[%s8809_s8 + $0x310] sm:$0xff] }
 0xb93   :  { %v731_v38 = vld [vmem:[%s8809_s8 + $0x390] sm:$0xff]  ;;  %3589 = vmatpush.msrb.mxu0 %v748_v25  ;;  %3550 = vmatpush.msrb.mxu3 %v715_v48 }
 0xb94   :  { %v3507_v28 = vrot.slane %v3506_v40, 2  ;;  %v3493_v5 = vrot.slane %v3492_v21, 2  ;;  %3570 = vmatpush.msrb.mxu2 %v731_v38 }
 0xb96   :  { %v3508_v27 = vmax.f32 %v3506_v40, %v3507_v28  ;;  %v3494_v16 = vmin.f32 %v3492_v21, %v3493_v5  ;;  %v747_v21 = vld [vmem:[%s8809_s8 + $0x410] sm:$0xff] }
 0xb97   :  { %3590 = vmatpush.msrb.mxu0 %v747_v21 }
 0xb98   :  { %v3495_v15 = vrot.slane %v3494_v16, 1  ;;  %v3509_v31 = vrot.slane %v3508_v27, 1 }
 0xb99   :  { %3591 = vmatpush.msrb.mxu0 %v746_v23 }
 0xb9a   :  { %v3496_v34 = vmin.f32 %v3494_v16, %v3495_v15  ;;  %v3510_v13 = vmax.f32 %v3508_v27, %v3509_v31 }
 0xb9b   :  { %3592 = vmatpush.msrb.mxu0 %v745_v14 }
 0xb9c   :  { %5952 = vpush %v3496_v34  ;;  %v714_v34 = vld [vmem:[%s8809_s8 + $0x308] sm:$0xff] }
 0xb9d   :  { %5954 = vpush %v3510_v13  ;;  %v730_v13 = vld [vmem:[%s8809_s8 + $0x388] sm:$0xff]  ;;  %3551 = vmatpush.msrb.mxu3 %v714_v34 }
 0xb9e   :  { %3571 = vmatpush.msrb.mxu2 %v730_v13 }
 0xb9f   :  { %3552 = vmatpush.msrb.mxu3 %v713_v4 }
 0xba0   :  { %3572 = vmatpush.msrb.mxu2 %v729_v63 }
 0xbcd   :  { %s8322_s16 = spop %5952 }
 0xbce   :  { %s5955_s21 = spop %5954  ;;  %v3512_v55 = vstv %s8322_s16 }
 0xbcf   :  { %s3516_s18 = ssub.f32 %s5955_s21, %s8322_s16  ;;  %v3513_v49 = vsub.f32 %v8286_v56, %v3512_v55  ;;  %v3514_v35 = vsub.f32 %v8288_v32, %v3512_v55  ;;  %v3515_v30 = vsub.f32 %v8298_v9, %v3512_v55 }
 0xbd1   :  { %v3517_v1 = vstv %s3516_s18 }
 0xbd2   :  { %6199 = vrcp.f32 %v3517_v1  ;;  %v3529_v40 = vand.u32 2147483648, %v3517_v1  ;;  %v3527_v5 = vand.u32 2147483647, %v3517_v1  ;;  %vm3523_vm6 = vweird.f32 %v3517_v1 }
 0xbd4   :  { %v3530_v16 = vor.u32 1.1754944e-38, %v3529_v40  ;;  %vm3528_vm15 = vcmp.eq.f32.partialorder %v3527_v5, 8.507059e+37 }
 0xbd8   :  { %v6200_v41 = vpop.eup %6199 }
 0xbd9   :  { %v3519_v39 = vmul.f32 %v6200_v41, %v3517_v1  ;;  %vm3524_vm4 = vweird.f32 %v6200_v41 }
 0xbda   :  { %vm3525_vm13 = vmor %vm3523_vm6, %vm3524_vm4 }
 0xbdb   :  { %v3520_v19 = vsub.f32 1.0, %v3519_v39 }
 0xbdd   :  { %v3521_v28 = vmul.f32 %v6200_v41, %v3520_v19 }
 0xbdf   :  { %v3522_v27 = vadd.f32 %v6200_v41, %v3521_v28 }
 0xbe1   :  { %v3526_v15 = vsel %vm3525_vm13, %v6200_v41, %v3522_v27 }
 0xbe2   :  { %v3531_v31 = vsel %vm3528_vm15, %v3530_v16, %v3526_v15 }
 0xbe3   :  { %5956 = vpush %v3531_v31 }
 0xc14   :  { %s5957_s30 = spop %5956 }
 0xc15   :  { %v3533_v52 = vstv %s5957_s30 }
 0xc16   :  { %v3534_v43 = vmul.f32 %v3533_v52, %v3513_v49  ;;  %v3535_v46 = vmul.f32 %v3533_v52, %v3514_v35  ;;  %v3536_v47 = vmul.f32 %v3533_v52, %v3515_v30 }
 0xc18   :  { %3553 = vmatmul.f32.vlgmr.msrb.gmra.mxu3 %v3534_v43  ;;  %3573 = vmatmul.f32.vlgmr.msrb.gmra.mxu2 %v3535_v46 }
 0xc19   :  { %3593 = vmatmul.f32.vlgmr.msrb.gmra.mxu0 %v3536_v47 }
 0xc1a   :  { %6737 = shalt.err (!%p6734_p11)  }
 0xc1b   :  { %437 = dma.hbm_to_vmem [thread:$0]  %s433_s17, 98304, %s435_s2, [#allocation3]  ;;  %v3247_v56 = vadd.f32 %v8271_v45, %v8273_v53 }
 0xc1d   :  { %v3267_v32 = vadd.f32 %v8282_v10, %v3247_v56 }
 0xc1f   :  { %v3287_v36 = vadd.f32 %v8284_v12, %v3267_v32 }
 0xc96   :  { %v3594_v57 = vpop.f32.mrf.mxu0 }
 0xc9b   :  { %v3554_v9 = vpop.f32.mrf.mxu3  ;;  %v3574_v0 = vpop.f32.mrf.mxu2 }
 0xc9c   :  { %v3575_v33 = vadd.f32 %v3574_v0, %v3554_v9 }
 0xc9e   :  { %v3595_v18 = vadd.f32 %v3594_v57, %v3575_v33 }
 0xca0   :  { %v8366_v29 = vadd.f32 %v3595_v18, %v3287_v36 }
 0xca1   :  { %6796 = dma.done.wait [#allocation3], 98304 }
 0xca2   :  { %6797 = vsyncadd [#allocation3], 4294868992  ;;  %v3852_v60 = vld [vmem:[#allocation2 + $0x7c0] sm:$0xff]  ;;  %s8817_s4 = sld [smem:[#allocation65_spill]]  ;;  %s6861_s24 = smov [#allocation37]   ;;  %vm5776_vm9 = vcmask 140288  }
 0xca3   :  { %v3844_v11 = vld [vmem:[#allocation2 + $0x780] sm:$0xff]  ;;  %4427 = vmatpush.msra.mxu3 %v3852_v60  ;;  %v3725_v60 = vld [vmem:[#allocation2 + $0x3c8] sm:$0xff]  ;;  %s5783_s5 = sshll.u32 %s6861_s24, 4  ;;  %s5785_s26 = sshll.u32 %s7015_s9, 4  ;;  %s5784_s5 = int_to_ptr.vmem [resolvable:$true] %s5783_s5  ;;  %s5786_s26 = int_to_ptr.hbm [resolvable:$true] %s5785_s26 }
 0xca4   :  { %v3980_v51 = vld [vmem:[#allocation2 + $0xbc0] sm:$0xff]  ;;  %s6762_s25 = sshra.s32 %s5786_s26, 4  ;;  %s6766_s1 = scalar_lea.hbm %s7015_s9, 2  ;;  %s6763_s25 = int_to_ptr.hbm [resolvable:$true] %s6762_s25 }
 0xca5   :  { %4447 = vmatpush.msra.mxu2 %v3980_v51  ;;  %v3724_v24 = vld [vmem:[#allocation2 + $0x3c0] sm:$0xff]  ;;  %4428 = vmatpush.msra.mxu3 %v3844_v11  ;;  %s6764_s15 = scalar_lea.hbm %s6763_s25, 2  ;;  %p6767_p13 = scmp.lt.s32.totalorder %s6763_s25, %s7015_s9 }
 0xca6   :  { %v3972_v45 = vld [vmem:[#allocation2 + $0xb80] sm:$0xff]  ;;  %4407 = vmatpush.msrb.mxu1 %v3724_v24  ;;  %p6765_p12 = scmp.ne.s32.totalorder %s6763_s25, %s6764_s15  ;;  %p6768_p0 = scmp.lt.s32.totalorder %s6766_s1, %s6764_s15 }
 0xca7   :  { %v3836_v53 = vld [vmem:[#allocation2 + $0x740] sm:$0xff]  ;;  %4448 = vmatpush.msra.mxu2 %v3972_v45 }
 0xca8   :  { %v3716_v10 = vld [vmem:[#allocation2 + $0x380] sm:$0xff]  ;;  %4429 = vmatpush.msra.mxu3 %v3836_v53  ;;  %v3717_v53 = vld [vmem:[#allocation2 + $0x388] sm:$0xff]  ;;  %p6769_p1 = por %p6768_p0, %p6767_p13 }
 0xca9   :  { %v3964_v58 = vld [vmem:[#allocation2 + $0xb40] sm:$0xff]  ;;  %4408 = vmatpush.msrb.mxu1 %v3716_v10 }
 0xcaa   :  { %v3708_v61 = vld [vmem:[#allocation2 + $0x340] sm:$0xff]  ;;  %4449 = vmatpush.msra.mxu2 %v3964_v58  ;;  %p6770_p2 = pnand %p6769_p1, %p6765_p12 }
 0xcab   :  { %v3828_v12 = vld [vmem:[#allocation2 + $0x700] sm:$0xff]  ;;  %4409 = vmatpush.msrb.mxu1 %v3708_v61 }
 0xcac   :  { %v3956_v1 = vld [vmem:[#allocation2 + $0xb00] sm:$0xff]  ;;  %4430 = vmatpush.msra.mxu3 %v3828_v12  ;;  %v3709_v12 = vld [vmem:[#allocation2 + $0x348] sm:$0xff] }
 0xcad   :  { %v3700_v44 = vld [vmem:[#allocation2 + $0x300] sm:$0xff]  ;;  %4450 = vmatpush.msra.mxu2 %v3956_v1 }
 0xcae   :  { %v4108_v3 = vld [vmem:[#allocation2 + $0xfc0] sm:$0xff]  ;;  %4410 = vmatpush.msrb.mxu1 %v3700_v44 }
 0xcaf   :  { %v3820_v59 = vld [vmem:[#allocation2 + $0x6c0] sm:$0xff]  ;;  %4467 = vmatpush.msra.mxu0 %v4108_v3 }
 0xcb0   :  { %v3948_v42 = vld [vmem:[#allocation2 + $0xac0] sm:$0xff]  ;;  %4431 = vmatpush.msra.mxu3 %v3820_v59  ;;  %v3701_v59 = vld [vmem:[#allocation2 + $0x308] sm:$0xff] }
 0xcb1   :  { %v4100_v22 = vld [vmem:[#allocation2 + $0xf80] sm:$0xff]  ;;  %4451 = vmatpush.msra.mxu2 %v3948_v42  ;;  %v3853_v42 = vld [vmem:[#allocation2 + $0x7c8] sm:$0xff] }
 0xcb2   :  { %v3692_v26 = vld [vmem:[#allocation2 + $0x2c0] sm:$0xff]  ;;  %4468 = vmatpush.msra.mxu0 %v4100_v22 }
 0xcb3   :  { %v4092_v6 = vld [vmem:[#allocation2 + $0xf40] sm:$0xff]  ;;  %4411 = vmatpush.msrb.mxu1 %v3692_v26 }
 0xcb4   :  { %v3812_v7 = vld [vmem:[#allocation2 + $0x680] sm:$0xff]  ;;  %4469 = vmatpush.msra.mxu0 %v4092_v6  ;;  %v3693_v6 = vld [vmem:[#allocation2 + $0x2c8] sm:$0xff] }
 0xcb5   :  { %v3940_v8 = vld [vmem:[#allocation2 + $0xa80] sm:$0xff]  ;;  %4432 = vmatpush.msra.mxu3 %v3812_v7  ;;  %v3845_v7 = vld [vmem:[#allocation2 + $0x788] sm:$0xff] }
 0xcb6   :  { %v3684_v62 = vld [vmem:[#allocation2 + $0x280] sm:$0xff]  ;;  %4452 = vmatpush.msra.mxu2 %v3940_v8 }
 0xcb7   :  { %v4084_v37 = vld [vmem:[#allocation2 + $0xf00] sm:$0xff]  ;;  %4412 = vmatpush.msrb.mxu1 %v3684_v62 }
 0xcb8   :  { %v3804_v41 = vld [vmem:[#allocation2 + $0x640] sm:$0xff]  ;;  %4470 = vmatpush.msra.mxu0 %v4084_v37  ;;  %v3685_v37 = vld [vmem:[#allocation2 + $0x288] sm:$0xff] }
 0xcb9   :  { %v3932_v20 = vld [vmem:[#allocation2 + $0xa40] sm:$0xff]  ;;  %4433 = vmatpush.msra.mxu3 %v3804_v41  ;;  %v3837_v41 = vld [vmem:[#allocation2 + $0x748] sm:$0xff] }
 0xcba   :  { %v3676_v39 = vld [vmem:[#allocation2 + $0x240] sm:$0xff]  ;;  %4453 = vmatpush.msra.mxu2 %v3932_v20 }
 0xcbb   :  { %v4076_v17 = vld [vmem:[#allocation2 + $0xec0] sm:$0xff]  ;;  %4413 = vmatpush.msrb.mxu1 %v3676_v39 }
 0xcbc   :  { %v3796_v54 = vld [vmem:[#allocation2 + $0x600] sm:$0xff]  ;;  %4471 = vmatpush.msra.mxu0 %v4076_v17 }
 0xcbd   :  { %v3924_v25 = vld [vmem:[#allocation2 + $0xa00] sm:$0xff]  ;;  %4434 = vmatpush.msra.mxu3 %v3796_v54  ;;  %v3677_v54 = vld [vmem:[#allocation2 + $0x248] sm:$0xff] }
 0xcbe   :  { %v3668_v19 = vld [vmem:[#allocation2 + $0x200] sm:$0xff]  ;;  %4454 = vmatpush.msra.mxu2 %v3924_v25  ;;  %v3829_v25 = vld [vmem:[#allocation2 + $0x708] sm:$0xff] }
 0xcbf   :  { %v4068_v48 = vld [vmem:[#allocation2 + $0xe80] sm:$0xff]  ;;  %4414 = vmatpush.msrb.mxu1 %v3668_v19 }
 0xcc0   :  { %v3788_v38 = vld [vmem:[#allocation2 + $0x5c0] sm:$0xff]  ;;  %4472 = vmatpush.msra.mxu0 %v4068_v48 }
 0xcc1   :  { %v3916_v40 = vld [vmem:[#allocation2 + $0x9c0] sm:$0xff]  ;;  %4435 = vmatpush.msra.mxu3 %v3788_v38  ;;  %v3669_v38 = vld [vmem:[#allocation2 + $0x208] sm:$0xff] }
 0xcc2   :  { %v3660_v21 = vld [vmem:[#allocation2 + $0x1c0] sm:$0xff]  ;;  %4455 = vmatpush.msra.mxu2 %v3916_v40  ;;  %v3821_v40 = vld [vmem:[#allocation2 + $0x6c8] sm:$0xff] }
 0xcc3   :  { %v4060_v28 = vld [vmem:[#allocation2 + $0xe40] sm:$0xff]  ;;  %4415 = vmatpush.msrb.mxu1 %v3660_v21 }
 0xcc4   :  { %v3780_v5 = vld [vmem:[#allocation2 + $0x580] sm:$0xff]  ;;  %4473 = vmatpush.msra.mxu0 %v4060_v28 }
 0xcc5   :  { %v3908_v27 = vld [vmem:[#allocation2 + $0x980] sm:$0xff]  ;;  %4436 = vmatpush.msra.mxu3 %v3780_v5 }
 0xcc6   :  { %v3652_v16 = vld [vmem:[#allocation2 + $0x180] sm:$0xff]  ;;  %4456 = vmatpush.msra.mxu2 %v3908_v27  ;;  %v3661_v27 = vld [vmem:[#allocation2 + $0x1c8] sm:$0xff] }
 0xcc7   :  { %v4052_v15 = vld [vmem:[#allocation2 + $0xe00] sm:$0xff]  ;;  %4416 = vmatpush.msrb.mxu1 %v3652_v16  ;;  %v3813_v16 = vld [vmem:[#allocation2 + $0x688] sm:$0xff] }
 0xcc8   :  { %v3772_v31 = vld [vmem:[#allocation2 + $0x540] sm:$0xff]  ;;  %4474 = vmatpush.msra.mxu0 %v4052_v15 }
 0xcc9   :  { %v3900_v34 = vld [vmem:[#allocation2 + $0x940] sm:$0xff]  ;;  %4437 = vmatpush.msra.mxu3 %v3772_v31 }
 0xcca   :  { %v3644_v13 = vld [vmem:[#allocation2 + $0x140] sm:$0xff]  ;;  %4457 = vmatpush.msra.mxu2 %v3900_v34  ;;  %v3653_v34 = vld [vmem:[#allocation2 + $0x188] sm:$0xff] }
 0xccb   :  { %v4044_v23 = vld [vmem:[#allocation2 + $0xdc0] sm:$0xff]  ;;  %4417 = vmatpush.msrb.mxu1 %v3644_v13  ;;  %v3805_v13 = vld [vmem:[#allocation2 + $0x648] sm:$0xff] }
 0xccc   :  { %v3764_v4 = vld [vmem:[#allocation2 + $0x500] sm:$0xff]  ;;  %4475 = vmatpush.msra.mxu0 %v4044_v23 }
 0xccd   :  { %v3892_v63 = vld [vmem:[#allocation2 + $0x900] sm:$0xff]  ;;  %4438 = vmatpush.msra.mxu3 %v3764_v4 }
 0xcce   :  { %v3636_v14 = vld [vmem:[#allocation2 + $0x100] sm:$0xff]  ;;  %4458 = vmatpush.msra.mxu2 %v3892_v63  ;;  %v3645_v63 = vld [vmem:[#allocation2 + $0x148] sm:$0xff] }
 0xccf   :  { %v4036_v55 = vld [vmem:[#allocation2 + $0xd80] sm:$0xff]  ;;  %4418 = vmatpush.msrb.mxu1 %v3636_v14  ;;  %v3797_v14 = vld [vmem:[#allocation2 + $0x608] sm:$0xff] }
 0xcd0   :  { %v3756_v49 = vld [vmem:[#allocation2 + $0x4c0] sm:$0xff]  ;;  %4476 = vmatpush.msra.mxu0 %v4036_v55 }
 0xcd1   :  { %v3884_v35 = vld [vmem:[#allocation2 + $0x8c0] sm:$0xff]  ;;  %4439 = vmatpush.msra.mxu3 %v3756_v49 }
 0xcd2   :  { %v3628_v30 = vld [vmem:[#allocation2 + $0xc0] sm:$0xff]  ;;  %4459 = vmatpush.msra.mxu2 %v3884_v35  ;;  %v3637_v35 = vld [vmem:[#allocation2 + $0x108] sm:$0xff] }
 0xcd3   :  { %v4028_v52 = vld [vmem:[#allocation2 + $0xd40] sm:$0xff]  ;;  %4419 = vmatpush.msrb.mxu1 %v3628_v30  ;;  %v3789_v30 = vld [vmem:[#allocation2 + $0x5c8] sm:$0xff] }
 0xcd4   :  { %v3748_v43 = vld [vmem:[#allocation2 + $0x480] sm:$0xff]  ;;  %4477 = vmatpush.msra.mxu0 %v4028_v52 }
 0xcd5   :  { %v3876_v46 = vld [vmem:[#allocation2 + $0x880] sm:$0xff]  ;;  %4440 = vmatpush.msra.mxu3 %v3748_v43 }
 0xcd6   :  { %v3620_v47 = vld [vmem:[#allocation2 + $0x80] sm:$0xff]  ;;  %4460 = vmatpush.msra.mxu2 %v3876_v46  ;;  %v3629_v46 = vld [vmem:[#allocation2 + $0xc8] sm:$0xff] }
 0xcd7   :  { %v4020_v56 = vld [vmem:[#allocation2 + $0xd00] sm:$0xff]  ;;  %4420 = vmatpush.msrb.mxu1 %v3620_v47  ;;  %v3781_v47 = vld [vmem:[#allocation2 + $0x588] sm:$0xff] }
 0xcd8   :  { %v3740_v32 = vld [vmem:[#allocation2 + $0x440] sm:$0xff]  ;;  %4478 = vmatpush.msra.mxu0 %v4020_v56 }
 0xcd9   :  { %v3868_v9 = vld [vmem:[#allocation2 + $0x840] sm:$0xff]  ;;  %4441 = vmatpush.msra.mxu3 %v3740_v32 }
 0xcda   :  { %v3612_v0 = vld [vmem:[#allocation2 + $0x40] sm:$0xff]  ;;  %4461 = vmatpush.msra.mxu2 %v3868_v9  ;;  %v3621_v9 = vld [vmem:[#allocation2 + $0x88] sm:$0xff] }
 0xcdb   :  { %v4012_v33 = vld [vmem:[#allocation2 + $0xcc0] sm:$0xff]  ;;  %4421 = vmatpush.msrb.mxu1 %v3612_v0  ;;  %v3773_v0 = vld [vmem:[#allocation2 + $0x548] sm:$0xff] }
 0xcdc   :  { %v3732_v57 = vld [vmem:[#allocation2 + $0x400] sm:$0xff]  ;;  %4479 = vmatpush.msra.mxu0 %v4012_v33 }
 0xcdd   :  { %v3860_v36 = vld [vmem:[#allocation2 + $0x800] sm:$0xff]  ;;  %4442 = vmatpush.msra.mxu3 %v3732_v57 }
 0xcde   :  { %v4364_v18 = vld [vmem:[#allocation2 + $0x17c0] sm:$0xff]  ;;  %4462 = vmatpush.msra.mxu2 %v3860_v36  ;;  %v3613_v36 = vld [vmem:[#allocation2 + $0x48] sm:$0xff] }
 0xcdf   :  { %v3604_v11 = vld [vmem:[#allocation2] sm:$0xff]  ;;  %4507 = vmatpush.msrb.mxu3 %v4364_v18 }
 0xce0   :  { %v4004_v51 = vld [vmem:[#allocation2 + $0xc80] sm:$0xff]  ;;  %4527 = vmatpush.msrb.mxu2 %v3725_v60  ;;  %4422 = vmatpush.msrb.mxu1 %v3604_v11 }
 0xce1   :  { %v4356_v24 = vld [vmem:[#allocation2 + $0x1780] sm:$0xff]  ;;  %4480 = vmatpush.msra.mxu0 %v4004_v51  ;;  %v4109_v51 = vld [vmem:[#allocation2 + $0xfc8] sm:$0xff] }
 0xce2   :  { %v4236_v45 = vld [vmem:[#allocation2 + $0x13c0] sm:$0xff]  ;;  %4508 = vmatpush.msrb.mxu3 %v4356_v24  ;;  %4528 = vmatpush.msrb.mxu2 %v3717_v53  ;;  %v3605_v24 = vld [vmem:[#allocation2 + $0x8] sm:$0xff] }
 0xce3   :  { %v3996_v10 = vld [vmem:[#allocation2 + $0xc40] sm:$0xff]  ;;  %4487 = vmatpush.msra.mxu1 %v4236_v45  ;;  %v3765_v45 = vld [vmem:[#allocation2 + $0x508] sm:$0xff] }
 0xce4   :  { %v4348_v58 = vld [vmem:[#allocation2 + $0x1740] sm:$0xff]  ;;  %4481 = vmatpush.msra.mxu0 %v3996_v10  ;;  %4529 = vmatpush.msrb.mxu2 %v3709_v12  ;;  %v4101_v10 = vld [vmem:[#allocation2 + $0xf88] sm:$0xff] }
 0xce5   :  { %v4228_v61 = vld [vmem:[#allocation2 + $0x1380] sm:$0xff]  ;;  %4509 = vmatpush.msrb.mxu3 %v4348_v58  ;;  %v4237_v58 = vld [vmem:[#allocation2 + $0x13c8] sm:$0xff] }
 0xce6   :  { %v3988_v1 = vld [vmem:[#allocation2 + $0xc00] sm:$0xff]  ;;  %4488 = vmatpush.msra.mxu1 %v4228_v61  ;;  %4530 = vmatpush.msrb.mxu2 %v3701_v59  ;;  %v3757_v12 = vld [vmem:[#allocation2 + $0x4c8] sm:$0xff] }
 0xce7   :  { %v4340_v44 = vld [vmem:[#allocation2 + $0x1700] sm:$0xff]  ;;  %4482 = vmatpush.msra.mxu0 %v3988_v1  ;;  %v4229_v59 = vld [vmem:[#allocation2 + $0x1388] sm:$0xff] }
 0xce8   :  { %v4220_v3 = vld [vmem:[#allocation2 + $0x1340] sm:$0xff]  ;;  %4510 = vmatpush.msrb.mxu3 %v4340_v44  ;;  %4531 = vmatpush.msrb.mxu2 %v3693_v6  ;;  %v4093_v44 = vld [vmem:[#allocation2 + $0xf48] sm:$0xff] }
 0xce9   :  { %v4332_v22 = vld [vmem:[#allocation2 + $0x16c0] sm:$0xff]  ;;  %4489 = vmatpush.msra.mxu1 %v4220_v3  ;;  %4547 = vmatpush.msrb.mxu0 %v3853_v42  ;;  %v3981_v3 = vld [vmem:[#allocation2 + $0xbc8] sm:$0xff] }
 0xcea   :  { %v4212_v26 = vld [vmem:[#allocation2 + $0x1300] sm:$0xff]  ;;  %4511 = vmatpush.msrb.mxu3 %v4332_v22  ;;  %4532 = vmatpush.msrb.mxu2 %v3685_v37  ;;  %v3749_v42 = vld [vmem:[#allocation2 + $0x488] sm:$0xff] }
 0xceb   :  { %v4324_v8 = vld [vmem:[#allocation2 + $0x1680] sm:$0xff]  ;;  %4490 = vmatpush.msra.mxu1 %v4212_v26  ;;  %4548 = vmatpush.msrb.mxu0 %v3845_v7  ;;  %v4085_v22 = vld [vmem:[#allocation2 + $0xf08] sm:$0xff] }
 0xcec   :  { %v4204_v62 = vld [vmem:[#allocation2 + $0x12c0] sm:$0xff]  ;;  %4512 = vmatpush.msrb.mxu3 %v4324_v8  ;;  %4533 = vmatpush.msrb.mxu2 %v3677_v54  ;;  %v3973_v26 = vld [vmem:[#allocation2 + $0xb88] sm:$0xff] }
 0xced   :  { %v3602_v20 = vld [vmem:[#allocation34] sm:$0xff]  ;;  %4491 = vmatpush.msra.mxu1 %v4204_v62  ;;  %4549 = vmatpush.msrb.mxu0 %v3837_v41  ;;  %v3603_v5 = vld [vmem:[#allocation34 + $0x8] sm:$0xf]  ;;  %v4221_v6 = vld [vmem:[#allocation2 + $0x1348] sm:$0xff] }
 0xcee   :  { %v4316_v39 = vld [vmem:[#allocation2 + $0x1640] sm:$0xff]  ;;  %4392 = vst [vmem:[#allocation1] ss:$4 sm:$0xff] %v3602_v20  ;;  %4534 = vmatpush.msrb.mxu2 %v3669_v38  ;;  %v3741_v7 = vld [vmem:[#allocation2 + $0x448] sm:$0xff] }
 0xcef   :  { %v4196_v17 = vld [vmem:[#allocation2 + $0x1280] sm:$0xff]  ;;  %4513 = vmatpush.msrb.mxu3 %v4316_v39  ;;  %4550 = vmatpush.msrb.mxu0 %v3829_v25  ;;  %4394 = vst [vmem:[#allocation1 + $0x20] ss:$4 sm:$0xff] %v3603_v5  ;;  %v3965_v62 = vld [vmem:[#allocation2 + $0xb48] sm:$0xff] }
 0xcf0   :  { %v4308_v19 = vld [vmem:[#allocation2 + $0x1600] sm:$0xff]  ;;  %4492 = vmatpush.msra.mxu1 %v4196_v17  ;;  %4535 = vmatpush.msrb.mxu2 %v3661_v27  ;;  %v4077_v37 = vld [vmem:[#allocation2 + $0xec8] sm:$0xff] }
 0xcf1   :  { %v4188_v48 = vld [vmem:[#allocation2 + $0x1240] sm:$0xff]  ;;  %4514 = vmatpush.msrb.mxu3 %v4308_v19  ;;  %4551 = vmatpush.msrb.mxu0 %v3821_v40  ;;  %v4213_v41 = vld [vmem:[#allocation2 + $0x1308] sm:$0xff] }
 0xcf2   :  { %v4300_v21 = vld [vmem:[#allocation2 + $0x15c0] sm:$0xff]  ;;  %4493 = vmatpush.msra.mxu1 %v4188_v48  ;;  %4536 = vmatpush.msrb.mxu2 %v3653_v34  ;;  %v3733_v20 = vld [vmem:[#allocation2 + $0x408] sm:$0xff] }
 0xcf3   :  { %v4180_v28 = vld [vmem:[#allocation2 + $0x1200] sm:$0xff]  ;;  %4515 = vmatpush.msrb.mxu3 %v4300_v21  ;;  %4552 = vmatpush.msrb.mxu0 %v3813_v16  ;;  %v3957_v17 = vld [vmem:[#allocation2 + $0xb08] sm:$0xff] }
 0xcf4   :  { %v4292_v15 = vld [vmem:[#allocation2 + $0x1580] sm:$0xff]  ;;  %4494 = vmatpush.msra.mxu1 %v4180_v28  ;;  %4537 = vmatpush.msrb.mxu2 %v3645_v63  ;;  %v4069_v54 = vld [vmem:[#allocation2 + $0xe88] sm:$0xff] }
 0xcf5   :  { %v4172_v31 = vld [vmem:[#allocation2 + $0x11c0] sm:$0xff]  ;;  %4516 = vmatpush.msrb.mxu3 %v4292_v15  ;;  %4553 = vmatpush.msrb.mxu0 %v3805_v13  ;;  %v8371_v53 = vld.sshfl [vmem:[#allocation1 + $0x10] sm:$0xff pattern:$0x73625140] }
 0xcf6   :  { %v4284_v23 = vld [vmem:[#allocation2 + $0x1540] sm:$0xff]  ;;  %4495 = vmatpush.msra.mxu1 %v4172_v31  ;;  %4538 = vmatpush.msrb.mxu2 %v3637_v35  ;;  %v8374_v1 = vld.sshfl [vmem:[#allocation1] sm:$0xff pattern:$0x73625140]  ;;  %v4205_v25 = vld [vmem:[#allocation2 + $0x12c8] sm:$0xff] }
 0xcf7   :  { %v4164_v4 = vld [vmem:[#allocation2 + $0x1180] sm:$0xff]  ;;  %4517 = vmatpush.msrb.mxu3 %v4284_v23  ;;  %4554 = vmatpush.msrb.mxu0 %v3797_v14  ;;  %v8380_v39 = vld.sshfl [vmem:[#allocation1 + $0x18] sm:$0xff pattern:$0x73625140]  ;;  %v4365_v19 = vld [vmem:[#allocation2 + $0x17c8] sm:$0xff] }
 0xcf8   :  { %v4276_v55 = vld [vmem:[#allocation2 + $0x1500] sm:$0xff]  ;;  %4496 = vmatpush.msra.mxu1 %v4164_v4  ;;  %4539 = vmatpush.msrb.mxu2 %v3629_v46  ;;  %v8382_v48 = vld.sshfl [vmem:[#allocation1 + $0x20] sm:$0xff pattern:$0x73625140]  ;;  %v3949_v38 = vld [vmem:[#allocation2 + $0xac8] sm:$0xff] }
 0xcf9   :  { %v4156_v49 = vld [vmem:[#allocation2 + $0x1140] sm:$0xff]  ;;  %4518 = vmatpush.msrb.mxu3 %v4276_v55  ;;  %4555 = vmatpush.msrb.mxu0 %v3789_v30  ;;  %v4061_v40 = vld [vmem:[#allocation2 + $0xe48] sm:$0xff] }
 0xcfa   :  { %v4268_v52 = vld [vmem:[#allocation2 + $0x14c0] sm:$0xff]  ;;  %4497 = vmatpush.msra.mxu1 %v4156_v49  ;;  %4540 = vmatpush.msrb.mxu2 %v3621_v9  ;;  %v4197_v21 = vld [vmem:[#allocation2 + $0x1288] sm:$0xff] }
 0xcfb   :  { %v4148_v43 = vld [vmem:[#allocation2 + $0x1100] sm:$0xff]  ;;  %4519 = vmatpush.msrb.mxu3 %v4268_v52  ;;  %4556 = vmatpush.msrb.mxu0 %v3781_v47  ;;  %v4357_v28 = vld [vmem:[#allocation2 + $0x1788] sm:$0xff] }
 0xcfc   :  { %v4260_v56 = vld [vmem:[#allocation2 + $0x1480] sm:$0xff]  ;;  %4498 = vmatpush.msra.mxu1 %v4148_v43  ;;  %4541 = vmatpush.msrb.mxu2 %v3613_v36  ;;  %v3941_v5 = vld [vmem:[#allocation2 + $0xa88] sm:$0xff] }
 0xcfd   :  { %v4140_v32 = vld [vmem:[#allocation2 + $0x10c0] sm:$0xff]  ;;  %4520 = vmatpush.msrb.mxu3 %v4260_v56  ;;  %4557 = vmatpush.msrb.mxu0 %v3773_v0  ;;  %v4053_v27 = vld [vmem:[#allocation2 + $0xe08] sm:$0xff] }
 0xcfe   :  { %v4252_v33 = vld [vmem:[#allocation2 + $0x1440] sm:$0xff]  ;;  %4499 = vmatpush.msra.mxu1 %v4140_v32  ;;  %4542 = vmatpush.msrb.mxu2 %v3605_v24  ;;  %v4189_v16 = vld [vmem:[#allocation2 + $0x1248] sm:$0xff] }
 0xcff   :  { %v4132_v57 = vld [vmem:[#allocation2 + $0x1080] sm:$0xff]  ;;  %4521 = vmatpush.msrb.mxu3 %v4252_v33  ;;  %4558 = vmatpush.msrb.mxu0 %v3765_v45  ;;  %v4349_v15 = vld [vmem:[#allocation2 + $0x1748] sm:$0xff] }
 0xd00   :  { %v8368_v18 = vld.sshfl [vmem:[#allocation1 + $0x8] sm:$0xff pattern:$0x73625140]  ;;  %4500 = vmatpush.msra.mxu1 %v4132_v57  ;;  %4463 = vmatmul.f32.vlgmr.msra.gmra.mxu2 %v8371_v53  ;;  %v3933_v31 = vld [vmem:[#allocation2 + $0xa48] sm:$0xff] }
 0xd01   :  { %v4244_v60 = vld [vmem:[#allocation2 + $0x1400] sm:$0xff]  ;;  %4443 = vmatmul.f32.vlgmr.msra.gmra.mxu3 %v8368_v18  ;;  %4607 = vmatpush.msra.mxu2 %v4237_v58  ;;  %v4045_v34 = vld [vmem:[#allocation2 + $0xdc8] sm:$0xff] }
 0xd02   :  { %v4124_v11 = vld [vmem:[#allocation2 + $0x1040] sm:$0xff]  ;;  %4522 = vmatpush.msrb.mxu3 %v4244_v60  ;;  %4559 = vmatpush.msrb.mxu0 %v3757_v12  ;;  %v4181_v13 = vld [vmem:[#allocation2 + $0x1208] sm:$0xff] }
 0xd03   :  { %4501 = vmatpush.msra.mxu1 %v4124_v11  ;;  %v4116_v61 = vld [vmem:[#allocation2 + $0x1000] sm:$0xff]  ;;  %4608 = vmatpush.msra.mxu2 %v4229_v59  ;;  %v4341_v23 = vld [vmem:[#allocation2 + $0x1708] sm:$0xff] }
 0xd04   :  { %4587 = vmatpush.msra.mxu3 %v4109_v51  ;;  %4423 = vmatmul.f32.vlgmr.msrb.gmra.mxu1 %v8374_v1  ;;  %v8377_v8 = vld.sshfl [vmem:[#allocation1 + $0x28] sm:$0xff pattern:$0x73625140]  ;;  %v3925_v4 = vld [vmem:[#allocation2 + $0xa08] sm:$0xff] }
 0xd05   :  { %4502 = vmatpush.msra.mxu1 %v4116_v61  ;;  %4560 = vmatpush.msrb.mxu0 %v3749_v42  ;;  %v4037_v63 = vld [vmem:[#allocation2 + $0xd88] sm:$0xff] }
 0xd06   :  { %4588 = vmatpush.msra.mxu3 %v4101_v10  ;;  %4609 = vmatpush.msra.mxu2 %v4221_v6  ;;  %v4173_v14 = vld [vmem:[#allocation2 + $0x11c8] sm:$0xff]  ;;  %v3982_v6 = vld [vmem:[#allocation2 + $0xbd0] sm:$0xff] }
 0xd07   :  { %4567 = vmatpush.msrb.mxu1 %v3981_v3  ;;  %4561 = vmatpush.msrb.mxu0 %v3741_v7  ;;  %v4333_v55 = vld [vmem:[#allocation2 + $0x16c8] sm:$0xff]  ;;  %v3854_v3 = vld [vmem:[#allocation2 + $0x7d0] sm:$0xff] }
 0xd08   :  { %4589 = vmatpush.msra.mxu3 %v4093_v44  ;;  %4610 = vmatpush.msra.mxu2 %v4213_v41  ;;  %v3917_v49 = vld [vmem:[#allocation2 + $0x9c8] sm:$0xff]  ;;  %v3838_v41 = vld [vmem:[#allocation2 + $0x750] sm:$0xff] }
 0xd09   :  { %4568 = vmatpush.msrb.mxu1 %v3973_v26  ;;  %4523 = vmatmul.f32.vlgmr.msrb.gmra.mxu3 %v8377_v8  ;;  %v4029_v35 = vld [vmem:[#allocation2 + $0xd48] sm:$0xff]  ;;  %v3846_v26 = vld [vmem:[#allocation2 + $0x790] sm:$0xff] }
 0xd0a   :  { %4590 = vmatpush.msra.mxu3 %v4085_v22  ;;  %4562 = vmatpush.msrb.mxu0 %v3733_v20  ;;  %v4165_v30 = vld [vmem:[#allocation2 + $0x1188] sm:$0xff]  ;;  %v3974_v20 = vld [vmem:[#allocation2 + $0xb90] sm:$0xff] }
 0xd0b   :  { %4569 = vmatpush.msrb.mxu1 %v3965_v62  ;;  %4483 = vmatmul.f32.vlgmr.msra.gmra.mxu0 %v8380_v39  ;;  %v4325_v52 = vld [vmem:[#allocation2 + $0x1688] sm:$0xff] }
 0xd0c   :  { %4591 = vmatpush.msra.mxu3 %v4077_v37  ;;  %4611 = vmatpush.msra.mxu2 %v4205_v25  ;;  %v3909_v43 = vld [vmem:[#allocation2 + $0x988] sm:$0xff]  ;;  %v3726_v37 = vld [vmem:[#allocation2 + $0x3d0] sm:$0xff] }
 0xd0d   :  { %4570 = vmatpush.msrb.mxu1 %v3957_v17  ;;  %4627 = vmatpush.msra.mxu0 %v4365_v19  ;;  %v4021_v46 = vld [vmem:[#allocation2 + $0xd08] sm:$0xff]  ;;  %v3830_v25 = vld [vmem:[#allocation2 + $0x710] sm:$0xff] }
 0xd0e   :  { %4592 = vmatpush.msra.mxu3 %v4069_v54  ;;  %4503 = vmatmul.f32.vlgmr.msra.gmra.mxu1 %v8382_v48  ;;  %v4157_v47 = vld [vmem:[#allocation2 + $0x1148] sm:$0xff]  ;;  %v3718_v54 = vld [vmem:[#allocation2 + $0x390] sm:$0xff] }
 0xd0f   :  { %4571 = vmatpush.msrb.mxu1 %v3949_v38  ;;  %4612 = vmatpush.msra.mxu2 %v4197_v21  ;;  %v4317_v56 = vld [vmem:[#allocation2 + $0x1648] sm:$0xff]  ;;  %v3966_v19 = vld [vmem:[#allocation2 + $0xb50] sm:$0xff] }
 0xd10   :  { %4593 = vmatpush.msra.mxu3 %v4061_v40  ;;  %4628 = vmatpush.msra.mxu0 %v4357_v28  ;;  %v3901_v32 = vld [vmem:[#allocation2 + $0x948] sm:$0xff]  ;;  %v3710_v40 = vld [vmem:[#allocation2 + $0x350] sm:$0xff] }
 0xd11   :  { %4572 = vmatpush.msrb.mxu1 %v3941_v5  ;;  %4613 = vmatpush.msra.mxu2 %v4189_v16  ;;  %v4013_v9 = vld [vmem:[#allocation2 + $0xcc8] sm:$0xff]  ;;  %v3822_v21 = vld [vmem:[#allocation2 + $0x6d0] sm:$0xff] }
 0xd12   :  { %4594 = vmatpush.msra.mxu3 %v4053_v27  ;;  %4629 = vmatpush.msra.mxu0 %v4349_v15  ;;  %v4149_v0 = vld [vmem:[#allocation2 + $0x1108] sm:$0xff]  ;;  %v3958_v28 = vld [vmem:[#allocation2 + $0xb10] sm:$0xff] }
 0xd13   :  { %4573 = vmatpush.msrb.mxu1 %v3933_v31  ;;  %4614 = vmatpush.msra.mxu2 %v4181_v13  ;;  %v4309_v33 = vld [vmem:[#allocation2 + $0x1608] sm:$0xff]  ;;  %v3702_v27 = vld [vmem:[#allocation2 + $0x310] sm:$0xff] }
 0xd14   :  { %4595 = vmatpush.msra.mxu3 %v4045_v34  ;;  %4630 = vmatpush.msra.mxu0 %v4341_v23  ;;  %v3893_v57 = vld [vmem:[#allocation2 + $0x908] sm:$0xff]  ;;  %v3814_v16 = vld [vmem:[#allocation2 + $0x690] sm:$0xff] }
 0xd15   :  { %4574 = vmatpush.msrb.mxu1 %v3925_v4  ;;  %4615 = vmatpush.msra.mxu2 %v4173_v14  ;;  %v4005_v36 = vld [vmem:[#allocation2 + $0xc88] sm:$0xff]  ;;  %v3950_v15 = vld [vmem:[#allocation2 + $0xad0] sm:$0xff] }
 0xd16   :  { %4596 = vmatpush.msra.mxu3 %v4037_v63  ;;  %4631 = vmatpush.msra.mxu0 %v4333_v55  ;;  %v4141_v60 = vld [vmem:[#allocation2 + $0x10c8] sm:$0xff]  ;;  %v4110_v31 = vld [vmem:[#allocation2 + $0xfd0] sm:$0xff] }
 0xd17   :  { %4575 = vmatpush.msrb.mxu1 %v3917_v49  ;;  %4616 = vmatpush.msra.mxu2 %v4165_v30  ;;  %v4301_v11 = vld [vmem:[#allocation2 + $0x15c8] sm:$0xff]  ;;  %v3806_v34 = vld [vmem:[#allocation2 + $0x650] sm:$0xff] }
 0xd18   :  { %4597 = vmatpush.msra.mxu3 %v4029_v35  ;;  %4632 = vmatpush.msra.mxu0 %v4325_v52  ;;  %v3885_v51 = vld [vmem:[#allocation2 + $0x8c8] sm:$0xff]  ;;  %v3694_v13 = vld [vmem:[#allocation2 + $0x2d0] sm:$0xff] }
 0xd19   :  { %4576 = vmatpush.msrb.mxu1 %v3909_v43  ;;  %4617 = vmatpush.msra.mxu2 %v4157_v47  ;;  %v3997_v24 = vld [vmem:[#allocation2 + $0xc48] sm:$0xff]  ;;  %v3942_v23 = vld [vmem:[#allocation2 + $0xa90] sm:$0xff] }
 0xd1a   :  { %4598 = vmatpush.msra.mxu3 %v4021_v46  ;;  %4633 = vmatpush.msra.mxu0 %v4317_v56  ;;  %v4133_v45 = vld [vmem:[#allocation2 + $0x1088] sm:$0xff]  ;;  %v4102_v4 = vld [vmem:[#allocation2 + $0xf90] sm:$0xff] }
 0xd1b   :  { %4577 = vmatpush.msrb.mxu1 %v3901_v32  ;;  %4618 = vmatpush.msra.mxu2 %v4149_v0  ;;  %v4293_v10 = vld [vmem:[#allocation2 + $0x1588] sm:$0xff]  ;;  %v3798_v63 = vld [vmem:[#allocation2 + $0x610] sm:$0xff] }
 0xd1c   :  { %4599 = vmatpush.msra.mxu3 %v4013_v9  ;;  %4634 = vmatpush.msra.mxu0 %v4309_v33  ;;  %v3877_v58 = vld [vmem:[#allocation2 + $0x888] sm:$0xff]  ;;  %v3686_v14 = vld [vmem:[#allocation2 + $0x290] sm:$0xff] }
 0xd1d   :  { %4578 = vmatpush.msrb.mxu1 %v3893_v57  ;;  %4619 = vmatpush.msra.mxu2 %v4141_v60  ;;  %v3989_v61 = vld [vmem:[#allocation2 + $0xc08] sm:$0xff]  ;;  %v3934_v55 = vld [vmem:[#allocation2 + $0xa50] sm:$0xff] }
 0xd1e   :  { %4600 = vmatpush.msra.mxu3 %v4005_v36  ;;  %4635 = vmatpush.msra.mxu0 %v4301_v11  ;;  %v4125_v12 = vld [vmem:[#allocation2 + $0x1048] sm:$0xff]  ;;  %v4094_v49 = vld [vmem:[#allocation2 + $0xf50] sm:$0xff] }
 0xd1f   :  { %4579 = vmatpush.msrb.mxu1 %v3885_v51  ;;  %v4285_v44 = vld [vmem:[#allocation2 + $0x1548] sm:$0xff]  ;;  %4620 = vmatpush.msra.mxu2 %v4133_v45  ;;  %v3790_v35 = vld [vmem:[#allocation2 + $0x5d0] sm:$0xff] }
 0xd20   :  { %4601 = vmatpush.msra.mxu3 %v3997_v24  ;;  %4636 = vmatpush.msra.mxu0 %v4293_v10  ;;  %v3869_v59 = vld [vmem:[#allocation2 + $0x848] sm:$0xff]  ;;  %v3678_v30 = vld [vmem:[#allocation2 + $0x250] sm:$0xff] }
 0xd21   :  { %4580 = vmatpush.msrb.mxu1 %v3877_v58  ;;  %v4117_v42 = vld [vmem:[#allocation2 + $0x1008] sm:$0xff]  ;;  %4621 = vmatpush.msra.mxu2 %v4125_v12  ;;  %v3926_v52 = vld [vmem:[#allocation2 + $0xa10] sm:$0xff] }
 0xd22   :  { %4602 = vmatpush.msra.mxu3 %v3989_v61  ;;  %v4277_v22 = vld [vmem:[#allocation2 + $0x1508] sm:$0xff]  ;;  %4637 = vmatpush.msra.mxu0 %v4285_v44  ;;  %v4086_v43 = vld [vmem:[#allocation2 + $0xf10] sm:$0xff] }
 0xd23   :  { %4581 = vmatpush.msrb.mxu1 %v3869_v59  ;;  %v3861_v7 = vld [vmem:[#allocation2 + $0x808] sm:$0xff]  ;;  %4622 = vmatpush.msra.mxu2 %v4117_v42  ;;  %v3782_v46 = vld [vmem:[#allocation2 + $0x590] sm:$0xff] }
 0xd24   :  { %4667 = vmatpush.msrb.mxu3 %v3854_v3  ;;  %4638 = vmatpush.msra.mxu0 %v4277_v22  ;;  %v4269_v62 = vld [vmem:[#allocation2 + $0x14c8] sm:$0xff]  ;;  %v3670_v47 = vld [vmem:[#allocation2 + $0x210] sm:$0xff] }
 0xd25   :  { %4543 = vmatmul.f32.vlgmr.msrb.gmra.mxu2 %v8374_v1  ;;  %4582 = vmatpush.msrb.mxu1 %v3861_v7  ;;  %v4261_v17 = vld [vmem:[#allocation2 + $0x1488] sm:$0xff]  ;;  %v3918_v56 = vld [vmem:[#allocation2 + $0x9d0] sm:$0xff] }
 0xd26   :  { %4668 = vmatpush.msrb.mxu3 %v3846_v26  ;;  %4687 = vmatpush.msrb.mxu2 %v3982_v6  ;;  %v4253_v38 = vld [vmem:[#allocation2 + $0x1448] sm:$0xff]  ;;  %v4078_v32 = vld [vmem:[#allocation2 + $0xed0] sm:$0xff] }
 0xd27   :  { %4639 = vmatpush.msra.mxu0 %v4269_v62  ;;  %4647 = vmatpush.msra.mxu1 %v3726_v37  ;;  %v4245_v5 = vld [vmem:[#allocation2 + $0x1408] sm:$0xff]  ;;  %v3662_v9 = vld [vmem:[#allocation2 + $0x1d0] sm:$0xff] }
 0xd28   :  { %4669 = vmatpush.msrb.mxu3 %v3838_v41  ;;  %4688 = vmatpush.msrb.mxu2 %v3974_v20  ;;  %v3774_v0 = vld [vmem:[#allocation2 + $0x550] sm:$0xff] }
 0xd29   :  { %4640 = vmatpush.msra.mxu0 %v4261_v17  ;;  %4648 = vmatpush.msra.mxu1 %v3718_v54  ;;  %v3910_v33 = vld [vmem:[#allocation2 + $0x990] sm:$0xff] }
 0xd2a   :  { %4670 = vmatpush.msrb.mxu3 %v3830_v25  ;;  %4689 = vmatpush.msrb.mxu2 %v3966_v19  ;;  %v4070_v57 = vld [vmem:[#allocation2 + $0xe90] sm:$0xff]  ;;  %v3727_v19 = vld [vmem:[#allocation2 + $0x3d8] sm:$0xff] }
 0xd2b   :  { %4641 = vmatpush.msra.mxu0 %v4253_v38  ;;  %4603 = vmatmul.f32.vlgmr.msra.gmra.mxu3 %v8380_v39  ;;  %v3654_v36 = vld [vmem:[#allocation2 + $0x190] sm:$0xff] }
 0xd2c   :  { %4649 = vmatpush.msra.mxu1 %v3710_v40  ;;  %4671 = vmatpush.msrb.mxu3 %v3822_v21  ;;  %v3766_v60 = vld [vmem:[#allocation2 + $0x510] sm:$0xff] }
 0xd2d   :  { %4690 = vmatpush.msrb.mxu2 %v3958_v28  ;;  %4642 = vmatpush.msra.mxu0 %v4245_v5  ;;  %v3902_v11 = vld [vmem:[#allocation2 + $0x950] sm:$0xff]  ;;  %v3719_v5 = vld [vmem:[#allocation2 + $0x398] sm:$0xff] }
 0xd2e   :  { %4563 = vmatmul.f32.vlgmr.msrb.gmra.mxu0 %v8368_v18  ;;  %4623 = vmatmul.f32.vlgmr.msra.gmra.mxu2 %v8382_v48  ;;  %v4062_v51 = vld [vmem:[#allocation2 + $0xe50] sm:$0xff] }
 0xd2f   :  { %4650 = vmatpush.msra.mxu1 %v3702_v27  ;;  %4672 = vmatpush.msrb.mxu3 %v3814_v16  ;;  %v3646_v24 = vld [vmem:[#allocation2 + $0x150] sm:$0xff] }
 0xd30   :  { %4691 = vmatpush.msrb.mxu2 %v3950_v15  ;;  %4707 = vmatpush.msrb.mxu0 %v4110_v31  ;;  %v3758_v45 = vld [vmem:[#allocation2 + $0x4d0] sm:$0xff]  ;;  %v3711_v31 = vld [vmem:[#allocation2 + $0x358] sm:$0xff] }
 0xd31   :  { %4583 = vmatmul.f32.vlgmr.msrb.gmra.mxu1 %v8371_v53  ;;  %4673 = vmatpush.msrb.mxu3 %v3806_v34  ;;  %v3894_v10 = vld [vmem:[#allocation2 + $0x910] sm:$0xff] }
 0xd32   :  { %4651 = vmatpush.msra.mxu1 %v3694_v13  ;;  %4692 = vmatpush.msrb.mxu2 %v3942_v23  ;;  %v4054_v58 = vld [vmem:[#allocation2 + $0xe10] sm:$0xff] }
 0xd33   :  { %4708 = vmatpush.msrb.mxu0 %v4102_v4  ;;  %4674 = vmatpush.msrb.mxu3 %v3798_v63  ;;  %v3638_v61 = vld [vmem:[#allocation2 + $0x110] sm:$0xff]  ;;  %v3703_v4 = vld [vmem:[#allocation2 + $0x318] sm:$0xff] }
 0xd34   :  { %4652 = vmatpush.msra.mxu1 %v3686_v14  ;;  %4693 = vmatpush.msrb.mxu2 %v3934_v55  ;;  %v3750_v12 = vld [vmem:[#allocation2 + $0x490] sm:$0xff] }
 0xd35   :  { %4709 = vmatpush.msrb.mxu0 %v4094_v49  ;;  %4675 = vmatpush.msrb.mxu3 %v3790_v35  ;;  %v3886_v44 = vld [vmem:[#allocation2 + $0x8d0] sm:$0xff]  ;;  %v3695_v49 = vld [vmem:[#allocation2 + $0x2d8] sm:$0xff] }
 0xd36   :  { %4653 = vmatpush.msra.mxu1 %v3678_v30  ;;  %4694 = vmatpush.msrb.mxu2 %v3926_v52  ;;  %v4046_v3 = vld [vmem:[#allocation2 + $0xdd0] sm:$0xff]  ;;  %v3855_v35 = vld [vmem:[#allocation2 + $0x7d8] sm:$0xff] }
 0xd37   :  { %4710 = vmatpush.msrb.mxu0 %v4086_v43  ;;  %4676 = vmatpush.msrb.mxu3 %v3782_v46  ;;  %v3630_v59 = vld [vmem:[#allocation2 + $0xd0] sm:$0xff]  ;;  %v3687_v43 = vld [vmem:[#allocation2 + $0x298] sm:$0xff] }
 0xd38   :  { %4643 = vmatmul.f32.vlgmr.msra.gmra.mxu0 %v8377_v8  ;;  %4654 = vmatpush.msra.mxu1 %v3670_v47  ;;  %v3742_v42 = vld [vmem:[#allocation2 + $0x450] sm:$0xff]  ;;  %v3847_v46 = vld [vmem:[#allocation2 + $0x798] sm:$0xff] }
 0xd39   :  { %4695 = vmatpush.msrb.mxu2 %v3918_v56  ;;  %4711 = vmatpush.msrb.mxu0 %v4078_v32  ;;  %v3878_v22 = vld [vmem:[#allocation2 + $0x890] sm:$0xff]  ;;  %v3679_v32 = vld [vmem:[#allocation2 + $0x258] sm:$0xff] }
 0xd3a   :  { %4655 = vmatpush.msra.mxu1 %v3662_v9  ;;  %4677 = vmatpush.msrb.mxu3 %v3774_v0  ;;  %v4038_v26 = vld [vmem:[#allocation2 + $0xd90] sm:$0xff]  ;;  %v3839_v9 = vld [vmem:[#allocation2 + $0x758] sm:$0xff] }
 0xd3b   :  { %4696 = vmatpush.msrb.mxu2 %v3910_v33  ;;  %4712 = vmatpush.msrb.mxu0 %v4070_v57  ;;  %v3622_v6 = vld [vmem:[#allocation2 + $0x90] sm:$0xff]  ;;  %v3671_v57 = vld [vmem:[#allocation2 + $0x218] sm:$0xff] }
 0xd3c   :  { %4656 = vmatpush.msra.mxu1 %v3654_v36  ;;  %4678 = vmatpush.msrb.mxu3 %v3766_v60  ;;  %v3734_v7 = vld [vmem:[#allocation2 + $0x410] sm:$0xff]  ;;  %v3831_v36 = vld [vmem:[#allocation2 + $0x718] sm:$0xff] }
 0xd3d   :  { %4697 = vmatpush.msrb.mxu2 %v3902_v11  ;;  %4713 = vmatpush.msrb.mxu0 %v4062_v51  ;;  %v3870_v62 = vld [vmem:[#allocation2 + $0x850] sm:$0xff]  ;;  %v3663_v51 = vld [vmem:[#allocation2 + $0x1d8] sm:$0xff] }
 0xd3e   :  { %4657 = vmatpush.msra.mxu1 %v3646_v24  ;;  %4679 = vmatpush.msrb.mxu3 %v3758_v45  ;;  %v4030_v37 = vld [vmem:[#allocation2 + $0xd50] sm:$0xff]  ;;  %v3823_v24 = vld [vmem:[#allocation2 + $0x6d8] sm:$0xff] }
 0xd3f   :  { %4698 = vmatpush.msrb.mxu2 %v3894_v10  ;;  %4714 = vmatpush.msrb.mxu0 %v4054_v58  ;;  %v4366_v41 = vld [vmem:[#allocation2 + $0x17d0] sm:$0xff]  ;;  %v3655_v58 = vld [vmem:[#allocation2 + $0x198] sm:$0xff] }
 0xd40   :  { %4658 = vmatpush.msra.mxu1 %v3638_v61  ;;  %4680 = vmatpush.msrb.mxu3 %v3750_v12  ;;  %v3614_v20 = vld [vmem:[#allocation2 + $0x50] sm:$0xff]  ;;  %v3815_v61 = vld [vmem:[#allocation2 + $0x698] sm:$0xff] }
 0xd41   :  { %4699 = vmatpush.msrb.mxu2 %v3886_v44  ;;  %4715 = vmatpush.msrb.mxu0 %v4046_v3  ;;  %v3862_v17 = vld [vmem:[#allocation2 + $0x810] sm:$0xff]  ;;  %v3647_v3 = vld [vmem:[#allocation2 + $0x158] sm:$0xff] }
 0xd42   :  { %4659 = vmatpush.msra.mxu1 %v3630_v59  ;;  %4681 = vmatpush.msrb.mxu3 %v3742_v42  ;;  %v4022_v54 = vld [vmem:[#allocation2 + $0xd10] sm:$0xff]  ;;  %v3807_v59 = vld [vmem:[#allocation2 + $0x658] sm:$0xff] }
 0xd43   :  { %4700 = vmatpush.msrb.mxu2 %v3878_v22  ;;  %4716 = vmatpush.msrb.mxu0 %v4038_v26  ;;  %v4358_v25 = vld [vmem:[#allocation2 + $0x1790] sm:$0xff]  ;;  %v3639_v26 = vld [vmem:[#allocation2 + $0x118] sm:$0xff] }
 0xd44   :  { %4660 = vmatpush.msra.mxu1 %v3622_v6  ;;  %4682 = vmatpush.msrb.mxu3 %v3734_v7  ;;  %v3606_v38 = vld [vmem:[#allocation2 + $0x10] sm:$0xff]  ;;  %v3799_v6 = vld [vmem:[#allocation2 + $0x618] sm:$0xff] }
 0xd45   :  { %4701 = vmatpush.msrb.mxu2 %v3870_v62  ;;  %4717 = vmatpush.msrb.mxu0 %v4030_v37  ;;  %v4014_v40 = vld [vmem:[#allocation2 + $0xcd0] sm:$0xff]  ;;  %v3631_v37 = vld [vmem:[#allocation2 + $0xd8] sm:$0xff] }
 0xd46   :  { %4747 = vmatpush.msra.mxu3 %v4366_v41  ;;  %4661 = vmatpush.msra.mxu1 %v3614_v20  ;;  %v4238_v21 = vld [vmem:[#allocation2 + $0x13d0] sm:$0xff]  ;;  %v3791_v41 = vld [vmem:[#allocation2 + $0x5d8] sm:$0xff] }
 0xd47   :  { %4702 = vmatpush.msrb.mxu2 %v3862_v17  ;;  %4718 = vmatpush.msrb.mxu0 %v4022_v54  ;;  %v4350_v28 = vld [vmem:[#allocation2 + $0x1750] sm:$0xff]  ;;  %v3623_v54 = vld [vmem:[#allocation2 + $0x98] sm:$0xff] }
 0xd48   :  { %4748 = vmatpush.msra.mxu3 %v4358_v25  ;;  %v4006_v27 = vld [vmem:[#allocation2 + $0xc90] sm:$0xff]  ;;  %4662 = vmatpush.msra.mxu1 %v3606_v38  ;;  %v3783_v25 = vld [vmem:[#allocation2 + $0x598] sm:$0xff] }
 0xd49   :  { %4767 = vmatpush.msra.mxu2 %v3727_v19  ;;  %4719 = vmatpush.msrb.mxu0 %v4014_v40  ;;  %v4230_v16 = vld [vmem:[#allocation2 + $0x1390] sm:$0xff]  ;;  %v3615_v40 = vld [vmem:[#allocation2 + $0x58] sm:$0xff] }
 0xd4a   :  { %v4342_v15 = vld [vmem:[#allocation2 + $0x1710] sm:$0xff]  ;;  %4727 = vmatpush.msrb.mxu1 %v4238_v21  ;;  %4749 = vmatpush.msra.mxu3 %v4350_v28  ;;  %v3775_v21 = vld [vmem:[#allocation2 + $0x558] sm:$0xff] }
 0xd4b   :  { %v3998_v34 = vld [vmem:[#allocation2 + $0xc50] sm:$0xff]  ;;  %4768 = vmatpush.msra.mxu2 %v3719_v5  ;;  %4720 = vmatpush.msrb.mxu0 %v4006_v27  ;;  %v4111_v5 = vld [vmem:[#allocation2 + $0xfd8] sm:$0xff] }
 0xd4c   :  { %v4222_v13 = vld [vmem:[#allocation2 + $0x1350] sm:$0xff]  ;;  %4728 = vmatpush.msrb.mxu1 %v4230_v16  ;;  %4750 = vmatpush.msra.mxu3 %v4342_v15  ;;  %v3607_v27 = vld [vmem:[#allocation2 + $0x18] sm:$0xff] }
 0xd4d   :  { %v4334_v23 = vld [vmem:[#allocation2 + $0x16d0] sm:$0xff]  ;;  %4769 = vmatpush.msra.mxu2 %v3711_v31  ;;  %4721 = vmatpush.msrb.mxu0 %v3998_v34  ;;  %v3767_v16 = vld [vmem:[#allocation2 + $0x518] sm:$0xff] }
 0xd4e   :  { %v3990_v63 = vld [vmem:[#allocation2 + $0xc10] sm:$0xff]  ;;  %4729 = vmatpush.msrb.mxu1 %v4222_v13  ;;  %4751 = vmatpush.msra.mxu3 %v4334_v23  ;;  %v4103_v15 = vld [vmem:[#allocation2 + $0xf98] sm:$0xff] }
 0xd4f   :  { %v4214_v14 = vld [vmem:[#allocation2 + $0x1310] sm:$0xff]  ;;  %4770 = vmatpush.msra.mxu2 %v3703_v4  ;;  %4722 = vmatpush.msrb.mxu0 %v3990_v63  ;;  %v4239_v31 = vld [vmem:[#allocation2 + $0x13d8] sm:$0xff] }
 0xd50   :  { %v4326_v55 = vld [vmem:[#allocation2 + $0x1690] sm:$0xff]  ;;  %4730 = vmatpush.msrb.mxu1 %v4214_v14  ;;  %4683 = vmatmul.f32.vlgmr.msrb.gmra.mxu3 %v8368_v18  ;;  %v3759_v13 = vld [vmem:[#allocation2 + $0x4d8] sm:$0xff] }
 0xd51   :  { %v4206_v30 = vld [vmem:[#allocation2 + $0x12d0] sm:$0xff]  ;;  %4752 = vmatpush.msra.mxu3 %v4326_v55  ;;  %4771 = vmatpush.msra.mxu2 %v3695_v49  ;;  %v4095_v23 = vld [vmem:[#allocation2 + $0xf58] sm:$0xff] }
 0xd52   :  { %v4318_v52 = vld [vmem:[#allocation2 + $0x1650] sm:$0xff]  ;;  %4787 = vmatpush.msra.mxu0 %v3855_v35  ;;  %4731 = vmatpush.msrb.mxu1 %v4206_v30  ;;  %v3983_v4 = vld [vmem:[#allocation2 + $0xbd8] sm:$0xff] }
 0xd53   :  { %v4198_v47 = vld [vmem:[#allocation2 + $0x1290] sm:$0xff]  ;;  %4753 = vmatpush.msra.mxu3 %v4318_v52  ;;  %4772 = vmatpush.msra.mxu2 %v3687_v43  ;;  %v4231_v63 = vld [vmem:[#allocation2 + $0x1398] sm:$0xff] }
 0xd54   :  { %v4310_v56 = vld [vmem:[#allocation2 + $0x1610] sm:$0xff]  ;;  %4788 = vmatpush.msra.mxu0 %v3847_v46  ;;  %4732 = vmatpush.msrb.mxu1 %v4198_v47  ;;  %v3751_v14 = vld [vmem:[#allocation2 + $0x498] sm:$0xff] }
 0xd55   :  { %v4190_v0 = vld [vmem:[#allocation2 + $0x1250] sm:$0xff]  ;;  %4754 = vmatpush.msra.mxu3 %v4310_v56  ;;  %4773 = vmatpush.msra.mxu2 %v3679_v32  ;;  %v4087_v55 = vld [vmem:[#allocation2 + $0xf18] sm:$0xff] }
 0xd56   :  { %v4302_v33 = vld [vmem:[#allocation2 + $0x15d0] sm:$0xff]  ;;  %4789 = vmatpush.msra.mxu0 %v3839_v9  ;;  %4733 = vmatpush.msrb.mxu1 %v4190_v0  ;;  %v3975_v18 = vld [vmem:[#allocation2 + $0xb98] sm:$0xff] }
 0xd57   :  { %v4182_v60 = vld [vmem:[#allocation2 + $0x1210] sm:$0xff]  ;;  %4755 = vmatpush.msra.mxu3 %v4302_v33  ;;  %4774 = vmatpush.msra.mxu2 %v3671_v57  ;;  %v4223_v49 = vld [vmem:[#allocation2 + $0x1358] sm:$0xff] }
 0xd58   :  { %v4294_v11 = vld [vmem:[#allocation2 + $0x1590] sm:$0xff]  ;;  %4790 = vmatpush.msra.mxu0 %v3831_v36  ;;  %4734 = vmatpush.msrb.mxu1 %v4182_v60  ;;  %v3743_v35 = vld [vmem:[#allocation2 + $0x458] sm:$0xff] }
 0xd59   :  { %v4174_v45 = vld [vmem:[#allocation2 + $0x11d0] sm:$0xff]  ;;  %4756 = vmatpush.msra.mxu3 %v4294_v11  ;;  %4775 = vmatpush.msra.mxu2 %v3663_v51  ;;  %v4079_v30 = vld [vmem:[#allocation2 + $0xed8] sm:$0xff] }
 0xd5a   :  { %v4286_v10 = vld [vmem:[#allocation2 + $0x1550] sm:$0xff]  ;;  %4791 = vmatpush.msra.mxu0 %v3823_v24  ;;  %4735 = vmatpush.msrb.mxu1 %v4174_v45  ;;  %v4215_v52 = vld [vmem:[#allocation2 + $0x1318] sm:$0xff] }
 0xd5b   :  { %v4166_v12 = vld [vmem:[#allocation2 + $0x1190] sm:$0xff]  ;;  %4757 = vmatpush.msra.mxu3 %v4286_v10  ;;  %4776 = vmatpush.msra.mxu2 %v3655_v58  ;;  %v3735_v43 = vld [vmem:[#allocation2 + $0x418] sm:$0xff] }
 0xd5c   :  { %v4278_v44 = vld [vmem:[#allocation2 + $0x1510] sm:$0xff]  ;;  %4792 = vmatpush.msra.mxu0 %v3815_v61  ;;  %4736 = vmatpush.msrb.mxu1 %v4166_v12  ;;  %v3959_v46 = vld [vmem:[#allocation2 + $0xb18] sm:$0xff] }
 0xd5d   :  { %v4158_v42 = vld [vmem:[#allocation2 + $0x1150] sm:$0xff]  ;;  %4758 = vmatpush.msra.mxu3 %v4278_v44  ;;  %4777 = vmatpush.msra.mxu2 %v3647_v3  ;;  %v4207_v47 = vld [vmem:[#allocation2 + $0x12d8] sm:$0xff] }
 0xd5e   :  { %v4270_v22 = vld [vmem:[#allocation2 + $0x14d0] sm:$0xff]  ;;  %4793 = vmatpush.msra.mxu0 %v3807_v59  ;;  %4737 = vmatpush.msrb.mxu1 %v4158_v42  ;;  %v4367_v56 = vld [vmem:[#allocation2 + $0x17d8] sm:$0xff] }
 0xd5f   :  { %v4150_v7 = vld [vmem:[#allocation2 + $0x1110] sm:$0xff]  ;;  %4759 = vmatpush.msra.mxu3 %v4270_v22  ;;  %4778 = vmatpush.msra.mxu2 %v3639_v26  ;;  %v3951_v32 = vld [vmem:[#allocation2 + $0xad8] sm:$0xff]  ;;  %v8398_v22 = vld [vmem:[#allocation36] sm:$0xff] }
 0xd60   :  { %v4262_v62 = vld [vmem:[#allocation2 + $0x1490] sm:$0xff]  ;;  %4794 = vmatpush.msra.mxu0 %v3799_v6  ;;  %4738 = vmatpush.msrb.mxu1 %v4150_v7  ;;  %v4063_v9 = vld [vmem:[#allocation2 + $0xe58] sm:$0xff] }
 0xd61   :  { %v4142_v20 = vld [vmem:[#allocation2 + $0x10d0] sm:$0xff]  ;;  %4760 = vmatpush.msra.mxu3 %v4262_v62  ;;  %4779 = vmatpush.msra.mxu2 %v3631_v37  ;;  %v4199_v0 = vld [vmem:[#allocation2 + $0x1298] sm:$0xff] }
 0xd62   :  { %v4254_v17 = vld [vmem:[#allocation2 + $0x1450] sm:$0xff]  ;;  %4795 = vmatpush.msra.mxu0 %v3791_v41  ;;  %4739 = vmatpush.msrb.mxu1 %v4142_v20  ;;  %v4359_v33 = vld [vmem:[#allocation2 + $0x1798] sm:$0xff]  ;;  %v4374_v20 = vperm.slane %v8398_v22, 0 }
 0xd63   :  { %v4134_v19 = vld [vmem:[#allocation2 + $0x1090] sm:$0xff]  ;;  %4761 = vmatpush.msra.mxu3 %v4254_v17  ;;  %4780 = vmatpush.msra.mxu2 %v3623_v54  ;;  %v4055_v57 = vld [vmem:[#allocation2 + $0xe18] sm:$0xff] }
 0xd64   :  { %v4246_v38 = vld [vmem:[#allocation2 + $0x1410] sm:$0xff]  ;;  %4796 = vmatpush.msra.mxu0 %v3783_v25  ;;  %4740 = vmatpush.msrb.mxu1 %v4134_v19  ;;  %v4191_v36 = vld [vmem:[#allocation2 + $0x1258] sm:$0xff] }
 0xd65   :  { %v4126_v28 = vld [vmem:[#allocation2 + $0x1050] sm:$0xff]  ;;  %4762 = vmatpush.msra.mxu3 %v4246_v38  ;;  %4781 = vmatpush.msra.mxu2 %v3615_v40  ;;  %v4351_v60 = vld [vmem:[#allocation2 + $0x1758] sm:$0xff] }
 0xd66   :  { %4797 = vmatpush.msra.mxu0 %v3775_v21  ;;  %4741 = vmatpush.msrb.mxu1 %v4126_v28  ;;  %v4118_v34 = vld [vmem:[#allocation2 + $0x1010] sm:$0xff]  ;;  %v3935_v11 = vld [vmem:[#allocation2 + $0xa58] sm:$0xff] }
 0xd67   :  { %4827 = vmatpush.msrb.mxu3 %v4111_v5  ;;  %4782 = vmatpush.msra.mxu2 %v3607_v27  ;;  %v4183_v51 = vld [vmem:[#allocation2 + $0x1218] sm:$0xff] }
 0xd68   :  { %4798 = vmatpush.msra.mxu0 %v3767_v16  ;;  %4703 = vmatmul.f32.vlgmr.msrb.gmra.mxu2 %v8371_v53  ;;  %v3967_v53 = vld [vmem:[#allocation2 + $0xb58] sm:$0xff] }
 0xd69   :  { %4828 = vmatpush.msrb.mxu3 %v4103_v15  ;;  %4847 = vmatpush.msrb.mxu2 %v4239_v31  ;;  %v4343_v24 = vld [vmem:[#allocation2 + $0x1718] sm:$0xff] }
 0xd6a   :  { %4742 = vmatpush.msrb.mxu1 %v4118_v34  ;;  %4799 = vmatpush.msra.mxu0 %v3759_v13  ;;  %v3927_v45 = vld [vmem:[#allocation2 + $0xa18] sm:$0xff] }
 0xd6b   :  { %4663 = vmatmul.f32.vlgmr.msra.gmra.mxu1 %v8374_v1  ;;  %4829 = vmatpush.msrb.mxu3 %v4095_v23  ;;  %v4071_v1 = vld [vmem:[#allocation2 + $0xe98] sm:$0xff] }
 0xd6c   :  { %4807 = vmatpush.msra.mxu1 %v3983_v4  ;;  %4848 = vmatpush.msrb.mxu2 %v4231_v63  ;;  %v4039_v10 = vld [vmem:[#allocation2 + $0xd98] sm:$0xff]  ;;  %v3856_v63 = vld [vmem:[#allocation2 + $0x7e0] sm:$0xff] }
 0xd6d   :  { %4800 = vmatpush.msra.mxu0 %v3751_v14  ;;  %4830 = vmatpush.msrb.mxu3 %v4087_v55  ;;  %v4335_v58 = vld [vmem:[#allocation2 + $0x16d8] sm:$0xff] }
 0xd6e   :  { %4808 = vmatpush.msra.mxu1 %v3975_v18  ;;  %4849 = vmatpush.msrb.mxu2 %v4223_v49  ;;  %v3919_v61 = vld [vmem:[#allocation2 + $0x9d8] sm:$0xff] }
 0xd6f   :  { %4801 = vmatpush.msra.mxu0 %v3743_v35  ;;  %4763 = vmatmul.f32.vlgmr.msra.gmra.mxu3 %v8377_v8  ;;  %v3943_v8 = vld [vmem:[#allocation2 + $0xa98] sm:$0xff]  ;;  %v3848_v35 = vld [vmem:[#allocation2 + $0x7a0] sm:$0xff] }
 0xd70   :  { %4809 = vmatpush.msra.mxu1 %v3967_v53  ;;  %4831 = vmatpush.msrb.mxu3 %v4079_v30  ;;  %v4031_v12 = vld [vmem:[#allocation2 + $0xd58] sm:$0xff]  ;;  %v3984_v53 = vld [vmem:[#allocation2 + $0xbe0] sm:$0xff] }
 0xd71   :  { %4850 = vmatpush.msrb.mxu2 %v4215_v52  ;;  %4802 = vmatpush.msra.mxu0 %v3735_v43  ;;  %v4167_v44 = vld [vmem:[#allocation2 + $0x1198] sm:$0xff] }
 0xd72   :  { %4723 = vmatmul.f32.vlgmr.msrb.gmra.mxu0 %v8380_v39  ;;  %4810 = vmatpush.msra.mxu1 %v3959_v46  ;;  %v4047_v39 = vld [vmem:[#allocation2 + $0xdd8] sm:$0xff]  ;;  %v3728_v46 = vld [vmem:[#allocation2 + $0x3e0] sm:$0xff] }
 0xd73   :  { %4832 = vmatpush.msrb.mxu3 %v4071_v1  ;;  %4851 = vmatpush.msrb.mxu2 %v4207_v47  ;;  %v4327_v3 = vld [vmem:[#allocation2 + $0x1698] sm:$0xff] }
 0xd74   :  { %4867 = vmatpush.msrb.mxu0 %v4367_v56  ;;  %4743 = vmatmul.f32.vlgmr.msrb.gmra.mxu1 %v8382_v48  ;;  %v4175_v48 = vld [vmem:[#allocation2 + $0x11d8] sm:$0xff]  ;;  %v3840_v56 = vld [vmem:[#allocation2 + $0x760] sm:$0xff] }
 0xd75   :  { %4811 = vmatpush.msra.mxu1 %v3951_v32  ;;  %4833 = vmatpush.msrb.mxu3 %v4063_v9  ;;  %v3911_v59 = vld [vmem:[#allocation2 + $0x998] sm:$0xff]  ;;  %v3976_v32 = vld [vmem:[#allocation2 + $0xba0] sm:$0xff] }
 0xd76   :  { %4852 = vmatpush.msrb.mxu2 %v4199_v0  ;;  %4868 = vmatpush.msrb.mxu0 %v4359_v33  ;;  %v4023_v42 = vld [vmem:[#allocation2 + $0xd18] sm:$0xff]  ;;  %v3720_v33 = vld [vmem:[#allocation2 + $0x3a0] sm:$0xff] }
 0xd77   :  { %4812 = vmatpush.msra.mxu1 %v3943_v8  ;;  %4834 = vmatpush.msrb.mxu3 %v4055_v57  ;;  %v4159_v26 = vld [vmem:[#allocation2 + $0x1158] sm:$0xff] }
 0xd78   :  { %4853 = vmatpush.msrb.mxu2 %v4191_v36  ;;  %4869 = vmatpush.msrb.mxu0 %v4351_v60  ;;  %v4319_v6 = vld [vmem:[#allocation2 + $0x1658] sm:$0xff]  ;;  %v3832_v36 = vld [vmem:[#allocation2 + $0x720] sm:$0xff] }
 0xd79   :  { %4813 = vmatpush.msra.mxu1 %v3935_v11  ;;  %4835 = vmatpush.msrb.mxu3 %v4047_v39  ;;  %v3903_v7 = vld [vmem:[#allocation2 + $0x958] sm:$0xff]  ;;  %v3968_v60 = vld [vmem:[#allocation2 + $0xb60] sm:$0xff] }
 0xd7a   :  { %4854 = vmatpush.msrb.mxu2 %v4183_v51  ;;  %4870 = vmatpush.msrb.mxu0 %v4343_v24  ;;  %v4015_v62 = vld [vmem:[#allocation2 + $0xcd8] sm:$0xff]  ;;  %v3712_v51 = vld [vmem:[#allocation2 + $0x360] sm:$0xff] }
 0xd7b   :  { %4814 = vmatpush.msra.mxu1 %v3927_v45  ;;  %4836 = vmatpush.msrb.mxu3 %v4039_v10  ;;  %v4151_v37 = vld [vmem:[#allocation2 + $0x1118] sm:$0xff]  ;;  %v3824_v24 = vld [vmem:[#allocation2 + $0x6e0] sm:$0xff] }
 0xd7c   :  { %4855 = vmatpush.msrb.mxu2 %v4175_v48  ;;  %4871 = vmatpush.msrb.mxu0 %v4335_v58  ;;  %v4311_v41 = vld [vmem:[#allocation2 + $0x1618] sm:$0xff]  ;;  %v3960_v45 = vld [vmem:[#allocation2 + $0xb20] sm:$0xff]  ;;  %v8406_v48 = vld.sshfl [vmem:[#allocation1 + $0x18] sm:$0xff pattern:$0x73625140] }
 0xd7d   :  { %4815 = vmatpush.msra.mxu1 %v3919_v61  ;;  %4837 = vmatpush.msrb.mxu3 %v4031_v12  ;;  %v3895_v17 = vld [vmem:[#allocation2 + $0x918] sm:$0xff]  ;;  %v3704_v58 = vld [vmem:[#allocation2 + $0x320] sm:$0xff] }
 0xd7e   :  { %4856 = vmatpush.msrb.mxu2 %v4167_v44  ;;  %4872 = vmatpush.msrb.mxu0 %v4327_v3  ;;  %v4007_v54 = vld [vmem:[#allocation2 + $0xc98] sm:$0xff]  ;;  %v3816_v61 = vld [vmem:[#allocation2 + $0x6a0] sm:$0xff] }
 0xd7f   :  { %4816 = vmatpush.msra.mxu1 %v3911_v59  ;;  %4838 = vmatpush.msrb.mxu3 %v4023_v42  ;;  %v4143_v25 = vld [vmem:[#allocation2 + $0x10d8] sm:$0xff]  ;;  %v3952_v12 = vld [vmem:[#allocation2 + $0xae0] sm:$0xff] }
 0xd80   :  { %4857 = vmatpush.msrb.mxu2 %v4159_v26  ;;  %4873 = vmatpush.msrb.mxu0 %v4319_v6  ;;  %v4303_v19 = vld [vmem:[#allocation2 + $0x15d8] sm:$0xff]  ;;  %v4112_v44 = vld [vmem:[#allocation2 + $0xfe0] sm:$0xff] }
 0xd81   :  { %4817 = vmatpush.msra.mxu1 %v3903_v7  ;;  %4839 = vmatpush.msrb.mxu3 %v4015_v62  ;;  %v3887_v38 = vld [vmem:[#allocation2 + $0x8d8] sm:$0xff]  ;;  %v4424_v21 = vpop.f32.mrf.mxu1  ;;  %v8409_v3 = vld.sshfl [vmem:[#allocation1 + $0x8] sm:$0xff pattern:$0x73625140] }
 0xd82   :  { %4858 = vmatpush.msrb.mxu2 %v4151_v37  ;;  %4874 = vmatpush.msrb.mxu0 %v4311_v41  ;;  %v3999_v40 = vld [vmem:[#allocation2 + $0xc58] sm:$0xff]  ;;  %v4425_v16 = vadd.f32 %v4424_v21, %v4374_v20  ;;  %v3808_v42 = vld [vmem:[#allocation2 + $0x660] sm:$0xff]  ;;  %v8415_v37 = vld.sshfl [vmem:[#allocation1 + $0x10] sm:$0xff pattern:$0x73625140] }
 0xd83   :  { %4818 = vmatpush.msra.mxu1 %v3895_v17  ;;  %4840 = vmatpush.msrb.mxu3 %v4007_v54  ;;  %v4135_v5 = vld [vmem:[#allocation2 + $0x1098] sm:$0xff]  ;;  %v4464_v4 = vpop.f32.mrf.mxu2  ;;  %v3696_v26 = vld [vmem:[#allocation2 + $0x2e0] sm:$0xff] }
 0xd84   :  { %v4444_v28 = vpop.f32.mrf.mxu3  ;;  %v4295_v27 = vld [vmem:[#allocation2 + $0x1598] sm:$0xff]  ;;  %4859 = vmatpush.msrb.mxu2 %v4143_v25  ;;  %4875 = vmatpush.msrb.mxu0 %v4303_v19  ;;  %v3944_v6 = vld [vmem:[#allocation2 + $0xaa0] sm:$0xff] }
 0xd85   :  { %v3879_v15 = vld [vmem:[#allocation2 + $0x898] sm:$0xff]  ;;  %4819 = vmatpush.msra.mxu1 %v3887_v38  ;;  %4841 = vmatpush.msrb.mxu3 %v3999_v40  ;;  %v4445_v23 = vadd.f32 %v4444_v28, %v4425_v16  ;;  %v4104_v7 = vld [vmem:[#allocation2 + $0xfa0] sm:$0xff] }
 0xd86   :  { %v3991_v31 = vld [vmem:[#allocation2 + $0xc18] sm:$0xff]  ;;  %4860 = vmatpush.msrb.mxu2 %v4135_v5  ;;  %4876 = vmatpush.msrb.mxu0 %v4295_v27  ;;  %v3800_v62 = vld [vmem:[#allocation2 + $0x620] sm:$0xff] }
 0xd87   :  { %v4127_v34 = vld [vmem:[#allocation2 + $0x1058] sm:$0xff]  ;;  %4820 = vmatpush.msra.mxu1 %v3879_v15  ;;  %4842 = vmatpush.msrb.mxu3 %v3991_v31  ;;  %v4465_v49 = vadd.f32 %v4464_v4, %v4445_v23  ;;  %v3688_v41 = vld [vmem:[#allocation2 + $0x2a0] sm:$0xff] }
 0xd88   :  { %v4287_v13 = vld [vmem:[#allocation2 + $0x1558] sm:$0xff]  ;;  %4861 = vmatpush.msrb.mxu2 %v4127_v34  ;;  %v4484_v52 = vpop.f32.mrf.mxu0  ;;  %4843 = vmatmul.f32.vlgmr.msrb.gmra.mxu3 %v8406_v48  ;;  %v3936_v20 = vld [vmem:[#allocation2 + $0xa60] sm:$0xff] }
 0xd89   :  { %v3871_v14 = vld [vmem:[#allocation2 + $0x858] sm:$0xff]  ;;  %4877 = vmatpush.msrb.mxu0 %v4287_v13  ;;  %4907 = vmatpush.msra.mxu3 %v3856_v63  ;;  %v4485_v1 = vadd.f32 %v4484_v52, %v4465_v49  ;;  %v4096_v17 = vld [vmem:[#allocation2 + $0xf60] sm:$0xff] }
 0xd8a   :  { %v4119_v55 = vld [vmem:[#allocation2 + $0x1018] sm:$0xff]  ;;  %4821 = vmatpush.msra.mxu1 %v3871_v14  ;;  %4803 = vmatmul.f32.vlgmr.msra.gmra.mxu0 %v8409_v3  ;;  %v3792_v54 = vld [vmem:[#allocation2 + $0x5e0] sm:$0xff] }
 0xd8b   :  { %v4279_v18 = vld [vmem:[#allocation2 + $0x1518] sm:$0xff]  ;;  %4862 = vmatpush.msrb.mxu2 %v4119_v55  ;;  %4908 = vmatpush.msra.mxu3 %v3848_v35  ;;  %v4504_v9 = vpop.f32.mrf.mxu1  ;;  %v3680_v25 = vld [vmem:[#allocation2 + $0x260] sm:$0xff] }
 0xd8c   :  { %v3863_v30 = vld [vmem:[#allocation2 + $0x818] sm:$0xff]  ;;  %4878 = vmatpush.msrb.mxu0 %v4279_v18  ;;  %v4505_v8 = vadd.f32 %v4504_v9, %v4485_v1  ;;  %v4524_v57 = vpop.f32.mrf.mxu3  ;;  %v3928_v19 = vld [vmem:[#allocation2 + $0xa20] sm:$0xff]  ;;  %v4375_v1 = vperm.slane %v8398_v22, 1 }
 0xd8d   :  { %v4271_v43 = vld [vmem:[#allocation2 + $0x14d8] sm:$0xff]  ;;  %4822 = vmatpush.msra.mxu1 %v3863_v30  ;;  %4909 = vmatpush.msra.mxu3 %v3840_v56  ;;  %v4088_v38 = vld [vmem:[#allocation2 + $0xf20] sm:$0xff] }
 0xd8e   :  { %v8401_v47 = vld.sshfl [vmem:[#allocation1] sm:$0xff pattern:$0x73625140]  ;;  %4879 = vmatpush.msrb.mxu0 %v4271_v43  ;;  %v8404_v39 = vadd.f32 %v4524_v57, %v4505_v8  ;;  %4823 = vmatmul.f32.vlgmr.msra.gmra.mxu1 %v8415_v37  ;;  %v3784_v40 = vld [vmem:[#allocation2 + $0x5a0] sm:$0xff] }
 0xd8f   :  { %4783 = vmatmul.f32.vlgmr.msra.gmra.mxu2 %v8401_v47  ;;  %v4263_v0 = vld [vmem:[#allocation2 + $0x1498] sm:$0xff]  ;;  %4887 = vmatpush.msrb.mxu1 %v3728_v46  ;;  %v3672_v21 = vld [vmem:[#allocation2 + $0x220] sm:$0xff] }
 0xd90   :  { %4927 = vmatpush.msra.mxu2 %v3984_v53  ;;  %v4255_v11 = vld [vmem:[#allocation2 + $0x1458] sm:$0xff]  ;;  %4880 = vmatpush.msrb.mxu0 %v4263_v0  ;;  %v3920_v28 = vld [vmem:[#allocation2 + $0x9e0] sm:$0xff] }
 0xd91   :  { %4888 = vmatpush.msrb.mxu1 %v3720_v33  ;;  %4910 = vmatpush.msra.mxu3 %v3832_v36  ;;  %v4247_v10 = vld [vmem:[#allocation2 + $0x1418] sm:$0xff]  ;;  %v4080_v5 = vld [vmem:[#allocation2 + $0xee0] sm:$0xff] }
 0xd92   :  { %4928 = vmatpush.msra.mxu2 %v3976_v32  ;;  %4881 = vmatpush.msrb.mxu0 %v4255_v11  ;;  %v8412_v59 = vld.sshfl [vmem:[#allocation1 + $0x20] sm:$0xff pattern:$0x73625140]  ;;  %v3664_v27 = vld [vmem:[#allocation2 + $0x1e0] sm:$0xff] }
 0xd93   :  { %4889 = vmatpush.msrb.mxu1 %v3712_v51  ;;  %4911 = vmatpush.msra.mxu3 %v3824_v24  ;;  %v3776_v16 = vld [vmem:[#allocation2 + $0x560] sm:$0xff] }
 0xd94   :  { %4929 = vmatpush.msra.mxu2 %v3968_v60  ;;  %4882 = vmatpush.msrb.mxu0 %v4247_v10  ;;  %v8418_v15 = vld.sshfl [vmem:[#allocation1 + $0x28] sm:$0xff pattern:$0x73625140] }
 0xd95   :  { %4890 = vmatpush.msrb.mxu1 %v3704_v58  ;;  %4912 = vmatpush.msra.mxu3 %v3816_v61  ;;  %v3912_v31 = vld [vmem:[#allocation2 + $0x9a0] sm:$0xff] }
 0xd96   :  { %4930 = vmatpush.msra.mxu2 %v3960_v45  ;;  %4947 = vmatpush.msra.mxu0 %v4112_v44  ;;  %v4072_v34 = vld [vmem:[#allocation2 + $0xea0] sm:$0xff]  ;;  %v3729_v45 = vld [vmem:[#allocation2 + $0x3e8] sm:$0xff] }
 0xd97   :  { %4863 = vmatmul.f32.vlgmr.msrb.gmra.mxu2 %v8412_v59  ;;  %4913 = vmatpush.msra.mxu3 %v3808_v42  ;;  %v3656_v13 = vld [vmem:[#allocation2 + $0x1a0] sm:$0xff] }
 0xd98   :  { %4931 = vmatpush.msra.mxu2 %v3952_v12  ;;  %4891 = vmatpush.msrb.mxu1 %v3696_v26  ;;  %v3768_v23 = vld [vmem:[#allocation2 + $0x520] sm:$0xff]  ;;  %v3721_v26 = vld [vmem:[#allocation2 + $0x3a8] sm:$0xff] }
 0xd99   :  { %4948 = vmatpush.msra.mxu0 %v4104_v7  ;;  %4914 = vmatpush.msra.mxu3 %v3800_v62  ;;  %v3904_v4 = vld [vmem:[#allocation2 + $0x960] sm:$0xff] }
 0xd9a   :  { %4932 = vmatpush.msra.mxu2 %v3944_v6  ;;  %4892 = vmatpush.msrb.mxu1 %v3688_v41  ;;  %v4064_v63 = vld [vmem:[#allocation2 + $0xe60] sm:$0xff] }
 0xd9b   :  { %4949 = vmatpush.msra.mxu0 %v4096_v17  ;;  %4915 = vmatpush.msra.mxu3 %v3792_v54  ;;  %v3648_v14 = vld [vmem:[#allocation2 + $0x160] sm:$0xff]  ;;  %v3713_v54 = vld [vmem:[#allocation2 + $0x368] sm:$0xff] }
 0xd9c   :  { %4933 = vmatpush.msra.mxu2 %v3936_v20  ;;  %4893 = vmatpush.msrb.mxu1 %v3680_v25  ;;  %v3760_v55 = vld [vmem:[#allocation2 + $0x4e0] sm:$0xff] }
 0xd9d   :  { %4950 = vmatpush.msra.mxu0 %v4088_v38  ;;  %4916 = vmatpush.msra.mxu3 %v3784_v40  ;;  %v3896_v18 = vld [vmem:[#allocation2 + $0x920] sm:$0xff] }
 0xd9e   :  { %4934 = vmatpush.msra.mxu2 %v3928_v19  ;;  %4883 = vmatmul.f32.vlgmr.msrb.gmra.mxu0 %v8418_v15  ;;  %v4056_v49 = vld [vmem:[#allocation2 + $0xe20] sm:$0xff] }
 0xd9f   :  { %4894 = vmatpush.msrb.mxu1 %v3672_v21  ;;  %4951 = vmatpush.msra.mxu0 %v4080_v5  ;;  %v3640_v35 = vld [vmem:[#allocation2 + $0x120] sm:$0xff] }
 0xda0   :  { %4935 = vmatpush.msra.mxu2 %v3920_v28  ;;  %4917 = vmatpush.msra.mxu3 %v3776_v16  ;;  %v3752_v53 = vld [vmem:[#allocation2 + $0x4a0] sm:$0xff]  ;;  %v3705_v28 = vld [vmem:[#allocation2 + $0x328] sm:$0xff] }
 0xda1   :  { %4895 = vmatpush.msrb.mxu1 %v3664_v27  ;;  %4952 = vmatpush.msra.mxu0 %v4072_v34  ;;  %v3888_v30 = vld [vmem:[#allocation2 + $0x8e0] sm:$0xff]  ;;  %v3697_v34 = vld [vmem:[#allocation2 + $0x2e8] sm:$0xff] }
 0xda2   :  { %4936 = vmatpush.msra.mxu2 %v3912_v31  ;;  %4918 = vmatpush.msra.mxu3 %v3768_v23  ;;  %v4048_v52 = vld [vmem:[#allocation2 + $0xde0] sm:$0xff] }
 0xda3   :  { %4896 = vmatpush.msrb.mxu1 %v3656_v13  ;;  %4953 = vmatpush.msra.mxu0 %v4064_v63  ;;  %v3632_v43 = vld [vmem:[#allocation2 + $0xe0] sm:$0xff]  ;;  %v3857_v13 = vld [vmem:[#allocation2 + $0x7e8] sm:$0xff] }
 0xda4   :  { %4937 = vmatpush.msra.mxu2 %v3904_v4  ;;  %4919 = vmatpush.msra.mxu3 %v3760_v55  ;;  %v3744_v46 = vld [vmem:[#allocation2 + $0x460] sm:$0xff]  ;;  %v3849_v55 = vld [vmem:[#allocation2 + $0x7a8] sm:$0xff] }
 0xda5   :  { %4897 = vmatpush.msrb.mxu1 %v3648_v14  ;;  %4954 = vmatpush.msra.mxu0 %v4056_v49  ;;  %v3880_v56 = vld [vmem:[#allocation2 + $0x8a0] sm:$0xff]  ;;  %v3689_v14 = vld [vmem:[#allocation2 + $0x2a8] sm:$0xff] }
 0xda6   :  { %4938 = vmatpush.msra.mxu2 %v3896_v18  ;;  %4920 = vmatpush.msra.mxu3 %v3752_v53  ;;  %v4040_v32 = vld [vmem:[#allocation2 + $0xda0] sm:$0xff]  ;;  %v3681_v53 = vld [vmem:[#allocation2 + $0x268] sm:$0xff] }
 0xda7   :  { %4898 = vmatpush.msrb.mxu1 %v3640_v35  ;;  %4955 = vmatpush.msra.mxu0 %v4048_v52  ;;  %v3624_v9 = vld [vmem:[#allocation2 + $0xa0] sm:$0xff] }
 0xda8   :  { %4939 = vmatpush.msra.mxu2 %v3888_v30  ;;  %v3736_v0 = vld [vmem:[#allocation2 + $0x420] sm:$0xff]  ;;  %4921 = vmatpush.msra.mxu3 %v3744_v46  ;;  %v4544_v57 = vpop.f32.mrf.mxu2  ;;  %v3841_v30 = vld [vmem:[#allocation2 + $0x768] sm:$0xff] }
 0xda9   :  { %4899 = vmatpush.msrb.mxu1 %v3632_v43  ;;  %v3872_v33 = vld [vmem:[#allocation2 + $0x860] sm:$0xff]  ;;  %4956 = vmatpush.msra.mxu0 %v4040_v32  ;;  %v4545_v11 = vadd.f32 %v4544_v57, %v4375_v1  ;;  %v3673_v46 = vld [vmem:[#allocation2 + $0x228] sm:$0xff] }
 0xdaa   :  { %v4032_v8 = vld [vmem:[#allocation2 + $0xd60] sm:$0xff]  ;;  %4940 = vmatpush.msra.mxu2 %v3880_v56  ;;  %4922 = vmatpush.msra.mxu3 %v3736_v0  ;;  %v3833_v1 = vld [vmem:[#allocation2 + $0x728] sm:$0xff] }
 0xdab   :  { %v4368_v36 = vld [vmem:[#allocation2 + $0x17e0] sm:$0xff]  ;;  %4900 = vmatpush.msrb.mxu1 %v3624_v9  ;;  %4957 = vmatpush.msra.mxu0 %v4032_v8  ;;  %v4564_v10 = vpop.f32.mrf.mxu0  ;;  %v3665_v9 = vld [vmem:[#allocation2 + $0x1e8] sm:$0xff] }
 0xdac   :  { %v3616_v60 = vld [vmem:[#allocation2 + $0x60] sm:$0xff]  ;;  %4941 = vmatpush.msra.mxu2 %v3872_v33  ;;  %4987 = vmatpush.msrb.mxu3 %v4368_v36  ;;  %v4565_v12 = vadd.f32 %v4564_v10, %v4545_v11  ;;  %v3825_v0 = vld [vmem:[#allocation2 + $0x6e8] sm:$0xff] }
 0xdad   :  { %v3864_v22 = vld [vmem:[#allocation2 + $0x820] sm:$0xff]  ;;  %4901 = vmatpush.msrb.mxu1 %v3616_v60  ;;  %v3657_v57 = vld [vmem:[#allocation2 + $0x1a8] sm:$0xff]  ;;  %4923 = vmatmul.f32.vlgmr.msra.gmra.mxu3 %v8409_v3 }
 0xdae   :  { %v4024_v51 = vld [vmem:[#allocation2 + $0xd20] sm:$0xff]  ;;  %4942 = vmatpush.msra.mxu2 %v3864_v22  ;;  %v4584_v7 = vpop.f32.mrf.mxu1  ;;  %v4604_v62 = vpop.f32.mrf.mxu3  ;;  %v3817_v36 = vld [vmem:[#allocation2 + $0x6a8] sm:$0xff] }
 0xdaf   :  { %v4360_v24 = vld [vmem:[#allocation2 + $0x17a0] sm:$0xff]  ;;  %4958 = vmatpush.msra.mxu0 %v4024_v51  ;;  %v4585_v17 = vadd.f32 %v4584_v7, %v4565_v12  ;;  %v3649_v22 = vld [vmem:[#allocation2 + $0x168] sm:$0xff]  ;;  %4943 = vmatmul.f32.vlgmr.msra.gmra.mxu2 %v8415_v37 }
 0xdb0   :  { %v3608_v58 = vld [vmem:[#allocation2 + $0x20] sm:$0xff]  ;;  %4988 = vmatpush.msrb.mxu3 %v4360_v24  ;;  %5007 = vmatpush.msrb.mxu2 %v3729_v45  ;;  %v3809_v51 = vld [vmem:[#allocation2 + $0x668] sm:$0xff] }
 0xdb1   :  { %v4016_v61 = vld [vmem:[#allocation2 + $0xce0] sm:$0xff]  ;;  %4902 = vmatpush.msrb.mxu1 %v3608_v58  ;;  %v4605_v40 = vadd.f32 %v4604_v62, %v4585_v17  ;;  %v4624_v21 = vpop.f32.mrf.mxu2  ;;  %v3641_v10 = vld [vmem:[#allocation2 + $0x128] sm:$0xff] }
 0xdb2   :  { %v4240_v44 = vld [vmem:[#allocation2 + $0x13e0] sm:$0xff]  ;;  %4959 = vmatpush.msra.mxu0 %v4016_v61  ;;  %5008 = vmatpush.msrb.mxu2 %v3721_v26  ;;  %v3801_v58 = vld [vmem:[#allocation2 + $0x628] sm:$0xff] }
 0xdb3   :  { %v4352_v42 = vld [vmem:[#allocation2 + $0x1760] sm:$0xff]  ;;  %4967 = vmatpush.msra.mxu1 %v4240_v44  ;;  %v4625_v31 = vadd.f32 %v4624_v21, %v4605_v40  ;;  %v3633_v44 = vld [vmem:[#allocation2 + $0xe8] sm:$0xff] }
 0xdb4   :  { %v4008_v6 = vld [vmem:[#allocation2 + $0xca0] sm:$0xff]  ;;  %4989 = vmatpush.msrb.mxu3 %v4352_v42  ;;  %5009 = vmatpush.msrb.mxu2 %v3713_v54  ;;  %v3793_v42 = vld [vmem:[#allocation2 + $0x5e8] sm:$0xff] }
 0xdb5   :  { %v4232_v41 = vld [vmem:[#allocation2 + $0x13a0] sm:$0xff]  ;;  %4960 = vmatpush.msra.mxu0 %v4008_v6  ;;  %v4644_v63 = vpop.f32.mrf.mxu0  ;;  %v3625_v7 = vld [vmem:[#allocation2 + $0xa8] sm:$0xff]  ;;  %4903 = vmatmul.f32.vlgmr.msrb.gmra.mxu1 %v8401_v47 }
 0xdb6   :  { %v4344_v20 = vld [vmem:[#allocation2 + $0x1720] sm:$0xff]  ;;  %4968 = vmatpush.msra.mxu1 %v4232_v41  ;;  %5010 = vmatpush.msrb.mxu2 %v3705_v28  ;;  %v8422_v18 = vadd.f32 %v4644_v63, %v4625_v31  ;;  %v3785_v62 = vld [vmem:[#allocation2 + $0x5a8] sm:$0xff] }
 0xdb7   :  { %v4000_v25 = vld [vmem:[#allocation2 + $0xc60] sm:$0xff]  ;;  %4990 = vmatpush.msrb.mxu3 %v4344_v20  ;;  %v3617_v17 = vld [vmem:[#allocation2 + $0x68] sm:$0xff] }
 0xdb8   :  { %v4224_v19 = vld [vmem:[#allocation2 + $0x1360] sm:$0xff]  ;;  %4961 = vmatpush.msra.mxu0 %v4000_v25  ;;  %5011 = vmatpush.msrb.mxu2 %v3697_v34  ;;  %v3777_v54 = vld [vmem:[#allocation2 + $0x568] sm:$0xff] }
 0xdb9   :  { %v4336_v38 = vld [vmem:[#allocation2 + $0x16e0] sm:$0xff]  ;;  %4969 = vmatpush.msra.mxu1 %v4224_v19  ;;  %v4113_v25 = vld [vmem:[#allocation2 + $0xfe8] sm:$0xff] }
 0xdba   :  { %v3992_v5 = vld [vmem:[#allocation2 + $0xc20] sm:$0xff]  ;;  %4991 = vmatpush.msrb.mxu3 %v4336_v38  ;;  %5012 = vmatpush.msrb.mxu2 %v3689_v14  ;;  %v3609_v38 = vld [vmem:[#allocation2 + $0x28] sm:$0xff] }
 0xdbb   :  { %v4216_v27 = vld [vmem:[#allocation2 + $0x1320] sm:$0xff]  ;;  %4962 = vmatpush.msra.mxu0 %v3992_v5  ;;  %v3769_v40 = vld [vmem:[#allocation2 + $0x528] sm:$0xff] }
 0xdbc   :  { %v4328_v16 = vld [vmem:[#allocation2 + $0x16a0] sm:$0xff]  ;;  %4970 = vmatpush.msra.mxu1 %v4216_v27  ;;  %5013 = vmatpush.msrb.mxu2 %v3681_v53  ;;  %v4105_v21 = vld [vmem:[#allocation2 + $0xfa8] sm:$0xff] }
 0xdbd   :  { %v4208_v23 = vld [vmem:[#allocation2 + $0x12e0] sm:$0xff]  ;;  %4992 = vmatpush.msrb.mxu3 %v4328_v16  ;;  %5027 = vmatpush.msrb.mxu0 %v3857_v13  ;;  %v4241_v28 = vld [vmem:[#allocation2 + $0x13e8] sm:$0xff] }
 0xdbe   :  { %v4320_v4 = vld [vmem:[#allocation2 + $0x1660] sm:$0xff]  ;;  %4971 = vmatpush.msra.mxu1 %v4208_v23  ;;  %5014 = vmatpush.msrb.mxu2 %v3673_v46  ;;  %v3761_v27 = vld [vmem:[#allocation2 + $0x4e8] sm:$0xff] }
 0xdbf   :  { %v4200_v49 = vld [vmem:[#allocation2 + $0x12a0] sm:$0xff]  ;;  %4993 = vmatpush.msrb.mxu3 %v4320_v4  ;;  %5028 = vmatpush.msrb.mxu0 %v3849_v55  ;;  %v3985_v16 = vld [vmem:[#allocation2 + $0xbe8] sm:$0xff] }
 0xdc0   :  { %v4312_v35 = vld [vmem:[#allocation2 + $0x1620] sm:$0xff]  ;;  %4972 = vmatpush.msra.mxu1 %v4200_v49  ;;  %5015 = vmatpush.msrb.mxu2 %v3665_v9  ;;  %v4097_v31 = vld [vmem:[#allocation2 + $0xf68] sm:$0xff] }
 0xdc1   :  { %v4192_v52 = vld [vmem:[#allocation2 + $0x1260] sm:$0xff]  ;;  %4994 = vmatpush.msrb.mxu3 %v4312_v35  ;;  %5029 = vmatpush.msrb.mxu0 %v3841_v30  ;;  %v4233_v34 = vld [vmem:[#allocation2 + $0x13a8] sm:$0xff] }
 0xdc2   :  { %v4304_v43 = vld [vmem:[#allocation2 + $0x15e0] sm:$0xff]  ;;  %4973 = vmatpush.msra.mxu1 %v4192_v52  ;;  %5016 = vmatpush.msrb.mxu2 %v3657_v57  ;;  %v3753_v13 = vld [vmem:[#allocation2 + $0x4a8] sm:$0xff] }
 0xdc3   :  { %v4184_v56 = vld [vmem:[#allocation2 + $0x1220] sm:$0xff]  ;;  %4995 = vmatpush.msrb.mxu3 %v4304_v43  ;;  %5030 = vmatpush.msrb.mxu0 %v3833_v1  ;;  %v3977_v23 = vld [vmem:[#allocation2 + $0xba8] sm:$0xff] }
 0xdc4   :  { %v4296_v32 = vld [vmem:[#allocation2 + $0x15a0] sm:$0xff]  ;;  %4974 = vmatpush.msra.mxu1 %v4184_v56  ;;  %5017 = vmatpush.msrb.mxu2 %v3649_v22  ;;  %v4089_v4 = vld [vmem:[#allocation2 + $0xf28] sm:$0xff] }
 0xdc5   :  { %v4176_v33 = vld [vmem:[#allocation2 + $0x11e0] sm:$0xff]  ;;  %4996 = vmatpush.msrb.mxu3 %v4296_v32  ;;  %5031 = vmatpush.msrb.mxu0 %v3825_v0  ;;  %v4225_v63 = vld [vmem:[#allocation2 + $0x1368] sm:$0xff] }
 0xdc6   :  { %v4288_v8 = vld [vmem:[#allocation2 + $0x1560] sm:$0xff]  ;;  %4975 = vmatpush.msra.mxu1 %v4176_v33  ;;  %5018 = vmatpush.msrb.mxu2 %v3641_v10  ;;  %v3745_v14 = vld [vmem:[#allocation2 + $0x468] sm:$0xff] }
 0xdc7   :  { %v4168_v60 = vld [vmem:[#allocation2 + $0x11a0] sm:$0xff]  ;;  %4997 = vmatpush.msrb.mxu3 %v4288_v8  ;;  %5032 = vmatpush.msrb.mxu0 %v3817_v36  ;;  %v3969_v55 = vld [vmem:[#allocation2 + $0xb68] sm:$0xff] }
 0xdc8   :  { %v4280_v11 = vld [vmem:[#allocation2 + $0x1520] sm:$0xff]  ;;  %4976 = vmatpush.msra.mxu1 %v4168_v60  ;;  %5019 = vmatpush.msrb.mxu2 %v3633_v44  ;;  %v4081_v49 = vld [vmem:[#allocation2 + $0xee8] sm:$0xff] }
 0xdc9   :  { %v4160_v24 = vld [vmem:[#allocation2 + $0x1160] sm:$0xff]  ;;  %4998 = vmatpush.msrb.mxu3 %v4280_v11  ;;  %5033 = vmatpush.msrb.mxu0 %v3809_v51  ;;  %v4217_v35 = vld [vmem:[#allocation2 + $0x1328] sm:$0xff] }
 0xdca   :  { %v4272_v45 = vld [vmem:[#allocation2 + $0x14e0] sm:$0xff]  ;;  %4977 = vmatpush.msra.mxu1 %v4160_v24  ;;  %5020 = vmatpush.msrb.mxu2 %v3625_v7  ;;  %v3737_v53 = vld [vmem:[#allocation2 + $0x428] sm:$0xff] }
 0xdcb   :  { %v4152_v61 = vld [vmem:[#allocation2 + $0x1120] sm:$0xff]  ;;  %4999 = vmatpush.msrb.mxu3 %v4272_v45  ;;  %5034 = vmatpush.msrb.mxu0 %v3801_v58  ;;  %v3961_v30 = vld [vmem:[#allocation2 + $0xb28] sm:$0xff] }
 0xdcc   :  { %v4264_v12 = vld [vmem:[#allocation2 + $0x14a0] sm:$0xff]  ;;  %4978 = vmatpush.msra.mxu1 %v4152_v61  ;;  %5021 = vmatpush.msrb.mxu2 %v3617_v17  ;;  %v4073_v52 = vld [vmem:[#allocation2 + $0xea8] sm:$0xff] }
 0xdcd   :  { %v4256_v26 = vld [vmem:[#allocation2 + $0x1460] sm:$0xff]  ;;  %5000 = vmatpush.msrb.mxu3 %v4264_v12  ;;  %5035 = vmatpush.msrb.mxu0 %v3793_v42  ;;  %v4209_v43 = vld [vmem:[#allocation2 + $0x12e8] sm:$0xff] }
 0xdce   :  { %v4144_v6 = vld [vmem:[#allocation2 + $0x10e0] sm:$0xff]  ;;  %5022 = vmatpush.msrb.mxu2 %v3609_v38  ;;  %4963 = vmatmul.f32.vlgmr.msra.gmra.mxu0 %v8406_v48  ;;  %v4369_v46 = vld [vmem:[#allocation2 + $0x17e8] sm:$0xff] }
 0xdcf   :  { %v4248_v41 = vld [vmem:[#allocation2 + $0x1420] sm:$0xff]  ;;  %5001 = vmatpush.msrb.mxu3 %v4256_v26  ;;  %4979 = vmatpush.msra.mxu1 %v4144_v6  ;;  %v3953_v1 = vld [vmem:[#allocation2 + $0xae8] sm:$0xff] }
 0xdd0   :  { %v4136_v20 = vld [vmem:[#allocation2 + $0x10a0] sm:$0xff]  ;;  %5036 = vmatpush.msrb.mxu0 %v3785_v62  ;;  %5087 = vmatpush.msra.mxu2 %v4241_v28  ;;  %v4065_v56 = vld [vmem:[#allocation2 + $0xe68] sm:$0xff] }
 0xdd1   :  { %5002 = vmatpush.msrb.mxu3 %v4248_v41  ;;  %v4128_v19 = vld [vmem:[#allocation2 + $0x1060] sm:$0xff]  ;;  %4980 = vmatpush.msra.mxu1 %v4136_v20  ;;  %v4201_v32 = vld [vmem:[#allocation2 + $0x12a8] sm:$0xff] }
 0xdd2   :  { %5037 = vmatpush.msrb.mxu0 %v3777_v54  ;;  %5003 = vmatmul.f32.vlgmr.msrb.gmra.mxu3 %v8418_v15  ;;  %v4120_v5 = vld [vmem:[#allocation2 + $0x1020] sm:$0xff]  ;;  %v4361_v9 = vld [vmem:[#allocation2 + $0x17a8] sm:$0xff] }
 0xdd3   :  { %5067 = vmatpush.msra.mxu3 %v4113_v25  ;;  %4981 = vmatpush.msra.mxu1 %v4128_v19  ;;  %v3945_v0 = vld [vmem:[#allocation2 + $0xaa8] sm:$0xff] }
 0xdd4   :  { %5038 = vmatpush.msrb.mxu0 %v3769_v40  ;;  %5088 = vmatpush.msra.mxu2 %v4233_v34  ;;  %v4057_v33 = vld [vmem:[#allocation2 + $0xe28] sm:$0xff] }
 0xdd5   :  { %5068 = vmatpush.msra.mxu3 %v4105_v21  ;;  %4982 = vmatpush.msra.mxu1 %v4120_v5  ;;  %v4193_v8 = vld [vmem:[#allocation2 + $0x1268] sm:$0xff] }
 0xdd6   :  { %5039 = vmatpush.msrb.mxu0 %v3761_v27  ;;  %4983 = vmatmul.f32.vlgmr.msra.gmra.mxu1 %v8412_v59  ;;  %v4353_v57 = vld [vmem:[#allocation2 + $0x1768] sm:$0xff] }
 0xdd7   :  { %5047 = vmatpush.msrb.mxu1 %v3985_v16  ;;  %5069 = vmatpush.msra.mxu3 %v4097_v31  ;;  %v3937_v36 = vld [vmem:[#allocation2 + $0xa68] sm:$0xff] }
 0xdd8   :  { %5040 = vmatpush.msrb.mxu0 %v3753_v13  ;;  %5089 = vmatpush.msra.mxu2 %v4225_v63  ;;  %v4049_v60 = vld [vmem:[#allocation2 + $0xde8] sm:$0xff]  ;;  %v3858_v13 = vld [vmem:[#allocation2 + $0x7f0] sm:$0xff] }
 0xdd9   :  { %5048 = vmatpush.msrb.mxu1 %v3977_v23  ;;  %5070 = vmatpush.msra.mxu3 %v4089_v4  ;;  %v4185_v11 = vld [vmem:[#allocation2 + $0x1228] sm:$0xff]  ;;  %v3850_v63 = vld [vmem:[#allocation2 + $0x7b0] sm:$0xff] }
 0xdda   :  { %5041 = vmatpush.msrb.mxu0 %v3745_v14  ;;  %5090 = vmatpush.msra.mxu2 %v4217_v35  ;;  %v4345_v22 = vld [vmem:[#allocation2 + $0x1728] sm:$0xff]  ;;  %v3986_v14 = vld [vmem:[#allocation2 + $0xbf0] sm:$0xff] }
 0xddb   :  { %5049 = vmatpush.msrb.mxu1 %v3969_v55  ;;  %5071 = vmatpush.msra.mxu3 %v4081_v49  ;;  %v3929_v51 = vld [vmem:[#allocation2 + $0xa28] sm:$0xff]  ;;  %v3842_v35 = vld [vmem:[#allocation2 + $0x770] sm:$0xff] }
 0xddc   :  { %5042 = vmatpush.msrb.mxu0 %v3737_v53  ;;  %5091 = vmatpush.msra.mxu2 %v4209_v43  ;;  %v4041_v24 = vld [vmem:[#allocation2 + $0xda8] sm:$0xff]  ;;  %v3730_v53 = vld [vmem:[#allocation2 + $0x3f0] sm:$0xff] }
 0xddd   :  { %5050 = vmatpush.msrb.mxu1 %v3961_v30  ;;  %5072 = vmatpush.msra.mxu3 %v4073_v52  ;;  %v4177_v45 = vld [vmem:[#allocation2 + $0x11e8] sm:$0xff]  ;;  %v3978_v30 = vld [vmem:[#allocation2 + $0xbb0] sm:$0xff] }
 0xdde   :  { %5107 = vmatpush.msra.mxu0 %v4369_v46  ;;  %5092 = vmatpush.msra.mxu2 %v4201_v32  ;;  %v4337_v10 = vld [vmem:[#allocation2 + $0x16e8] sm:$0xff]  ;;  %v3834_v52 = vld [vmem:[#allocation2 + $0x730] sm:$0xff] }
 0xddf   :  { %5051 = vmatpush.msrb.mxu1 %v3953_v1  ;;  %5073 = vmatpush.msra.mxu3 %v4065_v56  ;;  %v3921_v58 = vld [vmem:[#allocation2 + $0x9e8] sm:$0xff]  ;;  %v3722_v43 = vld [vmem:[#allocation2 + $0x3b0] sm:$0xff] }
 0xde0   :  { %5108 = vmatpush.msra.mxu0 %v4361_v9  ;;  %5093 = vmatpush.msra.mxu2 %v4193_v8  ;;  %v4033_v61 = vld [vmem:[#allocation2 + $0xd68] sm:$0xff]  ;;  %v3970_v46 = vld [vmem:[#allocation2 + $0xb70] sm:$0xff] }
 0xde1   :  { %5052 = vmatpush.msrb.mxu1 %v3945_v0  ;;  %5074 = vmatpush.msra.mxu3 %v4057_v33  ;;  %v4169_v12 = vld [vmem:[#allocation2 + $0x11a8] sm:$0xff]  ;;  %v3962_v56 = vld [vmem:[#allocation2 + $0xb30] sm:$0xff] }
 0xde2   :  { %5109 = vmatpush.msra.mxu0 %v4353_v57  ;;  %5094 = vmatpush.msra.mxu2 %v4185_v11  ;;  %v4329_v44 = vld [vmem:[#allocation2 + $0x16a8] sm:$0xff]  ;;  %v3818_v9 = vld [vmem:[#allocation2 + $0x6b0] sm:$0xff] }
 0xde3   :  { %5053 = vmatpush.msrb.mxu1 %v3937_v36  ;;  %5075 = vmatpush.msra.mxu3 %v4049_v60  ;;  %v3913_v42 = vld [vmem:[#allocation2 + $0x9a8] sm:$0xff]  ;;  %v3706_v0 = vld [vmem:[#allocation2 + $0x330] sm:$0xff] }
 0xde4   :  { %5110 = vmatpush.msra.mxu0 %v4345_v22  ;;  %5095 = vmatpush.msra.mxu2 %v4177_v45  ;;  %v4025_v26 = vld [vmem:[#allocation2 + $0xd28] sm:$0xff]  ;;  %v4114_v33 = vld [vmem:[#allocation2 + $0xff0] sm:$0xff] }
 0xde5   :  { %5054 = vmatpush.msrb.mxu1 %v3929_v51  ;;  %5076 = vmatpush.msra.mxu3 %v4041_v24  ;;  %v4161_v6 = vld [vmem:[#allocation2 + $0x1168] sm:$0xff]  ;;  %v3698_v8 = vld [vmem:[#allocation2 + $0x2f0] sm:$0xff] }
 0xde6   :  { %5111 = vmatpush.msra.mxu0 %v4337_v10  ;;  %v4321_v7 = vld [vmem:[#allocation2 + $0x1668] sm:$0xff]  ;;  %5096 = vmatpush.msra.mxu2 %v4169_v12  ;;  %v3810_v57 = vld [vmem:[#allocation2 + $0x670] sm:$0xff] }
 0xde7   :  { %5055 = vmatpush.msrb.mxu1 %v3921_v58  ;;  %5077 = vmatpush.msra.mxu3 %v4033_v61  ;;  %v3905_v62 = vld [vmem:[#allocation2 + $0x968] sm:$0xff]  ;;  %v3946_v36 = vld [vmem:[#allocation2 + $0xab0] sm:$0xff] }
 0xde8   :  { %5112 = vmatpush.msra.mxu0 %v4329_v44  ;;  %v4017_v41 = vld [vmem:[#allocation2 + $0xce8] sm:$0xff]  ;;  %5097 = vmatpush.msra.mxu2 %v4161_v6  ;;  %v4106_v60 = vld [vmem:[#allocation2 + $0xfb0] sm:$0xff] }
 0xde9   :  { %5056 = vmatpush.msrb.mxu1 %v3913_v42  ;;  %5078 = vmatpush.msra.mxu3 %v4025_v26  ;;  %v4153_v20 = vld [vmem:[#allocation2 + $0x1128] sm:$0xff]  ;;  %v3690_v11 = vld [vmem:[#allocation2 + $0x2b0] sm:$0xff] }
 0xdea   :  { %v4313_v17 = vld [vmem:[#allocation2 + $0x1628] sm:$0xff]  ;;  %5113 = vmatpush.msra.mxu0 %v4321_v7  ;;  %5098 = vmatpush.msra.mxu2 %v4153_v20  ;;  %v3802_v22 = vld [vmem:[#allocation2 + $0x630] sm:$0xff] }
 0xdeb   :  { %v3897_v54 = vld [vmem:[#allocation2 + $0x928] sm:$0xff]  ;;  %5057 = vmatpush.msrb.mxu1 %v3905_v62  ;;  %5079 = vmatpush.msra.mxu3 %v4017_v41  ;;  %v3938_v51 = vld [vmem:[#allocation2 + $0xa70] sm:$0xff] }
 0xdec   :  { %v4009_v25 = vld [vmem:[#allocation2 + $0xca8] sm:$0xff]  ;;  %5114 = vmatpush.msra.mxu0 %v4313_v17  ;;  %5023 = vmatmul.f32.vlgmr.msrb.gmra.mxu2 %v8401_v47  ;;  %v4098_v24 = vld [vmem:[#allocation2 + $0xf70] sm:$0xff] }
 0xded   :  { %v4145_v19 = vld [vmem:[#allocation2 + $0x10e8] sm:$0xff]  ;;  %5058 = vmatpush.msrb.mxu1 %v3897_v54  ;;  %5080 = vmatpush.msra.mxu3 %v4009_v25  ;;  %v3682_v45 = vld [vmem:[#allocation2 + $0x270] sm:$0xff] }
 0xdee   :  { %v4305_v38 = vld [vmem:[#allocation2 + $0x15e8] sm:$0xff]  ;;  %5099 = vmatpush.msra.mxu2 %v4145_v19  ;;  %5043 = vmatmul.f32.vlgmr.msrb.gmra.mxu0 %v8409_v3  ;;  %v3826_v3 = vld [vmem:[#allocation2 + $0x6f0] sm:$0xff] }
 0xdef   :  { %v3889_v40 = vld [vmem:[#allocation2 + $0x8e8] sm:$0xff]  ;;  %5115 = vmatpush.msra.mxu0 %v4305_v38  ;;  %v3794_v10 = vld [vmem:[#allocation2 + $0x5f0] sm:$0xff] }
 0xdf0   :  { %v4001_v21 = vld [vmem:[#allocation2 + $0xc68] sm:$0xff]  ;;  %5059 = vmatpush.msrb.mxu1 %v3889_v40  ;;  %v3930_v58 = vld [vmem:[#allocation2 + $0xa30] sm:$0xff] }
 0xdf1   :  { %v4137_v28 = vld [vmem:[#allocation2 + $0x10a8] sm:$0xff]  ;;  %5081 = vmatpush.msra.mxu3 %v4001_v21  ;;  %v4090_v61 = vld [vmem:[#allocation2 + $0xf30] sm:$0xff] }
 0xdf2   :  { %v4297_v5 = vld [vmem:[#allocation2 + $0x15a8] sm:$0xff]  ;;  %5100 = vmatpush.msra.mxu2 %v4137_v28  ;;  %v3786_v12 = vld [vmem:[#allocation2 + $0x5b0] sm:$0xff] }
 0xdf3   :  { %v3881_v27 = vld [vmem:[#allocation2 + $0x8a8] sm:$0xff]  ;;  %5116 = vmatpush.msra.mxu0 %v4297_v5  ;;  %v3922_v44 = vld [vmem:[#allocation2 + $0x9f0] sm:$0xff] }
 0xdf4   :  { %v3993_v16 = vld [vmem:[#allocation2 + $0xc28] sm:$0xff]  ;;  %5060 = vmatpush.msrb.mxu1 %v3881_v27  ;;  %v4082_v42 = vld [vmem:[#allocation2 + $0xef0] sm:$0xff] }
 0xdf5   :  { %v4129_v31 = vld [vmem:[#allocation2 + $0x1068] sm:$0xff]  ;;  %5082 = vmatpush.msra.mxu3 %v3993_v16  ;;  %v3666_v26 = vld [vmem:[#allocation2 + $0x1f0] sm:$0xff] }
 0xdf6   :  { %v4289_v34 = vld [vmem:[#allocation2 + $0x1568] sm:$0xff]  ;;  %5101 = vmatpush.msra.mxu2 %v4129_v31  ;;  %5083 = vmatmul.f32.vlgmr.msra.gmra.mxu3 %v8406_v48  ;;  %v3778_v6 = vld [vmem:[#allocation2 + $0x570] sm:$0xff] }
 0xdf7   :  { %v3873_v23 = vld [vmem:[#allocation2 + $0x868] sm:$0xff]  ;;  %5117 = vmatpush.msra.mxu0 %v4289_v34  ;;  %5147 = vmatpush.msrb.mxu3 %v3858_v13  ;;  %v3914_v7 = vld [vmem:[#allocation2 + $0x9b0] sm:$0xff] }
 0xdf8   :  { %v4121_v47 = vld [vmem:[#allocation2 + $0x1028] sm:$0xff]  ;;  %5061 = vmatpush.msrb.mxu1 %v3873_v23  ;;  %v4074_v62 = vld [vmem:[#allocation2 + $0xeb0] sm:$0xff] }
 0xdf9   :  { %v4281_v4 = vld [vmem:[#allocation2 + $0x1528] sm:$0xff]  ;;  %5102 = vmatpush.msra.mxu2 %v4121_v47  ;;  %5148 = vmatpush.msrb.mxu3 %v3850_v63  ;;  %v3658_v41 = vld [vmem:[#allocation2 + $0x1b0] sm:$0xff] }
 0xdfa   :  { %5118 = vmatpush.msra.mxu0 %v4281_v4  ;;  %v3865_v55 = vld [vmem:[#allocation2 + $0x828] sm:$0xff]  ;;  %5103 = vmatmul.f32.vlgmr.msra.gmra.mxu2 %v8412_v59  ;;  %v3714_v59 = vld [vmem:[#allocation2 + $0x370] sm:$0xff] }
 0xdfb   :  { %v4273_v49 = vld [vmem:[#allocation2 + $0x14e8] sm:$0xff]  ;;  %5167 = vmatpush.msrb.mxu2 %v3986_v14  ;;  %5062 = vmatpush.msrb.mxu1 %v3865_v55  ;;  %v3770_v20 = vld [vmem:[#allocation2 + $0x530] sm:$0xff] }
 0xdfc   :  { %5119 = vmatpush.msra.mxu0 %v4273_v49  ;;  %v4265_v48 = vld [vmem:[#allocation2 + $0x14a8] sm:$0xff]  ;;  %5063 = vmatmul.f32.vlgmr.msrb.gmra.mxu1 %v8415_v37  ;;  %v3954_v37 = vld [vmem:[#allocation2 + $0xaf0] sm:$0xff] }
 0xdfd   :  { %5149 = vmatpush.msrb.mxu3 %v3842_v35  ;;  %5127 = vmatpush.msra.mxu1 %v3730_v53  ;;  %v4257_v1 = vld [vmem:[#allocation2 + $0x1468] sm:$0xff]  ;;  %v3906_v17 = vld [vmem:[#allocation2 + $0x970] sm:$0xff] }
 0xdfe   :  { %5168 = vmatpush.msrb.mxu2 %v3978_v30  ;;  %5120 = vmatpush.msra.mxu0 %v4265_v48  ;;  %v4249_v32 = vld [vmem:[#allocation2 + $0x1428] sm:$0xff]  ;;  %v4066_v54 = vld [vmem:[#allocation2 + $0xe70] sm:$0xff]  ;;  %v3731_v30 = vld [vmem:[#allocation2 + $0x3f8] sm:$0xff] }
 0xdff   :  { %5150 = vmatpush.msrb.mxu3 %v3834_v52  ;;  %5128 = vmatpush.msra.mxu1 %v3722_v43  ;;  %v3650_v25 = vld [vmem:[#allocation2 + $0x170] sm:$0xff] }
 0xe00   :  { %5169 = vmatpush.msrb.mxu2 %v3970_v46  ;;  %5121 = vmatpush.msra.mxu0 %v4257_v1  ;;  %v3762_v19 = vld [vmem:[#allocation2 + $0x4f0] sm:$0xff]  ;;  %v3723_v1 = vld [vmem:[#allocation2 + $0x3b8] sm:$0xff] }
 0xe01   :  { %5151 = vmatpush.msrb.mxu3 %v3826_v3  ;;  %5129 = vmatpush.msra.mxu1 %v3714_v59  ;;  %v3898_v38 = vld [vmem:[#allocation2 + $0x930] sm:$0xff] }
 0xe02   :  { %5170 = vmatpush.msrb.mxu2 %v3962_v56  ;;  %5122 = vmatpush.msra.mxu0 %v4249_v32  ;;  %v4058_v40 = vld [vmem:[#allocation2 + $0xe30] sm:$0xff]  ;;  %v3715_v32 = vld [vmem:[#allocation2 + $0x378] sm:$0xff] }
 0xe03   :  { %5152 = vmatpush.msrb.mxu3 %v3818_v9  ;;  %5123 = vmatmul.f32.vlgmr.msra.gmra.mxu0 %v8418_v15  ;;  %v3674_v15 = vld [vmem:[#allocation2 + $0x230] sm:$0xff] }
 0xe04   :  { %5130 = vmatpush.msra.mxu1 %v3706_v0  ;;  %5171 = vmatpush.msrb.mxu2 %v3954_v37  ;;  %v3642_v21 = vld [vmem:[#allocation2 + $0x130] sm:$0xff] }
 0xe05   :  { %5187 = vmatpush.msrb.mxu0 %v4114_v33  ;;  %5153 = vmatpush.msrb.mxu3 %v3810_v57  ;;  %v3754_v28 = vld [vmem:[#allocation2 + $0x4b0] sm:$0xff]  ;;  %v3707_v33 = vld [vmem:[#allocation2 + $0x338] sm:$0xff] }
 0xe06   :  { %5131 = vmatpush.msra.mxu1 %v3698_v8  ;;  %5172 = vmatpush.msrb.mxu2 %v3946_v36  ;;  %v3890_v5 = vld [vmem:[#allocation2 + $0x8f0] sm:$0xff] }
 0xe07   :  { %5188 = vmatpush.msrb.mxu0 %v4106_v60  ;;  %5154 = vmatpush.msrb.mxu3 %v3802_v22  ;;  %v4050_v27 = vld [vmem:[#allocation2 + $0xdf0] sm:$0xff]  ;;  %v3699_v60 = vld [vmem:[#allocation2 + $0x2f8] sm:$0xff] }
 0xe08   :  { %5132 = vmatpush.msra.mxu1 %v3690_v11  ;;  %5173 = vmatpush.msrb.mxu2 %v3938_v51  ;;  %v3634_v16 = vld [vmem:[#allocation2 + $0xf0] sm:$0xff]  ;;  %v3859_v11 = vld [vmem:[#allocation2 + $0x7f8] sm:$0xff] }
 0xe09   :  { %5189 = vmatpush.msrb.mxu0 %v4098_v24  ;;  %5155 = vmatpush.msrb.mxu3 %v3794_v10  ;;  %v3746_v31 = vld [vmem:[#allocation2 + $0x470] sm:$0xff]  ;;  %v3691_v24 = vld [vmem:[#allocation2 + $0x2b8] sm:$0xff] }
 0xe0a   :  { %5133 = vmatpush.msra.mxu1 %v3682_v45  ;;  %5174 = vmatpush.msrb.mxu2 %v3930_v58  ;;  %v3882_v34 = vld [vmem:[#allocation2 + $0x8b0] sm:$0xff]  ;;  %v3851_v45 = vld [vmem:[#allocation2 + $0x7b8] sm:$0xff] }
 0xe0b   :  { %5190 = vmatpush.msrb.mxu0 %v4090_v61  ;;  %5156 = vmatpush.msrb.mxu3 %v3786_v12  ;;  %v4042_v13 = vld [vmem:[#allocation2 + $0xdb0] sm:$0xff]  ;;  %v3683_v61 = vld [vmem:[#allocation2 + $0x278] sm:$0xff] }
 0xe0c   :  { %5134 = vmatpush.msra.mxu1 %v3674_v15  ;;  %5175 = vmatpush.msrb.mxu2 %v3922_v44  ;;  %v3626_v23 = vld [vmem:[#allocation2 + $0xb0] sm:$0xff]  ;;  %v3843_v15 = vld [vmem:[#allocation2 + $0x778] sm:$0xff] }
 0xe0d   :  { %5191 = vmatpush.msrb.mxu0 %v4082_v42  ;;  %5157 = vmatpush.msrb.mxu3 %v3778_v6  ;;  %v3738_v47 = vld [vmem:[#allocation2 + $0x430] sm:$0xff]  ;;  %v3675_v42 = vld [vmem:[#allocation2 + $0x238] sm:$0xff] }
 0xe0e   :  { %5135 = vmatpush.msra.mxu1 %v3666_v26  ;;  %5176 = vmatpush.msrb.mxu2 %v3914_v7  ;;  %v3874_v4 = vld [vmem:[#allocation2 + $0x870] sm:$0xff]  ;;  %v3835_v26 = vld [vmem:[#allocation2 + $0x738] sm:$0xff] }
 0xe0f   :  { %5192 = vmatpush.msrb.mxu0 %v4074_v62  ;;  %5158 = vmatpush.msrb.mxu3 %v3770_v20  ;;  %v4034_v63 = vld [vmem:[#allocation2 + $0xd70] sm:$0xff]  ;;  %v3667_v62 = vld [vmem:[#allocation2 + $0x1f8] sm:$0xff] }
 0xe10   :  { %5136 = vmatpush.msra.mxu1 %v3658_v41  ;;  %5177 = vmatpush.msrb.mxu2 %v3906_v17  ;;  %v4370_v14 = vld [vmem:[#allocation2 + $0x17f0] sm:$0xff]  ;;  %v3827_v41 = vld [vmem:[#allocation2 + $0x6f8] sm:$0xff] }
 0xe11   :  { %5193 = vmatpush.msrb.mxu0 %v4066_v54  ;;  %5159 = vmatpush.msrb.mxu3 %v3762_v19  ;;  %v3618_v55 = vld [vmem:[#allocation2 + $0x70] sm:$0xff]  ;;  %v3659_v54 = vld [vmem:[#allocation2 + $0x1b8] sm:$0xff] }
 0xe12   :  { %5137 = vmatpush.msra.mxu1 %v3650_v25  ;;  %5178 = vmatpush.msrb.mxu2 %v3898_v38  ;;  %v3866_v49 = vld [vmem:[#allocation2 + $0x830] sm:$0xff]  ;;  %v3819_v25 = vld [vmem:[#allocation2 + $0x6b8] sm:$0xff] }
 0xe13   :  { %5194 = vmatpush.msrb.mxu0 %v4058_v40  ;;  %5160 = vmatpush.msrb.mxu3 %v3754_v28  ;;  %v4026_v35 = vld [vmem:[#allocation2 + $0xd30] sm:$0xff]  ;;  %v3651_v40 = vld [vmem:[#allocation2 + $0x178] sm:$0xff] }
 0xe14   :  { %5138 = vmatpush.msra.mxu1 %v3642_v21  ;;  %5179 = vmatpush.msrb.mxu2 %v3890_v5  ;;  %v4362_v53 = vld [vmem:[#allocation2 + $0x17b0] sm:$0xff]  ;;  %v3811_v21 = vld [vmem:[#allocation2 + $0x678] sm:$0xff] }
 0xe15   :  { %5195 = vmatpush.msrb.mxu0 %v4050_v27  ;;  %5161 = vmatpush.msrb.mxu3 %v3746_v31  ;;  %v3610_v48 = vld [vmem:[#allocation2 + $0x30] sm:$0xff]  ;;  %v3643_v27 = vld [vmem:[#allocation2 + $0x138] sm:$0xff]  ;;  %v8436_v31 = vld.sshfl [vmem:[#allocation1 + $0x8] sm:$0xff pattern:$0x73625140] }
 0xe16   :  { %5139 = vmatpush.msra.mxu1 %v3634_v16  ;;  %5180 = vmatpush.msrb.mxu2 %v3882_v34  ;;  %v4018_v52 = vld [vmem:[#allocation2 + $0xcf0] sm:$0xff]  ;;  %v3803_v16 = vld [vmem:[#allocation2 + $0x638] sm:$0xff] }
 0xe17   :  { %5196 = vmatpush.msrb.mxu0 %v4042_v13  ;;  %5162 = vmatpush.msrb.mxu3 %v3738_v47  ;;  %v4242_v43 = vld [vmem:[#allocation2 + $0x13f0] sm:$0xff]  ;;  %v3795_v47 = vld [vmem:[#allocation2 + $0x5f8] sm:$0xff] }
 0xe18   :  { %5140 = vmatpush.msra.mxu1 %v3626_v23  ;;  %5181 = vmatpush.msrb.mxu2 %v3874_v4  ;;  %v4354_v46 = vld [vmem:[#allocation2 + $0x1770] sm:$0xff]  ;;  %v3635_v23 = vld [vmem:[#allocation2 + $0xf8] sm:$0xff]  ;;  %v8439_v4 = vld.sshfl [vmem:[#allocation1 + $0x10] sm:$0xff pattern:$0x73625140] }
 0xe19   :  { %5197 = vmatpush.msrb.mxu0 %v4034_v63  ;;  %5227 = vmatpush.msra.mxu3 %v4370_v14  ;;  %v4010_v3 = vld [vmem:[#allocation2 + $0xcb0] sm:$0xff] }
 0xe1a   :  { %5141 = vmatpush.msra.mxu1 %v3618_v55  ;;  %5182 = vmatpush.msrb.mxu2 %v3866_v49  ;;  %v4234_v59 = vld [vmem:[#allocation2 + $0x13b0] sm:$0xff]  ;;  %v3627_v55 = vld [vmem:[#allocation2 + $0xb8] sm:$0xff] }
 0xe1b   :  { %5198 = vmatpush.msrb.mxu0 %v4026_v35  ;;  %5228 = vmatpush.msra.mxu3 %v4362_v53  ;;  %v4346_v56 = vld [vmem:[#allocation2 + $0x1730] sm:$0xff]  ;;  %v3787_v49 = vld [vmem:[#allocation2 + $0x5b8] sm:$0xff] }
 0xe1c   :  { %5247 = vmatpush.msra.mxu2 %v3731_v30  ;;  %5142 = vmatpush.msra.mxu1 %v3610_v48  ;;  %v4002_v9 = vld [vmem:[#allocation2 + $0xc70] sm:$0xff]  ;;  %v8442_v53 = vld.sshfl [vmem:[#allocation1] sm:$0xff pattern:$0x73625140] }
 0xe1d   :  { %5199 = vmatpush.msrb.mxu0 %v4018_v52  ;;  %5229 = vmatpush.msra.mxu3 %v4354_v46  ;;  %v4226_v0 = vld [vmem:[#allocation2 + $0x1370] sm:$0xff]  ;;  %v3619_v48 = vld [vmem:[#allocation2 + $0x78] sm:$0xff] }
 0xe1e   :  { %5207 = vmatpush.msrb.mxu1 %v4242_v43  ;;  %5248 = vmatpush.msra.mxu2 %v3723_v1  ;;  %v4338_v37 = vld [vmem:[#allocation2 + $0x16f0] sm:$0xff]  ;;  %v3779_v52 = vld [vmem:[#allocation2 + $0x578] sm:$0xff] }
 0xe1f   :  { %5200 = vmatpush.msrb.mxu0 %v4010_v3  ;;  %5230 = vmatpush.msra.mxu3 %v4346_v56  ;;  %v3994_v8 = vld [vmem:[#allocation2 + $0xc30] sm:$0xff]  ;;  %v4115_v43 = vld [vmem:[#allocation2 + $0xff8] sm:$0xff] }
 0xe20   :  { %5208 = vmatpush.msrb.mxu1 %v4234_v59  ;;  %5249 = vmatpush.msra.mxu2 %v3715_v32  ;;  %v4218_v57 = vld [vmem:[#allocation2 + $0x1330] sm:$0xff]  ;;  %v3611_v1 = vld [vmem:[#allocation2 + $0x38] sm:$0xff]  ;;  %v8445_v59 = vld.sshfl [vmem:[#allocation1 + $0x28] sm:$0xff pattern:$0x73625140] }
 0xe21   :  { %5201 = vmatpush.msrb.mxu0 %v4002_v9  ;;  %v4330_v36 = vld [vmem:[#allocation2 + $0x16b0] sm:$0xff]  ;;  %5231 = vmatpush.msra.mxu3 %v4338_v37  ;;  %v3771_v3 = vld [vmem:[#allocation2 + $0x538] sm:$0xff] }
 0xe22   :  { %5209 = vmatpush.msrb.mxu1 %v4226_v0  ;;  %5250 = vmatpush.msra.mxu2 %v3707_v33  ;;  %v4210_v22 = vld [vmem:[#allocation2 + $0x12f0] sm:$0xff]  ;;  %v4107_v56 = vld [vmem:[#allocation2 + $0xfb8] sm:$0xff] }
 0xe23   :  { %5202 = vmatpush.msrb.mxu0 %v3994_v8  ;;  %v4322_v51 = vld [vmem:[#allocation2 + $0x1670] sm:$0xff]  ;;  %5232 = vmatpush.msra.mxu3 %v4330_v36  ;;  %v4243_v32 = vld [vmem:[#allocation2 + $0x13f8] sm:$0xff] }
 0xe24   :  { %5210 = vmatpush.msrb.mxu1 %v4218_v57  ;;  %5251 = vmatpush.msra.mxu2 %v3699_v60  ;;  %v4202_v10 = vld [vmem:[#allocation2 + $0x12b0] sm:$0xff]  ;;  %v3763_v0 = vld [vmem:[#allocation2 + $0x4f8] sm:$0xff] }
 0xe25   :  { %5267 = vmatpush.msra.mxu0 %v3859_v11  ;;  %v4314_v58 = vld [vmem:[#allocation2 + $0x1630] sm:$0xff]  ;;  %5233 = vmatpush.msra.mxu3 %v4322_v51  ;;  %v3987_v33 = vld [vmem:[#allocation2 + $0xbf8] sm:$0xff] }
 0xe26   :  { %5211 = vmatpush.msrb.mxu1 %v4210_v22  ;;  %5252 = vmatpush.msra.mxu2 %v3691_v24  ;;  %v4194_v12 = vld [vmem:[#allocation2 + $0x1270] sm:$0xff]  ;;  %v4099_v8 = vld [vmem:[#allocation2 + $0xf78] sm:$0xff] }
 0xe27   :  { %5268 = vmatpush.msra.mxu0 %v3851_v45  ;;  %v4306_v44 = vld [vmem:[#allocation2 + $0x15f0] sm:$0xff]  ;;  %5234 = vmatpush.msra.mxu3 %v4314_v58  ;;  %v4235_v57 = vld [vmem:[#allocation2 + $0x13b8] sm:$0xff] }
 0xe28   :  { %5212 = vmatpush.msrb.mxu1 %v4202_v10  ;;  %5253 = vmatpush.msra.mxu2 %v3683_v61  ;;  %v4186_v6 = vld [vmem:[#allocation2 + $0x1230] sm:$0xff]  ;;  %v3755_v36 = vld [vmem:[#allocation2 + $0x4b8] sm:$0xff] }
 0xe29   :  { %5269 = vmatpush.msra.mxu0 %v3843_v15  ;;  %v4298_v7 = vld [vmem:[#allocation2 + $0x15b0] sm:$0xff]  ;;  %5235 = vmatpush.msra.mxu3 %v4306_v44  ;;  %v8451_v60 = vld.sshfl [vmem:[#allocation1 + $0x20] sm:$0xff pattern:$0x73625140] }
 0xe2a   :  { %5213 = vmatpush.msrb.mxu1 %v4194_v12  ;;  %5254 = vmatpush.msra.mxu2 %v3675_v42  ;;  %v4178_v20 = vld [vmem:[#allocation2 + $0x11f0] sm:$0xff]  ;;  %v3979_v11 = vld [vmem:[#allocation2 + $0xbb8] sm:$0xff] }
 0xe2b   :  { %5270 = vmatpush.msra.mxu0 %v3835_v26  ;;  %v4290_v17 = vld [vmem:[#allocation2 + $0x1570] sm:$0xff]  ;;  %5236 = vmatpush.msra.mxu3 %v4298_v7  ;;  %v4091_v22 = vld [vmem:[#allocation2 + $0xf38] sm:$0xff] }
 0xe2c   :  { %5214 = vmatpush.msrb.mxu1 %v4186_v6  ;;  %5255 = vmatpush.msra.mxu2 %v3667_v62  ;;  %v4170_v19 = vld [vmem:[#allocation2 + $0x11b0] sm:$0xff]  ;;  %v4227_v51 = vld [vmem:[#allocation2 + $0x1378] sm:$0xff] }
 0xe2d   :  { %5271 = vmatpush.msra.mxu0 %v3827_v41  ;;  %v4282_v38 = vld [vmem:[#allocation2 + $0x1530] sm:$0xff]  ;;  %5237 = vmatpush.msra.mxu3 %v4290_v17  ;;  %v3747_v24 = vld [vmem:[#allocation2 + $0x478] sm:$0xff] }
 0xe2e   :  { %5215 = vmatpush.msrb.mxu1 %v4178_v20  ;;  %5256 = vmatpush.msra.mxu2 %v3659_v54  ;;  %v4162_v28 = vld [vmem:[#allocation2 + $0x1170] sm:$0xff]  ;;  %v3971_v45 = vld [vmem:[#allocation2 + $0xb78] sm:$0xff] }
 0xe2f   :  { %5272 = vmatpush.msra.mxu0 %v3819_v25  ;;  %5238 = vmatpush.msra.mxu3 %v4282_v38  ;;  %v4274_v5 = vld [vmem:[#allocation2 + $0x14f0] sm:$0xff]  ;;  %v4083_v10 = vld [vmem:[#allocation2 + $0xef8] sm:$0xff] }
 0xe30   :  { %5216 = vmatpush.msrb.mxu1 %v4170_v19  ;;  %5257 = vmatpush.msra.mxu2 %v3651_v40  ;;  %v4154_v34 = vld [vmem:[#allocation2 + $0x1130] sm:$0xff]  ;;  %v4219_v58 = vld [vmem:[#allocation2 + $0x1338] sm:$0xff] }
 0xe31   :  { %5273 = vmatpush.msra.mxu0 %v3811_v21  ;;  %5163 = vmatmul.f32.vlgmr.msrb.gmra.mxu3 %v8436_v31  ;;  %v4266_v13 = vld [vmem:[#allocation2 + $0x14b0] sm:$0xff]  ;;  %v3739_v61 = vld [vmem:[#allocation2 + $0x438] sm:$0xff] }
 0xe32   :  { %5217 = vmatpush.msrb.mxu1 %v4162_v28  ;;  %5239 = vmatpush.msra.mxu3 %v4274_v5  ;;  %v4258_v63 = vld [vmem:[#allocation2 + $0x1470] sm:$0xff]  ;;  %v3963_v15 = vld [vmem:[#allocation2 + $0xb38] sm:$0xff] }
 0xe33   :  { %5258 = vmatpush.msra.mxu2 %v3643_v27  ;;  %5274 = vmatpush.msra.mxu0 %v3803_v16  ;;  %v4146_v14 = vld [vmem:[#allocation2 + $0x10f0] sm:$0xff]  ;;  %v4075_v12 = vld [vmem:[#allocation2 + $0xeb8] sm:$0xff] }
 0xe34   :  { %5183 = vmatmul.f32.vlgmr.msrb.gmra.mxu2 %v8439_v4  ;;  %5218 = vmatpush.msrb.mxu1 %v4154_v34  ;;  %v4250_v35 = vld [vmem:[#allocation2 + $0x1430] sm:$0xff]  ;;  %v4211_v44 = vld [vmem:[#allocation2 + $0x12f8] sm:$0xff] }
 0xe35   :  { %5240 = vmatpush.msra.mxu3 %v4266_v13  ;;  %5259 = vmatpush.msra.mxu2 %v3635_v23  ;;  %v4138_v30 = vld [vmem:[#allocation2 + $0x10b0] sm:$0xff]  ;;  %v4371_v42 = vld [vmem:[#allocation2 + $0x17f8] sm:$0xff] }
 0xe36   :  { %5275 = vmatpush.msra.mxu0 %v3795_v47  ;;  %5143 = vmatmul.f32.vlgmr.msra.gmra.mxu1 %v8442_v53  ;;  %v4130_v46 = vld [vmem:[#allocation2 + $0x1070] sm:$0xff]  ;;  %v3955_v26 = vld [vmem:[#allocation2 + $0xaf8] sm:$0xff] }
 0xe37   :  { %5241 = vmatpush.msra.mxu3 %v4258_v63  ;;  %5219 = vmatpush.msrb.mxu1 %v4146_v14  ;;  %v4122_v9 = vld [vmem:[#allocation2 + $0x1030] sm:$0xff]  ;;  %v4067_v6 = vld [vmem:[#allocation2 + $0xe78] sm:$0xff] }
 0xe38   :  { %5260 = vmatpush.msra.mxu2 %v3627_v55  ;;  %5276 = vmatpush.msra.mxu0 %v3787_v49  ;;  %v8448_v37 = vld.sshfl [vmem:[#allocation1 + $0x18] sm:$0xff pattern:$0x73625140]  ;;  %v4203_v7 = vld [vmem:[#allocation2 + $0x12b8] sm:$0xff] }
 0xe39   :  { %5242 = vmatpush.msra.mxu3 %v4250_v35  ;;  %5220 = vmatpush.msrb.mxu1 %v4138_v30  ;;  %v4363_v62 = vld [vmem:[#allocation2 + $0x17b8] sm:$0xff] }
 0xe3a   :  { %5261 = vmatpush.msra.mxu2 %v3619_v48  ;;  %5277 = vmatpush.msra.mxu0 %v3779_v52  ;;  %v3947_v41 = vld [vmem:[#allocation2 + $0xab8] sm:$0xff] }
 0xe3b   :  { %5243 = vmatmul.f32.vlgmr.msra.gmra.mxu3 %v8445_v59  ;;  %5221 = vmatpush.msrb.mxu1 %v4130_v46  ;;  %v4059_v20 = vld [vmem:[#allocation2 + $0xe38] sm:$0xff] }
 0xe3c   :  { %5307 = vmatpush.msrb.mxu3 %v4115_v43  ;;  %5262 = vmatpush.msra.mxu2 %v3611_v1  ;;  %v4195_v17 = vld [vmem:[#allocation2 + $0x1278] sm:$0xff] }
 0xe3d   :  { %5278 = vmatpush.msra.mxu0 %v3771_v3  ;;  %5222 = vmatpush.msrb.mxu1 %v4122_v9  ;;  %v4355_v54 = vld [vmem:[#allocation2 + $0x1778] sm:$0xff] }
 0xe3e   :  { %5203 = vmatmul.f32.vlgmr.msrb.gmra.mxu0 %v8448_v37  ;;  %5308 = vmatpush.msrb.mxu3 %v4107_v56  ;;  %v3939_v25 = vld [vmem:[#allocation2 + $0xa78] sm:$0xff] }
 0xe3f   :  { %5327 = vmatpush.msrb.mxu2 %v4243_v32  ;;  %5279 = vmatpush.msra.mxu0 %v3763_v0  ;;  %v4051_v19 = vld [vmem:[#allocation2 + $0xdf8] sm:$0xff] }
 0xe40   :  { %5223 = vmatmul.f32.vlgmr.msrb.gmra.mxu1 %v8451_v60  ;;  %5309 = vmatpush.msrb.mxu3 %v4099_v8  ;;  %v4187_v38 = vld [vmem:[#allocation2 + $0x1238] sm:$0xff] }
 0xe41   :  { %5287 = vmatpush.msra.mxu1 %v3987_v33  ;;  %5328 = vmatpush.msrb.mxu2 %v4235_v57  ;;  %v4347_v40 = vld [vmem:[#allocation2 + $0x1738] sm:$0xff] }
 0xe42   :  { %5280 = vmatpush.msra.mxu0 %v3755_v36  ;;  %5310 = vmatpush.msrb.mxu3 %v4091_v22  ;;  %v3931_v21 = vld [vmem:[#allocation2 + $0xa38] sm:$0xff] }
 0xe43   :  { %5288 = vmatpush.msra.mxu1 %v3979_v11  ;;  %5329 = vmatpush.msrb.mxu2 %v4227_v51  ;;  %v4043_v28 = vld [vmem:[#allocation2 + $0xdb8] sm:$0xff] }
 0xe44   :  { %5281 = vmatpush.msra.mxu0 %v3747_v24  ;;  %5311 = vmatpush.msrb.mxu3 %v4083_v10  ;;  %v4179_v5 = vld [vmem:[#allocation2 + $0x11f8] sm:$0xff] }
 0xe45   :  { %5289 = vmatpush.msra.mxu1 %v3971_v45  ;;  %5330 = vmatpush.msrb.mxu2 %v4219_v58  ;;  %v4339_v27 = vld [vmem:[#allocation2 + $0x16f8] sm:$0xff]  ;;  %v4684_v58 = vpop.f32.mrf.mxu3 }
 0xe46   :  { %5282 = vmatpush.msra.mxu0 %v3739_v61  ;;  %5312 = vmatpush.msrb.mxu3 %v4075_v12  ;;  %v3923_v16 = vld [vmem:[#allocation2 + $0x9f8] sm:$0xff]  ;;  %v4704_v61 = vpop.f32.mrf.mxu2 }
 0xe47   :  { %5290 = vmatpush.msra.mxu1 %v3963_v15  ;;  %5331 = vmatpush.msrb.mxu2 %v4211_v44  ;;  %v4035_v34 = vld [vmem:[#allocation2 + $0xd78] sm:$0xff]  ;;  %v4724_v15 = vpop.f32.mrf.mxu0 }
 0xe48   :  { %5347 = vmatpush.msrb.mxu0 %v4371_v42  ;;  %5313 = vmatpush.msrb.mxu3 %v4067_v6  ;;  %v4171_v13 = vld [vmem:[#allocation2 + $0x11b8] sm:$0xff] }
 0xe49   :  { %5291 = vmatpush.msra.mxu1 %v3955_v26  ;;  %5332 = vmatpush.msrb.mxu2 %v4203_v7  ;;  %v4331_v23 = vld [vmem:[#allocation2 + $0x16b8] sm:$0xff] }
 0xe4a   :  { %5348 = vmatpush.msrb.mxu0 %v4363_v62  ;;  %5314 = vmatpush.msrb.mxu3 %v4059_v20  ;;  %v3915_v47 = vld [vmem:[#allocation2 + $0x9b8] sm:$0xff] }
 0xe4b   :  { %5292 = vmatpush.msra.mxu1 %v3947_v41  ;;  %5333 = vmatpush.msrb.mxu2 %v4195_v17  ;;  %v4027_v63 = vld [vmem:[#allocation2 + $0xd38] sm:$0xff] }
 0xe4c   :  { %5349 = vmatpush.msrb.mxu0 %v4355_v54  ;;  %5315 = vmatpush.msrb.mxu3 %v4051_v19  ;;  %v4163_v14 = vld [vmem:[#allocation2 + $0x1178] sm:$0xff] }
 0xe4d   :  { %5293 = vmatpush.msra.mxu1 %v3939_v25  ;;  %5334 = vmatpush.msrb.mxu2 %v4187_v38  ;;  %v4323_v55 = vld [vmem:[#allocation2 + $0x1678] sm:$0xff] }
 0xe4e   :  { %5350 = vmatpush.msrb.mxu0 %v4347_v40  ;;  %5316 = vmatpush.msrb.mxu3 %v4043_v28  ;;  %v3907_v49 = vld [vmem:[#allocation2 + $0x978] sm:$0xff]  ;;  %v6221_v40 = vld [vmem:[#allocation36] sm:$0xff] }
 0xe4f   :  { %5294 = vmatpush.msra.mxu1 %v3931_v21  ;;  %5335 = vmatpush.msrb.mxu2 %v4179_v5  ;;  %v4019_v35 = vld [vmem:[#allocation2 + $0xcf8] sm:$0xff]  ;;  %v4804_v44 = vpop.f32.mrf.mxu0  ;;  %v4379_v21 = vperm.slane %v6221_v40, 5  ;;  %v4378_v5 = vperm.slane %v6221_v40, 4 }
 0xe50   :  { %5351 = vmatpush.msrb.mxu0 %v4339_v27  ;;  %5317 = vmatpush.msrb.mxu3 %v4035_v34  ;;  %v4155_v30 = vld [vmem:[#allocation2 + $0x1138] sm:$0xff]  ;;  %v4380_v27 = vperm.slane %v6221_v40, 6  ;;  %v4376_v34 = vperm.slane %v6221_v40, 2 }
 0xe51   :  { %5295 = vmatpush.msra.mxu1 %v3923_v16  ;;  %5336 = vmatpush.msrb.mxu2 %v4171_v13  ;;  %v4315_v48 = vld [vmem:[#allocation2 + $0x1638] sm:$0xff]  ;;  %v4377_v13 = vperm.slane %v6221_v40, 3 }
 0xe52   :  { %5352 = vmatpush.msrb.mxu0 %v4331_v23  ;;  %5318 = vmatpush.msrb.mxu3 %v4027_v63  ;;  %v3899_v52 = vld [vmem:[#allocation2 + $0x938] sm:$0xff] }
 0xe53   :  { %5296 = vmatpush.msra.mxu1 %v3915_v47  ;;  %5337 = vmatpush.msrb.mxu2 %v4163_v14  ;;  %v4011_v43 = vld [vmem:[#allocation2 + $0xcb8] sm:$0xff] }
 0xe54   :  { %5353 = vmatpush.msrb.mxu0 %v4323_v55  ;;  %5319 = vmatpush.msrb.mxu3 %v4019_v35  ;;  %v4147_v46 = vld [vmem:[#allocation2 + $0x10f8] sm:$0xff] }
 0xe55   :  { %5297 = vmatpush.msra.mxu1 %v3907_v49  ;;  %5338 = vmatpush.msrb.mxu2 %v4155_v30  ;;  %v4307_v1 = vld [vmem:[#allocation2 + $0x15f8] sm:$0xff] }
 0xe56   :  { %5354 = vmatpush.msrb.mxu0 %v4315_v48  ;;  %v3891_v3 = vld [vmem:[#allocation2 + $0x8f8] sm:$0xff]  ;;  %5263 = vmatmul.f32.vlgmr.msra.gmra.mxu2 %v8442_v53 }
 0xe57   :  { %5298 = vmatpush.msra.mxu1 %v3899_v52  ;;  %v4003_v56 = vld [vmem:[#allocation2 + $0xc78] sm:$0xff]  ;;  %5320 = vmatpush.msrb.mxu3 %v4011_v43  ;;  %v8464_v7 = vpop.f32.mrf.mxu0 }
 0xe58   :  { %v4139_v32 = vld [vmem:[#allocation2 + $0x10b8] sm:$0xff]  ;;  %5339 = vmatpush.msrb.mxu2 %v4147_v46  ;;  %5355 = vmatpush.msrb.mxu0 %v4307_v1 }
 0xe59   :  { %v4299_v9 = vld [vmem:[#allocation2 + $0x15b8] sm:$0xff]  ;;  %5299 = vmatpush.msra.mxu1 %v3891_v3  ;;  %5321 = vmatpush.msrb.mxu3 %v4003_v56 }
 0xe5a   :  { %v3883_v0 = vld [vmem:[#allocation2 + $0x8b8] sm:$0xff]  ;;  %5340 = vmatpush.msrb.mxu2 %v4139_v32  ;;  %5356 = vmatpush.msrb.mxu0 %v4299_v9 }
 0xe5b   :  { %v3995_v33 = vld [vmem:[#allocation2 + $0xc38] sm:$0xff]  ;;  %5300 = vmatpush.msra.mxu1 %v3883_v0  ;;  %5283 = vmatmul.f32.vlgmr.msra.gmra.mxu0 %v8436_v31  ;;  %v4784_v31 = vpop.f32.mrf.mxu2 }
 0xe5c   :  { %v4131_v8 = vld [vmem:[#allocation2 + $0x1078] sm:$0xff]  ;;  %5322 = vmatpush.msrb.mxu3 %v3995_v33  ;;  %v4785_v35 = vadd.f32 %v4784_v31, %v4377_v13  ;;  %v4381_v33 = vperm.slane %v6221_v40, 7 }
 0xe5d   :  { %v4291_v57 = vld [vmem:[#allocation2 + $0x1578] sm:$0xff]  ;;  %5341 = vmatpush.msrb.mxu2 %v4131_v8  ;;  %5323 = vmatmul.f32.vlgmr.msrb.gmra.mxu3 %v8448_v37  ;;  %v4664_v37 = vpop.f32.mrf.mxu1 }
 0xe5e   :  { %v3875_v36 = vld [vmem:[#allocation2 + $0x878] sm:$0xff]  ;;  %5357 = vmatpush.msrb.mxu0 %v4291_v57  ;;  %v4665_v49 = vadd.f32 %v4664_v37, %v4376_v34  ;;  %v4805_v1 = vadd.f32 %v4804_v44, %v4785_v35  ;;  %v5392_v34 = vsel %vm2795_vm3, %v8404_v39, inf }
 0xe5f   :  { %v4123_v11 = vld [vmem:[#allocation2 + $0x1038] sm:$0xff]  ;;  %5301 = vmatpush.msra.mxu1 %v3875_v36  ;;  %v4964_v20 = vpop.f32.mrf.mxu0 }
 0xe60   :  { %v4283_v53 = vld [vmem:[#allocation2 + $0x1538] sm:$0xff]  ;;  %5342 = vmatpush.msrb.mxu2 %v4123_v11  ;;  %v4685_v46 = vadd.f32 %v4684_v58, %v4665_v49  ;;  %v5368_v58 = vand.u32 127, %v1064_v50 }
 0xe61   :  { %v3867_v22 = vld [vmem:[#allocation2 + $0x838] sm:$0xff]  ;;  %5358 = vmatpush.msrb.mxu0 %v4283_v53  ;;  %5343 = vmatmul.f32.vlgmr.msrb.gmra.mxu2 %v8451_v60  ;;  %v8462_v60 = vpop.f32.mrf.mxu3 }
 0xe62   :  { %v4275_v51 = vld [vmem:[#allocation2 + $0x14f8] sm:$0xff]  ;;  %5302 = vmatpush.msra.mxu1 %v3867_v22  ;;  %v4705_v57 = vadd.f32 %v4704_v61, %v4685_v46 }
 0xe63   :  { %v4267_v24 = vld [vmem:[#allocation2 + $0x14b8] sm:$0xff]  ;;  %5359 = vmatpush.msrb.mxu0 %v4275_v51  ;;  %5303 = vmatmul.f32.vlgmr.msra.gmra.mxu1 %v8439_v4  ;;  %v4864_v4 = vpop.f32.mrf.mxu2 }
 0xe64   :  { %v4259_v45 = vld [vmem:[#allocation2 + $0x1478] sm:$0xff] }
 0xe65   :  { %5360 = vmatpush.msrb.mxu0 %v4267_v24  ;;  %v4251_v10 = vld [vmem:[#allocation2 + $0x1438] sm:$0xff]  ;;  %v8460_v12 = vpop.f32.mrf.mxu1 }
 0xe67   :  { %5361 = vmatpush.msrb.mxu0 %v4259_v45  ;;  %v4725_v45 = vadd.f32 %v4724_v15, %v4705_v57 }
 0xe69   :  { %5362 = vmatpush.msrb.mxu0 %v4251_v10  ;;  %v4844_v26 = vpop.f32.mrf.mxu3  ;;  %v4745_v61 = vadd.f32 %v8460_v12, %v4725_v45 }
 0xe6a   :  { %5363 = vmatmul.f32.vlgmr.msrb.gmra.mxu0 %v8445_v59 }
 0xe6b   :  { %v4944_v41 = vpop.f32.mrf.mxu2  ;;  %v5044_v25 = vpop.f32.mrf.mxu0  ;;  %v8475_v50 = vadd.f32 %v8462_v60, %v4745_v61  ;;  %v5514_v61 = vld [vmem:[%s8817_s4 + $0xf8] sm:$0xff] }
 0xe6c   :  { %5631 = vmatpush.msra.mxu3 %v5514_v61  ;;  %v5485_v61 = vld [vmem:[%s8817_s4 + $0x10] sm:$0xff] }
 0xe6d   :  { %v4824_v42 = vpop.f32.mrf.mxu1  ;;  %v5394_v13 = vsel %vm2795_vm3, %v8475_v50, inf }
 0xe6e   :  { %v4825_v36 = vadd.f32 %v4824_v42, %v4805_v1 }
 0xe70   :  { %v4845_v10 = vadd.f32 %v4844_v26, %v4825_v36 }
 0xe71   :  { %v4924_v62 = vpop.f32.mrf.mxu3 }
 0xe72   :  { %v4865_v42 = vadd.f32 %v4864_v4, %v4845_v10 }
 0xe73   :  { %v5024_v54 = vpop.f32.mrf.mxu2 }
 0xe74   :  { %v5025_v23 = vadd.f32 %v5024_v54, %v4379_v21 }
 0xe75   :  { %v4904_v6 = vpop.f32.mrf.mxu1 }
 0xe76   :  { %v4905_v14 = vadd.f32 %v4904_v6, %v4378_v5  ;;  %v5045_v30 = vadd.f32 %v5044_v25, %v5025_v23 }
 0xe78   :  { %v4925_v52 = vadd.f32 %v4924_v62, %v4905_v14 }
 0xe79   :  { %v5004_v17 = vpop.f32.mrf.mxu3 }
 0xe7a   :  { %v4945_v9 = vadd.f32 %v4944_v41, %v4925_v52 }
 0xe7c   :  { %v4965_v22 = vadd.f32 %v4964_v20, %v4945_v9  ;;  %v5375_v20 = vadd.s32 896, %v5368_v58 }
 0xe7d   :  { %v4984_v59 = vpop.f32.mrf.mxu1  ;;  %v5104_v28 = vpop.f32.mrf.mxu2 }
 0xe7e   :  { %v4985_v62 = vadd.f32 %v4984_v59, %v4965_v22  ;;  %v8478_v59 = vadd.f32 %v8464_v7, %v4865_v42  ;;  %vm5383_vm5 = vcmp.lt.s32.totalorder %v5375_v20, 1000  ;;  %v5530_v42 = vld [vmem:[%s8817_s4 + $0x178] sm:$0xff] }
 0xe7f   :  { %v5546_v20 = vld [vmem:[%s8817_s4 + $0x1f8] sm:$0xff]  ;;  %5651 = vmatpush.msra.mxu2 %v5530_v42  ;;  %v5501_v42 = vld [vmem:[%s8817_s4 + $0x90] sm:$0xff] }
 0xe80   :  { %v5124_v47 = vpop.f32.mrf.mxu0  ;;  %v8470_v15 = vadd.f32 %v5004_v17, %v4985_v62  ;;  %v5393_v17 = vsel %vm2795_vm3, %v8422_v18, inf  ;;  %v5395_v23 = vsel %vm2795_vm3, %v8478_v59, inf  ;;  %5671 = vmatpush.msra.mxu0 %v5546_v20  ;;  %v5517_v20 = vld [vmem:[%s8817_s4 + $0x110] sm:$0xff] }
 0xe81   :  { %v5084_v38 = vpop.f32.mrf.mxu3 }
 0xe82   :  { %v5396_v5 = vsel %vm2795_vm3, %v8470_v15, inf }
 0xe85   :  { %v5064_v19 = vpop.f32.mrf.mxu1 }
 0xe86   :  { %v5065_v3 = vadd.f32 %v5064_v19, %v5045_v30 }
 0xe88   :  { %v5085_v11 = vadd.f32 %v5084_v38, %v5065_v3  ;;  %v5425_v3 = vsel %vm2795_vm3, %v8422_v18, -inf }
 0xe8a   :  { %v5105_v37 = vadd.f32 %v5104_v28, %v5085_v11 }
 0xe8c   :  { %v8468_v19 = vadd.f32 %v5124_v47, %v5105_v37 }
 0xe8e   :  { %v5398_v12 = vsel %vm2795_vm3, %v8468_v19, inf  ;;  %v5430_v52 = vsel %vm2795_vm3, %v8468_v19, -inf }
 0xe8f   :  { %v5431_v9 = vmax.f32 %v5425_v3, %v5430_v52  ;;  %v5524_v52 = vld [vmem:[%s8817_s4 + $0x148] sm:$0xff]  ;;  %v5523_v3 = vld [vmem:[%s8817_s4 + $0x140] sm:$0xff] }
 0xeb3   :  { %v5144_v16 = vpop.f32.mrf.mxu1 }
 0xeb4   :  { %v5164_v63 = vpop.f32.mrf.mxu3  ;;  %v5145_v55 = vadd.f32 %v5144_v16, %v4380_v27  ;;  %v5399_v16 = vmin.f32 %v5393_v17, %v5398_v12  ;;  %v5496_v12 = vld [vmem:[%s8817_s4 + $0x68] sm:$0xff] }
 0xeb5   :  { %v5512_v17 = vld [vmem:[%s8817_s4 + $0xe8] sm:$0xff] }
 0xeb6   :  { %v5165_v43 = vadd.f32 %v5164_v63, %v5145_v55  ;;  %v5397_v63 = vmin.f32 %v5392_v34, %v5396_v5  ;;  %v5528_v5 = vld [vmem:[%s8817_s4 + $0x168] sm:$0xff]  ;;  %v5543_v34 = vld [vmem:[%s8817_s4 + $0x1e0] sm:$0xff] }
 0xeb7   :  { %v5184_v48 = vpop.f32.mrf.mxu2 }
 0xeb8   :  { %v5185_v0 = vadd.f32 %v5184_v48, %v5165_v43  ;;  %v5404_v35 = vmin.f32 %v5397_v63, %v5399_v16  ;;  %v5427_v48 = vsel %vm2795_vm3, %v8478_v59, -inf  ;;  %v5527_v16 = vld [vmem:[%s8817_s4 + $0x160] sm:$0xff]  ;;  %v5542_v63 = vld [vmem:[%s8817_s4 + $0x1d8] sm:$0xff] }
 0xebb   :  { %v5204_v56 = vpop.f32.mrf.mxu0 }
 0xebc   :  { %v5205_v51 = vadd.f32 %v5204_v56, %v5185_v0  ;;  %v5426_v56 = vsel %vm2795_vm3, %v8475_v50, -inf }
 0xebd   :  { %v5224_v32 = vpop.f32.mrf.mxu1 }
 0xebe   :  { %v5244_v8 = vpop.f32.mrf.mxu3  ;;  %v5225_v41 = vadd.f32 %v5224_v32, %v5205_v51  ;;  %v5428_v32 = vsel %vm2795_vm3, %v8470_v15, -inf }
 0xec0   :  { %v8472_v26 = vadd.f32 %v5244_v8, %v5225_v41 }
 0xec2   :  { %v5400_v60 = vsel %vm2795_vm3, %v8472_v26, inf  ;;  %v5432_v43 = vsel %vm2795_vm3, %v8472_v26, -inf }
 0xec3   :  { %v5401_v14 = vmin.f32 %v5394_v13, %v5400_v60  ;;  %v5433_v0 = vmax.f32 %v5426_v56, %v5432_v43  ;;  %v5544_v60 = vld [vmem:[%s8817_s4 + $0x1e8] sm:$0xff]  ;;  %v5494_v13 = vld [vmem:[%s8817_s4 + $0x58] sm:$0xff]  ;;  %v5539_v56 = vld [vmem:[%s8817_s4 + $0x1c0] sm:$0xff] }
 0xec4   :  { %v5540_v43 = vld [vmem:[%s8817_s4 + $0x1c8] sm:$0xff] }
 0xed8   :  { %v5284_v31 = vpop.f32.mrf.mxu0 }
 0xed9   :  { %v5264_v53 = vpop.f32.mrf.mxu2 }
 0xeda   :  { %v5265_v24 = vadd.f32 %v5264_v53, %v4381_v33  ;;  %v5424_v33 = vsel %vm2795_vm3, %v8404_v39, -inf }
 0xedb   :  { %v5429_v8 = vmax.f32 %v5424_v33, %v5428_v32  ;;  %v5490_v32 = vld [vmem:[%s8817_s4 + $0x38] sm:$0xff] }
 0xedc   :  { %v5285_v44 = vadd.f32 %v5284_v31, %v5265_v24  ;;  %v5538_v33 = vld [vmem:[%s8817_s4 + $0x1b8] sm:$0xff] }
 0xedd   :  { %v5436_v36 = vmax.f32 %v5429_v8, %v5431_v9  ;;  %v5506_v9 = vld [vmem:[%s8817_s4 + $0xb8] sm:$0xff] }
 0xee0   :  { %v5304_v6 = vpop.f32.mrf.mxu1  ;;  %v5324_v25 = vpop.f32.mrf.mxu3 }
 0xee1   :  { %v5305_v54 = vadd.f32 %v5304_v6, %v5285_v44 }
 0xee3   :  { %v5325_v38 = vadd.f32 %v5324_v25, %v5305_v54  ;;  %v5498_v25 = vld [vmem:[%s8817_s4 + $0x78] sm:$0xff] }
 0xee4   :  { %v5344_v40 = vpop.f32.mrf.mxu2  ;;  %5611 = vmatpush.msrb.mxu1 %v5498_v25 }
 0xee5   :  { %v5345_v21 = vadd.f32 %v5344_v40, %v5325_v38  ;;  %v5497_v38 = vld [vmem:[%s8817_s4 + $0x70] sm:$0xff] }
 0xee6   :  { %v5513_v40 = vld [vmem:[%s8817_s4 + $0xf0] sm:$0xff]  ;;  %5612 = vmatpush.msrb.mxu1 %v5497_v38 }
 0xee7   :  { %v5364_v28 = vpop.f32.mrf.mxu0  ;;  %5632 = vmatpush.msra.mxu3 %v5513_v40  ;;  %v5533_v38 = vld [vmem:[%s8817_s4 + $0x190] sm:$0xff] }
 0xee8   :  { %v8482_v4 = vadd.f32 %v5364_v28, %v5345_v21  ;;  %v5529_v21 = vld [vmem:[%s8817_s4 + $0x170] sm:$0xff]  ;;  %5613 = vmatpush.msrb.mxu1 %v5496_v12 }
 0xee9   :  { %v5545_v28 = vld [vmem:[%s8817_s4 + $0x1f0] sm:$0xff]  ;;  %5652 = vmatpush.msra.mxu2 %v5529_v21  ;;  %5633 = vmatpush.msra.mxu3 %v5512_v17  ;;  %v5484_v21 = vld [vmem:[%s8817_s4 + $0x8] sm:$0xff] }
 0xeea   :  { %v5391_v27 = vsel %vm5383_vm5, %v8482_v4, inf  ;;  %v5423_v7 = vsel %vm5383_vm5, %v8482_v4, -inf  ;;  %5672 = vmatpush.msra.mxu0 %v5545_v28  ;;  %v5500_v28 = vld [vmem:[%s8817_s4 + $0x88] sm:$0xff] }
 0xeeb   :  { %v5402_v47 = vsel %vm2795_vm3, %v5391_v27, inf  ;;  %v5434_v49 = vsel %vm2795_vm3, %v5423_v7, -inf  ;;  %v5495_v27 = vld [vmem:[%s8817_s4 + $0x60] sm:$0xff]  ;;  %5653 = vmatpush.msra.mxu2 %v5528_v5  ;;  %v5516_v17 = vld [vmem:[%s8817_s4 + $0x108] sm:$0xff] }
 0xeec   :  { %v5403_v55 = vmin.f32 %v5395_v23, %v5402_v47  ;;  %v5435_v1 = vmax.f32 %v5427_v48, %v5434_v49  ;;  %v5511_v7 = vld [vmem:[%s8817_s4 + $0xe0] sm:$0xff]  ;;  %5673 = vmatpush.msra.mxu0 %v5544_v60  ;;  %v5510_v23 = vld [vmem:[%s8817_s4 + $0xd8] sm:$0xff]  ;;  %5614 = vmatpush.msrb.mxu1 %v5495_v27  ;;  %v5525_v49 = vld [vmem:[%s8817_s4 + $0x150] sm:$0xff] }
 0xeed   :  { %5634 = vmatpush.msra.mxu3 %v5511_v7  ;;  %v5526_v47 = vld [vmem:[%s8817_s4 + $0x158] sm:$0xff]  ;;  %5654 = vmatpush.msra.mxu2 %v5527_v16  ;;  %v5508_v48 = vld [vmem:[%s8817_s4 + $0xc8] sm:$0xff]  ;;  %v5483_v7 = vld [vmem:[%s8817_s4] sm:$0xff] }
 0xeee   :  { %v5405_v30 = vmin.f32 %v5401_v14, %v5403_v55  ;;  %v5437_v57 = vmax.f32 %v5433_v0, %v5435_v1  ;;  %5674 = vmatpush.msra.mxu0 %v5543_v34  ;;  %v5493_v14 = vld [vmem:[%s8817_s4 + $0x50] sm:$0xff]  ;;  %5615 = vmatpush.msrb.mxu1 %v5494_v13  ;;  %v5507_v1 = vld [vmem:[%s8817_s4 + $0xc0] sm:$0xff]  ;;  %v5522_v0 = vld [vmem:[%s8817_s4 + $0x138] sm:$0xff] }
 0xeef   :  { %v5509_v55 = vld [vmem:[%s8817_s4 + $0xd0] sm:$0xff]  ;;  %5635 = vmatpush.msra.mxu3 %v5510_v23  ;;  %5655 = vmatpush.msra.mxu2 %v5526_v47  ;;  %v5532_v5 = vld [vmem:[%s8817_s4 + $0x188] sm:$0xff]  ;;  %v5499_v16 = vld [vmem:[%s8817_s4 + $0x80] sm:$0xff] }
 0xef0   :  { %v5406_v46 = vmin.f32 %v5404_v35, %v5405_v30  ;;  %v5438_v11 = vmax.f32 %v5436_v36, %v5437_v57  ;;  %v5541_v35 = vld [vmem:[%s8817_s4 + $0x1d0] sm:$0xff]  ;;  %5675 = vmatpush.msra.mxu0 %v5542_v63  ;;  %v5492_v30 = vld [vmem:[%s8817_s4 + $0x48] sm:$0xff]  ;;  %5616 = vmatpush.msrb.mxu1 %v5493_v14  ;;  %v5515_v34 = vld [vmem:[%s8817_s4 + $0x100] sm:$0xff] }
 0xef1   :  { %5636 = vmatpush.msra.mxu3 %v5509_v55  ;;  %5656 = vmatpush.msra.mxu2 %v5525_v49  ;;  %v5489_v57 = vld [vmem:[%s8817_s4 + $0x30] sm:$0xff]  ;;  %v5531_v13 = vld [vmem:[%s8817_s4 + $0x180] sm:$0xff]  ;;  %v5562_v47 = vld [vmem:[%s8817_s4 + $0x278] sm:$0xff] }
 0xef2   :  { %5407 = vmin.xlane.f32.xlu0 %v5406_v46  ;;  %5676 = vmatpush.msra.mxu0 %v5541_v35  ;;  %v5491_v46 = vld [vmem:[%s8817_s4 + $0x40] sm:$0xff]  ;;  %v5505_v36 = vld [vmem:[%s8817_s4 + $0xb0] sm:$0xff]  ;;  %v5578_v63 = vld [vmem:[%s8817_s4 + $0x2f8] sm:$0xff] }
 0xef3   :  { %5617 = vmatpush.msrb.mxu1 %v5492_v30  ;;  %5637 = vmatpush.msra.mxu3 %v5508_v48  ;;  %v5594_v55 = vld [vmem:[%s8817_s4 + $0x378] sm:$0xff]  ;;  %v5561_v30 = vld [vmem:[%s8817_s4 + $0x270] sm:$0xff] }
 0xef4   :  { %5657 = vmatpush.msra.mxu2 %v5524_v52  ;;  %5677 = vmatpush.msra.mxu0 %v5540_v43  ;;  %v5610_v49 = vld [vmem:[%s8817_s4 + $0x3f8] sm:$0xff]  ;;  %v5577_v48 = vld [vmem:[%s8817_s4 + $0x2f0] sm:$0xff] }
 0xef5   :  { %5618 = vmatpush.msrb.mxu1 %v5491_v46  ;;  %5638 = vmatpush.msra.mxu3 %v5507_v1  ;;  %v5593_v43 = vld [vmem:[%s8817_s4 + $0x370] sm:$0xff]  ;;  %v5560_v1 = vld [vmem:[%s8817_s4 + $0x268] sm:$0xff] }
 0xef6   :  { %5658 = vmatpush.msra.mxu2 %v5523_v3  ;;  %5678 = vmatpush.msra.mxu0 %v5539_v56  ;;  %v5609_v46 = vld [vmem:[%s8817_s4 + $0x3f0] sm:$0xff]  ;;  %v5576_v3 = vld [vmem:[%s8817_s4 + $0x2e8] sm:$0xff] }
 0xef7   :  { %5619 = vmatpush.msrb.mxu1 %v5490_v32  ;;  %5639 = vmatpush.msra.mxu3 %v5506_v9  ;;  %v5592_v56 = vld [vmem:[%s8817_s4 + $0x368] sm:$0xff]  ;;  %v5559_v9 = vld [vmem:[%s8817_s4 + $0x260] sm:$0xff] }
 0xef8   :  { %5659 = vmatpush.msra.mxu2 %v5522_v0  ;;  %5679 = vmatpush.msra.mxu0 %v5538_v33  ;;  %v5608_v32 = vld [vmem:[%s8817_s4 + $0x3e8] sm:$0xff]  ;;  %v5575_v0 = vld [vmem:[%s8817_s4 + $0x2e0] sm:$0xff] }
 0xef9   :  { %5620 = vmatpush.msrb.mxu1 %v5489_v57  ;;  %5640 = vmatpush.msra.mxu3 %v5505_v36  ;;  %v5591_v33 = vld [vmem:[%s8817_s4 + $0x360] sm:$0xff]  ;;  %v5558_v57 = vld [vmem:[%s8817_s4 + $0x258] sm:$0xff] }
 0xefa   :  { %5439 = vmax.xlane.f32.xlu0 %v5438_v11  ;;  %v5521_v11 = vld [vmem:[%s8817_s4 + $0x130] sm:$0xff]  ;;  %v5574_v36 = vld [vmem:[%s8817_s4 + $0x2d8] sm:$0xff] }
 0xefb   :  { %5660 = vmatpush.msra.mxu2 %v5521_v11  ;;  %v5590_v11 = vld [vmem:[%s8817_s4 + $0x358] sm:$0xff] }
 0xf65   :  { %v5408_v53 = vpop.xlane.xlu0 %5407 }
 0xf66   :  { %v5409_v22 = vrot.slane %v5408_v53, 4 }
 0xf68   :  { %v5410_v51 = vmin.f32 %v5408_v53, %v5409_v22  ;;  %v5537_v53 = vld [vmem:[%s8817_s4 + $0x1b0] sm:$0xff]  ;;  %v5488_v22 = vld [vmem:[%s8817_s4 + $0x28] sm:$0xff] }
 0xf69   :  { %5680 = vmatpush.msra.mxu0 %v5537_v53  ;;  %5621 = vmatpush.msrb.mxu1 %v5488_v22  ;;  %v5606_v53 = vld [vmem:[%s8817_s4 + $0x3d8] sm:$0xff]  ;;  %v5557_v22 = vld [vmem:[%s8817_s4 + $0x250] sm:$0xff] }
 0xf6a   :  { %v5411_v24 = vrot.slane %v5410_v51, 2 }
 0xf6c   :  { %v5412_v45 = vmin.f32 %v5410_v51, %v5411_v24  ;;  %v5504_v51 = vld [vmem:[%s8817_s4 + $0xa8] sm:$0xff] }
 0xf6d   :  { %v5440_v10 = vpop.xlane.xlu0 %5439  ;;  %v5520_v24 = vld [vmem:[%s8817_s4 + $0x128] sm:$0xff]  ;;  %5641 = vmatpush.msra.mxu3 %v5504_v51  ;;  %v5573_v51 = vld [vmem:[%s8817_s4 + $0x2d0] sm:$0xff] }
 0xf6e   :  { %v5441_v37 = vrot.slane %v5440_v10, 4  ;;  %v5413_v31 = vrot.slane %v5412_v45, 1  ;;  %5661 = vmatpush.msra.mxu2 %v5520_v24  ;;  %v5589_v24 = vld [vmem:[%s8817_s4 + $0x350] sm:$0xff] }
 0xf70   :  { %v5442_v58 = vmax.f32 %v5440_v10, %v5441_v37  ;;  %v5414_v44 = vmin.f32 %v5412_v45, %v5413_v31  ;;  %v5536_v45 = vld [vmem:[%s8817_s4 + $0x1a8] sm:$0xff]  ;;  %v5487_v10 = vld [vmem:[%s8817_s4 + $0x20] sm:$0xff] }
 0xf71   :  { %v5503_v37 = vld [vmem:[%s8817_s4 + $0xa0] sm:$0xff]  ;;  %5681 = vmatpush.msra.mxu0 %v5536_v45  ;;  %5622 = vmatpush.msrb.mxu1 %v5487_v10  ;;  %v5605_v45 = vld [vmem:[%s8817_s4 + $0x3d0] sm:$0xff]  ;;  %v5556_v10 = vld [vmem:[%s8817_s4 + $0x248] sm:$0xff] }
 0xf72   :  { %v5443_v6 = vrot.slane %v5442_v58, 2  ;;  %5958 = vpush %v5414_v44  ;;  %v5519_v31 = vld [vmem:[%s8817_s4 + $0x120] sm:$0xff]  ;;  %v5486_v44 = vld [vmem:[%s8817_s4 + $0x18] sm:$0xff]  ;;  %5642 = vmatpush.msra.mxu3 %v5503_v37  ;;  %v5572_v37 = vld [vmem:[%s8817_s4 + $0x2c8] sm:$0xff] }
 0xf73   :  { %5662 = vmatpush.msra.mxu2 %v5519_v31  ;;  %5623 = vmatpush.msrb.mxu1 %v5486_v44  ;;  %v5588_v31 = vld [vmem:[%s8817_s4 + $0x348] sm:$0xff]  ;;  %v5555_v44 = vld [vmem:[%s8817_s4 + $0x240] sm:$0xff] }
 0xf74   :  { %v5444_v62 = vmax.f32 %v5442_v58, %v5443_v6  ;;  %v5535_v58 = vld [vmem:[%s8817_s4 + $0x1a0] sm:$0xff]  ;;  %v5502_v6 = vld [vmem:[%s8817_s4 + $0x98] sm:$0xff] }
 0xf75   :  { %5682 = vmatpush.msra.mxu0 %v5535_v58  ;;  %5643 = vmatpush.msra.mxu3 %v5502_v6  ;;  %v5604_v58 = vld [vmem:[%s8817_s4 + $0x3c8] sm:$0xff]  ;;  %v5571_v6 = vld [vmem:[%s8817_s4 + $0x2c0] sm:$0xff] }
 0xf76   :  { %v5445_v41 = vrot.slane %v5444_v62, 1  ;;  %5624 = vmatpush.msrb.mxu1 %v5485_v61  ;;  %v5586_v61 = vld [vmem:[%s8817_s4 + $0x338] sm:$0xff] }
 0xf77   :  { %5644 = vmatpush.msra.mxu3 %v5501_v42  ;;  %v5602_v42 = vld [vmem:[%s8817_s4 + $0x3b8] sm:$0xff] }
 0xf78   :  { %v5446_v54 = vmax.f32 %v5444_v62, %v5445_v41  ;;  %v5518_v41 = vld [vmem:[%s8817_s4 + $0x118] sm:$0xff]  ;;  %5625 = vmatpush.msrb.mxu1 %v5484_v21  ;;  %v5601_v21 = vld [vmem:[%s8817_s4 + $0x3b0] sm:$0xff] }
 0xf79   :  { %5663 = vmatpush.msra.mxu2 %v5518_v41  ;;  %5645 = vmatpush.msra.mxu3 %v5500_v28  ;;  %v5603_v41 = vld [vmem:[%s8817_s4 + $0x3c0] sm:$0xff]  ;;  %v5552_v28 = vld [vmem:[%s8817_s4 + $0x228] sm:$0xff] }
 0xf7a   :  { %5960 = vpush %v5446_v54  ;;  %v5534_v54 = vld [vmem:[%s8817_s4 + $0x198] sm:$0xff]  ;;  %5626 = vmatpush.msrb.mxu1 %v5483_v7  ;;  %v5583_v7 = vld [vmem:[%s8817_s4 + $0x320] sm:$0xff] }
 0xf7b   :  { %5683 = vmatpush.msra.mxu0 %v5534_v54  ;;  %5664 = vmatpush.msra.mxu2 %v5517_v20  ;;  %v5554_v54 = vld [vmem:[%s8817_s4 + $0x238] sm:$0xff]  ;;  %v5553_v20 = vld [vmem:[%s8817_s4 + $0x230] sm:$0xff] }
 0xf7c   :  { %5646 = vmatpush.msra.mxu3 %v5499_v16  ;;  %5691 = vmatpush.msra.mxu1 %v5562_v47  ;;  %v5599_v16 = vld [vmem:[%s8817_s4 + $0x3a0] sm:$0xff]  ;;  %v5598_v47 = vld [vmem:[%s8817_s4 + $0x398] sm:$0xff] }
 0xf7d   :  { %5684 = vmatpush.msra.mxu0 %v5533_v38  ;;  %5665 = vmatpush.msra.mxu2 %v5516_v17  ;;  %v5569_v38 = vld [vmem:[%s8817_s4 + $0x2b0] sm:$0xff]  ;;  %v5584_v17 = vld [vmem:[%s8817_s4 + $0x328] sm:$0xff] }
 0xf7e   :  { %5711 = vmatpush.msrb.mxu3 %v5578_v63  ;;  %5692 = vmatpush.msra.mxu1 %v5561_v30  ;;  %v5549_v63 = vld [vmem:[%s8817_s4 + $0x210] sm:$0xff]  ;;  %v5564_v30 = vld [vmem:[%s8817_s4 + $0x288] sm:$0xff] }
 0xf7f   :  { %5685 = vmatpush.msra.mxu0 %v5532_v5  ;;  %5666 = vmatpush.msra.mxu2 %v5515_v34  ;;  %v5600_v5 = vld [vmem:[%s8817_s4 + $0x3a8] sm:$0xff]  ;;  %v5550_v34 = vld [vmem:[%s8817_s4 + $0x218] sm:$0xff] }
 0xf80   :  { %5712 = vmatpush.msrb.mxu3 %v5577_v48  ;;  %5693 = vmatpush.msra.mxu1 %v5560_v1  ;;  %v5580_v48 = vld [vmem:[%s8817_s4 + $0x308] sm:$0xff]  ;;  %v5579_v1 = vld [vmem:[%s8817_s4 + $0x300] sm:$0xff] }
 0xf81   :  { %5686 = vmatpush.msra.mxu0 %v5531_v13  ;;  %5731 = vmatpush.msrb.mxu2 %v5594_v55  ;;  %v5566_v13 = vld [vmem:[%s8817_s4 + $0x298] sm:$0xff]  ;;  %v5581_v55 = vld [vmem:[%s8817_s4 + $0x310] sm:$0xff] }
 0xf82   :  { %5713 = vmatpush.msrb.mxu3 %v5576_v3  ;;  %5694 = vmatpush.msra.mxu1 %v5559_v9  ;;  %v5595_v3 = vld [vmem:[%s8817_s4 + $0x380] sm:$0xff] }
 0xf83   :  { %5751 = vmatpush.msrb.mxu0 %v5610_v49  ;;  %5732 = vmatpush.msrb.mxu2 %v5593_v43  ;;  %v5597_v49 = vld [vmem:[%s8817_s4 + $0x390] sm:$0xff]  ;;  %v5547_v43 = vld [vmem:[%s8817_s4 + $0x200] sm:$0xff] }
 0xf84   :  { %5714 = vmatpush.msrb.mxu3 %v5575_v0  ;;  %5695 = vmatpush.msra.mxu1 %v5558_v57 }
 0xf85   :  { %5752 = vmatpush.msrb.mxu0 %v5609_v46  ;;  %5733 = vmatpush.msrb.mxu2 %v5592_v56  ;;  %v5563_v46 = vld [vmem:[%s8817_s4 + $0x280] sm:$0xff] }
 0xf86   :  { %5715 = vmatpush.msrb.mxu3 %v5574_v36  ;;  %5696 = vmatpush.msra.mxu1 %v5557_v22 }
 0xf87   :  { %5753 = vmatpush.msrb.mxu0 %v5608_v32  ;;  %5734 = vmatpush.msrb.mxu2 %v5591_v33 }
 0xf88   :  { %5716 = vmatpush.msrb.mxu3 %v5573_v51  ;;  %5697 = vmatpush.msra.mxu1 %v5556_v10 }
 0xf89   :  { %5735 = vmatpush.msrb.mxu2 %v5590_v11 }
 0xf8a   :  { %5717 = vmatpush.msrb.mxu3 %v5572_v37  ;;  %5698 = vmatpush.msra.mxu1 %v5555_v44 }
 0xf8b   :  { %5736 = vmatpush.msrb.mxu2 %v5589_v24 }
 0xf8c   :  { %5718 = vmatpush.msrb.mxu3 %v5571_v6  ;;  %5699 = vmatpush.msra.mxu1 %v5554_v54 }
 0xf8d   :  { %5737 = vmatpush.msrb.mxu2 %v5588_v31 }
 0xf8e   :  { %5700 = vmatpush.msra.mxu1 %v5553_v20 }
 0xf90   :  { %5701 = vmatpush.msra.mxu1 %v5552_v28 }
 0xfa3   :  { %s8542_s22 = spop %5958 }
 0xfa4   :  { %v5448_v56 = vstv %s8542_s22 }
 0xfa5   :  { %v5449_v32 = vsub.f32 %v8404_v39, %v5448_v56  ;;  %v5450_v9 = vsub.f32 %v8422_v18, %v5448_v56  ;;  %v5451_v0 = vsub.f32 %v8475_v50, %v5448_v56  ;;  %v5452_v33 = vsub.f32 %v8478_v59, %v5448_v56 }
 0xfa6   :  { %v5453_v22 = vsub.f32 %v8470_v15, %v5448_v56  ;;  %v5454_v51 = vsub.f32 %v8468_v19, %v5448_v56  ;;  %v5455_v39 = vsub.f32 %v8472_v26, %v5448_v56  ;;  %v5456_v18 = vsub.f32 %v8482_v4, %v5448_v56 }
 0xfab   :  { %s5961_s23 = spop %5960 }
 0xfac   :  { %s5457_s29 = ssub.f32 %s5961_s23, %s8542_s22 }
 0xfae   :  { %v8553_v8 = vstv %s5457_s29 }
 0xfaf   :  { %6207 = vrcp.f32 %v8553_v8  ;;  %v5470_v12 = vand.u32 2147483648, %v8553_v8  ;;  %v5468_v27 = vand.u32 2147483647, %v8553_v8  ;;  %vm5464_vm2 = vweird.f32 %v8553_v8 }
 0xfb1   :  { %v5471_v14 = vor.u32 1.1754944e-38, %v5470_v12  ;;  %vm5469_vm10 = vcmp.eq.f32.partialorder %v5468_v27, 8.507059e+37  ;;  %v5568_v12 = vld [vmem:[%s8817_s4 + $0x2a8] sm:$0xff]  ;;  %v5567_v27 = vld [vmem:[%s8817_s4 + $0x2a0] sm:$0xff] }
 0xfb5   :  { %v6208_v62 = vpop.eup %6207 }
 0xfb6   :  { %v5460_v25 = vmul.f32 %v6208_v62, %v8553_v8  ;;  %vm5465_vm3 = vweird.f32 %v6208_v62  ;;  %v5607_v8 = vld [vmem:[%s8817_s4 + $0x3e0] sm:$0xff] }
 0xfb7   :  { %vm5466_vm1 = vmor %vm5464_vm2, %vm5465_vm3  ;;  %5754 = vmatpush.msrb.mxu0 %v5607_v8 }
 0xfb8   :  { %v5461_v40 = vsub.f32 1.0, %v5460_v25  ;;  %v5570_v25 = vld [vmem:[%s8817_s4 + $0x2b8] sm:$0xff] }
 0xfb9   :  { %5755 = vmatpush.msrb.mxu0 %v5606_v53  ;;  %5719 = vmatpush.msrb.mxu3 %v5570_v25 }
 0xfba   :  { %v5462_v60 = vmul.f32 %v6208_v62, %v5461_v40  ;;  %v5585_v40 = vld [vmem:[%s8817_s4 + $0x330] sm:$0xff] }
 0xfbb   :  { %5756 = vmatpush.msrb.mxu0 %v5605_v45  ;;  %5720 = vmatpush.msrb.mxu3 %v5569_v38 }
 0xfbc   :  { %v5463_v23 = vadd.f32 %v6208_v62, %v5462_v60  ;;  %v5551_v60 = vld [vmem:[%s8817_s4 + $0x220] sm:$0xff] }
 0xfbd   :  { %5757 = vmatpush.msrb.mxu0 %v5604_v58  ;;  %5721 = vmatpush.msrb.mxu3 %v5568_v12 }
 0xfbe   :  { %v5467_v35 = vsel %vm5466_vm1, %v6208_v62, %v5463_v23  ;;  %v5587_v62 = vld [vmem:[%s8817_s4 + $0x340] sm:$0xff]  ;;  %5702 = vmatpush.msra.mxu1 %v5551_v60  ;;  %v5582_v23 = vld [vmem:[%s8817_s4 + $0x318] sm:$0xff] }
 0xfbf   :  { %v5472_v52 = vsel %vm5469_vm10, %v5471_v14, %v5467_v35  ;;  %5738 = vmatpush.msrb.mxu2 %v5587_v62  ;;  %5758 = vmatpush.msrb.mxu0 %v5603_v41  ;;  %v5565_v14 = vld [vmem:[%s8817_s4 + $0x290] sm:$0xff]  ;;  %v5548_v35 = vld [vmem:[%s8817_s4 + $0x208] sm:$0xff] }
 0xfc0   :  { %5962 = vpush %v5472_v52  ;;  %5722 = vmatpush.msrb.mxu3 %v5567_v27  ;;  %5703 = vmatpush.msra.mxu1 %v5550_v34  ;;  %v5596_v52 = vld [vmem:[%s8817_s4 + $0x388] sm:$0xff] }
 0xfc1   :  { %5739 = vmatpush.msrb.mxu2 %v5586_v61  ;;  %5759 = vmatpush.msrb.mxu0 %v5602_v42  ;;  %v5773_v42 = vperm.slane %v7144_v2, 0 }
 0xfc2   :  { %5723 = vmatpush.msrb.mxu3 %v5566_v13  ;;  %5704 = vmatpush.msra.mxu1 %v5549_v63 }
 0xfc3   :  { %5740 = vmatpush.msrb.mxu2 %v5585_v40  ;;  %5760 = vmatpush.msrb.mxu0 %v5601_v21 }
 0xfc4   :  { %5724 = vmatpush.msrb.mxu3 %v5565_v14  ;;  %5705 = vmatpush.msra.mxu1 %v5548_v35 }
 0xfc5   :  { %5741 = vmatpush.msrb.mxu2 %v5584_v17  ;;  %5761 = vmatpush.msrb.mxu0 %v5600_v5 }
 0xfc6   :  { %5725 = vmatpush.msrb.mxu3 %v5564_v30  ;;  %5706 = vmatpush.msra.mxu1 %v5547_v43 }
 0xfc7   :  { %5742 = vmatpush.msrb.mxu2 %v5583_v7  ;;  %5762 = vmatpush.msrb.mxu0 %v5599_v16 }
 0xfc8   :  { %5726 = vmatpush.msrb.mxu3 %v5563_v46 }
 0xfc9   :  { %5743 = vmatpush.msrb.mxu2 %v5582_v23  ;;  %5763 = vmatpush.msrb.mxu0 %v5598_v47 }
 0xfcb   :  { %5744 = vmatpush.msrb.mxu2 %v5581_v55  ;;  %5764 = vmatpush.msrb.mxu0 %v5597_v49 }
 0xfcd   :  { %5745 = vmatpush.msrb.mxu2 %v5580_v48  ;;  %5765 = vmatpush.msrb.mxu0 %v5596_v52 }
 0xfcf   :  { %5746 = vmatpush.msrb.mxu2 %v5579_v1  ;;  %5766 = vmatpush.msrb.mxu0 %v5595_v3 }
 0xff1   :  { %s5963_s28 = spop %5962 }
 0xff2   :  { %v5474_v8 = vstv %s5963_s28 }
 0xff3   :  { %v5475_v57 = vmul.f32 %v5474_v8, %v5449_v32  ;;  %v5476_v36 = vmul.f32 %v5474_v8, %v5450_v9  ;;  %v5477_v11 = vmul.f32 %v5474_v8, %v5451_v0  ;;  %v5478_v53 = vmul.f32 %v5474_v8, %v5452_v33 }
 0xff4   :  { %v5479_v50 = vmul.f32 %v5474_v8, %v5453_v22  ;;  %v5480_v24 = vmul.f32 %v5474_v8, %v5454_v51  ;;  %v5481_v59 = vmul.f32 %v5474_v8, %v5455_v39  ;;  %v5482_v45 = vmul.f32 %v5474_v8, %v5456_v18 }
 0xff5   :  { %5627 = vmatmul.f32.vlgmr.msrb.gmra.mxu1 %v5475_v57  ;;  %5647 = vmatmul.f32.vlgmr.msra.gmra.mxu3 %v5476_v36 }
 0xff6   :  { %5667 = vmatmul.f32.vlgmr.msra.gmra.mxu2 %v5477_v11  ;;  %5687 = vmatmul.f32.vlgmr.msra.gmra.mxu0 %v5478_v53 }
 0xffd   :  { %5707 = vmatmul.f32.vlgmr.msra.gmra.mxu1 %v5479_v50  ;;  %5727 = vmatmul.f32.vlgmr.msrb.gmra.mxu3 %v5480_v24 }
 0xffe   :  { %5747 = vmatmul.f32.vlgmr.msrb.gmra.mxu2 %v5481_v59  ;;  %5767 = vmatmul.f32.vlgmr.msrb.gmra.mxu0 %v5482_v45 }
0x1072   :  { %v5628_v10 = vpop.f32.mrf.mxu1 }
0x1073   :  { %v5688_v15 = vpop.f32.mrf.mxu0 }
0x1078   :  { %v5648_v37 = vpop.f32.mrf.mxu3 }
0x1079   :  { %v5649_v31 = vadd.f32 %v5648_v37, %v5628_v10  ;;  %v5668_v58 = vpop.f32.mrf.mxu2 }
0x107a   :  { %v5708_v6 = vpop.f32.mrf.mxu1 }
0x107b   :  { %v5669_v44 = vadd.f32 %v5668_v58, %v5649_v31  ;;  %v5768_v25 = vpop.f32.mrf.mxu0 }
0x107d   :  { %v5689_v19 = vadd.f32 %v5688_v15, %v5669_v44 }
0x107f   :  { %v5709_v26 = vadd.f32 %v5708_v6, %v5689_v19 }
0x1080   :  { %v5728_v62 = vpop.f32.mrf.mxu3 }
0x1081   :  { %v5729_v4 = vadd.f32 %v5728_v62, %v5709_v26  ;;  %v5748_v41 = vpop.f32.mrf.mxu2 }
0x1083   :  { %v5749_v54 = vadd.f32 %v5748_v41, %v5729_v4 }
0x1085   :  { %v5769_v61 = vadd.f32 %v5768_v25, %v5749_v54 }
0x1087   :  { %v5771_v20 = vadd.f32 %v5769_v61, %v8366_v29 }
0x1089   :  { %v5775_v38 = vadd.f32 %v5773_v42, %v5771_v20 }
0x108b   :  { %5777 = vst.msk [vmem:[#allocation37] sm:$0x3] %vm5776_vm9, %v5775_v38 }
0x108c   :  { %6773 = shalt.err (!%p6770_p2)
}
0x108d   :  { %5788 = dma.vmem_to_hbm [thread:$0]  %s5784_s5, 32, %s5786_s26, [#allocation6]  }
0x108e   :  { %6798 = dma.done.wait [#allocation6], 32  }
0x108f   :  { %6799 = vsyncadd [#allocation6], 4294967264 }
0x1090   :  { %5793 = vsyncpa [#allocation5], 1 }
0x1091   :  { %5794 = vsyncpa [#allocation8], 1 }
0x1092   :  { %5795 = vsyncpa [#allocation11], 1 }
0x1093   :  { %5796 = vsyncpa [#allocation14], 1 }
0x1094   :  { %5797 = vsyncpa [#allocation17], 1 }
0x1095   :  { %5798 = vsyncpa [#allocation20], 1 }
0x1096   :  { %5799 = vsyncpa [#allocation23], 1 }
0x1097   :  { %5800 = vsyncpa [#allocation26], 1 }
0x1098   :  { %5801 = vsyncpa [#allocation29], 1 }
0x1099   :  { %5802 = vsyncpa [#allocation32], 1 }
0x109a   :  { %5803 = vsyncpa [#allocation35], 1 }
0x109b   :  { %5804 = vsyncpa [#allocation6], 1 }
0x109c   :  { %5805 = vsyncmov [#allocation3] }
0x109f   :  { %s5806_s9 = vpop.sfrf %5805 }
0x10a0   :  { %p5939_p3 = scmp.ne.s32.totalorder %s5806_s9, 0 }
0x10a2   :  { %5810 = shalt.err (%p5939_p3)  }

</bundles_post_ra>
